<compile_context>
chip_gen: v5e
topology: v5e:2x2
jax: 0.10.0
libtpu: 0.0.40
codegen_flags: <defaults>
</compile_context>

<pallas_src>
import functools

import jax
import jax.numpy as jnp
from jax.experimental import pallas as pl
from jax.experimental.pallas import tpu as pltpu

NUM_FILTERS = 64
NEG_SLOPE = 0.01          # nn.LeakyReLU default negative_slope
BN_EPS = 1e-5
N_RES = 5


def _round_up(x, m):
    return ((x + m - 1) // m) * m


def _layout_dims(H, W):
    Hp, Wp = H + 2, W + 2
    plane = Hp * Wp                        # rows of one zero-padded board grid
    margin = _round_up(Wp + 1, 8)          # 8-aligned halo >= largest 3x3 tap offset (Wp+1)
    planep = _round_up(plane, 8)           # live(+alignment) rows computed per board
    rows = margin + planep + margin        # per-board row count (multiple of 8)
    return Hp, Wp, plane, margin, planep, rows


# --------------------------------------------------------------------------
# Fused kernel: one board (one grid step) = full forward pass
# --------------------------------------------------------------------------
def resnet8_kernel(x_ref, mask_ref,
                   w_in_ref, b_in_ref, w_res_ref, b_res_ref,
                   w_heads_ref, b_heads_ref,
                   w_vfc1_ref, b_vfc1_ref, w_vfc2_ref, b_vfc2_ref,
                   w_pfc_ref, b_pfc_ref,
                   policy_ref, value_ref,
                   act_ref,
                   *, wpad, margin, planep, n_res):
    """Row layout (per board): r = margin + y*wpad + x on the (H+2)x(W+2) padded grid.

    Border rows of the activation are held at zero and ARE the convs' 'same' zero padding,
    so each 3x3 tap is a constant row offset and a conv is 9 accumulating MXU dots straight
    off the scratch ref (no im2col copies).  Rows outside the live plane (halo / alignment
    rows) are only ever read into conv outputs that the interior mask discards, so their
    contents are don't-care and the scratch needs no zero-fill.
    """
    offs = [(dy - 1) * wpad + (dx - 1) for dy in range(3) for dx in range(3)]
    interior = mask_ref[...] != 0.0                     # (planep, 1) True at real board rows

    def leaky(v):                                       # LeakyReLU as mul+max (one VPU op)
        return jnp.maximum(v, NEG_SLOPE * v)

    def conv3x3(src_ref, tap_weight, bias_row):
        # 'same' 3x3 conv over the planep rows: 9 bf16 MXU dots, f32 accumulation.
        acc = bias_row                                  # (1, Cout) broadcasts over rows
        for t, off in enumerate(offs):
            tap = src_ref[margin + off: margin + off + planep, :].astype(jnp.bfloat16)
            acc = acc + jnp.dot(tap, tap_weight(t), preferred_element_type=jnp.float32)
        return acc

    # ---- conv_in (Conv+BN folded, LeakyReLU); mask keeps the padding ring at exactly 0
    y = leaky(conv3x3(x_ref, lambda t: w_in_ref[t], b_in_ref[...]))
    act_ref[margin:margin + planep, :] = jnp.where(interior, y, 0.0)

    # ---- residual tower: v = v + ConvBlock_i(v), i = 1..n_res
    for i in range(n_res):
        prev = act_ref[margin:margin + planep, :]
        y = leaky(conv3x3(act_ref, lambda t, i=i: w_res_ref[i, t], b_res_ref[i])) + prev
        act_ref[margin:margin + planep, :] = jnp.where(interior, y, 0.0)

    proc = act_ref[margin:margin + planep, :]           # processed_board rows (planep, 64)

    # ---- both 1x1 head ConvBlocks fused into one (planep,64)x(64,3) dot:
    #      column 0 = value conv, columns 1..2 = policy conv channels.
    hc = leaky(jnp.dot(proc, w_heads_ref[...], preferred_element_type=jnp.float32)
               + b_heads_ref[...])                      # (planep, 3)

    # ---- value head: flatten folded into w_vfc1 (zero rows at padding/alignment positions)
    h = leaky(jnp.dot(w_vfc1_ref[...], hc[:, 0:1], preferred_element_type=jnp.float32)
              + b_vfc1_ref[...])                        # (20, 1)
    v = jnp.dot(w_vfc2_ref[...], h, preferred_element_type=jnp.float32) + b_vfc2_ref[...]
    value_ref[...] = jnp.tanh(v).reshape(1, 1, 1)

    # ---- policy head: channel-major flatten folded into w_pfc; EXACT softmax normalization
    logits = (jnp.dot(w_pfc_ref[0], hc[:, 1:2], preferred_element_type=jnp.float32)
              + jnp.dot(w_pfc_ref[1], hc[:, 2:3], preferred_element_type=jnp.float32)
              + b_pfc_ref[...])                         # (P, 1)
    e = jnp.exp(logits - jnp.max(logits, axis=0, keepdims=True))
    probs = e / jnp.sum(e, axis=0, keepdims=True)       # exact division -> rows sum to 1
    policy_ref[...] = probs.reshape(1, -1, 1)


# --------------------------------------------------------------------------
# Glue: one pallas_call, grid over boards
# --------------------------------------------------------------------------
def resnet8_forward(x_nchw, kparams):
    """Forward pass matching ResNet8Network.forward; returns (policy, value)."""
    B, Cin, H, W = x_nchw.shape
    Hp, Wp, plane, margin, planep, rows = _layout_dims(H, W)
    assert margin >= Wp + 1                     # halo covers the largest 3x3 tap offset
    P = kparams["b_pfc"].shape[0]

    # Input glue (no 9x im2col): NCHW -> NHWC -> per-board padded-grid row layout with zero
    # halo rows (the zero ring at the border is the first conv's 'same' padding).
    x = jnp.transpose(x_nchw, (0, 2, 3, 1)).astype(jnp.float32)
    xp = jnp.pad(x, ((0, 0), (1, 1), (1, 1), (0, 0)))               # (B, Hp, Wp, Cin)
    xrows = xp.reshape(B, plane, Cin)
    xrows = jnp.pad(xrows, ((0, 0), (margin, rows - margin - plane), (0, 0)))
    x_flat = xrows.reshape(B * rows, Cin)

    # interior-row mask: 1 at real board positions, 0 at padding ring / alignment rows
    mask = jnp.pad(jnp.ones((H, W), jnp.float32), ((1, 1), (1, 1))).reshape(plane, 1)
    mask = jnp.pad(mask, ((0, planep - plane), (0, 0)))             # (planep, 1)

    kernel = functools.partial(resnet8_kernel, wpad=Wp, margin=margin,
                               planep=planep, n_res=N_RES)

    def _full(shape):                    # whole array resident in VMEM, fetched once
        zeros = (0,) * len(shape)
        return pl.BlockSpec(shape, lambda b: zeros)

    policy3, value3 = pl.pallas_call(
        kernel,
        grid=(B,),
        out_shape=(jax.ShapeDtypeStruct((B, P, 1), jnp.float32),
                   jax.ShapeDtypeStruct((B, 1, 1), jnp.float32)),
        in_specs=[
            pl.BlockSpec((rows, Cin), lambda b: (b, 0)),            # per-board input rows
            _full((planep, 1)),                                     # interior mask
            _full((9, Cin, NUM_FILTERS)),                           # w_in   (bf16)
            _full((1, NUM_FILTERS)),                                # b_in
            _full((N_RES, 9, NUM_FILTERS, NUM_FILTERS)),            # w_res  (bf16)
            _full((N_RES, 1, NUM_FILTERS)),                         # b_res
            _full((NUM_FILTERS, 3)),                                # w_heads (1x1 convs fused)
            _full((1, 3)),                                          # b_heads
            _full((20, planep)),                                    # w_vfc1 (flatten folded)
            _full((20, 1)),                                         # b_vfc1
            _full((1, 20)),                                         # w_vfc2
            _full((1, 1)),                                          # b_vfc2
            _full((2, P, planep)),                                  # w_pfc  (flatten folded)
            _full((P, 1)),                                          # b_pfc
        ],
        out_specs=(pl.BlockSpec((1, P, 1), lambda b: (b, 0, 0)),
                   pl.BlockSpec((1, 1, 1), lambda b: (b, 0, 0))),
        scratch_shapes=[pltpu.VMEM((rows, NUM_FILTERS), jnp.float32)],   # per-board activation
        compiler_params=pltpu.CompilerParams(
            dimension_semantics=("parallel",)),        # boards independent -> dual-TC on v7x
    )(x_flat, mask,
      kparams["w_in"], kparams["b_in"], kparams["w_res"], kparams["b_res"],
      kparams["w_heads"], kparams["b_heads"],
      kparams["w_vfc1"], kparams["b_vfc1"], kparams["w_vfc2"], kparams["b_vfc2"],
      kparams["w_pfc"], kparams["b_pfc"])

    return policy3.reshape(B, P), value3.reshape(B, 1)


# --------------------------------------------------------------------------
# Parameter construction (deterministic) + repacking into kernel layouts
# --------------------------------------------------------------------------
def _fold_bn(w_taps, b, gamma, beta, mean, var, eps=BN_EPS):
    scale = gamma / jnp.sqrt(var + eps)
    return w_taps * scale, ((b - mean) * scale + beta).reshape(1, -1)


def init_conv_block(key, cin, cout, K):
    w = jax.random.normal(key, (K * K, cin, cout), jnp.float32) / jnp.sqrt(cin * K * K)
    b = jnp.zeros((cout,), jnp.float32)          # Conv2d bias init: constant 0
    gamma = jnp.ones((cout,), jnp.float32)       # BatchNorm2d eval-mode defaults
    beta = jnp.zeros((cout,), jnp.float32)
    mean = jnp.zeros((cout,), jnp.float32)
    var = jnp.ones((cout,), jnp.float32)
    return _fold_bn(w, b, gamma, beta, mean, var)


def init_linear(key, din, dout):
    kw, kb = jax.random.split(key)
    bound = 1.0 / float(din) ** 0.5
    return (jax.random.uniform(kw, (din, dout), jnp.float32, -bound, bound),
            jax.random.uniform(kb, (1, dout), jnp.float32, -bound, bound))


def init_params(key, in_channels, H, W, num_points):
    keys = jax.random.split(key, 11)
    p = {"conv_in": init_conv_block(keys[0], in_channels, NUM_FILTERS, 3)}
    for i in range(1, 6):
        p[f"conv_{i}"] = init_conv_block(keys[i], NUM_FILTERS, NUM_FILTERS, 3)
    p["conv_value"] = init_conv_block(keys[6], NUM_FILTERS, 1, 1)
    p["conv_policy"] = init_conv_block(keys[7], NUM_FILTERS, 2, 1)
    p["value_fc1"] = init_linear(keys[8], 1 * H * W, 20)
    p["value_fc2"] = init_linear(keys[9], 20, 1)
    p["policy_fc"] = init_linear(keys[10], 2 * H * W, num_points)
    return p


def prepare_params(params, H, W):
    """Repack parameters into the fused-kernel layouts (done once, outside the kernel)."""
    Hp, Wp, plane, margin, planep, rows = _layout_dims(H, W)
    HW = H * W

    def fold_flatten(w):
        # (HW, dout) -> (dout, planep): fold the torch .view(B, -1) flatten into the linear
        # weight, zero rows at padding-ring / alignment-row positions.
        dout = w.shape[-1]
        wsp = jnp.pad(w.reshape(H, W, dout), ((1, 1), (1, 1), (0, 0))).reshape(plane, dout)
        return jnp.pad(wsp, ((0, planep - plane), (0, 0))).T

    w_in, b_in = params["conv_in"]                                   # (9, Cin, 64), (1, 64)
    w_res = jnp.stack([params[f"conv_{i}"][0] for i in range(1, 6)]) # (5, 9, 64, 64)
    b_res = jnp.stack([params[f"conv_{i}"][1] for i in range(1, 6)]) # (5, 1, 64)
    wv, bv = params["conv_value"]                                    # (1, 64, 1), (1, 1)
    wp_, bp_ = params["conv_policy"]                                 # (1, 64, 2), (1, 2)
    w1, b1 = params["value_fc1"]                                     # (HW, 20), (1, 20)
    w2, b2 = params["value_fc2"]                                     # (20, 1), (1, 1)
    wpf, bpf = params["policy_fc"]                                   # (2*HW, P), (1, P)

    return {
        # body conv weights as bf16 MXU operands (f32 accumulation in-kernel)
        "w_in": w_in.astype(jnp.bfloat16),
        "b_in": b_in,
        "w_res": w_res.astype(jnp.bfloat16),
        "b_res": b_res,
        # both 1x1 head convs fused: columns = [value, policy_ch0, policy_ch1]
        "w_heads": jnp.concatenate(
            [wv.reshape(NUM_FILTERS, 1), wp_.reshape(NUM_FILTERS, 2)], axis=1),   # (64, 3)
        "b_heads": jnp.concatenate([bv, bp_], axis=1),                            # (1, 3)
        "w_vfc1": fold_flatten(w1),                  # (20, planep)
        "b_vfc1": b1.reshape(-1, 1),                 # (20, 1)
        "w_vfc2": w2.T,                              # (1, 20)
        "b_vfc2": b2.reshape(1, 1),                  # (1, 1)
        "w_pfc": jnp.stack([fold_flatten(wpf[c * HW:(c + 1) * HW, :])
                            for c in range(2)]),     # (2, P, planep)
        "b_pfc": bpf.reshape(-1, 1),                 # (P, 1)
    }


# --------------------------------------------------------------------------
# Pure-JAX f32 reference (layer-by-layer) for correctness checking
# --------------------------------------------------------------------------
def resnet8_reference(x_nchw, params):
    x = jnp.transpose(x_nchw, (0, 2, 3, 1)).astype(jnp.float32)
    B = x.shape[0]

    def leaky(v):
        return jnp.where(v > 0, v, NEG_SLOPE * v)

    def conv_block(x_nhwc, w_taps, b_row, K):
        Bb, H, W, _ = x_nhwc.shape
        pad = (K - 1) // 2
        xp = jnp.pad(x_nhwc, ((0, 0), (pad, pad), (pad, pad), (0, 0)))
        Cout = w_taps.shape[-1]
        y = jnp.zeros((Bb, H, W, Cout), jnp.float32)
        t = 0
        for dy in range(K):
            for dx in range(K):
                y = y + jnp.einsum("bhwc,cd->bhwd",
                                   xp[:, dy:dy + H, dx:dx + W, :], w_taps[t])
                t += 1
        return leaky(y + b_row.reshape(1, 1, 1, -1))

    v = conv_block(x, *params["conv_in"], 3)
    for i in range(1, 6):
        v = v + conv_block(v, *params[f"conv_{i}"], 3)

    vh = conv_block(v, *params["conv_value"], 1)
    v_flat = jnp.transpose(vh, (0, 3, 1, 2)).reshape(B, -1)          # NCHW flatten order
    w1, b1 = params["value_fc1"]
    w2, b2 = params["value_fc2"]
    h = leaky(v_flat @ w1 + b1)
    value = jnp.tanh(h @ w2 + b2)

    ph = conv_block(v, *params["conv_policy"], 1)
    p_flat = jnp.transpose(ph, (0, 3, 1, 2)).reshape(B, -1)          # NCHW flatten order
    wpf, bpf = params["policy_fc"]
    policy = jax.nn.softmax(p_flat @ wpf + bpf, axis=1)
    return policy, value


# --------------------------------------------------------------------------
if __name__ == "__main__":
    B, C, H, W = 2, 4, 8, 8          # board-like input: input_shape = (4, 8, 8)
    num_points = H * W               # policy over board points

    key = jax.random.PRNGKey(0)
    k_x, k_p = jax.random.split(key)
    x = jax.random.normal(k_x, (B, C, H, W), jnp.float32)

    params = init_params(k_p, C, H, W, num_points)
    kparams = prepare_params(params, H, W)

    fwd = jax.jit(resnet8_forward)
    policy, value = fwd(x, kparams)
    jax.block_until_ready((policy, value))

    # structural checks
    assert policy.shape == (B, num_points) and value.shape == (B, 1)
    assert bool(jnp.all(jnp.isfinite(policy))) and bool(jnp.all(jnp.isfinite(value)))
    assert bool(jnp.allclose(jnp.sum(policy, axis=1), 1.0, atol=1e-3))   # exact softmax
    assert bool(jnp.all(jnp.abs(value) <= 1.0 + 1e-6))

    # cross-check against the pure-f32 layer-by-layer reference; tolerance covers the bf16
    # MXU operands used by the fused kernel's conv tower (accumulation is f32).
    p_ref, v_ref = jax.jit(resnet8_reference)(x, params)
    jax.block_until_ready((p_ref, v_ref))
    assert bool(jnp.allclose(policy, p_ref, atol=2e-2, rtol=0.0))
    assert bool(jnp.allclose(value, v_ref, atol=8e-2, rtol=0.0))

    print("KERNEL_OK")
</pallas_src>

<mosaic_0001>
module attributes {stable_mosaic.version = 11 : i64} {
  func.func @resnet8_kernel(%arg0: i32, %arg1: memref<136x4xf32, #tpu.memory_space<vmem>>, %arg2: memref<104x1xf32, #tpu.memory_space<vmem>>, %arg3: memref<9x4x64xbf16, #tpu.memory_space<vmem>>, %arg4: memref<1x64xf32, #tpu.memory_space<vmem>>, %arg5: memref<5x9x64x64xbf16, #tpu.memory_space<vmem>>, %arg6: memref<5x1x64xf32, #tpu.memory_space<vmem>>, %arg7: memref<64x3xf32, #tpu.memory_space<vmem>>, %arg8: memref<1x3xf32, #tpu.memory_space<vmem>>, %arg9: memref<20x104xf32, #tpu.memory_space<vmem>>, %arg10: memref<20x1xf32, #tpu.memory_space<vmem>>, %arg11: memref<1x20xf32, #tpu.memory_space<vmem>>, %arg12: memref<1x1xf32, #tpu.memory_space<vmem>>, %arg13: memref<2x64x104xf32, #tpu.memory_space<vmem>>, %arg14: memref<64x1xf32, #tpu.memory_space<vmem>>, %arg15: memref<1x64x1xf32, #tpu.memory_space<vmem>>, %arg16: memref<1x1x1xf32, #tpu.memory_space<vmem>>, %arg17: memref<136x64xf32, #tpu.memory_space<vmem>>) attributes {dimension_semantics = [#tpu.dimension_semantics<parallel>], iteration_bounds = array<i64: 2>, scalar_prefetch = 0 : i64, scratch_operands = 1 : i64, tpu.core_type = #tpu.core_type<tc>, window_params = [{transform_indices = @transform_0, window_bounds = array<i64: 136, 4>}, {pipeline_mode = #tpu.pipeline_mode<synchronous>, transform_indices = @transform_1, window_bounds = array<i64: 104, 1>}, {pipeline_mode = #tpu.pipeline_mode<synchronous>, transform_indices = @transform_2, window_bounds = array<i64: 9, 4, 64>}, {pipeline_mode = #tpu.pipeline_mode<synchronous>, transform_indices = @transform_3, window_bounds = array<i64: 1, 64>}, {pipeline_mode = #tpu.pipeline_mode<synchronous>, transform_indices = @transform_4, window_bounds = array<i64: 5, 9, 64, 64>}, {pipeline_mode = #tpu.pipeline_mode<synchronous>, transform_indices = @transform_5, window_bounds = array<i64: 5, 1, 64>}, {pipeline_mode = #tpu.pipeline_mode<synchronous>, transform_indices = @transform_6, window_bounds = array<i64: 64, 3>}, {pipeline_mode = #tpu.pipeline_mode<synchronous>, transform_indices = @transform_7, window_bounds = array<i64: 1, 3>}, {pipeline_mode = #tpu.pipeline_mode<synchronous>, transform_indices = @transform_8, window_bounds = array<i64: 20, 104>}, {pipeline_mode = #tpu.pipeline_mode<synchronous>, transform_indices = @transform_9, window_bounds = array<i64: 20, 1>}, {pipeline_mode = #tpu.pipeline_mode<synchronous>, transform_indices = @transform_10, window_bounds = array<i64: 1, 20>}, {pipeline_mode = #tpu.pipeline_mode<synchronous>, transform_indices = @transform_11, window_bounds = array<i64: 1, 1>}, {pipeline_mode = #tpu.pipeline_mode<synchronous>, transform_indices = @transform_12, window_bounds = array<i64: 2, 64, 104>}, {pipeline_mode = #tpu.pipeline_mode<synchronous>, transform_indices = @transform_13, window_bounds = array<i64: 64, 1>}, {transform_indices = @transform_14, window_bounds = array<i64: 1, 64, 1>}, {transform_indices = @transform_15, window_bounds = array<i64: 1, 1, 1>}]} {
    %c0 = arith.constant 0 : index
    %c0_0 = arith.constant 0 : index
    %0 = vector.load %arg2[%c0, %c0_0] : memref<104x1xf32, #tpu.memory_space<vmem>>, vector<104x1xf32>
    %cst = arith.constant 0.000000e+00 : f32
    %1 = vector.broadcast %cst : f32 to vector<104x1xf32>
    %2 = arith.cmpf one, %0, %1 : vector<104x1xf32>
    %c0_1 = arith.constant 0 : index
    %c0_2 = arith.constant 0 : index
    %3 = vector.load %arg4[%c0_1, %c0_2] : memref<1x64xf32, #tpu.memory_space<vmem>>, vector<1x64xf32>
    %c5 = arith.constant 5 : index
    %c0_3 = arith.constant 0 : index
    %4 = vector.load %arg1[%c5, %c0_3] : memref<136x4xf32, #tpu.memory_space<vmem>>, vector<104x4xf32>
    %5 = arith.truncf %4 : vector<104x4xf32> to vector<104x4xbf16>
    %c0_4 = arith.constant 0 : index
    %c0_5 = arith.constant 0 : index
    %c0_6 = arith.constant 0 : index
    %6 = vector.load %arg3[%c0_4, %c0_5, %c0_6] : memref<9x4x64xbf16, #tpu.memory_space<vmem>>, vector<1x4x64xbf16>
    %7 = vector.shape_cast %6 : vector<1x4x64xbf16> to vector<4x64xbf16>
    %cst_7 = arith.constant dense<0.000000e+00> : vector<104x64xf32>
    %8 = tpu.matmul %5, %7, %cst_7 {dimension_numbers = #tpu.dot_dimension_numbers<[1], [0], [0], [1], [0, 0, 1, 1], [], []>} : vector<104x4xbf16>, vector<4x64xbf16>, vector<104x64xf32> -> vector<104x64xf32>
    %9 = vector.broadcast %3 : vector<1x64xf32> to vector<104x64xf32>
    %10 = arith.addf %9, %8 : vector<104x64xf32>
    %c6 = arith.constant 6 : index
    %c0_8 = arith.constant 0 : index
    %11 = vector.load %arg1[%c6, %c0_8] : memref<136x4xf32, #tpu.memory_space<vmem>>, vector<104x4xf32>
    %12 = arith.truncf %11 : vector<104x4xf32> to vector<104x4xbf16>
    %c1 = arith.constant 1 : index
    %c0_9 = arith.constant 0 : index
    %c0_10 = arith.constant 0 : index
    %13 = vector.load %arg3[%c1, %c0_9, %c0_10] : memref<9x4x64xbf16, #tpu.memory_space<vmem>>, vector<1x4x64xbf16>
    %14 = vector.shape_cast %13 : vector<1x4x64xbf16> to vector<4x64xbf16>
    %cst_11 = arith.constant dense<0.000000e+00> : vector<104x64xf32>
    %15 = tpu.matmul %12, %14, %cst_11 {dimension_numbers = #tpu.dot_dimension_numbers<[1], [0], [0], [1], [0, 0, 1, 1], [], []>} : vector<104x4xbf16>, vector<4x64xbf16>, vector<104x64xf32> -> vector<104x64xf32>
    %16 = arith.addf %10, %15 : vector<104x64xf32>
    %c7 = arith.constant 7 : index
    %c0_12 = arith.constant 0 : index
    %17 = vector.load %arg1[%c7, %c0_12] : memref<136x4xf32, #tpu.memory_space<vmem>>, vector<104x4xf32>
    %18 = arith.truncf %17 : vector<104x4xf32> to vector<104x4xbf16>
    %c2 = arith.constant 2 : index
    %c0_13 = arith.constant 0 : index
    %c0_14 = arith.constant 0 : index
    %19 = vector.load %arg3[%c2, %c0_13, %c0_14] : memref<9x4x64xbf16, #tpu.memory_space<vmem>>, vector<1x4x64xbf16>
    %20 = vector.shape_cast %19 : vector<1x4x64xbf16> to vector<4x64xbf16>
    %cst_15 = arith.constant dense<0.000000e+00> : vector<104x64xf32>
    %21 = tpu.matmul %18, %20, %cst_15 {dimension_numbers = #tpu.dot_dimension_numbers<[1], [0], [0], [1], [0, 0, 1, 1], [], []>} : vector<104x4xbf16>, vector<4x64xbf16>, vector<104x64xf32> -> vector<104x64xf32>
    %22 = arith.addf %16, %21 : vector<104x64xf32>
    %c15 = arith.constant 15 : index
    %c0_16 = arith.constant 0 : index
    %23 = vector.load %arg1[%c15, %c0_16] : memref<136x4xf32, #tpu.memory_space<vmem>>, vector<104x4xf32>
    %24 = arith.truncf %23 : vector<104x4xf32> to vector<104x4xbf16>
    %c3 = arith.constant 3 : index
    %c0_17 = arith.constant 0 : index
    %c0_18 = arith.constant 0 : index
    %25 = vector.load %arg3[%c3, %c0_17, %c0_18] : memref<9x4x64xbf16, #tpu.memory_space<vmem>>, vector<1x4x64xbf16>
    %26 = vector.shape_cast %25 : vector<1x4x64xbf16> to vector<4x64xbf16>
    %cst_19 = arith.constant dense<0.000000e+00> : vector<104x64xf32>
    %27 = tpu.matmul %24, %26, %cst_19 {dimension_numbers = #tpu.dot_dimension_numbers<[1], [0], [0], [1], [0, 0, 1, 1], [], []>} : vector<104x4xbf16>, vector<4x64xbf16>, vector<104x64xf32> -> vector<104x64xf32>
    %28 = arith.addf %22, %27 : vector<104x64xf32>
    %c16 = arith.constant 16 : index
    %c0_20 = arith.constant 0 : index
    %29 = vector.load %arg1[%c16, %c0_20] : memref<136x4xf32, #tpu.memory_space<vmem>>, vector<104x4xf32>
    %30 = arith.truncf %29 : vector<104x4xf32> to vector<104x4xbf16>
    %c4 = arith.constant 4 : index
    %c0_21 = arith.constant 0 : index
    %c0_22 = arith.constant 0 : index
    %31 = vector.load %arg3[%c4, %c0_21, %c0_22] : memref<9x4x64xbf16, #tpu.memory_space<vmem>>, vector<1x4x64xbf16>
    %32 = vector.shape_cast %31 : vector<1x4x64xbf16> to vector<4x64xbf16>
    %cst_23 = arith.constant dense<0.000000e+00> : vector<104x64xf32>
    %33 = tpu.matmul %30, %32, %cst_23 {dimension_numbers = #tpu.dot_dimension_numbers<[1], [0], [0], [1], [0, 0, 1, 1], [], []>} : vector<104x4xbf16>, vector<4x64xbf16>, vector<104x64xf32> -> vector<104x64xf32>
    %34 = arith.addf %28, %33 : vector<104x64xf32>
    %c17 = arith.constant 17 : index
    %c0_24 = arith.constant 0 : index
    %35 = vector.load %arg1[%c17, %c0_24] : memref<136x4xf32, #tpu.memory_space<vmem>>, vector<104x4xf32>
    %36 = arith.truncf %35 : vector<104x4xf32> to vector<104x4xbf16>
    %c5_25 = arith.constant 5 : index
    %c0_26 = arith.constant 0 : index
    %c0_27 = arith.constant 0 : index
    %37 = vector.load %arg3[%c5_25, %c0_26, %c0_27] : memref<9x4x64xbf16, #tpu.memory_space<vmem>>, vector<1x4x64xbf16>
    %38 = vector.shape_cast %37 : vector<1x4x64xbf16> to vector<4x64xbf16>
    %cst_28 = arith.constant dense<0.000000e+00> : vector<104x64xf32>
    %39 = tpu.matmul %36, %38, %cst_28 {dimension_numbers = #tpu.dot_dimension_numbers<[1], [0], [0], [1], [0, 0, 1, 1], [], []>} : vector<104x4xbf16>, vector<4x64xbf16>, vector<104x64xf32> -> vector<104x64xf32>
    %40 = arith.addf %34, %39 : vector<104x64xf32>
    %c25 = arith.constant 25 : index
    %c0_29 = arith.constant 0 : index
    %41 = vector.load %arg1[%c25, %c0_29] : memref<136x4xf32, #tpu.memory_space<vmem>>, vector<104x4xf32>
    %42 = arith.truncf %41 : vector<104x4xf32> to vector<104x4xbf16>
    %c6_30 = arith.constant 6 : index
    %c0_31 = arith.constant 0 : index
    %c0_32 = arith.constant 0 : index
    %43 = vector.load %arg3[%c6_30, %c0_31, %c0_32] : memref<9x4x64xbf16, #tpu.memory_space<vmem>>, vector<1x4x64xbf16>
    %44 = vector.shape_cast %43 : vector<1x4x64xbf16> to vector<4x64xbf16>
    %cst_33 = arith.constant dense<0.000000e+00> : vector<104x64xf32>
    %45 = tpu.matmul %42, %44, %cst_33 {dimension_numbers = #tpu.dot_dimension_numbers<[1], [0], [0], [1], [0, 0, 1, 1], [], []>} : vector<104x4xbf16>, vector<4x64xbf16>, vector<104x64xf32> -> vector<104x64xf32>
    %46 = arith.addf %40, %45 : vector<104x64xf32>
    %c26 = arith.constant 26 : index
    %c0_34 = arith.constant 0 : index
    %47 = vector.load %arg1[%c26, %c0_34] : memref<136x4xf32, #tpu.memory_space<vmem>>, vector<104x4xf32>
    %48 = arith.truncf %47 : vector<104x4xf32> to vector<104x4xbf16>
    %c7_35 = arith.constant 7 : index
    %c0_36 = arith.constant 0 : index
    %c0_37 = arith.constant 0 : index
    %49 = vector.load %arg3[%c7_35, %c0_36, %c0_37] : memref<9x4x64xbf16, #tpu.memory_space<vmem>>, vector<1x4x64xbf16>
    %50 = vector.shape_cast %49 : vector<1x4x64xbf16> to vector<4x64xbf16>
    %cst_38 = arith.constant dense<0.000000e+00> : vector<104x64xf32>
    %51 = tpu.matmul %48, %50, %cst_38 {dimension_numbers = #tpu.dot_dimension_numbers<[1], [0], [0], [1], [0, 0, 1, 1], [], []>} : vector<104x4xbf16>, vector<4x64xbf16>, vector<104x64xf32> -> vector<104x64xf32>
    %52 = arith.addf %46, %51 : vector<104x64xf32>
    %c27 = arith.constant 27 : index
    %c0_39 = arith.constant 0 : index
    %53 = vector.load %arg1[%c27, %c0_39] : memref<136x4xf32, #tpu.memory_space<vmem>>, vector<104x4xf32>
    %54 = arith.truncf %53 : vector<104x4xf32> to vector<104x4xbf16>
    %c8 = arith.constant 8 : index
    %c0_40 = arith.constant 0 : index
    %c0_41 = arith.constant 0 : index
    %55 = vector.load %arg3[%c8, %c0_40, %c0_41] : memref<9x4x64xbf16, #tpu.memory_space<vmem>>, vector<1x4x64xbf16>
    %56 = vector.shape_cast %55 : vector<1x4x64xbf16> to vector<4x64xbf16>
    %cst_42 = arith.constant dense<0.000000e+00> : vector<104x64xf32>
    %57 = tpu.matmul %54, %56, %cst_42 {dimension_numbers = #tpu.dot_dimension_numbers<[1], [0], [0], [1], [0, 0, 1, 1], [], []>} : vector<104x4xbf16>, vector<4x64xbf16>, vector<104x64xf32> -> vector<104x64xf32>
    %58 = arith.addf %52, %57 : vector<104x64xf32>
    %cst_43 = arith.constant 0.00999999977 : f32
    %59 = vector.broadcast %cst_43 : f32 to vector<104x64xf32>
    %60 = arith.mulf %59, %58 : vector<104x64xf32>
    %61 = arith.maximumf %58, %60 : vector<104x64xf32>
    %cst_44 = arith.constant 0.000000e+00 : f32
    %62 = vector.shape_cast %2 : vector<104x1xi1> to vector<104x1xi1>
    %63 = vector.broadcast %62 : vector<104x1xi1> to vector<104x64xi1>
    %64 = vector.broadcast %cst_44 : f32 to vector<104x64xf32>
    %65 = arith.select %63, %61, %64 : vector<104x64xi1>, vector<104x64xf32>
    %c16_45 = arith.constant 16 : index
    %c0_46 = arith.constant 0 : index
    %66 = vector.load %arg17[%c16_45, %c0_46] : memref<136x64xf32, #tpu.memory_space<vmem>>, vector<104x64xf32>
    tpu.vector_store %arg17[%c16_45, %c0_46], %65 {strides = array<i32>} : memref<136x64xf32, #tpu.memory_space<vmem>>, vector<104x64xf32>,
    %c16_47 = arith.constant 16 : index
    %c0_48 = arith.constant 0 : index
    %67 = vector.load %arg17[%c16_47, %c0_48] : memref<136x64xf32, #tpu.memory_space<vmem>>, vector<104x64xf32>
    %c0_49 = arith.constant 0 : index
    %c0_50 = arith.constant 0 : index
    %c0_51 = arith.constant 0 : index
    %68 = vector.load %arg6[%c0_49, %c0_50, %c0_51] : memref<5x1x64xf32, #tpu.memory_space<vmem>>, vector<1x1x64xf32>
    %69 = vector.shape_cast %68 : vector<1x1x64xf32> to vector<1x64xf32>
    %c5_52 = arith.constant 5 : index
    %c0_53 = arith.constant 0 : index
    %70 = vector.load %arg17[%c5_52, %c0_53] : memref<136x64xf32, #tpu.memory_space<vmem>>, vector<104x64xf32>
    %71 = arith.truncf %70 : vector<104x64xf32> to vector<104x64xbf16>
    %c0_54 = arith.constant 0 : index
    %c0_55 = arith.constant 0 : index
    %c0_56 = arith.constant 0 : index
    %c0_57 = arith.constant 0 : index
    %72 = vector.load %arg5[%c0_54, %c0_55, %c0_56, %c0_57] : memref<5x9x64x64xbf16, #tpu.memory_space<vmem>>, vector<1x1x64x64xbf16>
    %73 = vector.shape_cast %72 : vector<1x1x64x64xbf16> to vector<64x64xbf16>
    %cst_58 = arith.constant dense<0.000000e+00> : vector<104x64xf32>
    %74 = tpu.matmul %71, %73, %cst_58 {dimension_numbers = #tpu.dot_dimension_numbers<[1], [0], [0], [1], [0, 0, 1, 1], [], []>} : vector<104x64xbf16>, vector<64x64xbf16>, vector<104x64xf32> -> vector<104x64xf32>
    %75 = vector.broadcast %69 : vector<1x64xf32> to vector<104x64xf32>
    %76 = arith.addf %75, %74 : vector<104x64xf32>
    %c6_59 = arith.constant 6 : index
    %c0_60 = arith.constant 0 : index
    %77 = vector.load %arg17[%c6_59, %c0_60] : memref<136x64xf32, #tpu.memory_space<vmem>>, vector<104x64xf32>
    %78 = arith.truncf %77 : vector<104x64xf32> to vector<104x64xbf16>
    %c0_61 = arith.constant 0 : index
    %c1_62 = arith.constant 1 : index
    %c0_63 = arith.constant 0 : index
    %c0_64 = arith.constant 0 : index
    %79 = vector.load %arg5[%c0_61, %c1_62, %c0_63, %c0_64] : memref<5x9x64x64xbf16, #tpu.memory_space<vmem>>, vector<1x1x64x64xbf16>
    %80 = vector.shape_cast %79 : vector<1x1x64x64xbf16> to vector<64x64xbf16>
    %cst_65 = arith.constant dense<0.000000e+00> : vector<104x64xf32>
    %81 = tpu.matmul %78, %80, %cst_65 {dimension_numbers = #tpu.dot_dimension_numbers<[1], [0], [0], [1], [0, 0, 1, 1], [], []>} : vector<104x64xbf16>, vector<64x64xbf16>, vector<104x64xf32> -> vector<104x64xf32>
    %82 = arith.addf %76, %81 : vector<104x64xf32>
    %c7_66 = arith.constant 7 : index
    %c0_67 = arith.constant 0 : index
    %83 = vector.load %arg17[%c7_66, %c0_67] : memref<136x64xf32, #tpu.memory_space<vmem>>, vector<104x64xf32>
    %84 = arith.truncf %83 : vector<104x64xf32> to vector<104x64xbf16>
    %c0_68 = arith.constant 0 : index
    %c2_69 = arith.constant 2 : index
    %c0_70 = arith.constant 0 : index
    %c0_71 = arith.constant 0 : index
    %85 = vector.load %arg5[%c0_68, %c2_69, %c0_70, %c0_71] : memref<5x9x64x64xbf16, #tpu.memory_space<vmem>>, vector<1x1x64x64xbf16>
    %86 = vector.shape_cast %85 : vector<1x1x64x64xbf16> to vector<64x64xbf16>
    %cst_72 = arith.constant dense<0.000000e+00> : vector<104x64xf32>
    %87 = tpu.matmul %84, %86, %cst_72 {dimension_numbers = #tpu.dot_dimension_numbers<[1], [0], [0], [1], [0, 0, 1, 1], [], []>} : vector<104x64xbf16>, vector<64x64xbf16>, vector<104x64xf32> -> vector<104x64xf32>
    %88 = arith.addf %82, %87 : vector<104x64xf32>
    %c15_73 = arith.constant 15 : index
    %c0_74 = arith.constant 0 : index
    %89 = vector.load %arg17[%c15_73, %c0_74] : memref<136x64xf32, #tpu.memory_space<vmem>>, vector<104x64xf32>
    %90 = arith.truncf %89 : vector<104x64xf32> to vector<104x64xbf16>
    %c0_75 = arith.constant 0 : index
    %c3_76 = arith.constant 3 : index
    %c0_77 = arith.constant 0 : index
    %c0_78 = arith.constant 0 : index
    %91 = vector.load %arg5[%c0_75, %c3_76, %c0_77, %c0_78] : memref<5x9x64x64xbf16, #tpu.memory_space<vmem>>, vector<1x1x64x64xbf16>
    %92 = vector.shape_cast %91 : vector<1x1x64x64xbf16> to vector<64x64xbf16>
    %cst_79 = arith.constant dense<0.000000e+00> : vector<104x64xf32>
    %93 = tpu.matmul %90, %92, %cst_79 {dimension_numbers = #tpu.dot_dimension_numbers<[1], [0], [0], [1], [0, 0, 1, 1], [], []>} : vector<104x64xbf16>, vector<64x64xbf16>, vector<104x64xf32> -> vector<104x64xf32>
    %94 = arith.addf %88, %93 : vector<104x64xf32>
    %c16_80 = arith.constant 16 : index
    %c0_81 = arith.constant 0 : index
    %95 = vector.load %arg17[%c16_80, %c0_81] : memref<136x64xf32, #tpu.memory_space<vmem>>, vector<104x64xf32>
    %96 = arith.truncf %95 : vector<104x64xf32> to vector<104x64xbf16>
    %c0_82 = arith.constant 0 : index
    %c4_83 = arith.constant 4 : index
    %c0_84 = arith.constant 0 : index
    %c0_85 = arith.constant 0 : index
    %97 = vector.load %arg5[%c0_82, %c4_83, %c0_84, %c0_85] : memref<5x9x64x64xbf16, #tpu.memory_space<vmem>>, vector<1x1x64x64xbf16>
    %98 = vector.shape_cast %97 : vector<1x1x64x64xbf16> to vector<64x64xbf16>
    %cst_86 = arith.constant dense<0.000000e+00> : vector<104x64xf32>
    %99 = tpu.matmul %96, %98, %cst_86 {dimension_numbers = #tpu.dot_dimension_numbers<[1], [0], [0], [1], [0, 0, 1, 1], [], []>} : vector<104x64xbf16>, vector<64x64xbf16>, vector<104x64xf32> -> vector<104x64xf32>
    %100 = arith.addf %94, %99 : vector<104x64xf32>
    %c17_87 = arith.constant 17 : index
    %c0_88 = arith.constant 0 : index
    %101 = vector.load %arg17[%c17_87, %c0_88] : memref<136x64xf32, #tpu.memory_space<vmem>>, vector<104x64xf32>
    %102 = arith.truncf %101 : vector<104x64xf32> to vector<104x64xbf16>
    %c0_89 = arith.constant 0 : index
    %c5_90 = arith.constant 5 : index
    %c0_91 = arith.constant 0 : index
    %c0_92 = arith.constant 0 : index
    %103 = vector.load %arg5[%c0_89, %c5_90, %c0_91, %c0_92] : memref<5x9x64x64xbf16, #tpu.memory_space<vmem>>, vector<1x1x64x64xbf16>
    %104 = vector.shape_cast %103 : vector<1x1x64x64xbf16> to vector<64x64xbf16>
    %cst_93 = arith.constant dense<0.000000e+00> : vector<104x64xf32>
    %105 = tpu.matmul %102, %104, %cst_93 {dimension_numbers = #tpu.dot_dimension_numbers<[1], [0], [0], [1], [0, 0, 1, 1], [], []>} : vector<104x64xbf16>, vector<64x64xbf16>, vector<104x64xf32> -> vector<104x64xf32>
    %106 = arith.addf %100, %105 : vector<104x64xf32>
    %c25_94 = arith.constant 25 : index
    %c0_95 = arith.constant 0 : index
    %107 = vector.load %arg17[%c25_94, %c0_95] : memref<136x64xf32, #tpu.memory_space<vmem>>, vector<104x64xf32>
    %108 = arith.truncf %107 : vector<104x64xf32> to vector<104x64xbf16>
    %c0_96 = arith.constant 0 : index
    %c6_97 = arith.constant 6 : index
    %c0_98 = arith.constant 0 : index
    %c0_99 = arith.constant 0 : index
    %109 = vector.load %arg5[%c0_96, %c6_97, %c0_98, %c0_99] : memref<5x9x64x64xbf16, #tpu.memory_space<vmem>>, vector<1x1x64x64xbf16>
    %110 = vector.shape_cast %109 : vector<1x1x64x64xbf16> to vector<64x64xbf16>
    %cst_100 = arith.constant dense<0.000000e+00> : vector<104x64xf32>
    %111 = tpu.matmul %108, %110, %cst_100 {dimension_numbers = #tpu.dot_dimension_numbers<[1], [0], [0], [1], [0, 0, 1, 1], [], []>} : vector<104x64xbf16>, vector<64x64xbf16>, vector<104x64xf32> -> vector<104x64xf32>
    %112 = arith.addf %106, %111 : vector<104x64xf32>
    %c26_101 = arith.constant 26 : index
    %c0_102 = arith.constant 0 : index
    %113 = vector.load %arg17[%c26_101, %c0_102] : memref<136x64xf32, #tpu.memory_space<vmem>>, vector<104x64xf32>
    %114 = arith.truncf %113 : vector<104x64xf32> to vector<104x64xbf16>
    %c0_103 = arith.constant 0 : index
    %c7_104 = arith.constant 7 : index
    %c0_105 = arith.constant 0 : index
    %c0_106 = arith.constant 0 : index
    %115 = vector.load %arg5[%c0_103, %c7_104, %c0_105, %c0_106] : memref<5x9x64x64xbf16, #tpu.memory_space<vmem>>, vector<1x1x64x64xbf16>
    %116 = vector.shape_cast %115 : vector<1x1x64x64xbf16> to vector<64x64xbf16>
    %cst_107 = arith.constant dense<0.000000e+00> : vector<104x64xf32>
    %117 = tpu.matmul %114, %116, %cst_107 {dimension_numbers = #tpu.dot_dimension_numbers<[1], [0], [0], [1], [0, 0, 1, 1], [], []>} : vector<104x64xbf16>, vector<64x64xbf16>, vector<104x64xf32> -> vector<104x64xf32>
    %118 = arith.addf %112, %117 : vector<104x64xf32>
    %c27_108 = arith.constant 27 : index
    %c0_109 = arith.constant 0 : index
    %119 = vector.load %arg17[%c27_108, %c0_109] : memref<136x64xf32, #tpu.memory_space<vmem>>, vector<104x64xf32>
    %120 = arith.truncf %119 : vector<104x64xf32> to vector<104x64xbf16>
    %c0_110 = arith.constant 0 : index
    %c8_111 = arith.constant 8 : index
    %c0_112 = arith.constant 0 : index
    %c0_113 = arith.constant 0 : index
    %121 = vector.load %arg5[%c0_110, %c8_111, %c0_112, %c0_113] : memref<5x9x64x64xbf16, #tpu.memory_space<vmem>>, vector<1x1x64x64xbf16>
    %122 = vector.shape_cast %121 : vector<1x1x64x64xbf16> to vector<64x64xbf16>
    %cst_114 = arith.constant dense<0.000000e+00> : vector<104x64xf32>
    %123 = tpu.matmul %120, %122, %cst_114 {dimension_numbers = #tpu.dot_dimension_numbers<[1], [0], [0], [1], [0, 0, 1, 1], [], []>} : vector<104x64xbf16>, vector<64x64xbf16>, vector<104x64xf32> -> vector<104x64xf32>
    %124 = arith.addf %118, %123 : vector<104x64xf32>
    %cst_115 = arith.constant 0.00999999977 : f32
    %125 = vector.broadcast %cst_115 : f32 to vector<104x64xf32>
    %126 = arith.mulf %125, %124 : vector<104x64xf32>
    %127 = arith.maximumf %124, %126 : vector<104x64xf32>
    %128 = arith.addf %127, %67 : vector<104x64xf32>
    %cst_116 = arith.constant 0.000000e+00 : f32
    %129 = vector.shape_cast %2 : vector<104x1xi1> to vector<104x1xi1>
    %130 = vector.broadcast %129 : vector<104x1xi1> to vector<104x64xi1>
    %131 = vector.broadcast %cst_116 : f32 to vector<104x64xf32>
    %132 = arith.select %130, %128, %131 : vector<104x64xi1>, vector<104x64xf32>
    %c16_117 = arith.constant 16 : index
    %c0_118 = arith.constant 0 : index
    %133 = vector.load %arg17[%c16_117, %c0_118] : memref<136x64xf32, #tpu.memory_space<vmem>>, vector<104x64xf32>
    tpu.vector_store %arg17[%c16_117, %c0_118], %132 {strides = array<i32>} : memref<136x64xf32, #tpu.memory_space<vmem>>, vector<104x64xf32>,
    %c16_119 = arith.constant 16 : index
    %c0_120 = arith.constant 0 : index
    %134 = vector.load %arg17[%c16_119, %c0_120] : memref<136x64xf32, #tpu.memory_space<vmem>>, vector<104x64xf32>
    %c1_121 = arith.constant 1 : index
    %c0_122 = arith.constant 0 : index
    %c0_123 = arith.constant 0 : index
    %135 = vector.load %arg6[%c1_121, %c0_122, %c0_123] : memref<5x1x64xf32, #tpu.memory_space<vmem>>, vector<1x1x64xf32>
    %136 = vector.shape_cast %135 : vector<1x1x64xf32> to vector<1x64xf32>
    %c5_124 = arith.constant 5 : index
    %c0_125 = arith.constant 0 : index
    %137 = vector.load %arg17[%c5_124, %c0_125] : memref<136x64xf32, #tpu.memory_space<vmem>>, vector<104x64xf32>
    %138 = arith.truncf %137 : vector<104x64xf32> to vector<104x64xbf16>
    %c1_126 = arith.constant 1 : index
    %c0_127 = arith.constant 0 : index
    %c0_128 = arith.constant 0 : index
    %c0_129 = arith.constant 0 : index
    %139 = vector.load %arg5[%c1_126, %c0_127, %c0_128, %c0_129] : memref<5x9x64x64xbf16, #tpu.memory_space<vmem>>, vector<1x1x64x64xbf16>
    %140 = vector.shape_cast %139 : vector<1x1x64x64xbf16> to vector<64x64xbf16>
    %cst_130 = arith.constant dense<0.000000e+00> : vector<104x64xf32>
    %141 = tpu.matmul %138, %140, %cst_130 {dimension_numbers = #tpu.dot_dimension_numbers<[1], [0], [0], [1], [0, 0, 1, 1], [], []>} : vector<104x64xbf16>, vector<64x64xbf16>, vector<104x64xf32> -> vector<104x64xf32>
    %142 = vector.broadcast %136 : vector<1x64xf32> to vector<104x64xf32>
    %143 = arith.addf %142, %141 : vector<104x64xf32>
    %c6_131 = arith.constant 6 : index
    %c0_132 = arith.constant 0 : index
    %144 = vector.load %arg17[%c6_131, %c0_132] : memref<136x64xf32, #tpu.memory_space<vmem>>, vector<104x64xf32>
    %145 = arith.truncf %144 : vector<104x64xf32> to vector<104x64xbf16>
    %c1_133 = arith.constant 1 : index
    %c1_134 = arith.constant 1 : index
    %c0_135 = arith.constant 0 : index
    %c0_136 = arith.constant 0 : index
    %146 = vector.load %arg5[%c1_133, %c1_134, %c0_135, %c0_136] : memref<5x9x64x64xbf16, #tpu.memory_space<vmem>>, vector<1x1x64x64xbf16>
    %147 = vector.shape_cast %146 : vector<1x1x64x64xbf16> to vector<64x64xbf16>
    %cst_137 = arith.constant dense<0.000000e+00> : vector<104x64xf32>
    %148 = tpu.matmul %145, %147, %cst_137 {dimension_numbers = #tpu.dot_dimension_numbers<[1], [0], [0], [1], [0, 0, 1, 1], [], []>} : vector<104x64xbf16>, vector<64x64xbf16>, vector<104x64xf32> -> vector<104x64xf32>
    %149 = arith.addf %143, %148 : vector<104x64xf32>
    %c7_138 = arith.constant 7 : index
    %c0_139 = arith.constant 0 : index
    %150 = vector.load %arg17[%c7_138, %c0_139] : memref<136x64xf32, #tpu.memory_space<vmem>>, vector<104x64xf32>
    %151 = arith.truncf %150 : vector<104x64xf32> to vector<104x64xbf16>
    %c1_140 = arith.constant 1 : index
    %c2_141 = arith.constant 2 : index
    %c0_142 = arith.constant 0 : index
    %c0_143 = arith.constant 0 : index
    %152 = vector.load %arg5[%c1_140, %c2_141, %c0_142, %c0_143] : memref<5x9x64x64xbf16, #tpu.memory_space<vmem>>, vector<1x1x64x64xbf16>
    %153 = vector.shape_cast %152 : vector<1x1x64x64xbf16> to vector<64x64xbf16>
    %cst_144 = arith.constant dense<0.000000e+00> : vector<104x64xf32>
    %154 = tpu.matmul %151, %153, %cst_144 {dimension_numbers = #tpu.dot_dimension_numbers<[1], [0], [0], [1], [0, 0, 1, 1], [], []>} : vector<104x64xbf16>, vector<64x64xbf16>, vector<104x64xf32> -> vector<104x64xf32>
    %155 = arith.addf %149, %154 : vector<104x64xf32>
    %c15_145 = arith.constant 15 : index
    %c0_146 = arith.constant 0 : index
    %156 = vector.load %arg17[%c15_145, %c0_146] : memref<136x64xf32, #tpu.memory_space<vmem>>, vector<104x64xf32>
    %157 = arith.truncf %156 : vector<104x64xf32> to vector<104x64xbf16>
    %c1_147 = arith.constant 1 : index
    %c3_148 = arith.constant 3 : index
    %c0_149 = arith.constant 0 : index
    %c0_150 = arith.constant 0 : index
    %158 = vector.load %arg5[%c1_147, %c3_148, %c0_149, %c0_150] : memref<5x9x64x64xbf16, #tpu.memory_space<vmem>>, vector<1x1x64x64xbf16>
    %159 = vector.shape_cast %158 : vector<1x1x64x64xbf16> to vector<64x64xbf16>
    %cst_151 = arith.constant dense<0.000000e+00> : vector<104x64xf32>
    %160 = tpu.matmul %157, %159, %cst_151 {dimension_numbers = #tpu.dot_dimension_numbers<[1], [0], [0], [1], [0, 0, 1, 1], [], []>} : vector<104x64xbf16>, vector<64x64xbf16>, vector<104x64xf32> -> vector<104x64xf32>
    %161 = arith.addf %155, %160 : vector<104x64xf32>
    %c16_152 = arith.constant 16 : index
    %c0_153 = arith.constant 0 : index
    %162 = vector.load %arg17[%c16_152, %c0_153] : memref<136x64xf32, #tpu.memory_space<vmem>>, vector<104x64xf32>
    %163 = arith.truncf %162 : vector<104x64xf32> to vector<104x64xbf16>
    %c1_154 = arith.constant 1 : index
    %c4_155 = arith.constant 4 : index
    %c0_156 = arith.constant 0 : index
    %c0_157 = arith.constant 0 : index
    %164 = vector.load %arg5[%c1_154, %c4_155, %c0_156, %c0_157] : memref<5x9x64x64xbf16, #tpu.memory_space<vmem>>, vector<1x1x64x64xbf16>
    %165 = vector.shape_cast %164 : vector<1x1x64x64xbf16> to vector<64x64xbf16>
    %cst_158 = arith.constant dense<0.000000e+00> : vector<104x64xf32>
    %166 = tpu.matmul %163, %165, %cst_158 {dimension_numbers = #tpu.dot_dimension_numbers<[1], [0], [0], [1], [0, 0, 1, 1], [], []>} : vector<104x64xbf16>, vector<64x64xbf16>, vector<104x64xf32> -> vector<104x64xf32>
    %167 = arith.addf %161, %166 : vector<104x64xf32>
    %c17_159 = arith.constant 17 : index
    %c0_160 = arith.constant 0 : index
    %168 = vector.load %arg17[%c17_159, %c0_160] : memref<136x64xf32, #tpu.memory_space<vmem>>, vector<104x64xf32>
    %169 = arith.truncf %168 : vector<104x64xf32> to vector<104x64xbf16>
    %c1_161 = arith.constant 1 : index
    %c5_162 = arith.constant 5 : index
    %c0_163 = arith.constant 0 : index
    %c0_164 = arith.constant 0 : index
    %170 = vector.load %arg5[%c1_161, %c5_162, %c0_163, %c0_164] : memref<5x9x64x64xbf16, #tpu.memory_space<vmem>>, vector<1x1x64x64xbf16>
    %171 = vector.shape_cast %170 : vector<1x1x64x64xbf16> to vector<64x64xbf16>
    %cst_165 = arith.constant dense<0.000000e+00> : vector<104x64xf32>
    %172 = tpu.matmul %169, %171, %cst_165 {dimension_numbers = #tpu.dot_dimension_numbers<[1], [0], [0], [1], [0, 0, 1, 1], [], []>} : vector<104x64xbf16>, vector<64x64xbf16>, vector<104x64xf32> -> vector<104x64xf32>
    %173 = arith.addf %167, %172 : vector<104x64xf32>
    %c25_166 = arith.constant 25 : index
    %c0_167 = arith.constant 0 : index
    %174 = vector.load %arg17[%c25_166, %c0_167] : memref<136x64xf32, #tpu.memory_space<vmem>>, vector<104x64xf32>
    %175 = arith.truncf %174 : vector<104x64xf32> to vector<104x64xbf16>
    %c1_168 = arith.constant 1 : index
    %c6_169 = arith.constant 6 : index
    %c0_170 = arith.constant 0 : index
    %c0_171 = arith.constant 0 : index
    %176 = vector.load %arg5[%c1_168, %c6_169, %c0_170, %c0_171] : memref<5x9x64x64xbf16, #tpu.memory_space<vmem>>, vector<1x1x64x64xbf16>
    %177 = vector.shape_cast %176 : vector<1x1x64x64xbf16> to vector<64x64xbf16>
    %cst_172 = arith.constant dense<0.000000e+00> : vector<104x64xf32>
    %178 = tpu.matmul %175, %177, %cst_172 {dimension_numbers = #tpu.dot_dimension_numbers<[1], [0], [0], [1], [0, 0, 1, 1], [], []>} : vector<104x64xbf16>, vector<64x64xbf16>, vector<104x64xf32> -> vector<104x64xf32>
    %179 = arith.addf %173, %178 : vector<104x64xf32>
    %c26_173 = arith.constant 26 : index
    %c0_174 = arith.constant 0 : index
    %180 = vector.load %arg17[%c26_173, %c0_174] : memref<136x64xf32, #tpu.memory_space<vmem>>, vector<104x64xf32>
    %181 = arith.truncf %180 : vector<104x64xf32> to vector<104x64xbf16>
    %c1_175 = arith.constant 1 : index
    %c7_176 = arith.constant 7 : index
    %c0_177 = arith.constant 0 : index
    %c0_178 = arith.constant 0 : index
    %182 = vector.load %arg5[%c1_175, %c7_176, %c0_177, %c0_178] : memref<5x9x64x64xbf16, #tpu.memory_space<vmem>>, vector<1x1x64x64xbf16>
    %183 = vector.shape_cast %182 : vector<1x1x64x64xbf16> to vector<64x64xbf16>
    %cst_179 = arith.constant dense<0.000000e+00> : vector<104x64xf32>
    %184 = tpu.matmul %181, %183, %cst_179 {dimension_numbers = #tpu.dot_dimension_numbers<[1], [0], [0], [1], [0, 0, 1, 1], [], []>} : vector<104x64xbf16>, vector<64x64xbf16>, vector<104x64xf32> -> vector<104x64xf32>
    %185 = arith.addf %179, %184 : vector<104x64xf32>
    %c27_180 = arith.constant 27 : index
    %c0_181 = arith.constant 0 : index
    %186 = vector.load %arg17[%c27_180, %c0_181] : memref<136x64xf32, #tpu.memory_space<vmem>>, vector<104x64xf32>
    %187 = arith.truncf %186 : vector<104x64xf32> to vector<104x64xbf16>
    %c1_182 = arith.constant 1 : index
    %c8_183 = arith.constant 8 : index
    %c0_184 = arith.constant 0 : index
    %c0_185 = arith.constant 0 : index
    %188 = vector.load %arg5[%c1_182, %c8_183, %c0_184, %c0_185] : memref<5x9x64x64xbf16, #tpu.memory_space<vmem>>, vector<1x1x64x64xbf16>
    %189 = vector.shape_cast %188 : vector<1x1x64x64xbf16> to vector<64x64xbf16>
    %cst_186 = arith.constant dense<0.000000e+00> : vector<104x64xf32>
    %190 = tpu.matmul %187, %189, %cst_186 {dimension_numbers = #tpu.dot_dimension_numbers<[1], [0], [0], [1], [0, 0, 1, 1], [], []>} : vector<104x64xbf16>, vector<64x64xbf16>, vector<104x64xf32> -> vector<104x64xf32>
    %191 = arith.addf %185, %190 : vector<104x64xf32>
    %cst_187 = arith.constant 0.00999999977 : f32
    %192 = vector.broadcast %cst_187 : f32 to vector<104x64xf32>
    %193 = arith.mulf %192, %191 : vector<104x64xf32>
    %194 = arith.maximumf %191, %193 : vector<104x64xf32>
    %195 = arith.addf %194, %134 : vector<104x64xf32>
    %cst_188 = arith.constant 0.000000e+00 : f32
    %196 = vector.shape_cast %2 : vector<104x1xi1> to vector<104x1xi1>
    %197 = vector.broadcast %196 : vector<104x1xi1> to vector<104x64xi1>
    %198 = vector.broadcast %cst_188 : f32 to vector<104x64xf32>
    %199 = arith.select %197, %195, %198 : vector<104x64xi1>, vector<104x64xf32>
    %c16_189 = arith.constant 16 : index
    %c0_190 = arith.constant 0 : index
    %200 = vector.load %arg17[%c16_189, %c0_190] : memref<136x64xf32, #tpu.memory_space<vmem>>, vector<104x64xf32>
    tpu.vector_store %arg17[%c16_189, %c0_190], %199 {strides = array<i32>} : memref<136x64xf32, #tpu.memory_space<vmem>>, vector<104x64xf32>,
    %c16_191 = arith.constant 16 : index
    %c0_192 = arith.constant 0 : index
    %201 = vector.load %arg17[%c16_191, %c0_192] : memref<136x64xf32, #tpu.memory_space<vmem>>, vector<104x64xf32>
    %c2_193 = arith.constant 2 : index
    %c0_194 = arith.constant 0 : index
    %c0_195 = arith.constant 0 : index
    %202 = vector.load %arg6[%c2_193, %c0_194, %c0_195] : memref<5x1x64xf32, #tpu.memory_space<vmem>>, vector<1x1x64xf32>
    %203 = vector.shape_cast %202 : vector<1x1x64xf32> to vector<1x64xf32>
    %c5_196 = arith.constant 5 : index
    %c0_197 = arith.constant 0 : index
    %204 = vector.load %arg17[%c5_196, %c0_197] : memref<136x64xf32, #tpu.memory_space<vmem>>, vector<104x64xf32>
    %205 = arith.truncf %204 : vector<104x64xf32> to vector<104x64xbf16>
    %c2_198 = arith.constant 2 : index
    %c0_199 = arith.constant 0 : index
    %c0_200 = arith.constant 0 : index
    %c0_201 = arith.constant 0 : index
    %206 = vector.load %arg5[%c2_198, %c0_199, %c0_200, %c0_201] : memref<5x9x64x64xbf16, #tpu.memory_space<vmem>>, vector<1x1x64x64xbf16>
    %207 = vector.shape_cast %206 : vector<1x1x64x64xbf16> to vector<64x64xbf16>
    %cst_202 = arith.constant dense<0.000000e+00> : vector<104x64xf32>
    %208 = tpu.matmul %205, %207, %cst_202 {dimension_numbers = #tpu.dot_dimension_numbers<[1], [0], [0], [1], [0, 0, 1, 1], [], []>} : vector<104x64xbf16>, vector<64x64xbf16>, vector<104x64xf32> -> vector<104x64xf32>
    %209 = vector.broadcast %203 : vector<1x64xf32> to vector<104x64xf32>
    %210 = arith.addf %209, %208 : vector<104x64xf32>
    %c6_203 = arith.constant 6 : index
    %c0_204 = arith.constant 0 : index
    %211 = vector.load %arg17[%c6_203, %c0_204] : memref<136x64xf32, #tpu.memory_space<vmem>>, vector<104x64xf32>
    %212 = arith.truncf %211 : vector<104x64xf32> to vector<104x64xbf16>
    %c2_205 = arith.constant 2 : index
    %c1_206 = arith.constant 1 : index
    %c0_207 = arith.constant 0 : index
    %c0_208 = arith.constant 0 : index
    %213 = vector.load %arg5[%c2_205, %c1_206, %c0_207, %c0_208] : memref<5x9x64x64xbf16, #tpu.memory_space<vmem>>, vector<1x1x64x64xbf16>
    %214 = vector.shape_cast %213 : vector<1x1x64x64xbf16> to vector<64x64xbf16>
    %cst_209 = arith.constant dense<0.000000e+00> : vector<104x64xf32>
    %215 = tpu.matmul %212, %214, %cst_209 {dimension_numbers = #tpu.dot_dimension_numbers<[1], [0], [0], [1], [0, 0, 1, 1], [], []>} : vector<104x64xbf16>, vector<64x64xbf16>, vector<104x64xf32> -> vector<104x64xf32>
    %216 = arith.addf %210, %215 : vector<104x64xf32>
    %c7_210 = arith.constant 7 : index
    %c0_211 = arith.constant 0 : index
    %217 = vector.load %arg17[%c7_210, %c0_211] : memref<136x64xf32, #tpu.memory_space<vmem>>, vector<104x64xf32>
    %218 = arith.truncf %217 : vector<104x64xf32> to vector<104x64xbf16>
    %c2_212 = arith.constant 2 : index
    %c2_213 = arith.constant 2 : index
    %c0_214 = arith.constant 0 : index
    %c0_215 = arith.constant 0 : index
    %219 = vector.load %arg5[%c2_212, %c2_213, %c0_214, %c0_215] : memref<5x9x64x64xbf16, #tpu.memory_space<vmem>>, vector<1x1x64x64xbf16>
    %220 = vector.shape_cast %219 : vector<1x1x64x64xbf16> to vector<64x64xbf16>
    %cst_216 = arith.constant dense<0.000000e+00> : vector<104x64xf32>
    %221 = tpu.matmul %218, %220, %cst_216 {dimension_numbers = #tpu.dot_dimension_numbers<[1], [0], [0], [1], [0, 0, 1, 1], [], []>} : vector<104x64xbf16>, vector<64x64xbf16>, vector<104x64xf32> -> vector<104x64xf32>
    %222 = arith.addf %216, %221 : vector<104x64xf32>
    %c15_217 = arith.constant 15 : index
    %c0_218 = arith.constant 0 : index
    %223 = vector.load %arg17[%c15_217, %c0_218] : memref<136x64xf32, #tpu.memory_space<vmem>>, vector<104x64xf32>
    %224 = arith.truncf %223 : vector<104x64xf32> to vector<104x64xbf16>
    %c2_219 = arith.constant 2 : index
    %c3_220 = arith.constant 3 : index
    %c0_221 = arith.constant 0 : index
    %c0_222 = arith.constant 0 : index
    %225 = vector.load %arg5[%c2_219, %c3_220, %c0_221, %c0_222] : memref<5x9x64x64xbf16, #tpu.memory_space<vmem>>, vector<1x1x64x64xbf16>
    %226 = vector.shape_cast %225 : vector<1x1x64x64xbf16> to vector<64x64xbf16>
    %cst_223 = arith.constant dense<0.000000e+00> : vector<104x64xf32>
    %227 = tpu.matmul %224, %226, %cst_223 {dimension_numbers = #tpu.dot_dimension_numbers<[1], [0], [0], [1], [0, 0, 1, 1], [], []>} : vector<104x64xbf16>, vector<64x64xbf16>, vector<104x64xf32> -> vector<104x64xf32>
    %228 = arith.addf %222, %227 : vector<104x64xf32>
    %c16_224 = arith.constant 16 : index
    %c0_225 = arith.constant 0 : index
    %229 = vector.load %arg17[%c16_224, %c0_225] : memref<136x64xf32, #tpu.memory_space<vmem>>, vector<104x64xf32>
    %230 = arith.truncf %229 : vector<104x64xf32> to vector<104x64xbf16>
    %c2_226 = arith.constant 2 : index
    %c4_227 = arith.constant 4 : index
    %c0_228 = arith.constant 0 : index
    %c0_229 = arith.constant 0 : index
    %231 = vector.load %arg5[%c2_226, %c4_227, %c0_228, %c0_229] : memref<5x9x64x64xbf16, #tpu.memory_space<vmem>>, vector<1x1x64x64xbf16>
    %232 = vector.shape_cast %231 : vector<1x1x64x64xbf16> to vector<64x64xbf16>
    %cst_230 = arith.constant dense<0.000000e+00> : vector<104x64xf32>
    %233 = tpu.matmul %230, %232, %cst_230 {dimension_numbers = #tpu.dot_dimension_numbers<[1], [0], [0], [1], [0, 0, 1, 1], [], []>} : vector<104x64xbf16>, vector<64x64xbf16>, vector<104x64xf32> -> vector<104x64xf32>
    %234 = arith.addf %228, %233 : vector<104x64xf32>
    %c17_231 = arith.constant 17 : index
    %c0_232 = arith.constant 0 : index
    %235 = vector.load %arg17[%c17_231, %c0_232] : memref<136x64xf32, #tpu.memory_space<vmem>>, vector<104x64xf32>
    %236 = arith.truncf %235 : vector<104x64xf32> to vector<104x64xbf16>
    %c2_233 = arith.constant 2 : index
    %c5_234 = arith.constant 5 : index
    %c0_235 = arith.constant 0 : index
    %c0_236 = arith.constant 0 : index
    %237 = vector.load %arg5[%c2_233, %c5_234, %c0_235, %c0_236] : memref<5x9x64x64xbf16, #tpu.memory_space<vmem>>, vector<1x1x64x64xbf16>
    %238 = vector.shape_cast %237 : vector<1x1x64x64xbf16> to vector<64x64xbf16>
    %cst_237 = arith.constant dense<0.000000e+00> : vector<104x64xf32>
    %239 = tpu.matmul %236, %238, %cst_237 {dimension_numbers = #tpu.dot_dimension_numbers<[1], [0], [0], [1], [0, 0, 1, 1], [], []>} : vector<104x64xbf16>, vector<64x64xbf16>, vector<104x64xf32> -> vector<104x64xf32>
    %240 = arith.addf %234, %239 : vector<104x64xf32>
    %c25_238 = arith.constant 25 : index
    %c0_239 = arith.constant 0 : index
    %241 = vector.load %arg17[%c25_238, %c0_239] : memref<136x64xf32, #tpu.memory_space<vmem>>, vector<104x64xf32>
    %242 = arith.truncf %241 : vector<104x64xf32> to vector<104x64xbf16>
    %c2_240 = arith.constant 2 : index
    %c6_241 = arith.constant 6 : index
    %c0_242 = arith.constant 0 : index
    %c0_243 = arith.constant 0 : index
    %243 = vector.load %arg5[%c2_240, %c6_241, %c0_242, %c0_243] : memref<5x9x64x64xbf16, #tpu.memory_space<vmem>>, vector<1x1x64x64xbf16>
    %244 = vector.shape_cast %243 : vector<1x1x64x64xbf16> to vector<64x64xbf16>
    %cst_244 = arith.constant dense<0.000000e+00> : vector<104x64xf32>
    %245 = tpu.matmul %242, %244, %cst_244 {dimension_numbers = #tpu.dot_dimension_numbers<[1], [0], [0], [1], [0, 0, 1, 1], [], []>} : vector<104x64xbf16>, vector<64x64xbf16>, vector<104x64xf32> -> vector<104x64xf32>
    %246 = arith.addf %240, %245 : vector<104x64xf32>
    %c26_245 = arith.constant 26 : index
    %c0_246 = arith.constant 0 : index
    %247 = vector.load %arg17[%c26_245, %c0_246] : memref<136x64xf32, #tpu.memory_space<vmem>>, vector<104x64xf32>
    %248 = arith.truncf %247 : vector<104x64xf32> to vector<104x64xbf16>
    %c2_247 = arith.constant 2 : index
    %c7_248 = arith.constant 7 : index
    %c0_249 = arith.constant 0 : index
    %c0_250 = arith.constant 0 : index
    %249 = vector.load %arg5[%c2_247, %c7_248, %c0_249, %c0_250] : memref<5x9x64x64xbf16, #tpu.memory_space<vmem>>, vector<1x1x64x64xbf16>
    %250 = vector.shape_cast %249 : vector<1x1x64x64xbf16> to vector<64x64xbf16>
    %cst_251 = arith.constant dense<0.000000e+00> : vector<104x64xf32>
    %251 = tpu.matmul %248, %250, %cst_251 {dimension_numbers = #tpu.dot_dimension_numbers<[1], [0], [0], [1], [0, 0, 1, 1], [], []>} : vector<104x64xbf16>, vector<64x64xbf16>, vector<104x64xf32> -> vector<104x64xf32>
    %252 = arith.addf %246, %251 : vector<104x64xf32>
    %c27_252 = arith.constant 27 : index
    %c0_253 = arith.constant 0 : index
    %253 = vector.load %arg17[%c27_252, %c0_253] : memref<136x64xf32, #tpu.memory_space<vmem>>, vector<104x64xf32>
    %254 = arith.truncf %253 : vector<104x64xf32> to vector<104x64xbf16>
    %c2_254 = arith.constant 2 : index
    %c8_255 = arith.constant 8 : index
    %c0_256 = arith.constant 0 : index
    %c0_257 = arith.constant 0 : index
    %255 = vector.load %arg5[%c2_254, %c8_255, %c0_256, %c0_257] : memref<5x9x64x64xbf16, #tpu.memory_space<vmem>>, vector<1x1x64x64xbf16>
    %256 = vector.shape_cast %255 : vector<1x1x64x64xbf16> to vector<64x64xbf16>
    %cst_258 = arith.constant dense<0.000000e+00> : vector<104x64xf32>
    %257 = tpu.matmul %254, %256, %cst_258 {dimension_numbers = #tpu.dot_dimension_numbers<[1], [0], [0], [1], [0, 0, 1, 1], [], []>} : vector<104x64xbf16>, vector<64x64xbf16>, vector<104x64xf32> -> vector<104x64xf32>
    %258 = arith.addf %252, %257 : vector<104x64xf32>
    %cst_259 = arith.constant 0.00999999977 : f32
    %259 = vector.broadcast %cst_259 : f32 to vector<104x64xf32>
    %260 = arith.mulf %259, %258 : vector<104x64xf32>
    %261 = arith.maximumf %258, %260 : vector<104x64xf32>
    %262 = arith.addf %261, %201 : vector<104x64xf32>
    %cst_260 = arith.constant 0.000000e+00 : f32
    %263 = vector.shape_cast %2 : vector<104x1xi1> to vector<104x1xi1>
    %264 = vector.broadcast %263 : vector<104x1xi1> to vector<104x64xi1>
    %265 = vector.broadcast %cst_260 : f32 to vector<104x64xf32>
    %266 = arith.select %264, %262, %265 : vector<104x64xi1>, vector<104x64xf32>
    %c16_261 = arith.constant 16 : index
    %c0_262 = arith.constant 0 : index
    %267 = vector.load %arg17[%c16_261, %c0_262] : memref<136x64xf32, #tpu.memory_space<vmem>>, vector<104x64xf32>
    tpu.vector_store %arg17[%c16_261, %c0_262], %266 {strides = array<i32>} : memref<136x64xf32, #tpu.memory_space<vmem>>, vector<104x64xf32>,
    %c16_263 = arith.constant 16 : index
    %c0_264 = arith.constant 0 : index
    %268 = vector.load %arg17[%c16_263, %c0_264] : memref<136x64xf32, #tpu.memory_space<vmem>>, vector<104x64xf32>
    %c3_265 = arith.constant 3 : index
    %c0_266 = arith.constant 0 : index
    %c0_267 = arith.constant 0 : index
    %269 = vector.load %arg6[%c3_265, %c0_266, %c0_267] : memref<5x1x64xf32, #tpu.memory_space<vmem>>, vector<1x1x64xf32>
    %270 = vector.shape_cast %269 : vector<1x1x64xf32> to vector<1x64xf32>
    %c5_268 = arith.constant 5 : index
    %c0_269 = arith.constant 0 : index
    %271 = vector.load %arg17[%c5_268, %c0_269] : memref<136x64xf32, #tpu.memory_space<vmem>>, vector<104x64xf32>
    %272 = arith.truncf %271 : vector<104x64xf32> to vector<104x64xbf16>
    %c3_270 = arith.constant 3 : index
    %c0_271 = arith.constant 0 : index
    %c0_272 = arith.constant 0 : index
    %c0_273 = arith.constant 0 : index
    %273 = vector.load %arg5[%c3_270, %c0_271, %c0_272, %c0_273] : memref<5x9x64x64xbf16, #tpu.memory_space<vmem>>, vector<1x1x64x64xbf16>
    %274 = vector.shape_cast %273 : vector<1x1x64x64xbf16> to vector<64x64xbf16>
    %cst_274 = arith.constant dense<0.000000e+00> : vector<104x64xf32>
    %275 = tpu.matmul %272, %274, %cst_274 {dimension_numbers = #tpu.dot_dimension_numbers<[1], [0], [0], [1], [0, 0, 1, 1], [], []>} : vector<104x64xbf16>, vector<64x64xbf16>, vector<104x64xf32> -> vector<104x64xf32>
    %276 = vector.broadcast %270 : vector<1x64xf32> to vector<104x64xf32>
    %277 = arith.addf %276, %275 : vector<104x64xf32>
    %c6_275 = arith.constant 6 : index
    %c0_276 = arith.constant 0 : index
    %278 = vector.load %arg17[%c6_275, %c0_276] : memref<136x64xf32, #tpu.memory_space<vmem>>, vector<104x64xf32>
    %279 = arith.truncf %278 : vector<104x64xf32> to vector<104x64xbf16>
    %c3_277 = arith.constant 3 : index
    %c1_278 = arith.constant 1 : index
    %c0_279 = arith.constant 0 : index
    %c0_280 = arith.constant 0 : index
    %280 = vector.load %arg5[%c3_277, %c1_278, %c0_279, %c0_280] : memref<5x9x64x64xbf16, #tpu.memory_space<vmem>>, vector<1x1x64x64xbf16>
    %281 = vector.shape_cast %280 : vector<1x1x64x64xbf16> to vector<64x64xbf16>
    %cst_281 = arith.constant dense<0.000000e+00> : vector<104x64xf32>
    %282 = tpu.matmul %279, %281, %cst_281 {dimension_numbers = #tpu.dot_dimension_numbers<[1], [0], [0], [1], [0, 0, 1, 1], [], []>} : vector<104x64xbf16>, vector<64x64xbf16>, vector<104x64xf32> -> vector<104x64xf32>
    %283 = arith.addf %277, %282 : vector<104x64xf32>
    %c7_282 = arith.constant 7 : index
    %c0_283 = arith.constant 0 : index
    %284 = vector.load %arg17[%c7_282, %c0_283] : memref<136x64xf32, #tpu.memory_space<vmem>>, vector<104x64xf32>
    %285 = arith.truncf %284 : vector<104x64xf32> to vector<104x64xbf16>
    %c3_284 = arith.constant 3 : index
    %c2_285 = arith.constant 2 : index
    %c0_286 = arith.constant 0 : index
    %c0_287 = arith.constant 0 : index
    %286 = vector.load %arg5[%c3_284, %c2_285, %c0_286, %c0_287] : memref<5x9x64x64xbf16, #tpu.memory_space<vmem>>, vector<1x1x64x64xbf16>
    %287 = vector.shape_cast %286 : vector<1x1x64x64xbf16> to vector<64x64xbf16>
    %cst_288 = arith.constant dense<0.000000e+00> : vector<104x64xf32>
    %288 = tpu.matmul %285, %287, %cst_288 {dimension_numbers = #tpu.dot_dimension_numbers<[1], [0], [0], [1], [0, 0, 1, 1], [], []>} : vector<104x64xbf16>, vector<64x64xbf16>, vector<104x64xf32> -> vector<104x64xf32>
    %289 = arith.addf %283, %288 : vector<104x64xf32>
    %c15_289 = arith.constant 15 : index
    %c0_290 = arith.constant 0 : index
    %290 = vector.load %arg17[%c15_289, %c0_290] : memref<136x64xf32, #tpu.memory_space<vmem>>, vector<104x64xf32>
    %291 = arith.truncf %290 : vector<104x64xf32> to vector<104x64xbf16>
    %c3_291 = arith.constant 3 : index
    %c3_292 = arith.constant 3 : index
    %c0_293 = arith.constant 0 : index
    %c0_294 = arith.constant 0 : index
    %292 = vector.load %arg5[%c3_291, %c3_292, %c0_293, %c0_294] : memref<5x9x64x64xbf16, #tpu.memory_space<vmem>>, vector<1x1x64x64xbf16>
    %293 = vector.shape_cast %292 : vector<1x1x64x64xbf16> to vector<64x64xbf16>
    %cst_295 = arith.constant dense<0.000000e+00> : vector<104x64xf32>
    %294 = tpu.matmul %291, %293, %cst_295 {dimension_numbers = #tpu.dot_dimension_numbers<[1], [0], [0], [1], [0, 0, 1, 1], [], []>} : vector<104x64xbf16>, vector<64x64xbf16>, vector<104x64xf32> -> vector<104x64xf32>
    %295 = arith.addf %289, %294 : vector<104x64xf32>
    %c16_296 = arith.constant 16 : index
    %c0_297 = arith.constant 0 : index
    %296 = vector.load %arg17[%c16_296, %c0_297] : memref<136x64xf32, #tpu.memory_space<vmem>>, vector<104x64xf32>
    %297 = arith.truncf %296 : vector<104x64xf32> to vector<104x64xbf16>
    %c3_298 = arith.constant 3 : index
    %c4_299 = arith.constant 4 : index
    %c0_300 = arith.constant 0 : index
    %c0_301 = arith.constant 0 : index
    %298 = vector.load %arg5[%c3_298, %c4_299, %c0_300, %c0_301] : memref<5x9x64x64xbf16, #tpu.memory_space<vmem>>, vector<1x1x64x64xbf16>
    %299 = vector.shape_cast %298 : vector<1x1x64x64xbf16> to vector<64x64xbf16>
    %cst_302 = arith.constant dense<0.000000e+00> : vector<104x64xf32>
    %300 = tpu.matmul %297, %299, %cst_302 {dimension_numbers = #tpu.dot_dimension_numbers<[1], [0], [0], [1], [0, 0, 1, 1], [], []>} : vector<104x64xbf16>, vector<64x64xbf16>, vector<104x64xf32> -> vector<104x64xf32>
    %301 = arith.addf %295, %300 : vector<104x64xf32>
    %c17_303 = arith.constant 17 : index
    %c0_304 = arith.constant 0 : index
    %302 = vector.load %arg17[%c17_303, %c0_304] : memref<136x64xf32, #tpu.memory_space<vmem>>, vector<104x64xf32>
    %303 = arith.truncf %302 : vector<104x64xf32> to vector<104x64xbf16>
    %c3_305 = arith.constant 3 : index
    %c5_306 = arith.constant 5 : index
    %c0_307 = arith.constant 0 : index
    %c0_308 = arith.constant 0 : index
    %304 = vector.load %arg5[%c3_305, %c5_306, %c0_307, %c0_308] : memref<5x9x64x64xbf16, #tpu.memory_space<vmem>>, vector<1x1x64x64xbf16>
    %305 = vector.shape_cast %304 : vector<1x1x64x64xbf16> to vector<64x64xbf16>
    %cst_309 = arith.constant dense<0.000000e+00> : vector<104x64xf32>
    %306 = tpu.matmul %303, %305, %cst_309 {dimension_numbers = #tpu.dot_dimension_numbers<[1], [0], [0], [1], [0, 0, 1, 1], [], []>} : vector<104x64xbf16>, vector<64x64xbf16>, vector<104x64xf32> -> vector<104x64xf32>
    %307 = arith.addf %301, %306 : vector<104x64xf32>
    %c25_310 = arith.constant 25 : index
    %c0_311 = arith.constant 0 : index
    %308 = vector.load %arg17[%c25_310, %c0_311] : memref<136x64xf32, #tpu.memory_space<vmem>>, vector<104x64xf32>
    %309 = arith.truncf %308 : vector<104x64xf32> to vector<104x64xbf16>
    %c3_312 = arith.constant 3 : index
    %c6_313 = arith.constant 6 : index
    %c0_314 = arith.constant 0 : index
    %c0_315 = arith.constant 0 : index
    %310 = vector.load %arg5[%c3_312, %c6_313, %c0_314, %c0_315] : memref<5x9x64x64xbf16, #tpu.memory_space<vmem>>, vector<1x1x64x64xbf16>
    %311 = vector.shape_cast %310 : vector<1x1x64x64xbf16> to vector<64x64xbf16>
    %cst_316 = arith.constant dense<0.000000e+00> : vector<104x64xf32>
    %312 = tpu.matmul %309, %311, %cst_316 {dimension_numbers = #tpu.dot_dimension_numbers<[1], [0], [0], [1], [0, 0, 1, 1], [], []>} : vector<104x64xbf16>, vector<64x64xbf16>, vector<104x64xf32> -> vector<104x64xf32>
    %313 = arith.addf %307, %312 : vector<104x64xf32>
    %c26_317 = arith.constant 26 : index
    %c0_318 = arith.constant 0 : index
    %314 = vector.load %arg17[%c26_317, %c0_318] : memref<136x64xf32, #tpu.memory_space<vmem>>, vector<104x64xf32>
    %315 = arith.truncf %314 : vector<104x64xf32> to vector<104x64xbf16>
    %c3_319 = arith.constant 3 : index
    %c7_320 = arith.constant 7 : index
    %c0_321 = arith.constant 0 : index
    %c0_322 = arith.constant 0 : index
    %316 = vector.load %arg5[%c3_319, %c7_320, %c0_321, %c0_322] : memref<5x9x64x64xbf16, #tpu.memory_space<vmem>>, vector<1x1x64x64xbf16>
    %317 = vector.shape_cast %316 : vector<1x1x64x64xbf16> to vector<64x64xbf16>
    %cst_323 = arith.constant dense<0.000000e+00> : vector<104x64xf32>
    %318 = tpu.matmul %315, %317, %cst_323 {dimension_numbers = #tpu.dot_dimension_numbers<[1], [0], [0], [1], [0, 0, 1, 1], [], []>} : vector<104x64xbf16>, vector<64x64xbf16>, vector<104x64xf32> -> vector<104x64xf32>
    %319 = arith.addf %313, %318 : vector<104x64xf32>
    %c27_324 = arith.constant 27 : index
    %c0_325 = arith.constant 0 : index
    %320 = vector.load %arg17[%c27_324, %c0_325] : memref<136x64xf32, #tpu.memory_space<vmem>>, vector<104x64xf32>
    %321 = arith.truncf %320 : vector<104x64xf32> to vector<104x64xbf16>
    %c3_326 = arith.constant 3 : index
    %c8_327 = arith.constant 8 : index
    %c0_328 = arith.constant 0 : index
    %c0_329 = arith.constant 0 : index
    %322 = vector.load %arg5[%c3_326, %c8_327, %c0_328, %c0_329] : memref<5x9x64x64xbf16, #tpu.memory_space<vmem>>, vector<1x1x64x64xbf16>
    %323 = vector.shape_cast %322 : vector<1x1x64x64xbf16> to vector<64x64xbf16>
    %cst_330 = arith.constant dense<0.000000e+00> : vector<104x64xf32>
    %324 = tpu.matmul %321, %323, %cst_330 {dimension_numbers = #tpu.dot_dimension_numbers<[1], [0], [0], [1], [0, 0, 1, 1], [], []>} : vector<104x64xbf16>, vector<64x64xbf16>, vector<104x64xf32> -> vector<104x64xf32>
    %325 = arith.addf %319, %324 : vector<104x64xf32>
    %cst_331 = arith.constant 0.00999999977 : f32
    %326 = vector.broadcast %cst_331 : f32 to vector<104x64xf32>
    %327 = arith.mulf %326, %325 : vector<104x64xf32>
    %328 = arith.maximumf %325, %327 : vector<104x64xf32>
    %329 = arith.addf %328, %268 : vector<104x64xf32>
    %cst_332 = arith.constant 0.000000e+00 : f32
    %330 = vector.shape_cast %2 : vector<104x1xi1> to vector<104x1xi1>
    %331 = vector.broadcast %330 : vector<104x1xi1> to vector<104x64xi1>
    %332 = vector.broadcast %cst_332 : f32 to vector<104x64xf32>
    %333 = arith.select %331, %329, %332 : vector<104x64xi1>, vector<104x64xf32>
    %c16_333 = arith.constant 16 : index
    %c0_334 = arith.constant 0 : index
    %334 = vector.load %arg17[%c16_333, %c0_334] : memref<136x64xf32, #tpu.memory_space<vmem>>, vector<104x64xf32>
    tpu.vector_store %arg17[%c16_333, %c0_334], %333 {strides = array<i32>} : memref<136x64xf32, #tpu.memory_space<vmem>>, vector<104x64xf32>,
    %c16_335 = arith.constant 16 : index
    %c0_336 = arith.constant 0 : index
    %335 = vector.load %arg17[%c16_335, %c0_336] : memref<136x64xf32, #tpu.memory_space<vmem>>, vector<104x64xf32>
    %c4_337 = arith.constant 4 : index
    %c0_338 = arith.constant 0 : index
    %c0_339 = arith.constant 0 : index
    %336 = vector.load %arg6[%c4_337, %c0_338, %c0_339] : memref<5x1x64xf32, #tpu.memory_space<vmem>>, vector<1x1x64xf32>
    %337 = vector.shape_cast %336 : vector<1x1x64xf32> to vector<1x64xf32>
    %c5_340 = arith.constant 5 : index
    %c0_341 = arith.constant 0 : index
    %338 = vector.load %arg17[%c5_340, %c0_341] : memref<136x64xf32, #tpu.memory_space<vmem>>, vector<104x64xf32>
    %339 = arith.truncf %338 : vector<104x64xf32> to vector<104x64xbf16>
    %c4_342 = arith.constant 4 : index
    %c0_343 = arith.constant 0 : index
    %c0_344 = arith.constant 0 : index
    %c0_345 = arith.constant 0 : index
    %340 = vector.load %arg5[%c4_342, %c0_343, %c0_344, %c0_345] : memref<5x9x64x64xbf16, #tpu.memory_space<vmem>>, vector<1x1x64x64xbf16>
    %341 = vector.shape_cast %340 : vector<1x1x64x64xbf16> to vector<64x64xbf16>
    %cst_346 = arith.constant dense<0.000000e+00> : vector<104x64xf32>
    %342 = tpu.matmul %339, %341, %cst_346 {dimension_numbers = #tpu.dot_dimension_numbers<[1], [0], [0], [1], [0, 0, 1, 1], [], []>} : vector<104x64xbf16>, vector<64x64xbf16>, vector<104x64xf32> -> vector<104x64xf32>
    %343 = vector.broadcast %337 : vector<1x64xf32> to vector<104x64xf32>
    %344 = arith.addf %343, %342 : vector<104x64xf32>
    %c6_347 = arith.constant 6 : index
    %c0_348 = arith.constant 0 : index
    %345 = vector.load %arg17[%c6_347, %c0_348] : memref<136x64xf32, #tpu.memory_space<vmem>>, vector<104x64xf32>
    %346 = arith.truncf %345 : vector<104x64xf32> to vector<104x64xbf16>
    %c4_349 = arith.constant 4 : index
    %c1_350 = arith.constant 1 : index
    %c0_351 = arith.constant 0 : index
    %c0_352 = arith.constant 0 : index
    %347 = vector.load %arg5[%c4_349, %c1_350, %c0_351, %c0_352] : memref<5x9x64x64xbf16, #tpu.memory_space<vmem>>, vector<1x1x64x64xbf16>
    %348 = vector.shape_cast %347 : vector<1x1x64x64xbf16> to vector<64x64xbf16>
    %cst_353 = arith.constant dense<0.000000e+00> : vector<104x64xf32>
    %349 = tpu.matmul %346, %348, %cst_353 {dimension_numbers = #tpu.dot_dimension_numbers<[1], [0], [0], [1], [0, 0, 1, 1], [], []>} : vector<104x64xbf16>, vector<64x64xbf16>, vector<104x64xf32> -> vector<104x64xf32>
    %350 = arith.addf %344, %349 : vector<104x64xf32>
    %c7_354 = arith.constant 7 : index
    %c0_355 = arith.constant 0 : index
    %351 = vector.load %arg17[%c7_354, %c0_355] : memref<136x64xf32, #tpu.memory_space<vmem>>, vector<104x64xf32>
    %352 = arith.truncf %351 : vector<104x64xf32> to vector<104x64xbf16>
    %c4_356 = arith.constant 4 : index
    %c2_357 = arith.constant 2 : index
    %c0_358 = arith.constant 0 : index
    %c0_359 = arith.constant 0 : index
    %353 = vector.load %arg5[%c4_356, %c2_357, %c0_358, %c0_359] : memref<5x9x64x64xbf16, #tpu.memory_space<vmem>>, vector<1x1x64x64xbf16>
    %354 = vector.shape_cast %353 : vector<1x1x64x64xbf16> to vector<64x64xbf16>
    %cst_360 = arith.constant dense<0.000000e+00> : vector<104x64xf32>
    %355 = tpu.matmul %352, %354, %cst_360 {dimension_numbers = #tpu.dot_dimension_numbers<[1], [0], [0], [1], [0, 0, 1, 1], [], []>} : vector<104x64xbf16>, vector<64x64xbf16>, vector<104x64xf32> -> vector<104x64xf32>
    %356 = arith.addf %350, %355 : vector<104x64xf32>
    %c15_361 = arith.constant 15 : index
    %c0_362 = arith.constant 0 : index
    %357 = vector.load %arg17[%c15_361, %c0_362] : memref<136x64xf32, #tpu.memory_space<vmem>>, vector<104x64xf32>
    %358 = arith.truncf %357 : vector<104x64xf32> to vector<104x64xbf16>
    %c4_363 = arith.constant 4 : index
    %c3_364 = arith.constant 3 : index
    %c0_365 = arith.constant 0 : index
    %c0_366 = arith.constant 0 : index
    %359 = vector.load %arg5[%c4_363, %c3_364, %c0_365, %c0_366] : memref<5x9x64x64xbf16, #tpu.memory_space<vmem>>, vector<1x1x64x64xbf16>
    %360 = vector.shape_cast %359 : vector<1x1x64x64xbf16> to vector<64x64xbf16>
    %cst_367 = arith.constant dense<0.000000e+00> : vector<104x64xf32>
    %361 = tpu.matmul %358, %360, %cst_367 {dimension_numbers = #tpu.dot_dimension_numbers<[1], [0], [0], [1], [0, 0, 1, 1], [], []>} : vector<104x64xbf16>, vector<64x64xbf16>, vector<104x64xf32> -> vector<104x64xf32>
    %362 = arith.addf %356, %361 : vector<104x64xf32>
    %c16_368 = arith.constant 16 : index
    %c0_369 = arith.constant 0 : index
    %363 = vector.load %arg17[%c16_368, %c0_369] : memref<136x64xf32, #tpu.memory_space<vmem>>, vector<104x64xf32>
    %364 = arith.truncf %363 : vector<104x64xf32> to vector<104x64xbf16>
    %c4_370 = arith.constant 4 : index
    %c4_371 = arith.constant 4 : index
    %c0_372 = arith.constant 0 : index
    %c0_373 = arith.constant 0 : index
    %365 = vector.load %arg5[%c4_370, %c4_371, %c0_372, %c0_373] : memref<5x9x64x64xbf16, #tpu.memory_space<vmem>>, vector<1x1x64x64xbf16>
    %366 = vector.shape_cast %365 : vector<1x1x64x64xbf16> to vector<64x64xbf16>
    %cst_374 = arith.constant dense<0.000000e+00> : vector<104x64xf32>
    %367 = tpu.matmul %364, %366, %cst_374 {dimension_numbers = #tpu.dot_dimension_numbers<[1], [0], [0], [1], [0, 0, 1, 1], [], []>} : vector<104x64xbf16>, vector<64x64xbf16>, vector<104x64xf32> -> vector<104x64xf32>
    %368 = arith.addf %362, %367 : vector<104x64xf32>
    %c17_375 = arith.constant 17 : index
    %c0_376 = arith.constant 0 : index
    %369 = vector.load %arg17[%c17_375, %c0_376] : memref<136x64xf32, #tpu.memory_space<vmem>>, vector<104x64xf32>
    %370 = arith.truncf %369 : vector<104x64xf32> to vector<104x64xbf16>
    %c4_377 = arith.constant 4 : index
    %c5_378 = arith.constant 5 : index
    %c0_379 = arith.constant 0 : index
    %c0_380 = arith.constant 0 : index
    %371 = vector.load %arg5[%c4_377, %c5_378, %c0_379, %c0_380] : memref<5x9x64x64xbf16, #tpu.memory_space<vmem>>, vector<1x1x64x64xbf16>
    %372 = vector.shape_cast %371 : vector<1x1x64x64xbf16> to vector<64x64xbf16>
    %cst_381 = arith.constant dense<0.000000e+00> : vector<104x64xf32>
    %373 = tpu.matmul %370, %372, %cst_381 {dimension_numbers = #tpu.dot_dimension_numbers<[1], [0], [0], [1], [0, 0, 1, 1], [], []>} : vector<104x64xbf16>, vector<64x64xbf16>, vector<104x64xf32> -> vector<104x64xf32>
    %374 = arith.addf %368, %373 : vector<104x64xf32>
    %c25_382 = arith.constant 25 : index
    %c0_383 = arith.constant 0 : index
    %375 = vector.load %arg17[%c25_382, %c0_383] : memref<136x64xf32, #tpu.memory_space<vmem>>, vector<104x64xf32>
    %376 = arith.truncf %375 : vector<104x64xf32> to vector<104x64xbf16>
    %c4_384 = arith.constant 4 : index
    %c6_385 = arith.constant 6 : index
    %c0_386 = arith.constant 0 : index
    %c0_387 = arith.constant 0 : index
    %377 = vector.load %arg5[%c4_384, %c6_385, %c0_386, %c0_387] : memref<5x9x64x64xbf16, #tpu.memory_space<vmem>>, vector<1x1x64x64xbf16>
    %378 = vector.shape_cast %377 : vector<1x1x64x64xbf16> to vector<64x64xbf16>
    %cst_388 = arith.constant dense<0.000000e+00> : vector<104x64xf32>
    %379 = tpu.matmul %376, %378, %cst_388 {dimension_numbers = #tpu.dot_dimension_numbers<[1], [0], [0], [1], [0, 0, 1, 1], [], []>} : vector<104x64xbf16>, vector<64x64xbf16>, vector<104x64xf32> -> vector<104x64xf32>
    %380 = arith.addf %374, %379 : vector<104x64xf32>
    %c26_389 = arith.constant 26 : index
    %c0_390 = arith.constant 0 : index
    %381 = vector.load %arg17[%c26_389, %c0_390] : memref<136x64xf32, #tpu.memory_space<vmem>>, vector<104x64xf32>
    %382 = arith.truncf %381 : vector<104x64xf32> to vector<104x64xbf16>
    %c4_391 = arith.constant 4 : index
    %c7_392 = arith.constant 7 : index
    %c0_393 = arith.constant 0 : index
    %c0_394 = arith.constant 0 : index
    %383 = vector.load %arg5[%c4_391, %c7_392, %c0_393, %c0_394] : memref<5x9x64x64xbf16, #tpu.memory_space<vmem>>, vector<1x1x64x64xbf16>
    %384 = vector.shape_cast %383 : vector<1x1x64x64xbf16> to vector<64x64xbf16>
    %cst_395 = arith.constant dense<0.000000e+00> : vector<104x64xf32>
    %385 = tpu.matmul %382, %384, %cst_395 {dimension_numbers = #tpu.dot_dimension_numbers<[1], [0], [0], [1], [0, 0, 1, 1], [], []>} : vector<104x64xbf16>, vector<64x64xbf16>, vector<104x64xf32> -> vector<104x64xf32>
    %386 = arith.addf %380, %385 : vector<104x64xf32>
    %c27_396 = arith.constant 27 : index
    %c0_397 = arith.constant 0 : index
    %387 = vector.load %arg17[%c27_396, %c0_397] : memref<136x64xf32, #tpu.memory_space<vmem>>, vector<104x64xf32>
    %388 = arith.truncf %387 : vector<104x64xf32> to vector<104x64xbf16>
    %c4_398 = arith.constant 4 : index
    %c8_399 = arith.constant 8 : index
    %c0_400 = arith.constant 0 : index
    %c0_401 = arith.constant 0 : index
    %389 = vector.load %arg5[%c4_398, %c8_399, %c0_400, %c0_401] : memref<5x9x64x64xbf16, #tpu.memory_space<vmem>>, vector<1x1x64x64xbf16>
    %390 = vector.shape_cast %389 : vector<1x1x64x64xbf16> to vector<64x64xbf16>
    %cst_402 = arith.constant dense<0.000000e+00> : vector<104x64xf32>
    %391 = tpu.matmul %388, %390, %cst_402 {dimension_numbers = #tpu.dot_dimension_numbers<[1], [0], [0], [1], [0, 0, 1, 1], [], []>} : vector<104x64xbf16>, vector<64x64xbf16>, vector<104x64xf32> -> vector<104x64xf32>
    %392 = arith.addf %386, %391 : vector<104x64xf32>
    %cst_403 = arith.constant 0.00999999977 : f32
    %393 = vector.broadcast %cst_403 : f32 to vector<104x64xf32>
    %394 = arith.mulf %393, %392 : vector<104x64xf32>
    %395 = arith.maximumf %392, %394 : vector<104x64xf32>
    %396 = arith.addf %395, %335 : vector<104x64xf32>
    %cst_404 = arith.constant 0.000000e+00 : f32
    %397 = vector.shape_cast %2 : vector<104x1xi1> to vector<104x1xi1>
    %398 = vector.broadcast %397 : vector<104x1xi1> to vector<104x64xi1>
    %399 = vector.broadcast %cst_404 : f32 to vector<104x64xf32>
    %400 = arith.select %398, %396, %399 : vector<104x64xi1>, vector<104x64xf32>
    %c16_405 = arith.constant 16 : index
    %c0_406 = arith.constant 0 : index
    %401 = vector.load %arg17[%c16_405, %c0_406] : memref<136x64xf32, #tpu.memory_space<vmem>>, vector<104x64xf32>
    tpu.vector_store %arg17[%c16_405, %c0_406], %400 {strides = array<i32>} : memref<136x64xf32, #tpu.memory_space<vmem>>, vector<104x64xf32>,
    %c16_407 = arith.constant 16 : index
    %c0_408 = arith.constant 0 : index
    %402 = vector.load %arg17[%c16_407, %c0_408] : memref<136x64xf32, #tpu.memory_space<vmem>>, vector<104x64xf32>
    %c0_409 = arith.constant 0 : index
    %c0_410 = arith.constant 0 : index
    %403 = vector.load %arg7[%c0_409, %c0_410] : memref<64x3xf32, #tpu.memory_space<vmem>>, vector<64x3xf32>
    %cst_411 = arith.constant dense<0.000000e+00> : vector<104x3xf32>
    %404 = tpu.matmul %402, %403, %cst_411 {dimension_numbers = #tpu.dot_dimension_numbers<[1], [0], [0], [1], [0, 0, 1, 1], [], []>} : vector<104x64xf32>, vector<64x3xf32>, vector<104x3xf32> -> vector<104x3xf32>
    %c0_412 = arith.constant 0 : index
    %c0_413 = arith.constant 0 : index
    %405 = vector.load %arg8[%c0_412, %c0_413] : memref<1x3xf32, #tpu.memory_space<vmem>>, vector<1x3xf32>
    %406 = vector.broadcast %405 : vector<1x3xf32> to vector<104x3xf32>
    %407 = arith.addf %404, %406 : vector<104x3xf32>
    %cst_414 = arith.constant 0.00999999977 : f32
    %408 = vector.broadcast %cst_414 : f32 to vector<104x3xf32>
    %409 = arith.mulf %408, %407 : vector<104x3xf32>
    %410 = arith.maximumf %407, %409 : vector<104x3xf32>
    %c0_415 = arith.constant 0 : index
    %c0_416 = arith.constant 0 : index
    %411 = vector.load %arg9[%c0_415, %c0_416] : memref<20x104xf32, #tpu.memory_space<vmem>>, vector<20x104xf32>
    %412 = vector.extract_strided_slice %410 {offsets = [0, 0], sizes = [104, 1], strides = [1, 1]} : vector<104x3xf32> to vector<104x1xf32>
    %cst_417 = arith.constant dense<0.000000e+00> : vector<20x1xf32>
    %413 = tpu.matmul %411, %412, %cst_417 {dimension_numbers = #tpu.dot_dimension_numbers<[1], [0], [0], [1], [0, 0, 1, 1], [], []>} : vector<20x104xf32>, vector<104x1xf32>, vector<20x1xf32> -> vector<20x1xf32>
    %c0_418 = arith.constant 0 : index
    %c0_419 = arith.constant 0 : index
    %414 = vector.load %arg10[%c0_418, %c0_419] : memref<20x1xf32, #tpu.memory_space<vmem>>, vector<20x1xf32>
    %415 = arith.addf %413, %414 : vector<20x1xf32>
    %cst_420 = arith.constant 0.00999999977 : f32
    %416 = vector.broadcast %cst_420 : f32 to vector<20x1xf32>
    %417 = arith.mulf %416, %415 : vector<20x1xf32>
    %418 = arith.maximumf %415, %417 : vector<20x1xf32>
    %c0_421 = arith.constant 0 : index
    %c0_422 = arith.constant 0 : index
    %419 = vector.load %arg11[%c0_421, %c0_422] : memref<1x20xf32, #tpu.memory_space<vmem>>, vector<1x20xf32>
    %cst_423 = arith.constant dense<0.000000e+00> : vector<1x1xf32>
    %420 = tpu.matmul %419, %418, %cst_423 {dimension_numbers = #tpu.dot_dimension_numbers<[1], [0], [0], [1], [0, 0, 1, 1], [], []>} : vector<1x20xf32>, vector<20x1xf32>, vector<1x1xf32> -> vector<1x1xf32>
    %c0_424 = arith.constant 0 : index
    %c0_425 = arith.constant 0 : index
    %421 = vector.load %arg12[%c0_424, %c0_425] : memref<1x1xf32, #tpu.memory_space<vmem>>, vector<1x1xf32>
    %422 = arith.addf %420, %421 : vector<1x1xf32>
    %423 = math.tanh %422 : vector<1x1xf32>
    %424 = vector.shape_cast %423 : vector<1x1xf32> to vector<1x1x1xf32>
    %c0_426 = arith.constant 0 : index
    %c0_427 = arith.constant 0 : index
    %c0_428 = arith.constant 0 : index
    %425 = vector.load %arg16[%c0_426, %c0_427, %c0_428] : memref<1x1x1xf32, #tpu.memory_space<vmem>>, vector<1x1x1xf32>
    tpu.vector_store %arg16[%c0_426, %c0_427, %c0_428], %424 {strides = array<i32>} : memref<1x1x1xf32, #tpu.memory_space<vmem>>, vector<1x1x1xf32>,
    %c0_429 = arith.constant 0 : index
    %c0_430 = arith.constant 0 : index
    %c0_431 = arith.constant 0 : index
    %426 = vector.load %arg13[%c0_429, %c0_430, %c0_431] : memref<2x64x104xf32, #tpu.memory_space<vmem>>, vector<1x64x104xf32>
    %427 = vector.shape_cast %426 : vector<1x64x104xf32> to vector<64x104xf32>
    %428 = vector.extract_strided_slice %410 {offsets = [0, 1], sizes = [104, 1], strides = [1, 1]} : vector<104x3xf32> to vector<104x1xf32>
    %cst_432 = arith.constant dense<0.000000e+00> : vector<64x1xf32>
    %429 = tpu.matmul %427, %428, %cst_432 {dimension_numbers = #tpu.dot_dimension_numbers<[1], [0], [0], [1], [0, 0, 1, 1], [], []>} : vector<64x104xf32>, vector<104x1xf32>, vector<64x1xf32> -> vector<64x1xf32>
    %c1_433 = arith.constant 1 : index
    %c0_434 = arith.constant 0 : index
    %c0_435 = arith.constant 0 : index
    %430 = vector.load %arg13[%c1_433, %c0_434, %c0_435] : memref<2x64x104xf32, #tpu.memory_space<vmem>>, vector<1x64x104xf32>
    %431 = vector.shape_cast %430 : vector<1x64x104xf32> to vector<64x104xf32>
    %432 = vector.extract_strided_slice %410 {offsets = [0, 2], sizes = [104, 1], strides = [1, 1]} : vector<104x3xf32> to vector<104x1xf32>
    %cst_436 = arith.constant dense<0.000000e+00> : vector<64x1xf32>
    %433 = tpu.matmul %431, %432, %cst_436 {dimension_numbers = #tpu.dot_dimension_numbers<[1], [0], [0], [1], [0, 0, 1, 1], [], []>} : vector<64x104xf32>, vector<104x1xf32>, vector<64x1xf32> -> vector<64x1xf32>
    %434 = arith.addf %429, %433 : vector<64x1xf32>
    %c0_437 = arith.constant 0 : index
    %c0_438 = arith.constant 0 : index
    %435 = vector.load %arg14[%c0_437, %c0_438] : memref<64x1xf32, #tpu.memory_space<vmem>>, vector<64x1xf32>
    %436 = arith.addf %434, %435 : vector<64x1xf32>
    %cst_439 = arith.constant dense<0xFF800000> : vector<1xf32>
    %437 = vector.multi_reduction <maximumf>, %436, %cst_439 [0] : vector<64x1xf32> to vector<1xf32>
    %438 = vector.shape_cast %437 : vector<1xf32> to vector<1x1xf32>
    %439 = vector.broadcast %438 : vector<1x1xf32> to vector<64x1xf32>
    %440 = arith.subf %436, %439 : vector<64x1xf32>
    %441 = math.exp %440 : vector<64x1xf32>
    %cst_440 = arith.constant dense<0.000000e+00> : vector<1xf32>
    %442 = vector.multi_reduction <add>, %441, %cst_440 [0] : vector<64x1xf32> to vector<1xf32>
    %443 = vector.shape_cast %442 : vector<1xf32> to vector<1x1xf32>
    %444 = vector.broadcast %443 : vector<1x1xf32> to vector<64x1xf32>
    %445 = arith.divf %441, %444 : vector<64x1xf32>
    %446 = vector.shape_cast %445 : vector<64x1xf32> to vector<1x64x1xf32>
    %c0_441 = arith.constant 0 : index
    %c0_442 = arith.constant 0 : index
    %c0_443 = arith.constant 0 : index
    %447 = vector.load %arg15[%c0_441, %c0_442, %c0_443] : memref<1x64x1xf32, #tpu.memory_space<vmem>>, vector<1x64x1xf32>
    tpu.vector_store %arg15[%c0_441, %c0_442, %c0_443], %446 {strides = array<i32>} : memref<1x64x1xf32, #tpu.memory_space<vmem>>, vector<1x64x1xf32>,
    return
  }
  func.func @transform_0(%arg0: i32) -> (i32, i32) {
    %c0_i32 = arith.constant 0 : i32
    %c0_i32_0 = arith.constant 0 : i32
    return %arg0, %c0_i32 : i32, i32
  }
  func.func @transform_1(%arg0: i32) -> (i32, i32) {
    %c0_i32 = arith.constant 0 : i32
    %c0_i32_0 = arith.constant 0 : i32
    %c0_i32_1 = arith.constant 0 : i32
    return %c0_i32, %c0_i32_0 : i32, i32
  }
  func.func @transform_2(%arg0: i32) -> (i32, i32, i32) {
    %c0_i32 = arith.constant 0 : i32
    %c0_i32_0 = arith.constant 0 : i32
    %c0_i32_1 = arith.constant 0 : i32
    %c0_i32_2 = arith.constant 0 : i32
    return %c0_i32, %c0_i32_0, %c0_i32_1 : i32, i32, i32
  }
  func.func @transform_3(%arg0: i32) -> (i32, i32) {
    %c0_i32 = arith.constant 0 : i32
    %c0_i32_0 = arith.constant 0 : i32
    %c0_i32_1 = arith.constant 0 : i32
    return %c0_i32, %c0_i32_0 : i32, i32
  }
  func.func @transform_4(%arg0: i32) -> (i32, i32, i32, i32) {
    %c0_i32 = arith.constant 0 : i32
    %c0_i32_0 = arith.constant 0 : i32
    %c0_i32_1 = arith.constant 0 : i32
    %c0_i32_2 = arith.constant 0 : i32
    %c0_i32_3 = arith.constant 0 : i32
    return %c0_i32, %c0_i32_0, %c0_i32_1, %c0_i32_2 : i32, i32, i32, i32
  }
  func.func @transform_5(%arg0: i32) -> (i32, i32, i32) {
    %c0_i32 = arith.constant 0 : i32
    %c0_i32_0 = arith.constant 0 : i32
    %c0_i32_1 = arith.constant 0 : i32
    %c0_i32_2 = arith.constant 0 : i32
    return %c0_i32, %c0_i32_0, %c0_i32_1 : i32, i32, i32
  }
  func.func @transform_6(%arg0: i32) -> (i32, i32) {
    %c0_i32 = arith.constant 0 : i32
    %c0_i32_0 = arith.constant 0 : i32
    %c0_i32_1 = arith.constant 0 : i32
    return %c0_i32, %c0_i32_0 : i32, i32
  }
  func.func @transform_7(%arg0: i32) -> (i32, i32) {
    %c0_i32 = arith.constant 0 : i32
    %c0_i32_0 = arith.constant 0 : i32
    %c0_i32_1 = arith.constant 0 : i32
    return %c0_i32, %c0_i32_0 : i32, i32
  }
  func.func @transform_8(%arg0: i32) -> (i32, i32) {
    %c0_i32 = arith.constant 0 : i32
    %c0_i32_0 = arith.constant 0 : i32
    %c0_i32_1 = arith.constant 0 : i32
    return %c0_i32, %c0_i32_0 : i32, i32
  }
  func.func @transform_9(%arg0: i32) -> (i32, i32) {
    %c0_i32 = arith.constant 0 : i32
    %c0_i32_0 = arith.constant 0 : i32
    %c0_i32_1 = arith.constant 0 : i32
    return %c0_i32, %c0_i32_0 : i32, i32
  }
  func.func @transform_10(%arg0: i32) -> (i32, i32) {
    %c0_i32 = arith.constant 0 : i32
    %c0_i32_0 = arith.constant 0 : i32
    %c0_i32_1 = arith.constant 0 : i32
    return %c0_i32, %c0_i32_0 : i32, i32
  }
  func.func @transform_11(%arg0: i32) -> (i32, i32) {
    %c0_i32 = arith.constant 0 : i32
    %c0_i32_0 = arith.constant 0 : i32
    %c0_i32_1 = arith.constant 0 : i32
    return %c0_i32, %c0_i32_0 : i32, i32
  }
  func.func @transform_12(%arg0: i32) -> (i32, i32, i32) {
    %c0_i32 = arith.constant 0 : i32
    %c0_i32_0 = arith.constant 0 : i32
    %c0_i32_1 = arith.constant 0 : i32
    %c0_i32_2 = arith.constant 0 : i32
    return %c0_i32, %c0_i32_0, %c0_i32_1 : i32, i32, i32
  }
  func.func @transform_13(%arg0: i32) -> (i32, i32) {
    %c0_i32 = arith.constant 0 : i32
    %c0_i32_0 = arith.constant 0 : i32
    %c0_i32_1 = arith.constant 0 : i32
    return %c0_i32, %c0_i32_0 : i32, i32
  }
  func.func @transform_14(%arg0: i32) -> (i32, i32, i32) {
    %c0_i32 = arith.constant 0 : i32
    %c0_i32_0 = arith.constant 0 : i32
    %c0_i32_1 = arith.constant 0 : i32
    return %arg0, %c0_i32, %c0_i32_0 : i32, i32, i32
  }
  func.func @transform_15(%arg0: i32) -> (i32, i32, i32) {
    %c0_i32 = arith.constant 0 : i32
    %c0_i32_0 = arith.constant 0 : i32
    %c0_i32_1 = arith.constant 0 : i32
    return %arg0, %c0_i32, %c0_i32_0 : i32, i32, i32
  }
}

</mosaic_0001>

<bundles_post_ra>
// kernel: resnet8_forward.1
= control target key start
LH: loop header
LB: loop body
LE: loop exit
PB: predicated region body
PF: predicated region fallthrough
CT: control target
= control target key end

     0   :  { %s12609_s0 = inlined_call_operand.vmem [shape: f32[272,4], index: 0, kind: input, shape index: {}]   ;;  %s12610_s1 = inlined_call_operand.vmem [shape: f32[104,1], index: 1, kind: input, shape index: {}]   ;;  %s12611_s2 = inlined_call_operand.vmem [shape: bf16[9,4,64], index: 2, kind: input, shape index: {}]   ;;  %s12612_s3 = inlined_call_operand.vmem [shape: f32[1,64], index: 3, kind: input, shape index: {}]   ;;  %s12613_s4 = inlined_call_operand.hbm [shape: bf16[5,9,64,64], index: 4, kind: input, shape index: {}]   ;;  %s12614_s5 = inlined_call_operand.vmem [shape: f32[5,1,64], index: 5, kind: input, shape index: {}]   ;;  %s12615_s6 = inlined_call_operand.vmem [shape: f32[64,3], index: 6, kind: input, shape index: {}]   ;;  %s12616_s7 = inlined_call_operand.vmem [shape: f32[1,3], index: 7, kind: input, shape index: {}]   ;;  %s12617_s8 = inlined_call_operand.vmem [shape: f32[20,104], index: 8, kind: input, shape index: {}]   ;;  %s12618_s9 = inlined_call_operand.vmem [shape: f32[20,1], index: 9, kind: input, shape index: {}]   ;;  %s12619_s10 = inlined_call_operand.vmem [shape: f32[1,20], index: 10, kind: input, shape index: {}]   ;;  %s12620_s11 = inlined_call_operand.<no memory space> [shape: f32[1,1], index: 11, kind: input, shape index: {}]   ;;  %s12621_s12 = inlined_call_operand.vmem [shape: f32[2,64,104], index: 12, kind: input, shape index: {}]   ;;  %s12622_s13 = inlined_call_operand.vmem [shape: f32[64,1], index: 13, kind: input, shape index: {}]   ;;  %s12623_s14 = inlined_call_operand.vmem [shape: f32[2,64,1], index: 14, kind: output, shape index: {0}]   ;;  %s12624_s15 = inlined_call_operand.vmem [shape: f32[2,1,1], index: 15, kind: output, shape index: {1}]  }
   0x1   :  { %v21_v0 = vstv %s12620_s11 }
   0x2   :  { %22 = vst [vmem:[#allocation3] sm:$0x1] %v21_v0 }
   0x3   :  { %23 = vsyncpa [#allocation5], 0  ;;  %s10066_s20 = smov 0  }
   0x4 LB: > { %s405_s23 = sshll.u32 %s12613_s4, 4  ;;  %s10075_s24 = sadd.s32 4294967295, %s9975_s20   ;;  %s9975_s20 = sphi %s10066_s20, %s29_s20   ;;  %s406_s23 = int_to_ptr.hbm [resolvable:$true] %s405_s23 }
   0x5   : > { %p8463_p0 = scmp.ge.s32.totalorder %s9975_s20, 1  ;;  %p385_p1 = scmp.lt.s32.totalorder %s9975_s20, 3 }
   0x6   : > { %p9829_p2 = scmp.eq.s32.totalorder %s10075_s24, 0  ;;  %s9977_s11 = smov [#allocation4]  }
   0x7   : > { %p386_p3 = pnand %p8463_p0, %p385_p1  ;;  %s407_s25 = sshll.u32 %s9977_s11, 4  ;;  %s408_s25 = int_to_ptr.vmem [resolvable:$true] %s407_s25 }
   0x8   : > { %s9978_s26 = smov 64   ;;  %s9979_s27 = smov 4  }
   0x9   : > { %p9825_p4 = pneg %p386_p3  ;;  %459 = sbr.rel (%p386_p3) target bundleno = 2993 (0xbb1), region = 76 }
   0xb   : > { %p9826_p5 = pnand %p9829_p2, %p9825_p4 }
   0xd   : > { %9828 = dma.hbm_to_vmem [thread:$0]  (!%p9826_p5), %s406_s23, 23040, %s408_s25, [#allocation5], %s9978_s26, %s9978_s26, %s9979_s27  }
   0xe   : > { %9970 = dma.done.wait (%p9829_p2), [#allocation5], 23040  }
   0xf   : > { %9972 = vsyncadd (%p9829_p2), [#allocation5], 4294944256  ;;  %s511_s28 = smul.u32 17, %s10075_s24  ;;  %vm596_vm0 = vcmask 1041408   ;;  %v573_v1 = vld [vmem:[%s12611_s2] sm:$0x3] }
  0x10   : > { %v8494_v2 = vld [vmem:[%s12611_s2 + $0x6] sm:$0x3]  ;;  %v8478_v3 = vld [vmem:[%s12611_s2 + $0x2] sm:$0x3]  ;;  %v598_v4 = vsel %vm596_vm0, %v573_v1, 0  ;;  %vm574_vm1 = vcmask 31744  }
  0x11   : > { %p512_p6 = scmp.lt.s32.totalorder %s511_s28, 33  ;;  %v907_v8 = vsel %vm596_vm0, %v8494_v2, 0  ;;  %v703_v9 = vsel %vm596_vm0, %v8478_v3, 0  ;;  %607 = vmatpush.bf16.msra.mxu0 %v598_v4  ;;  %9806 = vmatpush.bf16.msra.mxu1 %v598_v4  ;;  %v8486_v16 = vld [vmem:[%s12611_s2 + $0x4] sm:$0x3]  ;;  %s9982_s26 = smov 127  }
  0x12   : > { %916 = vmatpush.bf16.msra.mxu3 %v907_v8  ;;  %v805_v18 = vsel %vm596_vm0, %v8486_v16, 0  ;;  %v8518_v3 = vld [vmem:[%s12611_s2 + $0xc] sm:$0x3]  ;;  %p517_p7 = scmp.lt.s32.totalorder %s10075_s24, 1 }
  0x13   : > { %s12860_s28 = smov (!%p512_p6, %s511_s28), 33  ;;  %9807 = vmatpush.bf16.msra.mxu2 %v805_v18  ;;  %v1213_v4 = vsel %vm596_vm0, %v8518_v3, 0 }
  0x14   : > { %s8468_s29 = sshll.u32 %s12860_s28, 3  ;;  %s12862_s24 = smov (!%p517_p7, %s10075_s24), 1 }
  0x15   : > { %s10087_s19 = scalar_lea.vmem %s12609_s0, %s8468_s29  ;;  %712 = vmatpush.bf16.msrb.mxu1 %v703_v9  ;;  %814 = vmatpush.bf16.msrb.mxu0 %v805_v18  ;;  %v8502_v9 = vld [vmem:[%s12611_s2 + $0x8] sm:$0x3]  ;;  %s524_s18 = scalar_lea.vmem %s12624_s15, %s12862_s24 }
  0x16   : > { %v553_v5 = vld [vmem:[%s10087_s19 + $0x5] sm:$0xff]  ;;  %v554_v6 = vld [vmem:[%s10087_s19 + $0xd] sm:$0xff]  ;;  %v10105_v13 = vld [vmem:[%s10087_s19 + $0x17] sm:$0xff]  ;;  %v1009_v16 = vsel %vm596_vm0, %v8502_v9, 0  ;;  %s9625_s23 = sshll.u32 %s12862_s24, 6 }
  0x17   : > { %v565_v7 = vld [vmem:[%s10087_s19 + $0x65] sm:$0xff]  ;;  %v566_v10 = vpack.c.bf16 %v554_v6, %v553_v5  ;;  %v10102_v12 = vld [vmem:[%s10087_s19 + $0xf] sm:$0xff]  ;;  %v556_v21 = vld [vmem:[%s10087_s19 + $0x1d] sm:$0xff]  ;;  %1222 = vmatpush.bf16.msrb.mxu2 %v1213_v4 }
  0x18   : > { %v572_v11 = vpack.c.bf16 %v565_v7, %v565_v7  ;;  %v876_v14 = vpack.c.bf16 %v10105_v13, %v10102_v12  ;;  %v866_v15 = vld [vmem:[%s10087_s19 + $0x27] sm:$0xff]  ;;  %v766_v17 = vld [vmem:[%s10087_s19 + $0x2f] sm:$0xff]  ;;  %v10124_v24 = vld [vmem:[%s10087_s19 + $0x1f] sm:$0xff] }
  0x19   : > { %8471 = vmatmul.msk.bf16.vlgmr.msra.gmra.mxu0 %vm574_vm1, %v566_v10  ;;  %v776_v19 = vpack.c.bf16 %v766_v17, %v866_v15  ;;  %v555_v20 = vld [vmem:[%s10087_s19 + $0x15] sm:$0xff]  ;;  %v659_v22 = vld [vmem:[%s10087_s19 + $0x6] sm:$0xff]  ;;  %v877_v27 = vpack.c.bf16 %v866_v15, %v10124_v24  ;;  %v662_v34 = vld [vmem:[%s10087_s19 + $0x1e] sm:$0xff] }
  0x1a   : > { %8477 = vmatmul.msk.bf16.vlgmr.msra.gmra.mxu1 %vm574_vm1, %v572_v11  ;;  %8495 = vmatmul.msk.bf16.vlgmr.msra.gmra.mxu3 %vm574_vm1, %v876_v14  ;;  %v660_v23 = vld [vmem:[%s10087_s19 + $0xe] sm:$0xff]  ;;  %v567_v25 = vpack.c.bf16 %v556_v21, %v555_v20  ;;  %v768_v28 = vld [vmem:[%s10087_s19 + $0x3f] sm:$0xff]  ;;  %v868_v29 = vld [vmem:[%s10087_s19 + $0x37] sm:$0xff] }
  0x1b   : > { %8489 = vmatmul.msk.bf16.vlgmr.msra.gmra.mxu2 %vm574_vm1, %v776_v19  ;;  %v672_v26 = vpack.c.bf16 %v660_v23, %v659_v22  ;;  %v777_v30 = vpack.c.bf16 %v768_v28, %v868_v29  ;;  %v557_v31 = vld [vmem:[%s10087_s19 + $0x25] sm:$0xff]  ;;  %v558_v32 = vld [vmem:[%s10087_s19 + $0x2d] sm:$0xff]  ;;  %v661_v33 = vld [vmem:[%s10087_s19 + $0x16] sm:$0xff]  ;;  %v878_v37 = vpack.c.bf16 %v868_v29, %v766_v17  ;;  %1018 = vmatpush.bf16.msra.mxu0 %v1009_v16 }
  0x1c   : > { %v568_v35 = vpack.c.bf16 %v558_v32, %v557_v31  ;;  %v673_v36 = vpack.c.bf16 %v662_v34, %v661_v33  ;;  %v770_v38 = vld [vmem:[%s10087_s19 + $0x4f] sm:$0xff]  ;;  %v870_v39 = vld [vmem:[%s10087_s19 + $0x47] sm:$0xff]  ;;  %v560_v42 = vld [vmem:[%s10087_s19 + $0x3d] sm:$0xff]  ;;  %v775_v29 = vpack.c.bf16 %v10124_v24, %v10105_v13 }
  0x1d   : > { %v778_v40 = vpack.c.bf16 %v770_v38, %v870_v39  ;;  %v559_v41 = vld [vmem:[%s10087_s19 + $0x35] sm:$0xff]  ;;  %v663_v43 = vld [vmem:[%s10087_s19 + $0x26] sm:$0xff]  ;;  %v879_v47 = vpack.c.bf16 %v870_v39, %v768_v28  ;;  %v666_v54 = vld [vmem:[%s10087_s19 + $0x3e] sm:$0xff] }
  0x1e   : > { %v664_v44 = vld [vmem:[%s10087_s19 + $0x2e] sm:$0xff]  ;;  %v569_v45 = vpack.c.bf16 %v560_v42, %v559_v41  ;;  %v772_v48 = vld [vmem:[%s10087_s19 + $0x5f] sm:$0xff]  ;;  %v872_v49 = vld [vmem:[%s10087_s19 + $0x57] sm:$0xff] }
  0x1f   : > { %v674_v46 = vpack.c.bf16 %v664_v44, %v663_v43  ;;  %v779_v50 = vpack.c.bf16 %v772_v48, %v872_v49  ;;  %v561_v51 = vld [vmem:[%s10087_s19 + $0x45] sm:$0xff]  ;;  %v562_v52 = vld [vmem:[%s10087_s19 + $0x4d] sm:$0xff]  ;;  %v665_v53 = vld [vmem:[%s10087_s19 + $0x36] sm:$0xff]  ;;  %v880_v57 = vpack.c.bf16 %v872_v49, %v770_v38 }
  0x20   : > { %v570_v55 = vpack.c.bf16 %v562_v52, %v561_v51  ;;  %v675_v56 = vpack.c.bf16 %v666_v54, %v665_v53  ;;  %v874_v58 = vld [vmem:[%s10087_s19 + $0x67] sm:$0xff]  ;;  %v563_v60 = vld [vmem:[%s10087_s19 + $0x55] sm:$0xff]  ;;  %v564_v61 = vld [vmem:[%s10087_s19 + $0x5d] sm:$0xff] }
  0x21   : > { %v780_v59 = vpack.c.bf16 %v874_v58, %v874_v58  ;;  %v667_v62 = vld [vmem:[%s10087_s19 + $0x46] sm:$0xff]  ;;  %v668_v63 = vld [vmem:[%s10087_s19 + $0x4e] sm:$0xff]  ;;  %v571_v0 = vpack.c.bf16 %v564_v61, %v563_v60  ;;  %v881_v2 = vpack.c.bf16 %v874_v58, %v772_v48  ;;  %v669_v5 = vld [vmem:[%s10087_s19 + $0x56] sm:$0xff] }
  0x22   : > { %v676_v1 = vpack.c.bf16 %v668_v63, %v667_v62  ;;  %v670_v6 = vld [vmem:[%s10087_s19 + $0x5e] sm:$0xff]  ;;  %v761_v7 = vld [vmem:[%s10087_s19 + $0x7] sm:$0xff]  ;;  %v875_v8 = vld [vmem:[%s10087_s19 + $0x6f] sm:$0xff] }
  0x23   : > { %v8526_v10 = vld [vmem:[%s12611_s2 + $0xe] sm:$0x3]  ;;  %v1169_v11 = vld [vmem:[%s10087_s19 + $0x19] sm:$0xff]  ;;  %v677_v14 = vpack.c.bf16 %v670_v6, %v669_v5  ;;  %v774_v15 = vpack.c.bf16 %v10102_v12, %v761_v7  ;;  %v10188_v18 = vld [vmem:[%s10087_s19 + $0x21] sm:$0xff]  ;;  %v882_v19 = vpack.c.bf16 %v875_v8, %v875_v8 }
  0x24   : > { %v1315_v17 = vsel %vm596_vm0, %v8526_v10, 0  ;;  %v1182_v20 = vpack.c.bf16 %v10188_v18, %v1169_v11  ;;  %v8510_v21 = vld [vmem:[%s12611_s2 + $0xa] sm:$0x3]  ;;  %v1271_v23 = vld [vmem:[%s10087_s19 + $0x1a] sm:$0xff]  ;;  %v965_v32 = vld [vmem:[%s10087_s19 + $0x10] sm:$0xff] }
  0x25   : > { %1324 = vmatpush.bf16.msrb.mxu3 %v1315_v17  ;;  %v1111_v12 = vsel %vm596_vm0, %v8510_v21, 0  ;;  %v671_v22 = vld [vmem:[%s10087_s19 + $0x66] sm:$0xff]  ;;  %v966_v33 = vld [vmem:[%s10087_s19 + $0x18] sm:$0xff]  ;;  %v969_v5 = vld [vmem:[%s10087_s19 + $0x30] sm:$0xff] }
  0x26   : > { %1120 = vmatpush.bf16.msra.mxu1 %v1111_v12  ;;  %v678_v28 = vpack.c.bf16 %v671_v22, %v671_v22  ;;  %v1067_v34 = vld [vmem:[%s10087_s19 + $0x11] sm:$0xff]  ;;  %v10220_v38 = vld [vmem:[%s10087_s19 + $0x41] sm:$0xff]  ;;  %v978_v13 = vpack.c.bf16 %v966_v33, %v965_v32  ;;  %v10241_v51 = vld [vmem:[%s10087_s19 + $0x49] sm:$0xff] }
  0x27   : > { %v1080_v24 = vpack.c.bf16 %v1169_v11, %v1067_v34  ;;  %v968_v48 = vld [vmem:[%s10087_s19 + $0x28] sm:$0xff]  ;;  %v1275_v49 = vld [vmem:[%s10087_s19 + $0x3a] sm:$0xff]  ;;  %v10244_v52 = vld [vmem:[%s10087_s19 + $0x51] sm:$0xff] }
  0x28   : > { %v970_v6 = vld [vmem:[%s10087_s19 + $0x38] sm:$0xff]  ;;  %v1277_v7 = vld [vmem:[%s10087_s19 + $0x4a] sm:$0xff]  ;;  %v10273_v10 = vld [vmem:[%s10087_s19 + $0x61] sm:$0xff] }
  0x29   : > { %8472 = vmatmul.msk.bf16.gmra.mxu0 %vm574_vm1, %v567_v25  ;;  %v1272_v25 = vld [vmem:[%s10087_s19 + $0x22] sm:$0xff]  ;;  %v1278_v8 = vld [vmem:[%s10087_s19 + $0x52] sm:$0xff] }
  0x2a   : > { %8479 = vmatmul.msk.bf16.vlgmr.msrb.gmra.mxu1 %vm574_vm1, %v672_v26  ;;  %8496 = vmatmul.msk.bf16.gmra.mxu3 %vm574_vm1, %v877_v27  ;;  %v1171_v26 = vld [vmem:[%s10087_s19 + $0x29] sm:$0xff]  ;;  %v10204_v27 = vld [vmem:[%s10087_s19 + $0x31] sm:$0xff]  ;;  %v1284_v31 = vpack.c.bf16 %v1272_v25, %v1271_v23  ;;  %v10270_v9 = vld [vmem:[%s10087_s19 + $0x59] sm:$0xff] }
  0x2b   : > { %8490 = vmatmul.msk.bf16.gmra.mxu2 %vm574_vm1, %v777_v30  ;;  %v1183_v30 = vpack.c.bf16 %v10204_v27, %v1171_v26  ;;  %v1186_v17 = vpack.c.bf16 %v10273_v10, %v10270_v9  ;;  %v1280_v32 = vld [vmem:[%s10087_s19 + $0x62] sm:$0xff]  ;;  %v10302_v34 = vld [vmem:[%s10087_s19 + $0x71] sm:$0xff] }
  0x2c   : > { %v10299_v33 = vld [vmem:[%s10087_s19 + $0x69] sm:$0xff] }
  0x39   : > { %8473 = vmatmul.msk.bf16.gmra.mxu0 %vm574_vm1, %v568_v35  ;;  %v1273_v35 = vld [vmem:[%s10087_s19 + $0x2a] sm:$0xff] }
  0x3a   : > { %8480 = vmatmul.msk.bf16.gmra.mxu1 %vm574_vm1, %v673_v36  ;;  %8497 = vmatmul.msk.bf16.gmra.mxu3 %vm574_vm1, %v878_v37  ;;  %v1274_v36 = vld [vmem:[%s10087_s19 + $0x32] sm:$0xff] }
  0x3b   : > { %8491 = vmatmul.msk.bf16.gmra.mxu2 %vm574_vm1, %v778_v40  ;;  %v1173_v37 = vld [vmem:[%s10087_s19 + $0x39] sm:$0xff]  ;;  %v1285_v42 = vpack.c.bf16 %v1274_v36, %v1273_v35 }
  0x3c   : > { %v1184_v39 = vpack.c.bf16 %v10220_v38, %v1173_v37 }
  0x49   : > { %8474 = vmatmul.msk.bf16.gmra.mxu0 %vm574_vm1, %v569_v45 }
  0x4a   : > { %8481 = vmatmul.msk.bf16.gmra.mxu1 %vm574_vm1, %v674_v46  ;;  %8498 = vmatmul.msk.bf16.gmra.mxu3 %vm574_vm1, %v879_v47  ;;  %v10234_v46 = vld [vmem:[%s12612_s3] ss:$0 sm:$0xff] }
  0x4b   : > { %8492 = vmatmul.msk.bf16.gmra.mxu2 %vm574_vm1, %v779_v50  ;;  %v967_v47 = vld [vmem:[%s10087_s19 + $0x20] sm:$0xff] }
  0x4c   : > { %v1276_v50 = vld [vmem:[%s10087_s19 + $0x42] sm:$0xff]  ;;  %v979_v54 = vpack.c.bf16 %v968_v48, %v967_v47 }
  0x4d   : > { %v1286_v60 = vpack.c.bf16 %v1276_v50, %v1275_v49 }
  0x59   : > { %8475 = vmatmul.msk.bf16.gmra.mxu0 %vm574_vm1, %v570_v55  ;;  %v1081_v55 = vpack.c.bf16 %v1171_v26, %v10188_v18 }
  0x5a   : > { %8482 = vmatmul.msk.bf16.gmra.mxu1 %vm574_vm1, %v675_v56  ;;  %8499 = vmatmul.msk.bf16.gmra.mxu3 %vm574_vm1, %v880_v57  ;;  %v1185_v57 = vpack.c.bf16 %v10244_v52, %v10241_v51 }
  0x5b   : > { %8493 = vmatmul.msk.bf16.gmra.mxu2 %vm574_vm1, %v780_v59 }
  0x69   : > { %8476 = vmatmul.msk.bf16.gmra.mxu0 %vm574_vm1, %v571_v0 }
  0x6a   : > { %8483 = vmatmul.msk.bf16.gmra.mxu1 %vm574_vm1, %v676_v1  ;;  %8500 = vmatmul.msk.bf16.gmra.mxu3 %vm574_vm1, %v881_v2 }
  0x6b   : > { %8519 = vmatmul.msk.bf16.vlgmr.msrb.gmra.mxu2 %vm574_vm1, %v1182_v20  ;;  %v1287_v20 = vpack.c.bf16 %v1278_v8, %v1277_v7 }
  0x79   : > { %8487 = vmatmul.msk.bf16.vlgmr.msrb.gmra.mxu0 %vm574_vm1, %v774_v15  ;;  %v1082_v15 = vpack.c.bf16 %v1173_v37, %v10204_v27  ;;  %v1083_v37 = vpack.c.bf16 %v10241_v51, %v10220_v38 }
  0x7a   : > { %8484 = vmatmul.msk.bf16.gmra.mxu1 %vm574_vm1, %v677_v14  ;;  %8501 = vmatmul.msk.bf16.gmra.mxu3 %vm574_vm1, %v882_v19  ;;  %v980_v14 = vpack.c.bf16 %v970_v6, %v969_v5 }
  0x7b   : > { %8520 = vmatmul.msk.bf16.gmra.mxu2 %vm574_vm1, %v1183_v30  ;;  %v972_v30 = vld [vmem:[%s10087_s19 + $0x48] sm:$0xff] }
  0x89   : > { %8488 = vmatmul.msk.bf16.gmra.mxu0 %vm574_vm1, %v775_v29  ;;  %v971_v29 = vld [vmem:[%s10087_s19 + $0x40] sm:$0xff] }
  0x8a   : > { %8485 = vmatmul.msk.bf16.gmra.mxu1 %vm574_vm1, %v678_v28  ;;  %8527 = vmatmul.msk.bf16.vlgmr.msrb.gmra.mxu3 %vm574_vm1, %v1284_v31  ;;  %v1279_v31 = vld [vmem:[%s10087_s19 + $0x5a] sm:$0xff]  ;;  %v981_v36 = vpack.c.bf16 %v972_v30, %v971_v29  ;;  %v976_v30 = vld [vmem:[%s10087_s19 + $0x68] sm:$0xff] }
  0x8b   : > { %8521 = vmatmul.msk.bf16.gmra.mxu2 %vm574_vm1, %v1184_v39  ;;  %v975_v29 = vld [vmem:[%s10087_s19 + $0x60] sm:$0xff] }
  0x96   : > { %v609_v40 = vpop.f32.mrf.mxu0 }
  0x97   : > { %v10223_v41 = vpop.f32.mrf.mxu1  ;;  %v646_v53 = vadd.f32 %v10234_v46, %v609_v40 }
  0x99   : > { %8503 = vmatmul.msk.bf16.vlgmr.msra.gmra.mxu0 %vm574_vm1, %v978_v13 }
  0x9a   : > { %8511 = vmatmul.msk.bf16.vlgmr.msra.gmra.mxu1 %vm574_vm1, %v1080_v24  ;;  %8528 = vmatmul.msk.bf16.gmra.mxu3 %vm574_vm1, %v1285_v42  ;;  %v1187_v24 = vpack.c.bf16 %v10302_v34, %v10299_v33  ;;  %v1288_v42 = vpack.c.bf16 %v1280_v32, %v1279_v31  ;;  %v1283_v31 = vld [vmem:[%s10087_s19 + $0x7a] sm:$0xff] }
  0x9b   : > { %8522 = vmatmul.msk.bf16.gmra.mxu2 %vm574_vm1, %v1185_v57 }
  0x9d   : > { %v10229_v43 = vpop.f32.mrf.mxu3 }
  0x9e   : > { %v611_v44 = vpop.f32.mrf.mxu0  ;;  %v826_v62 = vpop.f32.mrf.mxu2 }
  0x9f   : > { %v641_v45 = vpop.f32.mrf.mxu1  ;;  %v647_v63 = vadd.f32 %v10234_v46, %v611_v44 }
  0xa5   : > { %v10248_v56 = vpop.f32.mrf.mxu3 }
  0xa6   : > { %v614_v58 = vpop.f32.mrf.mxu0  ;;  %v10263_v4 = vpop.f32.mrf.mxu2 }
  0xa7   : > { %v714_v59 = vpop.f32.mrf.mxu1  ;;  %v648_v11 = vadd.f32 %v10234_v46, %v614_v58  ;;  %v1281_v58 = vld [vmem:[%s10087_s19 + $0x6a] sm:$0xff] }
  0xa8   : > { %v10252_v61 = vadd.f32 %v714_v59, %v646_v53  ;;  %v8534_v53 = vld [vmem:[%s12611_s2 + $0x10] sm:$0x3]  ;;  %v1282_v59 = vld [vmem:[%s10087_s19 + $0x72] sm:$0xff] }
  0xa9   : > { %8504 = vmatmul.msk.bf16.gmra.mxu0 %vm574_vm1, %v979_v54  ;;  %v973_v54 = vld [vmem:[%s10087_s19 + $0x50] sm:$0xff]  ;;  %v1417_v57 = vsel %vm596_vm0, %v8534_v53, 0  ;;  %v1289_v8 = vpack.c.bf16 %v1282_v59, %v1281_v58  ;;  %vm1579_vm0 = vcmask 523264  }
  0xaa   : > { %8512 = vmatmul.msk.bf16.gmra.mxu1 %vm574_vm1, %v1081_v55  ;;  %8529 = vmatmul.msk.bf16.gmra.mxu3 %vm574_vm1, %v1286_v60  ;;  %v974_v55 = vld [vmem:[%s10087_s19 + $0x58] sm:$0xff] }
  0xab   : > { %8523 = vmatmul.msk.bf16.gmra.mxu2 %vm574_vm1, %v1186_v17  ;;  %1426 = vmatpush.bf16.msrb.mxu0 %v1417_v57  ;;  %v1181_v60 = vld [vmem:[%s10087_s19 + $0x79] sm:$0xff]  ;;  %v9980_v17 = vmov 0   ;;  %v528_v57 = vld [vmem:[%s12610_s1 + $0x10] sm:$0xff] }
  0xac   : > { %v1188_v5 = vpack.c.bf16 %v1181_v60, %v1181_v60  ;;  %9845 = vset.pattern.permute.xlu0 %v9980_v17  ;;  %9846 = vset.pattern.permute.xlu1 %v9980_v17  ;;  %vm541_vm5 = vcmp.ne.f32.partialorder %v528_v57, 0.0 }
  0xad   : > { %v10259_v0 = vpop.f32.mrf.mxu3  ;;  %9847 = vset.pattern.permute.xlu2 %v9980_v17  ;;  %v1503_v59 = vsel %vm541_vm5, 1, %v9980_v17 }
  0xae   : > { %v616_v1 = vpop.f32.mrf.mxu0  ;;  %v831_v12 = vpop.f32.mrf.mxu2  ;;  %1521 = vperm.xlu1 %9846, %v1503_v59  }
  0xaf   : > { %v716_v2 = vpop.f32.mrf.mxu1  ;;  %v649_v22 = vadd.f32 %v10234_v46, %v616_v1  ;;  %v1084_v1 = vpack.c.bf16 %v10270_v9, %v10244_v52 }
  0xb0   : > { %v10261_v3 = vadd.f32 %v716_v2, %v647_v63  ;;  %v982_v63 = vpack.c.bf16 %v974_v55, %v973_v54 }
  0xb5   : > { %v10277_v16 = vpop.f32.mrf.mxu3 }
  0xb6   : > { %v619_v18 = vpop.f32.mrf.mxu0  ;;  %v10292_v28 = vpop.f32.mrf.mxu2 }
  0xb7   : > { %v719_v19 = vpop.f32.mrf.mxu1  ;;  %v650_v35 = vadd.f32 %v10234_v46, %v619_v18 }
  0xb8   : > { %v10281_v21 = vadd.f32 %v719_v19, %v648_v11  ;;  %v526_v11 = vld [vmem:[%s12610_s1] sm:$0xff] }
  0xb9   : > { %8505 = vmatmul.msk.bf16.gmra.mxu0 %vm574_vm1, %v980_v14  ;;  %vm539_vm2 = vcmp.ne.f32.partialorder %v526_v11, 0.0  ;;  %v529_v11 = vld [vmem:[%s12610_s1 + $0x18] sm:$0xff] }
  0xba   : > { %8513 = vmatmul.msk.bf16.gmra.mxu1 %vm574_vm1, %v1082_v15  ;;  %8530 = vmatmul.msk.bf16.gmra.mxu3 %vm574_vm1, %v1287_v20  ;;  %v1501_v9 = vsel %vm539_vm2, 1, %v9980_v17  ;;  %vm542_vm7 = vcmp.ne.f32.partialorder %v529_v11, 0.0 }
  0xbb   : > { %8524 = vmatmul.msk.bf16.gmra.mxu2 %vm574_vm1, %v1187_v24  ;;  %1515 = vperm.xlu0 %9845, %v1501_v9   ;;  %v538_v9 = vld [vmem:[%s12610_s1 + $0x60] sm:$0xff] }
  0xbc   : > { %vm551_vm8 = vcmp.ne.f32.partialorder %v538_v9, 0.0 }
  0xbd   : > { %v928_v23 = vpop.f32.mrf.mxu3 }
  0xbe   : > { %v10288_v25 = vpop.f32.mrf.mxu0  ;;  %v10311_v45 = vpop.f32.mrf.mxu2 }
  0xbf   : > { %v721_v26 = vpop.f32.mrf.mxu1 }
  0xc0   : > { %v10290_v27 = vadd.f32 %v721_v26, %v649_v22  ;;  %v527_v22 = vld [vmem:[%s12610_s1 + $0x8] sm:$0xff] }
  0xc1   : > { %vm540_vm3 = vcmp.ne.f32.partialorder %v527_v22, 0.0  ;;  %v1513_v22 = vsel %vm551_vm8, 1, %v9980_v17 }
  0xc2   : > { %v1502_v26 = vsel %vm540_vm3, 1, %v9980_v17 }
  0xc3   : > { %1518 = vperm.xlu0 %9845, %v1502_v26  }
  0xc5   : > { %v10307_v13 = vpop.f32.mrf.mxu3 }
  0xc6   : > { %v624_v39 = vpop.f32.mrf.mxu0  ;;  %v10323_v51 = vpop.f32.mrf.mxu2 }
  0xc7   : > { %v724_v40 = vpop.f32.mrf.mxu1 }
  0xc8   : > { %v752_v44 = vadd.f32 %v724_v40, %v650_v35  ;;  %v983_v35 = vpack.c.bf16 %v976_v30, %v975_v29  ;;  %v1290_v40 = vpack.c.bf16 %v1283_v31, %v1283_v31 }
  0xc9   : > { %8506 = vmatmul.msk.bf16.gmra.mxu0 %vm574_vm1, %v981_v36  ;;  %v1085_v36 = vpack.c.bf16 %v10299_v33, %v10273_v10 }
  0xca   : > { %v854_v47 = vadd.f32 %v826_v62, %v752_v44  ;;  %8514 = vmatmul.msk.bf16.gmra.mxu1 %vm574_vm1, %v1083_v37  ;;  %8531 = vmatmul.msk.bf16.gmra.mxu3 %vm574_vm1, %v1288_v42  ;;  %v652_v62 = vadd.f32 %v10234_v46, %v624_v39  ;;  %v532_v42 = vld [vmem:[%s12610_s1 + $0x30] sm:$0xff] }
  0xcb   : > { %8525 = vmatmul.msk.bf16.gmra.mxu2 %vm574_vm1, %v1188_v5  ;;  %vm545_vm4 = vcmp.ne.f32.partialorder %v532_v42, 0.0  ;;  %v1086_v5 = vpack.c.bf16 %v10302_v34, %v10302_v34 }
  0xcc   : > { %v10317_v38 = vadd.f32 %v928_v23, %v854_v47 }
  0xcd   : > { %v933_v48 = vpop.f32.mrf.mxu3 }
  0xce   : > { %v10319_v49 = vpop.f32.mrf.mxu0  ;;  %v10342_v15 = vpop.f32.mrf.mxu2 }
  0xcf   : > { %v10321_v50 = vpop.f32.mrf.mxu1 }
  0xd5   : > { %v10337_v2 = vpop.f32.mrf.mxu3 }
  0xd6   : > { %v629_v6 = vpop.f32.mrf.mxu0  ;;  %v10361_v23 = vpop.f32.mrf.mxu2 }
  0xd7   : > { %v729_v7 = vpop.f32.mrf.mxu1  ;;  %v654_v32 = vadd.f32 %v10234_v46, %v629_v6 }
  0xd8   : > { %v754_v14 = vadd.f32 %v729_v7, %v652_v62  ;;  %v977_v62 = vld [vmem:[%s10087_s19 + $0x70] sm:$0xff] }
  0xd9   : > { %8507 = vmatmul.msk.bf16.gmra.mxu0 %vm574_vm1, %v982_v63 }
  0xda   : > { %v856_v52 = vadd.f32 %v831_v12, %v754_v14  ;;  %8515 = vmatmul.msk.bf16.gmra.mxu1 %vm574_vm1, %v1084_v1  ;;  %8532 = vmatmul.msk.bf16.gmra.mxu3 %vm574_vm1, %v1289_v8  ;;  %v984_v1 = vpack.c.bf16 %v977_v62, %v977_v62 }
  0xdc   : > { %v10350_v18 = vadd.f32 %v933_v48, %v856_v52  ;;  %v1507_v48 = vsel %vm545_vm4, 1, %v9980_v17 }
  0xdd   : > { %v938_v19 = vpop.f32.mrf.mxu3  ;;  %1533 = vperm.xlu0 %9845, %v1507_v48  }
  0xde   : > { %v10354_v20 = vpop.f32.mrf.mxu0  ;;  %v10375_v47 = vpop.f32.mrf.mxu2 }
  0xdf   : > { %v10356_v12 = vpop.f32.mrf.mxu1 }
  0xe5   : > { %v10370_v37 = vpop.f32.mrf.mxu3 }
  0xe6   : > { %v634_v24 = vpop.f32.mrf.mxu0  ;;  %v848_v58 = vpop.f32.mrf.mxu2 }
  0xe7   : > { %v734_v39 = vpop.f32.mrf.mxu1  ;;  %v656_v63 = vadd.f32 %v10234_v46, %v634_v24  ;;  %v1374_v24 = vld [vmem:[%s10087_s19 + $0x23] sm:$0xff] }
  0xe8   : > { %v756_v44 = vadd.f32 %v734_v39, %v654_v32 }
  0xe9   : > { %8508 = vmatmul.msk.bf16.gmra.mxu0 %vm574_vm1, %v983_v35 }
  0xea   : > { %v858_v53 = vadd.f32 %v10311_v45, %v756_v44  ;;  %8516 = vmatmul.msk.bf16.gmra.mxu1 %vm574_vm1, %v1085_v36  ;;  %8533 = vmatmul.msk.bf16.gmra.mxu3 %vm574_vm1, %v1290_v40  ;;  %v535_v45 = vld [vmem:[%s12610_s1 + $0x48] sm:$0xff]  ;;  %v1373_v36 = vld [vmem:[%s10087_s19 + $0x1b] sm:$0xff]  ;;  %v658_v40 = vadd.f32 %v10234_v46, %v10223_v41 }
  0xeb   : > { %vm548_vm6 = vcmp.ne.f32.partialorder %v535_v45, 0.0  ;;  %v1386_v42 = vpack.c.bf16 %v1374_v24, %v1373_v36  ;;  %v531_v24 = vld [vmem:[%s12610_s1 + $0x28] sm:$0xff] }
  0xec   : > { %v10382_v10 = vadd.f32 %v938_v19, %v858_v53  ;;  %v1510_v60 = vsel %vm548_vm6, 1, %v9980_v17  ;;  %v1504_v19 = vsel %vm542_vm7, 1, %v9980_v17  ;;  %vm544_vm12 = vcmp.ne.f32.partialorder %v531_v24, 0.0 }
  0xed   : > { %v943_v33 = vpop.f32.mrf.mxu3  ;;  %1542 = vperm.xlu0 %9845, %v1510_v60   ;;  %1524 = vperm.xlu1 %9846, %v1504_v19   ;;  %v530_v19 = vld [vmem:[%s12610_s1 + $0x20] sm:$0xff] }
  0xee   : > { %v10384_v54 = vpop.f32.mrf.mxu0  ;;  %v1224_v26 = vpop.f32.mrf.mxu2  ;;  %vm543_vm11 = vcmp.ne.f32.partialorder %v530_v19, 0.0 }
  0xef   : > { %v10386_v55 = vpop.f32.mrf.mxu1 }
  0xf5   : > { %v10400_v6 = vpop.f32.mrf.mxu3  ;;  %1551 = vperm.xlu0 %9845, %v1513_v22   ;;  %v1505_v22 = vsel %vm543_vm11, 1, %v9980_v17 }
  0xf6   : > { %v816_v8 = vpop.f32.mrf.mxu0  ;;  %v10425_v39 = vpop.f32.mrf.mxu2  ;;  %1527 = vperm.xlu2 %9847, %v1505_v22  }
  0xf7   : > { %v739_v7 = vpop.f32.mrf.mxu1  ;;  %v850_v52 = vadd.f32 %v816_v8, %v10252_v61 }
  0xf8   : > { %v758_v14 = vadd.f32 %v739_v7, %v656_v63  ;;  %v1376_v7 = vld [vmem:[%s10087_s19 + $0x33] sm:$0xff] }
  0xf9   : > { %8509 = vmatmul.msk.bf16.gmra.mxu0 %vm574_vm1, %v984_v1 }
  0xfa   : > { %v860_v34 = vadd.f32 %v10342_v15, %v758_v14  ;;  %8517 = vmatmul.msk.bf16.gmra.mxu1 %vm574_vm1, %v1086_v5  ;;  %v533_v15 = vld [vmem:[%s12610_s1 + $0x38] sm:$0xff]  ;;  %v1375_v5 = vld [vmem:[%s10087_s19 + $0x2b] sm:$0xff] }
  0xfb   : > { %vm546_vm9 = vcmp.ne.f32.partialorder %v533_v15, 0.0  ;;  %v1387_v11 = vpack.c.bf16 %v1376_v7, %v1375_v5 }
  0xfc   : > { %v10414_v61 = vadd.f32 %v943_v33, %v860_v34  ;;  %v1508_v35 = vsel %vm546_vm9, 1, %v9980_v17 }
  0xfd   : > { %v948_v29 = vpop.f32.mrf.mxu3  ;;  %1536 = vperm.xlu1 %9846, %v1508_v35  }
  0xfe   : > { %v818_v31 = vpop.f32.mrf.mxu0  ;;  %v1229_v59 = vpop.f32.mrf.mxu2 }
  0xff   : > { %v10416_v30 = vpop.f32.mrf.mxu1  ;;  %v851_v32 = vadd.f32 %v818_v31, %v10261_v3  ;;  %v536_v3 = vld [vmem:[%s12610_s1 + $0x50] sm:$0xff] }
 0x100   : > { %vm549_vm10 = vcmp.ne.f32.partialorder %v536_v3, 0.0 }
 0x101   : > { %v1511_v45 = vsel %vm549_vm10, 1, %v9980_v17  ;;  %v953_v31 = vadd.f32 %v10248_v56, %v851_v32 }
 0x105   : > { %v950_v44 = vpop.f32.mrf.mxu3  ;;  %1545 = vperm.xlu1 %9846, %v1511_v45   ;;  %v534_v45 = vld [vmem:[%s12610_s1 + $0x40] sm:$0xff] }
 0x106   : > { %v821_v53 = vpop.f32.mrf.mxu0  ;;  %v10441_v8 = vpop.f32.mrf.mxu2  ;;  %v1378_v44 = vld [vmem:[%s10087_s19 + $0x43] sm:$0xff]  ;;  %vm547_vm13 = vcmp.ne.f32.partialorder %v534_v45, 0.0 }
 0x107   : > { %v744_v48 = vpop.f32.mrf.mxu1  ;;  %v852_v57 = vadd.f32 %v821_v53, %v10281_v21  ;;  %v952_v21 = vadd.f32 %v10229_v43, %v850_v52 }
 0x108   : > { %v760_v33 = vadd.f32 %v744_v48, %v658_v40 }
 0x109   : > { %8535 = vmatmul.msk.bf16.vlgmr.msrb.gmra.mxu0 %vm574_vm1, %v1386_v42  ;;  %v1506_v42 = vsel %vm544_vm12, 1, %v9980_v17  ;;  %v954_v56 = vadd.f32 %v10259_v0, %v852_v57 }
 0x10a   : > { %v862_v58 = vadd.f32 %v10375_v47, %v760_v33  ;;  %1530 = vperm.xlu2 %9847, %v1506_v42  }
 0x10c   : > { %v10436_v41 = vadd.f32 %v948_v29, %v862_v58 }
 0x10d   : > { %v1326_v60 = vpop.f32.mrf.mxu3 }
 0x10e   : > { %v823_v62 = vpop.f32.mrf.mxu0  ;;  %v1234_v52 = vpop.f32.mrf.mxu2 }
 0x10f   : > { %v746_v63 = vpop.f32.mrf.mxu1  ;;  %v853_v1 = vadd.f32 %v823_v62, %v10290_v27 }
 0x111   : > { %v955_v5 = vadd.f32 %v10277_v16, %v853_v1 }
 0x115   : > { %v10444_v14 = vpop.f32.mrf.mxu3 }
 0x116   : > { %v1020_v47 = vpop.f32.mrf.mxu0  ;;  %v10464_v48 = vpop.f32.mrf.mxu2 }
 0x117   : > { %v1122_v9 = vpop.f32.mrf.mxu1  ;;  %v1054_v34 = vadd.f32 %v1020_v47, %v952_v21  ;;  %v537_v47 = vld [vmem:[%s12610_s1 + $0x58] sm:$0xff] }
 0x118   : > { %vm550_vm14 = vcmp.ne.f32.partialorder %v537_v47, 0.0 }
 0x119   : > { %v1156_v27 = vadd.f32 %v1122_v9, %v1054_v34  ;;  %8536 = vmatmul.msk.bf16.gmra.mxu0 %vm574_vm1, %v1387_v11  ;;  %v1512_v19 = vsel %vm550_vm14, 1, %v9980_v17  ;;  %v1380_v34 = vld [vmem:[%s10087_s19 + $0x53] sm:$0xff]  ;;  %vm7991_vm14 = vcmask 1043456  }
 0x11b   : > { %v1258_v43 = vadd.f32 %v1224_v26, %v1156_v27  ;;  %v1377_v26 = vld [vmem:[%s10087_s19 + $0x3b] sm:$0xff] }
 0x11c   : > { %v1388_v32 = vpack.c.bf16 %v1378_v44, %v1377_v26 }
 0x11d   : > { %v10451_v29 = vadd.f32 %v1326_v60, %v1258_v43  ;;  %v1331_v15 = vpop.f32.mrf.mxu3  ;;  %v1509_v60 = vsel %vm547_vm13, 1, %v9980_v17  ;;  %vm7943_vm13 = vcmask 850944  }
 0x11e   : > { %v1022_v35 = vpop.f32.mrf.mxu0  ;;  %1539 = vperm.xlu2 %9847, %v1509_v60   ;;  %v1239_v57 = vpop.f32.mrf.mxu2 }
 0x11f   : > { %v10454_v36 = vpop.f32.mrf.mxu1  ;;  %v10459_v40 = vadd.f32 %v1022_v35, %v953_v31 }
 0x125   : > { %v10467_v53 = vpop.f32.mrf.mxu3 }
 0x126   : > { %v1025_v3 = vpop.f32.mrf.mxu0  ;;  %1548 = vperm.xlu2 %9847, %v1512_v19   ;;  %v10487_v22 = vpop.f32.mrf.mxu2  ;;  %v1383_v19 = vld [vmem:[%s10087_s19 + $0x6b] sm:$0xff] }
 0x127   : > { %v1127_v33 = vpop.f32.mrf.mxu1  ;;  %v1056_v58 = vadd.f32 %v1025_v3, %v954_v56  ;;  %v1381_v56 = vld [vmem:[%s10087_s19 + $0x5b] sm:$0xff] }
 0x129   : > { %v1158_v62 = vadd.f32 %v1127_v33, %v1056_v58  ;;  %8537 = vmatmul.msk.bf16.gmra.mxu0 %vm574_vm1, %v1388_v32  ;;  %v1382_v32 = vld [vmem:[%s10087_s19 + $0x63] sm:$0xff] }
 0x12a   : > { %v1390_v33 = vpack.c.bf16 %v1382_v32, %v1381_v56 }
 0x12b   : > { %v1260_v0 = vadd.f32 %v1229_v59, %v1158_v62  ;;  %v1379_v59 = vld [vmem:[%s10087_s19 + $0x4b] sm:$0xff] }
 0x12c   : > { %v1389_v16 = vpack.c.bf16 %v1380_v34, %v1379_v59  ;;  %v1384_v59 = vld [vmem:[%s10087_s19 + $0x73] sm:$0xff] }
 0x12d   : > { %v10474_v63 = vadd.f32 %v1331_v15, %v1260_v0  ;;  %v1336_v7 = vpop.f32.mrf.mxu3 }
 0x12e   : > { %v1027_v21 = vpop.f32.mrf.mxu0  ;;  %v1244_v24 = vpop.f32.mrf.mxu2 }
 0x12f   : > { %v10477_v11 = vpop.f32.mrf.mxu1  ;;  %v10482_v9 = vadd.f32 %v1027_v21, %v955_v5 }
 0x135   : > { %v10489_v1 = vpop.f32.mrf.mxu3 }
 0x136   : > { %v1030_v27 = vpop.f32.mrf.mxu0  ;;  %v10501_v3 = vpop.f32.mrf.mxu2 }
 0x137   : > { %v1132_v43 = vpop.f32.mrf.mxu1  ;;  %v1058_v31 = vadd.f32 %v1030_v27, %v10317_v38 }
 0x139   : > { %v1160_v15 = vadd.f32 %v1132_v43, %v1058_v31  ;;  %8538 = vmatmul.msk.bf16.gmra.mxu0 %vm574_vm1, %v1389_v16  ;;  %v1391_v16 = vpack.c.bf16 %v1384_v59, %v1383_v19 }
 0x13b   : > { %v1262_v35 = vadd.f32 %v1234_v52, %v1160_v15 }
 0x13d   : > { %v10493_v17 = vadd.f32 %v1336_v7, %v1262_v35  ;;  %v1341_v42 = vpop.f32.mrf.mxu3 }
 0x13e   : > { %v10495_v26 = vpop.f32.mrf.mxu0  ;;  %v1249_v0 = vpop.f32.mrf.mxu2 }
 0x13f   : > { %v10497_v44 = vpop.f32.mrf.mxu1 }
 0x145   : > { %v10503_v38 = vpop.f32.mrf.mxu3 }
 0x146   : > { %v1035_v45 = vpop.f32.mrf.mxu0  ;;  %v10515_v34 = vpop.f32.mrf.mxu2 }
 0x147   : > { %v1137_v58 = vpop.f32.mrf.mxu1  ;;  %v1060_v52 = vadd.f32 %v1035_v45, %v10350_v18  ;;  %v9629_v45 = vld [vmem:[#allocation4 + $0x18] sm:$0xff] }
 0x148   : > { %1684 = vmatpush.bf16.msrb.mxu1 %v9629_v45 }
 0x149   : > { %v1162_v60 = vadd.f32 %v1137_v58, %v1060_v52  ;;  %8539 = vmatmul.msk.bf16.gmra.mxu0 %vm574_vm1, %v1390_v33  ;;  %v1385_v58 = vld [vmem:[%s10087_s19 + $0x7b] sm:$0xff]  ;;  %s9981_s19 = smov 126  }
 0x14b   : > { %v1264_v62 = vadd.f32 %v1239_v57, %v1162_v60  ;;  %v1392_v60 = vpack.c.bf16 %v1385_v58, %v1385_v58 }
 0x14d   : > { %v10507_v5 = vadd.f32 %v1341_v42, %v1264_v62  ;;  %v1346_v7 = vpop.f32.mrf.mxu3 }
 0x14e   : > { %v10509_v21 = vpop.f32.mrf.mxu0  ;;  %v1254_v35 = vpop.f32.mrf.mxu2 }
 0x14f   : > { %v10511_v47 = vpop.f32.mrf.mxu1 }
 0x155   : > { %v10517_v27 = vpop.f32.mrf.mxu3 }
 0x156   : > { %v1040_v18 = vpop.f32.mrf.mxu0  ;;  %v1256_v52 = vpop.f32.mrf.mxu2 }
 0x157   : > { %v1142_v43 = vpop.f32.mrf.mxu1  ;;  %v1062_v57 = vadd.f32 %v1040_v18, %v10382_v10 }
 0x159   : > { %v1164_v31 = vadd.f32 %v1142_v43, %v1062_v57  ;;  %8540 = vmatmul.msk.bf16.gmra.mxu0 %vm574_vm1, %v1391_v16  ;;  %v9637_v16 = vld [vmem:[#allocation4 + $0x58] sm:$0xff]  ;;  %v9628_v43 = vld [vmem:[#allocation4 + $0x10] sm:$0xff] }
 0x15a   : > { %1947 = vmatpush.bf16.msra.mxu3 %v9637_v16  ;;  %v9632_v57 = vld [vmem:[#allocation4 + $0x30] sm:$0xff]  ;;  %1685 = vmatpush.bf16.msrb.mxu1 %v9628_v43 }
 0x15b   : > { %v1266_v15 = vadd.f32 %v1244_v24, %v1164_v31  ;;  %v9633_v24 = vld [vmem:[#allocation4 + $0x38] sm:$0xff]  ;;  %v9636_v31 = vld [vmem:[#allocation4 + $0x50] sm:$0xff] }
 0x15c   : > { %1817 = vmatpush.bf16.msra.mxu2 %v9633_v24  ;;  %v9640_v24 = vld [vmem:[#allocation4 + $0x70] sm:$0xff] }
 0x15d   : > { %v10521_v42 = vadd.f32 %v1346_v7, %v1266_v15  ;;  %v1351_v56 = vpop.f32.mrf.mxu3 }
 0x15e   : > { %v10523_v32 = vpop.f32.mrf.mxu0  ;;  %1948 = vmatpush.bf16.msra.mxu3 %v9636_v31 }
 0x15f   : > { %v10525_v33 = vpop.f32.mrf.mxu1 }
 0x160   : > { %1818 = vmatpush.bf16.msra.mxu2 %v9632_v57  ;;  %v9639_v57 = vld [vmem:[#allocation4 + $0x68] sm:$0xff] }
 0x165   : > { %v10528_v62 = vpop.f32.mrf.mxu3 }
 0x166   : > { %12663 = vst [vmem:[#allocation7_spill] sm:$0xff] %v10528_v62  ;;  %v1045_v10 = vpop.f32.mrf.mxu0 }
 0x167   : > { %v1147_v19 = vpop.f32.mrf.mxu1  ;;  %v1064_v59 = vadd.f32 %v1045_v10, %v10414_v61  ;;  %v9627_v61 = vld [vmem:[#allocation4 + $0x8] sm:$0xff] }
 0x168   : > { %v9631_v10 = vld [vmem:[#allocation4 + $0x28] sm:$0xff]  ;;  %1686 = vmatpush.bf16.msrb.mxu1 %v9627_v61 }
 0x169   : > { %v1166_v7 = vadd.f32 %v1147_v19, %v1064_v59  ;;  %8541 = vmatmul.msk.bf16.gmra.mxu0 %vm574_vm1, %v1392_v60  ;;  %v9635_v19 = vld [vmem:[#allocation4 + $0x48] sm:$0xff]  ;;  %v9641_v60 = vld [vmem:[#allocation4 + $0x78] sm:$0xff]  ;;  %1819 = vmatpush.bf16.msra.mxu2 %v9631_v10  ;;  %v9630_v59 = vld [vmem:[#allocation4 + $0x20] sm:$0xff] }
 0x16a   : > { %1949 = vmatpush.bf16.msra.mxu3 %v9635_v19  ;;  %2077 = vmatpush.bf16.msra.mxu0 %v9641_v60  ;;  %v9638_v10 = vld [vmem:[#allocation4 + $0x60] sm:$0xff] }
 0x16b   : > { %v1268_v18 = vadd.f32 %v1249_v0, %v1166_v7  ;;  %v9626_v0 = vld [vmem:[#allocation4] sm:$0xff] }
 0x16c   : > { %1687 = vmatpush.bf16.msrb.mxu1 %v9626_v0  ;;  %v1157_v0 = vadd.f32 %v10454_v36, %v10459_v40 }
 0x16d   : > { %v10532_v15 = vadd.f32 %v1351_v56, %v1268_v18  ;;  %v1356_v45 = vpop.f32.mrf.mxu3  ;;  %v9634_v56 = vld [vmem:[#allocation4 + $0x40] sm:$0xff]  ;;  %1820 = vmatpush.bf16.msra.mxu2 %v9630_v59 }
 0x16e   : > { %v10534_v58 = vpop.f32.mrf.mxu0  ;;  %1950 = vmatpush.bf16.msra.mxu3 %v9634_v56  ;;  %2078 = vmatpush.bf16.msra.mxu0 %v9640_v24  ;;  %v1259_v56 = vadd.f32 %v10425_v39, %v1157_v0  ;;  %v10545_v24 = vpop.permute.xlu0 %1515 }
 0x16f   : > { %v10536_v52 = vpop.f32.mrf.mxu1  ;;  %vm1553_vm15 = vcmp.eq.s32.totalorder %v10545_v24, 1 }
 0x172   : > { %2079 = vmatpush.bf16.msra.mxu0 %v9639_v57  ;;  %v1869_v57 = vld [vmem:[#allocation2 + $0x7] sm:$0xff] }
 0x175   : > { %v1358_v16 = vpop.f32.mrf.mxu3 }
 0x176   : > { %v1050_v7 = vpop.f32.mrf.mxu0  ;;  %2080 = vmatpush.bf16.msra.mxu0 %v9638_v10 }
 0x177   : > { %v1152_v18 = vpop.f32.mrf.mxu1  ;;  %v1066_v43 = vadd.f32 %v1050_v7, %v10436_v41 }
 0x179   : > { %v1168_v31 = vadd.f32 %v1152_v18, %v1066_v43  ;;  %v1607_v18 = vld [vmem:[#allocation2 + $0x5] sm:$0xff] }
 0x17a   : > { %v1739_v43 = vld [vmem:[#allocation2 + $0x6] sm:$0xff] }
 0x17b   : > { %v1270_v61 = vadd.f32 %v1254_v35, %v1168_v31  ;;  %v651_v31 = vadd.f32 %v10234_v46, %v10288_v25 }
 0x17d   : > { %v10539_v19 = vadd.f32 %v1356_v45, %v1270_v61  ;;  %v1361_v45 = vadd.f32 %v10444_v14, %v1259_v56  ;;  %v1159_v14 = vadd.f32 %v10477_v11, %v10482_v9  ;;  %v10567_v11 = vpop.permute.xlu1 %1521 }
 0x17e   : > { %v1052_v60 = vpop.f32.mrf.mxu0  ;;  %vm1555_vm2 = vcmp.eq.s32.totalorder %v10567_v11, 1 }
 0x17f   : > { %v1154_v62 = vpop.f32.mrf.mxu1  ;;  %v1261_v25 = vadd.f32 %v10441_v8, %v1159_v14 }
 0x186   : > { %v1428_v59 = vpop.f32.mrf.mxu0 }
 0x187   : > { %v1462_v16 = vadd.f32 %v1428_v59, %v10451_v29  ;;  %v10552_v29 = vpop.permute.xlu0 %1518 }
 0x188   : > { %vm1554_vm1 = vcmp.eq.s32.totalorder %v10552_v29, 1 }
 0x189   : > { %v1475_v41 = vmul.f32 0.01, %v1462_v16 }
 0x18b   : > { %v1488_v35 = vmax.f32 %v1462_v16, %v1475_v41 }
 0x18d   : > { %v1566_v62 = vsel %vm1553_vm15, %v1488_v35, 0.0  ;;  %v753_v35 = vadd.f32 %v10321_v50, %v651_v31  ;;  %v1363_v50 = vadd.f32 %v10467_v53, %v1261_v25  ;;  %v653_v53 = vadd.f32 %v10234_v46, %v10319_v49 }
 0x18e   : > { %1580 = vst.msk [vmem:[#allocation2 + $0x10] sm:$0xff] %vm1579_vm0, %v1566_v62  ;;  %v1430_v36 = vpop.f32.mrf.mxu0 }
 0x18f   : > { %v1463_v40 = vadd.f32 %v1430_v36, %v1361_v45  ;;  %v855_v62 = vadd.f32 %v10263_v4, %v753_v35  ;;  %v10579_v4 = vpop.permute.xlu1 %1524 }
 0x190   : > { %vm1556_vm3 = vcmp.eq.s32.totalorder %v10579_v4, 1 }
 0x191   : > { %v1476_v7 = vmul.f32 0.01, %v1463_v40 }
 0x193   : > { %v1489_v39 = vmax.f32 %v1463_v40, %v1476_v7 }
 0x195   : > { %v1567_v61 = vsel %vm1554_vm1, %v1489_v39, 0.0  ;;  %v1608_v10 = vld [vmem:[#allocation2 + $0xd] sm:$0xff]  ;;  %v957_v39 = vadd.f32 %v10307_v13, %v855_v62 }
 0x196   : > { %v1740_v60 = vld [vmem:[#allocation2 + $0xe] sm:$0xff]  ;;  %1581 = vst.msk [vmem:[#allocation2 + $0x18] sm:$0xff] %vm1579_vm0, %v1567_v61  ;;  %v1433_v59 = vpop.f32.mrf.mxu0  ;;  %v1620_v16 = vpack.c.bf16 %v1608_v10, %v1607_v18 }
 0x197   : > { %v1870_v0 = vld [vmem:[#allocation2 + $0xf] sm:$0xff]  ;;  %v1752_v56 = vpack.c.bf16 %v1740_v60, %v1739_v43  ;;  %v1464_v45 = vadd.f32 %v1433_v59, %v10474_v63  ;;  %v1059_v43 = vadd.f32 %v10495_v26, %v957_v39  ;;  %v755_v60 = vadd.f32 %v10356_v12, %v653_v53 }
 0x198   : > { %v1882_v41 = vpack.c.bf16 %v1870_v0, %v1869_v57  ;;  %8558 = vmatmul.msk.bf16.vlgmr.msrb.gmra.mxu1 %vm1579_vm0, %v1620_v16 }
 0x199   : > { %8581 = vmatmul.msk.bf16.vlgmr.msra.gmra.mxu2 %vm1579_vm0, %v1752_v56  ;;  %v1477_v9 = vmul.f32 0.01, %v1464_v45  ;;  %v1161_v14 = vadd.f32 %v10497_v44, %v1059_v43  ;;  %v857_v12 = vadd.f32 %v10292_v28, %v755_v60  ;;  %v655_v43 = vadd.f32 %v10234_v46, %v10354_v20 }
 0x19a   : > { %8604 = vmatmul.msk.bf16.vlgmr.msra.gmra.mxu3 %vm1579_vm0, %v1882_v41 }
 0x19b   : > { %v1490_v36 = vmax.f32 %v1464_v45, %v1477_v9  ;;  %v1263_v44 = vadd.f32 %v10464_v48, %v1161_v14  ;;  %v10591_v45 = vpop.permute.xlu2 %1527  ;;  %v757_v60 = vadd.f32 %v10386_v55, %v655_v43 }
 0x19c   : > { %vm1557_vm4 = vcmp.eq.s32.totalorder %v10591_v45, 1 }
 0x19d   : > { %v2000_v40 = vld [vmem:[#allocation2 + $0x17] sm:$0xff]  ;;  %v1568_v63 = vsel %vm1555_vm2, %v1490_v36, 0.0 }
 0x19e   : > { %1582 = vst.msk [vmem:[#allocation2 + $0x20] sm:$0xff] %vm1579_vm0, %v1568_v63  ;;  %v1435_v7 = vpop.f32.mrf.mxu0  ;;  %v2012_v8 = vpack.c.bf16 %v2000_v40, %v1870_v0  ;;  %v1609_v13 = vld [vmem:[#allocation2 + $0x15] sm:$0xff] }
 0x19f   : > { %v1465_v18 = vadd.f32 %v1435_v7, %v1363_v50  ;;  %v1741_v10 = vld [vmem:[#allocation2 + $0x16] sm:$0xff]  ;;  %v959_v50 = vadd.f32 %v10337_v2, %v857_v12 }
 0x1a0   : > { %8627 = vmatmul.msk.bf16.vlgmr.msra.gmra.mxu0 %vm1579_vm0, %v2012_v8 }
 0x1a1   : > { %v1478_v57 = vmul.f32 0.01, %v1465_v18  ;;  %v1061_v7 = vadd.f32 %v10509_v21, %v959_v50 }
 0x1a3   : > { %v1491_v31 = vmax.f32 %v1465_v18, %v1478_v57  ;;  %v10605_v28 = vpop.permute.xlu2 %1530  ;;  %v1163_v57 = vadd.f32 %v10511_v47, %v1061_v7  ;;  %v859_v47 = vadd.f32 %v10323_v51, %v757_v60 }
 0x1a4   : > { %vm1558_vm5 = vcmp.eq.s32.totalorder %v10605_v28, 1 }
 0x1a5   : > { %v1569_v61 = vsel %vm1556_vm3, %v1491_v31, 0.0  ;;  %v1610_v0 = vld [vmem:[#allocation2 + $0x1d] sm:$0xff]  ;;  %v1265_v20 = vadd.f32 %v10487_v22, %v1163_v57 }
 0x1a6   : > { %1583 = vst.msk [vmem:[#allocation2 + $0x28] sm:$0xff] %vm1579_vm0, %v1569_v61  ;;  %v1438_v26 = vpop.f32.mrf.mxu0  ;;  %v1742_v59 = vld [vmem:[#allocation2 + $0x1e] sm:$0xff]  ;;  %v1621_v49 = vpack.c.bf16 %v1610_v0, %v1609_v13 }
 0x1a7   : > { %v1872_v16 = vld [vmem:[#allocation2 + $0x1f] sm:$0xff]  ;;  %v1466_v56 = vadd.f32 %v1438_v26, %v10493_v17  ;;  %v1753_v41 = vpack.c.bf16 %v1742_v59, %v1741_v10  ;;  %v1365_v17 = vadd.f32 %v10489_v1, %v1263_v44  ;;  %v10621_v59 = vpop.permute.xlu0 %1533  ;;  %v1367_v55 = vadd.f32 %v10503_v38, %v1265_v20 }
 0x1a8   : > { %v1883_v35 = vpack.c.bf16 %v1872_v16, %v2000_v40  ;;  %8559 = vmatmul.msk.bf16.gmra.mxu1 %vm1579_vm0, %v1621_v49  ;;  %12664 = vst [vmem:[#allocation8_spill] sm:$0xff] %v10621_v59  ;;  %vm1559_vm6 = vcmp.eq.s32.totalorder %v10621_v59, 1 }
 0x1a9   : > { %v1479_v25 = vmul.f32 0.01, %v1466_v56  ;;  %8582 = vmatmul.msk.bf16.gmra.mxu2 %vm1579_vm0, %v1753_v41  ;;  %v961_v41 = vadd.f32 %v10370_v37, %v859_v47 }
 0x1aa   : > { %8605 = vmatmul.msk.bf16.gmra.mxu3 %vm1579_vm0, %v1883_v35 }
 0x1ab   : > { %v1492_v9 = vmax.f32 %v1466_v56, %v1479_v25  ;;  %v1063_v51 = vadd.f32 %v10523_v32, %v961_v41  ;;  %v10631_v25 = vpop.permute.xlu1 %1536  ;;  %v9644_v41 = vld [vmem:[#allocation4 + $0x90] sm:$0xff] }
 0x1ac   : > { %12665 = vst [vmem:[#allocation9_spill] sm:$0xff] %v10631_v25  ;;  %vm1560_vm7 = vcmp.eq.s32.totalorder %v10631_v25, 1 }
 0x1ad   : > { %v1570_v62 = vsel %vm1557_vm4, %v1492_v9, 0.0  ;;  %v2002_v36 = vld [vmem:[#allocation2 + $0x27] sm:$0xff] }
 0x1ae   : > { %1584 = vst.msk [vmem:[#allocation2 + $0x30] sm:$0xff] %vm1579_vm0, %v1570_v62  ;;  %v1440_v48 = vpop.f32.mrf.mxu0  ;;  %v2013_v63 = vpack.c.bf16 %v2002_v36, %v1872_v16  ;;  %v1611_v1 = vld [vmem:[#allocation2 + $0x25] sm:$0xff]  ;;  %v1165_v62 = vadd.f32 %v10525_v33, %v1063_v51  ;;  %v9648_v51 = vld [vmem:[#allocation4 + $0xb0] sm:$0xff] }
 0x1af   : > { %v1467_v40 = vadd.f32 %v1440_v48, %v1365_v17  ;;  %v1743_v18 = vld [vmem:[#allocation2 + $0x26] sm:$0xff]  ;;  %v657_v17 = vadd.f32 %v10234_v46, %v10384_v54 }
 0x1b0   : > { %8628 = vmatmul.msk.bf16.gmra.mxu0 %vm1579_vm0, %v2013_v63  ;;  %v1267_v46 = vadd.f32 %v10501_v3, %v1165_v62 }
 0x1b1   : > { %v1480_v8 = vmul.f32 0.01, %v1467_v40 }
 0x1b3   : > { %v1493_v39 = vmax.f32 %v1467_v40, %v1480_v8  ;;  %v759_v8 = vadd.f32 %v10416_v30, %v657_v17  ;;  %v1369_v30 = vadd.f32 %v10517_v27, %v1267_v46 }
 0x1b5   : > { %v1571_v2 = vsel %vm1558_vm5, %v1493_v39, 0.0  ;;  %v1612_v31 = vld [vmem:[#allocation2 + $0x2d] sm:$0xff]  ;;  %v861_v33 = vadd.f32 %v10361_v23, %v759_v8 }
 0x1b6   : > { %v1744_v21 = vld [vmem:[#allocation2 + $0x2e] sm:$0xff]  ;;  %1585 = vst.msk [vmem:[#allocation2 + $0x38] sm:$0xff] %vm1579_vm0, %v1571_v2  ;;  %v1443_v14 = vpop.f32.mrf.mxu0  ;;  %v1622_v61 = vpack.c.bf16 %v1612_v31, %v1611_v1  ;;  %v10647_v1 = vpop.permute.xlu2 %1539  ;;  %v9645_v2 = vld [vmem:[#allocation4 + $0x98] sm:$0xff] }
 0x1b7   : > { %v1874_v53 = vld [vmem:[#allocation2 + $0x2f] sm:$0xff]  ;;  %v1754_v13 = vpack.c.bf16 %v1744_v21, %v1743_v18  ;;  %v1468_v26 = vadd.f32 %v1443_v14, %v10507_v5  ;;  %12666 = vst [vmem:[#allocation10_spill] sm:$0xff] %v10647_v1  ;;  %vm1561_vm8 = vcmp.eq.s32.totalorder %v10647_v1, 1  ;;  %v963_v31 = vadd.f32 %v10400_v6, %v861_v33  ;;  %2194 = vmatpush.bf16.msra.mxu1 %v9645_v2  ;;  %v10657_v14 = vpop.permute.xlu0 %1542  ;;  %v9656_v33 = vld [vmem:[#allocation4 + $0xf0] sm:$0xff] }
 0x1b8   : > { %v1884_v10 = vpack.c.bf16 %v1874_v53, %v2002_v36  ;;  %8560 = vmatmul.msk.bf16.gmra.mxu1 %vm1579_vm0, %v1622_v61  ;;  %12667 = vst [vmem:[#allocation11_spill] sm:$0xff] %v10657_v14  ;;  %vm1562_vm9 = vcmp.eq.s32.totalorder %v10657_v14, 1  ;;  %v9642_v8 = vld [vmem:[#allocation4 + $0x80] sm:$0xff] }
 0x1b9   : > { %v1481_v0 = vmul.f32 0.01, %v1468_v26  ;;  %8583 = vmatmul.msk.bf16.gmra.mxu2 %vm1579_vm0, %v1754_v13  ;;  %v1065_v23 = vadd.f32 %v10534_v58, %v963_v31 }
 0x1ba   : > { %8606 = vmatmul.msk.bf16.gmra.mxu3 %vm1579_vm0, %v1884_v10 }
 0x1bb   : > { %v1494_v16 = vmax.f32 %v1468_v26, %v1481_v0  ;;  %v1167_v10 = vadd.f32 %v10536_v52, %v1065_v23  ;;  %v9649_v52 = vld [vmem:[#allocation4 + $0xb8] sm:$0xff]  ;;  %2195 = vmatpush.bf16.msra.mxu1 %v9644_v41  ;;  %v10700_v41 = vld [vmem:[#allocation2 + $0x10] sm:$0xff] }
 0x1bc   : > { %2324 = vmatpush.bf16.msrb.mxu2 %v9649_v52  ;;  %v2377_v52 = vld [vmem:[#allocation2 + $0x21] sm:$0xff] }
 0x1bd   : > { %v1572_v5 = vsel %vm1559_vm6, %v1494_v16, 0.0  ;;  %v2004_v22 = vld [vmem:[#allocation2 + $0x37] sm:$0xff] }
 0x1be   : > { %1586 = vst.msk [vmem:[#allocation2 + $0x40] sm:$0xff] %vm1579_vm0, %v1572_v5  ;;  %v1445_v56 = vpop.f32.mrf.mxu0  ;;  %v2014_v49 = vpack.c.bf16 %v2004_v22, %v1874_v53  ;;  %v1613_v38 = vld [vmem:[#allocation2 + $0x35] sm:$0xff]  ;;  %v1269_v5 = vadd.f32 %v10515_v34, %v1167_v10  ;;  %v12669_v34 = vld [vmem:[#allocation7_spill] sm:$0xff] }
 0x1bf   : > { %v1469_v35 = vadd.f32 %v1445_v56, %v1367_v55  ;;  %v1745_v9 = vld [vmem:[#allocation2 + $0x36] sm:$0xff]  ;;  %v10684_v23 = vpop.permute.xlu0 %1551 }
 0x1c0   : > { %8629 = vmatmul.msk.bf16.gmra.mxu0 %vm1579_vm0, %v2014_v49  ;;  %v9653_v49 = vld [vmem:[#allocation4 + $0xd8] sm:$0xff]  ;;  %2325 = vmatpush.bf16.msrb.mxu2 %v9648_v51  ;;  %12671 = vst [vmem:[#allocation13_spill] sm:$0xff] %v10684_v23  ;;  %vm1565_vm12 = vcmp.eq.s32.totalorder %v10684_v23, 1  ;;  %v2639_v23 = vld [vmem:[#allocation2 + $0x33] sm:$0xff] }
 0x1c1   : > { %v1482_v44 = vmul.f32 0.01, %v1469_v35  ;;  %2454 = vmatpush.bf16.msrb.mxu3 %v9653_v49  ;;  %v2246_v49 = vld [vmem:[#allocation2 + $0x11] sm:$0xff] }
 0x1c3   : > { %v1495_v12 = vmax.f32 %v1469_v35, %v1482_v44  ;;  %v9652_v44 = vld [vmem:[#allocation4 + $0xd0] sm:$0xff] }
 0x1c5   : > { %v1573_v37 = vsel %vm1560_vm7, %v1495_v12, 0.0  ;;  %v1614_v48 = vld [vmem:[#allocation2 + $0x3d] sm:$0xff]  ;;  %2455 = vmatpush.bf16.msrb.mxu3 %v9652_v44 }
 0x1c6   : > { %v1746_v32 = vld [vmem:[#allocation2 + $0x3e] sm:$0xff]  ;;  %1587 = vst.msk [vmem:[#allocation2 + $0x48] sm:$0xff] %vm1579_vm0, %v1573_v37  ;;  %v1448_v50 = vpop.f32.mrf.mxu0  ;;  %v1623_v40 = vpack.c.bf16 %v1614_v48, %v1613_v38  ;;  %v10676_v37 = vpop.permute.xlu2 %1548 }
 0x1c7   : > { %v1876_v36 = vld [vmem:[#allocation2 + $0x3f] sm:$0xff]  ;;  %v1755_v63 = vpack.c.bf16 %v1746_v32, %v1745_v9  ;;  %v1470_v39 = vadd.f32 %v1448_v50, %v10521_v42  ;;  %12670 = vst [vmem:[#allocation7_spill] sm:$0xff] %v10676_v37  ;;  %v9643_v32 = vld [vmem:[#allocation4 + $0x88] sm:$0xff]  ;;  %vm1564_vm11 = vcmp.eq.s32.totalorder %v10676_v37, 1 }
 0x1c8   : > { %v1885_v7 = vpack.c.bf16 %v1876_v36, %v2004_v22  ;;  %8561 = vmatmul.msk.bf16.gmra.mxu1 %vm1579_vm0, %v1623_v40  ;;  %v10666_v22 = vpop.permute.xlu1 %1545  ;;  %v9651_v50 = vld [vmem:[#allocation4 + $0xc8] sm:$0xff]  ;;  %v9657_v40 = vld [vmem:[#allocation4 + $0xf8] sm:$0xff] }
 0x1c9   : > { %v1483_v54 = vmul.f32 0.01, %v1470_v39  ;;  %8584 = vmatmul.msk.bf16.gmra.mxu2 %vm1579_vm0, %v1755_v63  ;;  %12668 = vst [vmem:[#allocation12_spill] sm:$0xff] %v10666_v22  ;;  %vm1563_vm10 = vcmp.eq.s32.totalorder %v10666_v22, 1  ;;  %2196 = vmatpush.bf16.msra.mxu1 %v9643_v32  ;;  %v10715_v32 = vld [vmem:[#allocation2 + $0x20] sm:$0xff]  ;;  %v2638_v22 = vld [vmem:[#allocation2 + $0x2b] sm:$0xff] }
 0x1ca   : > { %8607 = vmatmul.msk.bf16.gmra.mxu3 %vm1579_vm0, %v1885_v7  ;;  %2584 = vmatpush.bf16.msrb.mxu0 %v9657_v40 }
 0x1cb   : > { %v1496_v18 = vmax.f32 %v1470_v39, %v1483_v54  ;;  %v9646_v39 = vld [vmem:[#allocation4 + $0xa0] sm:$0xff]  ;;  %2456 = vmatpush.bf16.msrb.mxu3 %v9651_v50 }
 0x1cc   : > { %v9650_v54 = vld [vmem:[#allocation4 + $0xc0] sm:$0xff] }
 0x1cd   : > { %v1574_v42 = vsel %vm1561_vm8, %v1496_v18, 0.0  ;;  %v2006_v3 = vld [vmem:[#allocation2 + $0x47] sm:$0xff]  ;;  %2197 = vmatpush.bf16.msra.mxu1 %v9642_v8 }
 0x1ce   : > { %1588 = vst.msk [vmem:[#allocation2 + $0x50] sm:$0xff] %vm1579_vm0, %v1574_v42  ;;  %v1450_v43 = vpop.f32.mrf.mxu0  ;;  %v2015_v57 = vpack.c.bf16 %v2006_v3, %v1876_v36  ;;  %v1615_v61 = vld [vmem:[#allocation2 + $0x45] sm:$0xff]  ;;  %v9647_v36 = vld [vmem:[#allocation4 + $0xa8] sm:$0xff]  ;;  %2585 = vmatpush.bf16.msrb.mxu0 %v9656_v33 }
 0x1cf   : > { %v1471_v21 = vadd.f32 %v1450_v43, %v1369_v30  ;;  %v1747_v13 = vld [vmem:[#allocation2 + $0x46] sm:$0xff]  ;;  %2326 = vmatpush.bf16.msrb.mxu2 %v9647_v36  ;;  %2457 = vmatpush.bf16.msrb.mxu3 %v9650_v54 }
 0x1d0   : > { %8630 = vmatmul.msk.bf16.gmra.mxu0 %vm1579_vm0, %v2015_v57 }
 0x1d1   : > { %v1484_v53 = vmul.f32 0.01, %v1471_v21 }
 0x1d3   : > { %v1497_v27 = vmax.f32 %v1471_v21, %v1484_v53  ;;  %2327 = vmatpush.bf16.msrb.mxu2 %v9646_v39 }
 0x1d5   : > { %v1575_v60 = vsel %vm1562_vm9, %v1497_v27, 0.0  ;;  %v1616_v6 = vld [vmem:[#allocation2 + $0x4d] sm:$0xff] }
 0x1d6   : > { %v1748_v26 = vld [vmem:[#allocation2 + $0x4e] sm:$0xff]  ;;  %1589 = vst.msk [vmem:[#allocation2 + $0x58] sm:$0xff] %vm1579_vm0, %v1575_v60  ;;  %v1453_v58 = vpop.f32.mrf.mxu0  ;;  %v1624_v0 = vpack.c.bf16 %v1616_v6, %v1615_v61 }
 0x1d7   : > { %v1878_v20 = vld [vmem:[#allocation2 + $0x4f] sm:$0xff]  ;;  %v1756_v47 = vpack.c.bf16 %v1748_v26, %v1747_v13  ;;  %v1472_v55 = vadd.f32 %v1453_v58, %v10532_v15  ;;  %v1371_v15 = vadd.f32 %v12669_v34, %v1269_v5  ;;  %v2247_v5 = vld [vmem:[#allocation2 + $0x19] sm:$0xff]  ;;  %v2507_v34 = vld [vmem:[#allocation2 + $0x22] sm:$0xff] }
 0x1d8   : > { %v1886_v16 = vpack.c.bf16 %v1878_v20, %v2006_v3  ;;  %8562 = vmatmul.msk.bf16.gmra.mxu1 %vm1579_vm0, %v1624_v0  ;;  %v9655_v27 = vld [vmem:[#allocation4 + $0xe8] sm:$0xff]  ;;  %v9654_v13 = vld [vmem:[#allocation4 + $0xe0] sm:$0xff]  ;;  %v2259_v51 = vpack.c.bf16 %v2247_v5, %v2246_v49  ;;  %v2389_v44 = vpack.c.bf16 %v2377_v52, %v2247_v5  ;;  %v2510_v49 = vld [vmem:[#allocation2 + $0x3a] sm:$0xff] }
 0x1d9   : > { %v1485_v56 = vmul.f32 0.01, %v1472_v55  ;;  %8585 = vmatmul.msk.bf16.gmra.mxu2 %vm1579_vm0, %v1756_v47  ;;  %2586 = vmatpush.bf16.msrb.mxu0 %v9655_v27 }
 0x1da   : > { %8608 = vmatmul.msk.bf16.gmra.mxu3 %vm1579_vm0, %v1886_v16 }
 0x1db   : > { %v1498_v35 = vmax.f32 %v1472_v55, %v1485_v56  ;;  %v10698_v56 = vld [vmem:[#allocation2 + $0x18] sm:$0xff] }
 0x1dd   : > { %v1576_v12 = vsel %vm1563_vm10, %v1498_v35, 0.0  ;;  %v2008_v38 = vld [vmem:[#allocation2 + $0x57] sm:$0xff]  ;;  %2587 = vmatpush.bf16.msrb.mxu0 %v9654_v13  ;;  %v2129_v35 = vpack.c.bf16 %v10698_v56, %v10700_v41 }
 0x1de   : > { %1590 = vst.msk [vmem:[#allocation2 + $0x60] sm:$0xff] %vm1579_vm0, %v1576_v12  ;;  %v1455_v9 = vpop.f32.mrf.mxu0  ;;  %v2016_v17 = vpack.c.bf16 %v2008_v38, %v1878_v20  ;;  %v1617_v7 = vld [vmem:[#allocation2 + $0x55] sm:$0xff] }
 0x1df   : > { %v1473_v62 = vadd.f32 %v1455_v9, %v1371_v15  ;;  %v1749_v46 = vld [vmem:[#allocation2 + $0x56] sm:$0xff]  ;;  %v2249_v9 = vld [vmem:[#allocation2 + $0x29] sm:$0xff] }
 0x1e0   : > { %8631 = vmatmul.msk.bf16.gmra.mxu0 %vm1579_vm0, %v2016_v17  ;;  %v2506_v15 = vld [vmem:[#allocation2 + $0x1a] sm:$0xff]  ;;  %v2260_v50 = vpack.c.bf16 %v2249_v9, %v2377_v52 }
 0x1e1   : > { %v1486_v48 = vmul.f32 0.01, %v1473_v62  ;;  %v2519_v12 = vpack.c.bf16 %v2507_v34, %v2506_v15 }
 0x1e3   : > { %v1499_v63 = vmax.f32 %v1473_v62, %v1486_v48  ;;  %v2379_v62 = vld [vmem:[#allocation2 + $0x31] sm:$0xff]  ;;  %v10713_v48 = vld [vmem:[%s12614_s5] ss:$0 sm:$0xff] }
 0x1e4   : > { %v2390_v40 = vpack.c.bf16 %v2379_v62, %v2249_v9  ;;  %v2253_v9 = vld [vmem:[#allocation2 + $0x49] sm:$0xff] }
 0x1e5   : > { %v1577_v18 = vsel %vm1564_vm11, %v1499_v63, 0.0  ;;  %v1618_v30 = vld [vmem:[#allocation2 + $0x5d] sm:$0xff] }
 0x1e6   : > { %v1750_v42 = vld [vmem:[#allocation2 + $0x5e] sm:$0xff]  ;;  %1591 = vst.msk [vmem:[#allocation2 + $0x68] sm:$0xff] %vm1579_vm0, %v1577_v18  ;;  %v1458_v43 = vpop.f32.mrf.mxu0  ;;  %v1625_v57 = vpack.c.bf16 %v1618_v30, %v1617_v7  ;;  %v2508_v30 = vld [vmem:[#allocation2 + $0x2a] sm:$0xff] }
 0x1e7   : > { %v1880_v3 = vld [vmem:[#allocation2 + $0x5f] sm:$0xff]  ;;  %v1757_v2 = vpack.c.bf16 %v1750_v42, %v1749_v46  ;;  %v1474_v21 = vadd.f32 %v1458_v43, %v10539_v19  ;;  %v2509_v46 = vld [vmem:[#allocation2 + $0x32] sm:$0xff] }
 0x1e8   : > { %v1887_v31 = vpack.c.bf16 %v1880_v3, %v2008_v38  ;;  %8563 = vmatmul.msk.bf16.gmra.mxu1 %vm1579_vm0, %v1625_v57  ;;  %v10708_v38 = vld [vmem:[#allocation2 + $0x28] sm:$0xff]  ;;  %v2520_v42 = vpack.c.bf16 %v2509_v46, %v2508_v30  ;;  %v2513_v30 = vld [vmem:[#allocation2 + $0x52] sm:$0xff] }
 0x1e9   : > { %v1487_v53 = vmul.f32 0.01, %v1474_v21  ;;  %8586 = vmatmul.msk.bf16.gmra.mxu2 %vm1579_vm0, %v1757_v2  ;;  %v2130_v36 = vpack.c.bf16 %v10708_v38, %v10715_v32 }
 0x1ea   : > { %8609 = vmatmul.msk.bf16.gmra.mxu3 %vm1579_vm0, %v1887_v31 }
 0x1eb   : > { %v1500_v61 = vmax.f32 %v1474_v21, %v1487_v53  ;;  %v10727_v21 = vld [vmem:[#allocation2 + $0x38] sm:$0xff] }
 0x1ec   : > { %v2251_v53 = vld [vmem:[#allocation2 + $0x39] sm:$0xff] }
 0x1ed   : > { %v1578_v19 = vsel %vm1565_vm12, %v1500_v61, 0.0  ;;  %v2010_v10 = vld [vmem:[#allocation2 + $0x67] sm:$0xff] }
 0x1ee   : > { %1592 = vst.msk [vmem:[#allocation2 + $0x70] sm:$0xff] %vm1579_vm0, %v1578_v19  ;;  %v2017_v60 = vpack.c.bf16 %v2010_v10, %v1880_v3  ;;  %v1460_v6 = vpop.f32.mrf.mxu0  ;;  %v1619_v26 = vld [vmem:[#allocation2 + $0x65] sm:$0xff]  ;;  %v1888_v47 = vpack.c.bf16 %v2010_v10, %v2010_v10  ;;  %v10729_v10 = vld [vmem:[#allocation2 + $0x30] sm:$0xff] }
 0x1ef   : > { %v1751_v20 = vld [vmem:[#allocation2 + $0x66] sm:$0xff]  ;;  %v1626_v58 = vpack.c.bf16 %v1619_v26, %v1619_v26  ;;  %v2261_v6 = vpack.c.bf16 %v2251_v53, %v2379_v62 }
 0x1f0   : > { %8632 = vmatmul.msk.bf16.gmra.mxu0 %vm1579_vm0, %v2017_v60  ;;  %v1758_v0 = vpack.c.bf16 %v1751_v20, %v1751_v20  ;;  %v2381_v61 = vld [vmem:[#allocation2 + $0x41] sm:$0xff]  ;;  %v2131_v60 = vpack.c.bf16 %v10727_v21, %v10729_v10 }
 0x1f1   : > { %v2391_v20 = vpack.c.bf16 %v2381_v61, %v2251_v53 }
 0x1f5   : > { %v2011_v16 = vld [vmem:[#allocation2 + $0x6f] sm:$0xff] }
 0x1f6   : > { %v2018_v55 = vpack.c.bf16 %v2011_v16, %v2011_v16 }
 0x1f8   : > { %8564 = vmatmul.msk.bf16.gmra.mxu1 %vm1579_vm0, %v1626_v58 }
 0x1f9   : > { %8587 = vmatmul.msk.bf16.gmra.mxu2 %vm1579_vm0, %v1758_v0 }
 0x1fa   : > { %8610 = vmatmul.msk.bf16.gmra.mxu3 %vm1579_vm0, %v1888_v47  ;;  %v2511_v47 = vld [vmem:[#allocation2 + $0x42] sm:$0xff] }
 0x200   : > { %8633 = vmatmul.msk.bf16.gmra.mxu0 %vm1579_vm0, %v2018_v55 }
 0x208   : > { %8650 = vmatmul.msk.bf16.vlgmr.msra.gmra.mxu1 %vm1579_vm0, %v2129_v35 }
 0x209   : > { %8673 = vmatmul.msk.bf16.vlgmr.msrb.gmra.mxu2 %vm1579_vm0, %v2259_v51  ;;  %v2521_v51 = vpack.c.bf16 %v2511_v47, %v2510_v49 }
 0x20a   : > { %8696 = vmatmul.msk.bf16.vlgmr.msrb.gmra.mxu3 %vm1579_vm0, %v2389_v44 }
 0x210   : > { %8719 = vmatmul.msk.bf16.vlgmr.msrb.gmra.mxu0 %vm1579_vm0, %v2519_v12  ;;  %v10743_v12 = vld [vmem:[#allocation2 + $0x48] sm:$0xff] }
 0x211   : > { %12672 = vst [vmem:[#allocation14_spill] sm:$0xff] %v10743_v12 }
 0x215   : > { %v1689_v17 = vpop.f32.mrf.mxu1 }
 0x216   : > { %v1726_v63 = vadd.f32 %v10713_v48, %v1689_v17 }
 0x218   : > { %8651 = vmatmul.msk.bf16.gmra.mxu1 %vm1579_vm0, %v2130_v36  ;;  %v2383_v36 = vld [vmem:[#allocation2 + $0x51] sm:$0xff] }
 0x219   : > { %8674 = vmatmul.msk.bf16.gmra.mxu2 %vm1579_vm0, %v2260_v50  ;;  %v2392_v46 = vpack.c.bf16 %v2383_v36, %v2253_v9 }
 0x21a   : > { %8697 = vmatmul.msk.bf16.gmra.mxu3 %vm1579_vm0, %v2390_v40 }
 0x21c   : > { %v1822_v7 = vpop.f32.mrf.mxu2 }
 0x21d   : > { %v1856_v8 = vadd.f32 %v1822_v7, %v1726_v63  ;;  %v1952_v39 = vpop.f32.mrf.mxu3  ;;  %v1691_v54 = vpop.f32.mrf.mxu1  ;;  %v10745_v63 = vld [vmem:[#allocation2 + $0x40] sm:$0xff] }
 0x21e   : > { %v2082_v33 = vpop.f32.mrf.mxu0  ;;  %v1727_v43 = vadd.f32 %v10713_v48, %v1691_v54 }
 0x21f   : > { %v1986_v18 = vadd.f32 %v1952_v39, %v1856_v8  ;;  %v2132_v8 = vpack.c.bf16 %v10743_v12, %v10745_v63  ;;  %v2262_v39 = vpack.c.bf16 %v2253_v9, %v2381_v61  ;;  %v9660_v9 = vld [vmem:[#allocation4 + $0x110] sm:$0xff] }
 0x220   : > { %8720 = vmatmul.msk.bf16.gmra.mxu0 %vm1579_vm0, %v2520_v42  ;;  %v2648_v12 = vld [vmem:[#allocation2 + $0x7b] sm:$0xff] }
 0x221   : > { %v10723_v3 = vadd.f32 %v2082_v33, %v1986_v18 }
 0x224   : > { %v1824_v57 = vpop.f32.mrf.mxu2 }
 0x225   : > { %v1857_v2 = vadd.f32 %v1824_v57, %v1727_v43  ;;  %v1954_v31 = vpop.f32.mrf.mxu3  ;;  %v1694_v19 = vpop.f32.mrf.mxu1 }
 0x226   : > { %v2084_v27 = vpop.f32.mrf.mxu0  ;;  %v1728_v58 = vadd.f32 %v10713_v48, %v1694_v19 }
 0x227   : > { %v1987_v13 = vadd.f32 %v1954_v31, %v1857_v2  ;;  %v2512_v31 = vld [vmem:[#allocation2 + $0x4a] sm:$0xff] }
 0x228   : > { %8652 = vmatmul.msk.bf16.gmra.mxu1 %vm1579_vm0, %v2131_v60  ;;  %v10762_v60 = vld [vmem:[#allocation2 + $0x58] sm:$0xff] }
 0x229   : > { %v10733_v26 = vadd.f32 %v2084_v27, %v1987_v13  ;;  %8675 = vmatmul.msk.bf16.gmra.mxu2 %vm1579_vm0, %v2261_v6  ;;  %v2522_v27 = vpack.c.bf16 %v2513_v30, %v2512_v31  ;;  %v9661_v13 = vld [vmem:[#allocation4 + $0x118] sm:$0xff]  ;;  %12673 = vst [vmem:[#allocation15_spill] sm:$0xff] %v10762_v60  ;;  %v2255_v6 = vld [vmem:[#allocation2 + $0x59] sm:$0xff]  ;;  %v2387_v30 = vld [vmem:[#allocation2 + $0x71] sm:$0xff] }
 0x22a   : > { %8698 = vmatmul.msk.bf16.gmra.mxu3 %vm1579_vm0, %v2391_v20  ;;  %2714 = vmatpush.bf16.msrb.mxu1 %v9661_v13  ;;  %v10789_v31 = vld [vmem:[#allocation2 + $0x60] sm:$0xff] }
 0x22b   : > { %12676 = vst [vmem:[#allocation18_spill] sm:$0xff] %v10789_v31 }
 0x22c   : > { %v1827_v0 = vpop.f32.mrf.mxu2 }
 0x22d   : > { %v1858_v16 = vadd.f32 %v1827_v0, %v1728_v58  ;;  %v1957_v55 = vpop.f32.mrf.mxu3  ;;  %v1696_v5 = vpop.f32.mrf.mxu1  ;;  %v2385_v58 = vld [vmem:[#allocation2 + $0x61] sm:$0xff] }
 0x22e   : > { %v2087_v52 = vpop.f32.mrf.mxu0  ;;  %v1729_v34 = vadd.f32 %v10713_v48, %v1696_v5  ;;  %v2263_v5 = vpack.c.bf16 %v2255_v6, %v2383_v36  ;;  %2715 = vmatpush.bf16.msrb.mxu1 %v9660_v9  ;;  %v2388_v9 = vld [vmem:[#allocation2 + $0x79] sm:$0xff] }
 0x22f   : > { %v1988_v35 = vadd.f32 %v1957_v55, %v1858_v16  ;;  %v10768_v16 = vld [vmem:[#allocation2 + $0x50] sm:$0xff] }
 0x230   : > { %8721 = vmatmul.msk.bf16.gmra.mxu0 %vm1579_vm0, %v2521_v51  ;;  %12674 = vst [vmem:[#allocation16_spill] sm:$0xff] %v10768_v16  ;;  %v2133_v55 = vpack.c.bf16 %v10762_v60, %v10768_v16  ;;  %v2515_v51 = vld [vmem:[#allocation2 + $0x62] sm:$0xff] }
 0x231   : > { %v10739_v44 = vadd.f32 %v2087_v52, %v1988_v35  ;;  %v2393_v52 = vpack.c.bf16 %v2385_v58, %v2255_v6  ;;  %v2645_v60 = vld [vmem:[#allocation2 + $0x63] sm:$0xff] }
 0x234   : > { %v1829_v15 = vpop.f32.mrf.mxu2 }
 0x235   : > { %v1859_v17 = vadd.f32 %v1829_v15, %v1729_v34  ;;  %v1959_v62 = vpop.f32.mrf.mxu3  ;;  %v1699_v50 = vpop.f32.mrf.mxu1 }
 0x236   : > { %v2089_v40 = vpop.f32.mrf.mxu0  ;;  %v1730_v33 = vadd.f32 %v10713_v48, %v1699_v50  ;;  %v2514_v50 = vld [vmem:[#allocation2 + $0x5a] sm:$0xff] }
 0x237   : > { %v1989_v7 = vadd.f32 %v1959_v62, %v1859_v17  ;;  %v2523_v36 = vpack.c.bf16 %v2515_v51, %v2514_v50  ;;  %v10804_v50 = vld [vmem:[#allocation2 + $0x70] sm:$0xff] }
 0x238   : > { %8653 = vmatmul.msk.bf16.gmra.mxu1 %vm1579_vm0, %v2132_v8  ;;  %v9659_v8 = vld [vmem:[#allocation4 + $0x108] sm:$0xff]  ;;  %12677 = vst [vmem:[#allocation19_spill] sm:$0xff] %v10804_v50 }
 0x239   : > { %v10749_v54 = vadd.f32 %v2089_v40, %v1989_v7  ;;  %8676 = vmatmul.msk.bf16.gmra.mxu2 %vm1579_vm0, %v2262_v39  ;;  %2716 = vmatpush.bf16.msrb.mxu1 %v9659_v8 }
 0x23a   : > { %8699 = vmatmul.msk.bf16.gmra.mxu3 %vm1579_vm0, %v2392_v46  ;;  %v10783_v46 = vld [vmem:[#allocation2 + $0x68] sm:$0xff] }
 0x23b   : > { %12675 = vst [vmem:[#allocation17_spill] sm:$0xff] %v10783_v46 }
 0x23c   : > { %v1832_v18 = vpop.f32.mrf.mxu2 }
 0x23d   : > { %v1860_v42 = vadd.f32 %v1832_v18, %v1730_v33  ;;  %v1962_v43 = vpop.f32.mrf.mxu3  ;;  %v10755_v57 = vpop.f32.mrf.mxu1  ;;  %v2257_v33 = vld [vmem:[#allocation2 + $0x69] sm:$0xff] }
 0x23e   : > { %v2092_v2 = vpop.f32.mrf.mxu0  ;;  %v2394_v13 = vpack.c.bf16 %v2387_v30, %v2257_v33 }
 0x23f   : > { %v1990_v53 = vadd.f32 %v1962_v43, %v1860_v42  ;;  %v9658_v42 = vld [vmem:[#allocation4 + $0x100] sm:$0xff] }
 0x240   : > { %8722 = vmatmul.msk.bf16.gmra.mxu0 %vm1579_vm0, %v2522_v27  ;;  %v2264_v27 = vpack.c.bf16 %v2257_v33, %v2385_v58  ;;  %2717 = vmatpush.bf16.msrb.mxu1 %v9658_v42  ;;  %v2395_v33 = vpack.c.bf16 %v2388_v9, %v2388_v9  ;;  %v2135_v42 = vpack.c.bf16 %v10804_v50, %v10804_v50  ;;  %v2636_v9 = vld [vmem:[#allocation2 + $0x1b] sm:$0xff] }
 0x241   : > { %v10757_v61 = vadd.f32 %v2092_v2, %v1990_v53  ;;  %v2134_v53 = vpack.c.bf16 %v10783_v46, %v10789_v31 }
 0x244   : > { %v10760_v19 = vpop.f32.mrf.mxu2 }
 0x245   : > { %v10764_v20 = vpop.f32.mrf.mxu3  ;;  %v1704_v0 = vpop.f32.mrf.mxu1 }
 0x246   : > { %v10766_v47 = vpop.f32.mrf.mxu0  ;;  %v1732_v49 = vadd.f32 %v10713_v48, %v1704_v0 }
 0x248   : > { %8654 = vmatmul.msk.bf16.gmra.mxu1 %vm1579_vm0, %v2133_v55  ;;  %v2516_v55 = vld [vmem:[#allocation2 + $0x6a] sm:$0xff] }
 0x249   : > { %8677 = vmatmul.msk.bf16.gmra.mxu2 %vm1579_vm0, %v2263_v5  ;;  %v2517_v5 = vld [vmem:[#allocation2 + $0x72] sm:$0xff] }
 0x24a   : > { %8700 = vmatmul.msk.bf16.gmra.mxu3 %vm1579_vm0, %v2393_v52  ;;  %v2524_v58 = vpack.c.bf16 %v2517_v5, %v2516_v55 }
 0x24c   : > { %v1837_v35 = vpop.f32.mrf.mxu2 }
 0x24d   : > { %v1862_v34 = vadd.f32 %v1837_v35, %v1732_v49  ;;  %v1967_v15 = vpop.f32.mrf.mxu3  ;;  %v10776_v17 = vpop.f32.mrf.mxu1 }
 0x24e   : > { %v2097_v62 = vpop.f32.mrf.mxu0 }
 0x24f   : > { %v1992_v40 = vadd.f32 %v1967_v15, %v1862_v34 }
 0x250   : > { %8723 = vmatmul.msk.bf16.gmra.mxu0 %vm1579_vm0, %v2523_v36 }
 0x251   : > { %v10778_v7 = vadd.f32 %v2097_v62, %v1992_v40 }
 0x254   : > { %v10781_v39 = vpop.f32.mrf.mxu2 }
 0x255   : > { %v10785_v18 = vpop.f32.mrf.mxu3  ;;  %v1709_v43 = vpop.f32.mrf.mxu1 }
 0x256   : > { %v10787_v2 = vpop.f32.mrf.mxu0  ;;  %v1734_v6 = vadd.f32 %v10713_v48, %v1709_v43  ;;  %v2265_v43 = vpack.c.bf16 %v2387_v30, %v2387_v30  ;;  %v2637_v30 = vld [vmem:[#allocation2 + $0x23] sm:$0xff] }
 0x258   : > { %8655 = vmatmul.msk.bf16.gmra.mxu1 %vm1579_vm0, %v2134_v53  ;;  %v2518_v53 = vld [vmem:[#allocation2 + $0x7a] sm:$0xff] }
 0x259   : > { %8678 = vmatmul.msk.bf16.gmra.mxu2 %vm1579_vm0, %v2264_v27  ;;  %v2525_v55 = vpack.c.bf16 %v2518_v53, %v2518_v53 }
 0x25a   : > { %8701 = vmatmul.msk.bf16.gmra.mxu3 %vm1579_vm0, %v2394_v13 }
 0x25c   : > { %v1842_v0 = vpop.f32.mrf.mxu2 }
 0x25d   : > { %v1864_v52 = vadd.f32 %v1842_v0, %v1734_v6  ;;  %v1972_v49 = vpop.f32.mrf.mxu3  ;;  %v10797_v35 = vpop.f32.mrf.mxu1 }
 0x25e   : > { %v2102_v51 = vpop.f32.mrf.mxu0 }
 0x25f   : > { %v1994_v34 = vadd.f32 %v1972_v49, %v1864_v52 }
 0x260   : > { %8724 = vmatmul.msk.bf16.gmra.mxu0 %vm1579_vm0, %v2524_v58 }
 0x261   : > { %v10799_v15 = vadd.f32 %v2102_v51, %v1994_v34 }
 0x264   : > { %v10802_v62 = vpop.f32.mrf.mxu2 }
 0x265   : > { %v10806_v40 = vpop.f32.mrf.mxu3  ;;  %v1714_v36 = vpop.f32.mrf.mxu1 }
 0x266   : > { %v10808_v8 = vpop.f32.mrf.mxu0  ;;  %v1736_v27 = vadd.f32 %v10713_v48, %v1714_v36 }
 0x267   : > { %12678 = vst [vmem:[#allocation20_spill] sm:$0xff] %v10808_v8 }
 0x268   : > { %8656 = vmatmul.msk.bf16.gmra.mxu1 %vm1579_vm0, %v2135_v42  ;;  %v2649_v42 = vpack.c.bf16 %v2637_v30, %v2636_v9  ;;  %v2650_v9 = vpack.c.bf16 %v2639_v23, %v2638_v22  ;;  %v2640_v23 = vld [vmem:[#allocation2 + $0x3b] sm:$0xff] }
 0x269   : > { %8679 = vmatmul.msk.bf16.gmra.mxu2 %vm1579_vm0, %v2265_v43 }
 0x26a   : > { %8702 = vmatmul.msk.bf16.gmra.mxu3 %vm1579_vm0, %v2395_v33 }
 0x26c   : > { %v1847_v13 = vpop.f32.mrf.mxu2 }
 0x26d   : > { %v1866_v6 = vadd.f32 %v1847_v13, %v1736_v27  ;;  %v1977_v0 = vpop.f32.mrf.mxu3  ;;  %v10816_v5 = vpop.f32.mrf.mxu1 }
 0x26e   : > { %12679 = vst [vmem:[#allocation21_spill] sm:$0xff] %v10816_v5  ;;  %v2107_v52 = vpop.f32.mrf.mxu0 }
 0x26f   : > { %v1996_v49 = vadd.f32 %v1977_v0, %v1866_v6 }
 0x270   : > { %8725 = vmatmul.msk.bf16.gmra.mxu0 %vm1579_vm0, %v2525_v55 }
 0x271   : > { %v10818_v51 = vadd.f32 %v2107_v52, %v1996_v49 }
 0x274   : > { %v10821_v34 = vpop.f32.mrf.mxu2 }
 0x275   : > { %12680 = vst [vmem:[#allocation22_spill] sm:$0xff] %v10821_v34  ;;  %v10823_v58 = vpop.f32.mrf.mxu3  ;;  %v1719_v33 = vpop.f32.mrf.mxu1  ;;  %v2647_v34 = vld [vmem:[#allocation2 + $0x73] sm:$0xff] }
 0x276   : > { %12681 = vst [vmem:[#allocation23_spill] sm:$0xff] %v10823_v58  ;;  %v10825_v36 = vpop.f32.mrf.mxu0  ;;  %v1738_v43 = vadd.f32 %v10713_v48, %v1719_v33  ;;  %v2646_v58 = vld [vmem:[#allocation2 + $0x6b] sm:$0xff] }
 0x277   : > { %12682 = vst [vmem:[#allocation24_spill] sm:$0xff] %v10825_v36 }
 0x278   : > { %8742 = vmatmul.msk.bf16.vlgmr.msrb.gmra.mxu1 %vm1579_vm0, %v2649_v42 }
 0x27c   : > { %v1852_v53 = vpop.f32.mrf.mxu2 }
 0x27d   : > { %v1868_v27 = vadd.f32 %v1852_v53, %v1738_v43  ;;  %v1982_v13 = vpop.f32.mrf.mxu3  ;;  %v1721_v6 = vpop.f32.mrf.mxu1 }
 0x27e   : > { %v2112_v0 = vpop.f32.mrf.mxu0 }
 0x27f   : > { %v1998_v55 = vadd.f32 %v1982_v13, %v1868_v27 }
 0x281   : > { %v10829_v52 = vadd.f32 %v2112_v0, %v1998_v55 }
 0x284   : > { %v1854_v49 = vpop.f32.mrf.mxu2 }
 0x285   : > { %v1984_v50 = vpop.f32.mrf.mxu3  ;;  %v2199_v46 = vpop.f32.mrf.mxu1 }
 0x286   : > { %v2114_v37 = vpop.f32.mrf.mxu0  ;;  %v2233_v30 = vadd.f32 %v2199_v46, %v10723_v3 }
 0x287   : > { %v2641_v37 = vld [vmem:[#allocation2 + $0x43] sm:$0xff] }
 0x288   : > { %8743 = vmatmul.msk.bf16.gmra.mxu1 %vm1579_vm0, %v2650_v9  ;;  %v2651_v55 = vpack.c.bf16 %v2641_v37, %v2640_v23 }
 0x28c   : > { %v2329_v33 = vpop.f32.mrf.mxu2 }
 0x28d   : > { %v2363_v42 = vadd.f32 %v2329_v33, %v2233_v30  ;;  %v2459_v43 = vpop.f32.mrf.mxu3  ;;  %v2201_v53 = vpop.f32.mrf.mxu1 }
 0x28e   : > { %v2589_v6 = vpop.f32.mrf.mxu0  ;;  %v10834_v27 = vadd.f32 %v2201_v53, %v10733_v26 }
 0x28f   : > { %v2493_v31 = vadd.f32 %v2459_v43, %v2363_v42 }
 0x291   : > { %v10836_v13 = vadd.f32 %v2589_v6, %v2493_v31  ;;  %v2643_v6 = vld [vmem:[#allocation2 + $0x53] sm:$0xff] }
 0x294   : > { %v10838_v50 = vpop.f32.mrf.mxu2 }
 0x295   : > { %v10840_v0 = vpop.f32.mrf.mxu3  ;;  %v2204_v3 = vpop.f32.mrf.mxu1 }
 0x296   : > { %v10842_v22 = vpop.f32.mrf.mxu0  ;;  %v2235_v46 = vadd.f32 %v2204_v3, %v10739_v44  ;;  %v2642_v3 = vld [vmem:[#allocation2 + $0x4b] sm:$0xff] }
 0x298   : > { %8744 = vmatmul.msk.bf16.gmra.mxu1 %vm1579_vm0, %v2651_v55 }
 0x29c   : > { %v2334_v49 = vpop.f32.mrf.mxu2 }
 0x29d   : > { %v2365_v30 = vadd.f32 %v2334_v49, %v2235_v46  ;;  %v2464_v26 = vpop.f32.mrf.mxu3  ;;  %v2206_v9 = vpop.f32.mrf.mxu1  ;;  %v2652_v46 = vpack.c.bf16 %v2643_v6, %v2642_v3 }
 0x29e   : > { %v2594_v31 = vpop.f32.mrf.mxu0  ;;  %v10847_v42 = vadd.f32 %v2206_v9, %v10749_v54 }
 0x29f   : > { %v2495_v33 = vadd.f32 %v2464_v26, %v2365_v30 }
 0x2a1   : > { %v10849_v43 = vadd.f32 %v2594_v31, %v2495_v33 }
 0x2a4   : > { %v10851_v53 = vpop.f32.mrf.mxu2 }
 0x2a5   : > { %v10853_v14 = vpop.f32.mrf.mxu3  ;;  %v2209_v44 = vpop.f32.mrf.mxu1 }
 0x2a6   : > { %v10855_v37 = vpop.f32.mrf.mxu0  ;;  %v2237_v23 = vadd.f32 %v2209_v44, %v10757_v61  ;;  %v2644_v61 = vld [vmem:[#allocation2 + $0x5b] sm:$0xff] }
 0x2a7   : > { %v2653_v44 = vpack.c.bf16 %v2645_v60, %v2644_v61 }
 0x2a8   : > { %8745 = vmatmul.msk.bf16.gmra.mxu1 %vm1579_vm0, %v2652_v46 }
 0x2ac   : > { %v2339_v55 = vpop.f32.mrf.mxu2 }
 0x2ad   : > { %v2367_v49 = vadd.f32 %v2339_v55, %v2237_v23  ;;  %v2469_v54 = vpop.f32.mrf.mxu3  ;;  %v10859_v30 = vpop.f32.mrf.mxu1 }
 0x2ae   : > { %v2599_v26 = vpop.f32.mrf.mxu0 }
 0x2af   : > { %v2497_v9 = vadd.f32 %v2469_v54, %v2367_v49 }
 0x2b1   : > { %v10861_v31 = vadd.f32 %v2599_v26, %v2497_v9 }
 0x2b4   : > { %v10863_v33 = vpop.f32.mrf.mxu2 }
 0x2b5   : > { %v10865_v36 = vpop.f32.mrf.mxu3  ;;  %v2214_v1 = vpop.f32.mrf.mxu1 }
 0x2b6   : > { %v10867_v16 = vpop.f32.mrf.mxu0  ;;  %v2239_v6 = vadd.f32 %v2214_v1, %v10778_v7  ;;  %v2654_v7 = vpack.c.bf16 %v2647_v34, %v2646_v58 }
 0x2b8   : > { %8746 = vmatmul.msk.bf16.gmra.mxu1 %vm1579_vm0, %v2653_v44 }
 0x2bc   : > { %v2344_v3 = vpop.f32.mrf.mxu2 }
 0x2bd   : > { %v2369_v23 = vadd.f32 %v2344_v3, %v2239_v6  ;;  %v2474_v46 = vpop.f32.mrf.mxu3  ;;  %v10871_v55 = vpop.f32.mrf.mxu1 }
 0x2be   : > { %v2604_v49 = vpop.f32.mrf.mxu0 }
 0x2bf   : > { %v2499_v54 = vadd.f32 %v2474_v46, %v2369_v23 }
 0x2c1   : > { %v10873_v26 = vadd.f32 %v2604_v49, %v2499_v54  ;;  %v9665_v54 = vld [vmem:[#allocation4 + $0x138] sm:$0xff] }
 0x2c2   : > { %2924 = vmatpush.bf16.msra.mxu2 %v9665_v54  ;;  %v9664_v54 = vld [vmem:[#allocation4 + $0x130] sm:$0xff] }
 0x2c4   : > { %v10875_v9 = vpop.f32.mrf.mxu2 }
 0x2c5   : > { %v10877_v25 = vpop.f32.mrf.mxu3  ;;  %v2219_v5 = vpop.f32.mrf.mxu1 }
 0x2c6   : > { %v10879_v1 = vpop.f32.mrf.mxu0  ;;  %v2241_v60 = vadd.f32 %v2219_v5, %v10799_v15  ;;  %v2655_v15 = vpack.c.bf16 %v2648_v12, %v2648_v12  ;;  %v9672_v12 = vld [vmem:[#allocation4 + $0x170] sm:$0xff]  ;;  %2925 = vmatpush.bf16.msra.mxu2 %v9664_v54  ;;  %v9675_v54 = vld [vmem:[#allocation4 + $0x188] sm:$0xff] }
 0x2c8   : > { %8747 = vmatmul.msk.bf16.gmra.mxu1 %vm1579_vm0, %v2654_v7  ;;  %v9673_v7 = vld [vmem:[#allocation4 + $0x178] sm:$0xff] }
 0x2c9   : > { %3187 = vmatpush.bf16.msra.mxu0 %v9673_v7 }
 0x2cc   : > { %v2349_v61 = vpop.f32.mrf.mxu2 }
 0x2cd   : > { %v2371_v6 = vadd.f32 %v2349_v61, %v2241_v60  ;;  %v2479_v44 = vpop.f32.mrf.mxu3  ;;  %v10883_v3 = vpop.f32.mrf.mxu1  ;;  %v9669_v60 = vld [vmem:[#allocation4 + $0x158] sm:$0xff]  ;;  %3188 = vmatpush.bf16.msra.mxu0 %v9672_v12 }
 0x2ce   : > { %v2609_v23 = vpop.f32.mrf.mxu0  ;;  %3057 = vmatpush.bf16.msra.mxu3 %v9669_v60 }
 0x2cf   : > { %v2501_v46 = vadd.f32 %v2479_v44, %v2371_v6 }
 0x2d1   : > { %v10885_v49 = vadd.f32 %v2609_v23, %v2501_v46 }
 0x2d3   : > { %12683 = vst [vmem:[#allocation25_spill] sm:$0xff] %v10885_v49 }
 0x2d4   : > { %v10887_v8 = vpop.f32.mrf.mxu2 }
 0x2d5   : > { %12684 = vst [vmem:[#allocation26_spill] sm:$0xff] %v10887_v8  ;;  %v10889_v59 = vpop.f32.mrf.mxu3  ;;  %v2224_v5 = vpop.f32.mrf.mxu1  ;;  %v9677_v8 = vld [vmem:[#allocation4 + $0x198] sm:$0xff] }
 0x2d6   : > { %12685 = vst [vmem:[#allocation27_spill] sm:$0xff] %v10889_v59  ;;  %v10891_v34 = vpop.f32.mrf.mxu0  ;;  %v2243_v58 = vadd.f32 %v2224_v5, %v10818_v51  ;;  %v9668_v59 = vld [vmem:[#allocation4 + $0x150] sm:$0xff]  ;;  %v9663_v51 = vld [vmem:[#allocation4 + $0x128] sm:$0xff]  ;;  %3317 = vmatpush.bf16.msra.mxu1 %v9677_v8 }
 0x2d7   : > { %12686 = vst [vmem:[#allocation28_spill] sm:$0xff] %v10891_v34  ;;  %3058 = vmatpush.bf16.msra.mxu3 %v9668_v59  ;;  %v9671_v5 = vld [vmem:[#allocation4 + $0x168] sm:$0xff]  ;;  %2926 = vmatpush.bf16.msra.mxu2 %v9663_v51  ;;  %v9666_v59 = vld [vmem:[#allocation4 + $0x140] sm:$0xff] }
 0x2d8   : > { %8748 = vmatmul.msk.bf16.gmra.mxu1 %vm1579_vm0, %v2655_v15  ;;  %v9667_v15 = vld [vmem:[#allocation4 + $0x148] sm:$0xff]  ;;  %3189 = vmatpush.bf16.msra.mxu0 %v9671_v5 }
 0x2db   : > { %3059 = vmatpush.bf16.msra.mxu3 %v9667_v15 }
 0x2dc   : > { %v2354_v61 = vpop.f32.mrf.mxu2 }
 0x2dd   : > { %v2373_v6 = vadd.f32 %v2354_v61, %v2243_v58  ;;  %v2484_v44 = vpop.f32.mrf.mxu3  ;;  %v10895_v23 = vpop.f32.mrf.mxu1 }
 0x2de   : > { %v2614_v46 = vpop.f32.mrf.mxu0 }
 0x2df   : > { %v2503_v49 = vadd.f32 %v2484_v44, %v2373_v6  ;;  %v9662_v6 = vld [vmem:[#allocation4 + $0x120] sm:$0xff]  ;;  %3060 = vmatpush.bf16.msra.mxu3 %v9666_v59 }
 0x2e0   : > { %2927 = vmatpush.bf16.msra.mxu2 %v9662_v6 }
 0x2e1   : > { %v10897_v34 = vadd.f32 %v2614_v46, %v2503_v49  ;;  %v9670_v49 = vld [vmem:[#allocation4 + $0x160] sm:$0xff]  ;;  %v9676_v46 = vld [vmem:[#allocation4 + $0x190] sm:$0xff] }
 0x2e2   : > { %3190 = vmatpush.bf16.msra.mxu0 %v9670_v49  ;;  %3318 = vmatpush.bf16.msra.mxu1 %v9676_v46 }
 0x2e3   : > { %12687 = vst [vmem:[#allocation29_spill] sm:$0xff] %v10897_v34 }
 0x2e4   : > { %v10899_v60 = vpop.f32.mrf.mxu2 }
 0x2e5   : > { %12688 = vst [vmem:[#allocation30_spill] sm:$0xff] %v10899_v60  ;;  %v10901_v58 = vpop.f32.mrf.mxu3  ;;  %v2229_v7 = vpop.f32.mrf.mxu1 }
 0x2e6   : > { %12689 = vst [vmem:[#allocation31_spill] sm:$0xff] %v10901_v58  ;;  %v10903_v61 = vpop.f32.mrf.mxu0  ;;  %v2245_v44 = vadd.f32 %v2229_v7, %v10829_v52  ;;  %3319 = vmatpush.bf16.msra.mxu1 %v9675_v54  ;;  %v9674_v58 = vld [vmem:[#allocation4 + $0x180] sm:$0xff]  ;;  %v2364_v52 = vadd.f32 %v10838_v50, %v10834_v27 }
 0x2e7   : > { %12690 = vst [vmem:[#allocation32_spill] sm:$0xff] %v10903_v61 }
 0x2ea   : > { %3320 = vmatpush.bf16.msra.mxu1 %v9674_v58 }
 0x2ec   : > { %v2359_v12 = vpop.f32.mrf.mxu2 }
 0x2ed   : > { %v2375_v51 = vadd.f32 %v2359_v12, %v2245_v44  ;;  %v2489_v15 = vpop.f32.mrf.mxu3  ;;  %v2231_v5 = vpop.f32.mrf.mxu1  ;;  %v2494_v44 = vadd.f32 %v10840_v0, %v2364_v52 }
 0x2ee   : > { %v2619_v8 = vpop.f32.mrf.mxu0  ;;  %v2979_v5 = vld [vmem:[#allocation2 + $0x6] sm:$0xff] }
 0x2ef   : > { %v2505_v34 = vadd.f32 %v2489_v15, %v2375_v51  ;;  %v2624_v12 = vadd.f32 %v10842_v22, %v2494_v44  ;;  %v2846_v15 = vld [vmem:[#allocation2 + $0x5] sm:$0xff] }
 0x2f1   : > { %v10906_v61 = vadd.f32 %v2619_v8, %v2505_v34  ;;  %v3109_v8 = vld [vmem:[#allocation2 + $0x7] sm:$0xff] }
 0x2f4   : > { %v2361_v60 = vpop.f32.mrf.mxu2 }
 0x2f5   : > { %v2491_v7 = vpop.f32.mrf.mxu3  ;;  %v2719_v6 = vpop.f32.mrf.mxu1 }
 0x2f6   : > { %v2621_v59 = vpop.f32.mrf.mxu0  ;;  %v2753_v49 = vadd.f32 %v2719_v6, %v10836_v13  ;;  %v2366_v13 = vadd.f32 %v10851_v53, %v10847_v42 }
 0x2f8   : > { %v2766_v46 = vmul.f32 0.01, %v2753_v49 }
 0x2fa   : > { %v2779_v54 = vmax.f32 %v2753_v49, %v2766_v46  ;;  %v2496_v46 = vadd.f32 %v10853_v14, %v2366_v13 }
 0x2fc   : > { %v2792_v51 = vadd.f32 %v2779_v54, %v10700_v41  ;;  %v1731_v41 = vadd.f32 %v10713_v48, %v10755_v57 }
 0x2fd   : > { %v2721_v34 = vpop.f32.mrf.mxu1 }
 0x2fe   : > { %v2805_v60 = vsel %vm1553_vm15, %v2792_v51, 0.0  ;;  %v2754_v58 = vadd.f32 %v2721_v34, %v2624_v12  ;;  %v1861_v44 = vadd.f32 %v10760_v19, %v1731_v41  ;;  %v2626_v12 = vadd.f32 %v10855_v37, %v2496_v46 }
 0x2ff   : > { %2818 = vst.msk [vmem:[#allocation2 + $0x10] sm:$0xff] %vm1579_vm0, %v2805_v60 }
 0x300   : > { %v2767_v27 = vmul.f32 0.01, %v2754_v58 }
 0x302   : > { %v2780_v50 = vmax.f32 %v2754_v58, %v2767_v27 }
 0x304   : > { %v2793_v0 = vadd.f32 %v2780_v50, %v10698_v56 }
 0x305   : > { %v2724_v22 = vpop.f32.mrf.mxu1 }
 0x306   : > { %v2806_v52 = vsel %vm1554_vm1, %v2793_v0, 0.0  ;;  %v2755_v7 = vadd.f32 %v2724_v22, %v10849_v43  ;;  %v2847_v6 = vld [vmem:[#allocation2 + $0xd] sm:$0xff]  ;;  %v1991_v43 = vadd.f32 %v10764_v20, %v1861_v44 }
 0x307   : > { %v2980_v59 = vld [vmem:[#allocation2 + $0xe] sm:$0xff]  ;;  %2819 = vst.msk [vmem:[#allocation2 + $0x18] sm:$0xff] %vm1579_vm0, %v2806_v52  ;;  %v2859_v42 = vpack.c.bf16 %v2847_v6, %v2846_v15 }
 0x308   : > { %v3110_v49 = vld [vmem:[#allocation2 + $0xf] sm:$0xff]  ;;  %v2992_v53 = vpack.c.bf16 %v2980_v59, %v2979_v5  ;;  %v2768_v54 = vmul.f32 0.01, %v2755_v7  ;;  %v2121_v27 = vadd.f32 %v10766_v47, %v1991_v43 }
 0x309   : > { %v3122_v56 = vpack.c.bf16 %v3110_v49, %v3109_v8  ;;  %8766 = vmatmul.msk.bf16.vlgmr.msra.gmra.mxu2 %vm1579_vm0, %v2859_v42  ;;  %v1733_v8 = vadd.f32 %v10713_v48, %v10776_v17 }
 0x30a   : > { %8789 = vmatmul.msk.bf16.vlgmr.msra.gmra.mxu3 %vm1579_vm0, %v2992_v53  ;;  %v2781_v57 = vmax.f32 %v2755_v7, %v2768_v54  ;;  %v2238_v20 = vadd.f32 %v10859_v30, %v2121_v27 }
 0x30b   : > { %8812 = vmatmul.msk.bf16.vlgmr.msra.gmra.mxu0 %vm1579_vm0, %v3122_v56 }
 0x30c   : > { %v2794_v51 = vadd.f32 %v2781_v57, %v10715_v32  ;;  %v2368_v37 = vadd.f32 %v10863_v33, %v2238_v20 }
 0x30d   : > { %v2726_v34 = vpop.f32.mrf.mxu1 }
 0x30e   : > { %v2807_v19 = vsel %vm1555_vm2, %v2794_v51, 0.0  ;;  %v2756_v60 = vadd.f32 %v2726_v34, %v2626_v12  ;;  %v3240_v14 = vld [vmem:[#allocation2 + $0x17] sm:$0xff]  ;;  %v2498_v59 = vadd.f32 %v10865_v36, %v2368_v37 }
 0x30f   : > { %2820 = vst.msk [vmem:[#allocation2 + $0x20] sm:$0xff] %vm1579_vm0, %v2807_v19  ;;  %v3252_v58 = vpack.c.bf16 %v3240_v14, %v3110_v49  ;;  %v2848_v15 = vld [vmem:[#allocation2 + $0x15] sm:$0xff]  ;;  %v1735_v19 = vadd.f32 %v10713_v48, %v10797_v35 }
 0x310   : > { %v2769_v50 = vmul.f32 0.01, %v2756_v60  ;;  %v2981_v5 = vld [vmem:[#allocation2 + $0x16] sm:$0xff]  ;;  %v2628_v42 = vadd.f32 %v10867_v16, %v2498_v59 }
 0x311   : > { %8835 = vmatmul.msk.bf16.vlgmr.msra.gmra.mxu1 %vm1579_vm0, %v3252_v58  ;;  %v12695_v59 = vld [vmem:[#allocation21_spill] sm:$0xff] }
 0x312   : > { %v2782_v13 = vmax.f32 %v2756_v60, %v2769_v50 }
 0x314   : > { %v2795_v32 = vadd.f32 %v2782_v13, %v10708_v38  ;;  %v1863_v38 = vadd.f32 %v10781_v39, %v1733_v8 }
 0x315   : > { %v2729_v0 = vpop.f32.mrf.mxu1 }
 0x316   : > { %v2808_v22 = vsel %vm1556_vm3, %v2795_v32, 0.0  ;;  %v2757_v47 = vadd.f32 %v2729_v0, %v10861_v31  ;;  %v2849_v41 = vld [vmem:[#allocation2 + $0x1d] sm:$0xff]  ;;  %v1993_v31 = vadd.f32 %v10785_v18, %v1863_v38 }
 0x317   : > { %v2982_v52 = vld [vmem:[#allocation2 + $0x1e] sm:$0xff]  ;;  %2821 = vst.msk [vmem:[#allocation2 + $0x28] sm:$0xff] %vm1579_vm0, %v2808_v22  ;;  %v2860_v30 = vpack.c.bf16 %v2849_v41, %v2848_v15  ;;  %v12692_v22 = vld [vmem:[#allocation20_spill] sm:$0xff] }
 0x318   : > { %v3112_v7 = vld [vmem:[#allocation2 + $0x1f] sm:$0xff]  ;;  %v2993_v33 = vpack.c.bf16 %v2982_v52, %v2981_v5  ;;  %v2770_v49 = vmul.f32 0.01, %v2757_v47  ;;  %v2123_v54 = vadd.f32 %v10787_v2, %v1993_v31 }
 0x319   : > { %v3123_v6 = vpack.c.bf16 %v3112_v7, %v3240_v14  ;;  %8767 = vmatmul.msk.bf16.gmra.mxu2 %vm1579_vm0, %v2860_v30 }
 0x31a   : > { %8790 = vmatmul.msk.bf16.gmra.mxu3 %vm1579_vm0, %v2993_v33  ;;  %v2783_v17 = vmax.f32 %v2757_v47, %v2770_v49  ;;  %v2240_v18 = vadd.f32 %v10871_v55, %v2123_v54  ;;  %v1737_v49 = vadd.f32 %v10713_v48, %v12695_v59  ;;  %v12698_v54 = vld [vmem:[#allocation22_spill] sm:$0xff] }
 0x31b   : > { %8813 = vmatmul.msk.bf16.gmra.mxu0 %vm1579_vm0, %v3123_v6  ;;  %v9685_v59 = vld [vmem:[#allocation4 + $0x1d8] sm:$0xff] }
 0x31c   : > { %v2796_v53 = vadd.f32 %v2783_v17, %v10729_v10  ;;  %v2370_v16 = vadd.f32 %v10875_v9, %v2240_v18  ;;  %v12699_v18 = vld [vmem:[#allocation27_spill] sm:$0xff]  ;;  %3564 = vmatpush.bf16.msrb.mxu3 %v9685_v59 }
 0x31d   : > { %v2731_v56 = vpop.f32.mrf.mxu1 }
 0x31e   : > { %v2809_v39 = vsel %vm1557_vm4, %v2796_v53, 0.0  ;;  %v2758_v44 = vadd.f32 %v2731_v56, %v2628_v42  ;;  %v3242_v36 = vld [vmem:[#allocation2 + $0x27] sm:$0xff]  ;;  %v2500_v20 = vadd.f32 %v10877_v25, %v2370_v16  ;;  %v12697_v42 = vld [vmem:[#allocation25_spill] sm:$0xff] }
 0x31f   : > { %2822 = vst.msk [vmem:[#allocation2 + $0x30] sm:$0xff] %vm1579_vm0, %v2809_v39  ;;  %v3253_v46 = vpack.c.bf16 %v3242_v36, %v3112_v7  ;;  %v2850_v51 = vld [vmem:[#allocation2 + $0x25] sm:$0xff] }
 0x320   : > { %v2771_v57 = vmul.f32 0.01, %v2758_v44  ;;  %v2983_v34 = vld [vmem:[#allocation2 + $0x26] sm:$0xff]  ;;  %v2630_v37 = vadd.f32 %v10879_v1, %v2500_v20 }
 0x321   : > { %8836 = vmatmul.msk.bf16.gmra.mxu1 %vm1579_vm0, %v3253_v46  ;;  %v12693_v1 = vld [vmem:[#allocation26_spill] sm:$0xff] }
 0x322   : > { %v2784_v43 = vmax.f32 %v2758_v44, %v2771_v57  ;;  %v1867_v57 = vadd.f32 %v12698_v54, %v1737_v49  ;;  %v9689_v49 = vld [vmem:[#allocation4 + $0x1f8] sm:$0xff] }
 0x323   : > { %3694 = vmatpush.bf16.msrb.mxu0 %v9689_v49 }
 0x324   : > { %v2797_v10 = vadd.f32 %v2784_v43, %v10727_v21  ;;  %v1865_v21 = vadd.f32 %v10802_v62, %v1735_v19  ;;  %v12702_v19 = vld [vmem:[#allocation16_spill] sm:$0xff] }
 0x325   : > { %v2734_v12 = vpop.f32.mrf.mxu1 }
 0x326   : > { %v2810_v60 = vsel %vm1558_vm5, %v2797_v10, 0.0  ;;  %v2759_v2 = vadd.f32 %v2734_v12, %v10873_v26  ;;  %v2851_v14 = vld [vmem:[#allocation2 + $0x2d] sm:$0xff]  ;;  %v1995_v26 = vadd.f32 %v10806_v40, %v1865_v21 }
 0x327   : > { %v2984_v58 = vld [vmem:[#allocation2 + $0x2e] sm:$0xff]  ;;  %2823 = vst.msk [vmem:[#allocation2 + $0x38] sm:$0xff] %vm1579_vm0, %v2810_v60  ;;  %v2861_v55 = vpack.c.bf16 %v2851_v14, %v2850_v51 }
 0x328   : > { %v3114_v27 = vld [vmem:[#allocation2 + $0x2f] sm:$0xff]  ;;  %v2994_v9 = vpack.c.bf16 %v2984_v58, %v2983_v34  ;;  %v2772_v13 = vmul.f32 0.01, %v2759_v2  ;;  %v2125_v47 = vadd.f32 %v12692_v22, %v1995_v26 }
 0x329   : > { %v3124_v50 = vpack.c.bf16 %v3114_v27, %v3242_v36  ;;  %8768 = vmatmul.msk.bf16.gmra.mxu2 %vm1579_vm0, %v2861_v55  ;;  %v12700_v10 = vld [vmem:[#allocation23_spill] sm:$0xff]  ;;  %v12701_v51 = vld [vmem:[#allocation28_spill] sm:$0xff] }
 0x32a   : > { %8791 = vmatmul.msk.bf16.gmra.mxu3 %vm1579_vm0, %v2994_v9  ;;  %v2785_v35 = vmax.f32 %v2759_v2, %v2772_v13  ;;  %v2242_v40 = vadd.f32 %v10883_v3, %v2125_v47  ;;  %v1997_v12 = vadd.f32 %v12700_v10, %v1867_v57  ;;  %v12704_v21 = vld [vmem:[#allocation24_spill] sm:$0xff] }
 0x32b   : > { %8814 = vmatmul.msk.bf16.gmra.mxu0 %vm1579_vm0, %v3124_v50  ;;  %v9681_v50 = vld [vmem:[#allocation4 + $0x1b8] sm:$0xff]  ;;  %v9679_v10 = vld [vmem:[#allocation4 + $0x1a8] sm:$0xff] }
 0x32c   : > { %v2798_v32 = vadd.f32 %v2785_v35, %v10745_v63  ;;  %v2372_v7 = vadd.f32 %v12693_v1, %v2242_v40  ;;  %v12694_v63 = vld [vmem:[#allocation14_spill] sm:$0xff]  ;;  %v2127_v20 = vadd.f32 %v12704_v21, %v1997_v12  ;;  %3434 = vmatpush.bf16.msrb.mxu2 %v9681_v50  ;;  %v9683_v12 = vld [vmem:[#allocation4 + $0x1c8] sm:$0xff] }
 0x32d   : > { %v2736_v0 = vpop.f32.mrf.mxu1 }
 0x32e   : > { %v2811_v62 = vsel %vm1559_vm6, %v2798_v32, 0.0  ;;  %v2760_v5 = vadd.f32 %v2736_v0, %v2630_v37  ;;  %v3244_v25 = vld [vmem:[#allocation2 + $0x37] sm:$0xff]  ;;  %v2502_v43 = vadd.f32 %v12699_v18, %v2372_v7  ;;  %v2244_v35 = vadd.f32 %v10895_v23, %v2127_v20  ;;  %v12705_v37 = vld [vmem:[#allocation30_spill] sm:$0xff]  ;;  %v12706_v0 = vld [vmem:[#allocation15_spill] sm:$0xff] }
 0x32f   : > { %2824 = vst.msk [vmem:[#allocation2 + $0x40] sm:$0xff] %vm1579_vm0, %v2811_v62  ;;  %v3254_v8 = vpack.c.bf16 %v3244_v25, %v3114_v27  ;;  %v2852_v6 = vld [vmem:[#allocation2 + $0x35] sm:$0xff] }
 0x330   : > { %v2773_v41 = vmul.f32 0.01, %v2760_v5  ;;  %v2985_v38 = vld [vmem:[#allocation2 + $0x36] sm:$0xff]  ;;  %v2632_v34 = vadd.f32 %v12701_v51, %v2502_v43  ;;  %v2374_v32 = vadd.f32 %v12705_v37, %v2244_v35 }
 0x331   : > { %8837 = vmatmul.msk.bf16.gmra.mxu1 %vm1579_vm0, %v3254_v8  ;;  %v9687_v51 = vld [vmem:[#allocation4 + $0x1e8] sm:$0xff] }
 0x332   : > { %v2786_v52 = vmax.f32 %v2760_v5, %v2773_v41  ;;  %v12708_v41 = vld [vmem:[#allocation29_spill] sm:$0xff] }
 0x334   : > { %v2799_v30 = vadd.f32 %v2786_v52, %v12694_v63 }
 0x335   : > { %v2739_v33 = vpop.f32.mrf.mxu1 }
 0x336   : > { %v2812_v31 = vsel %vm1560_vm7, %v2799_v30, 0.0  ;;  %v2761_v53 = vadd.f32 %v2739_v33, %v12697_v42  ;;  %v2853_v56 = vld [vmem:[#allocation2 + $0x3d] sm:$0xff]  ;;  %v12709_v33 = vld [vmem:[#allocation31_spill] sm:$0xff] }
 0x337   : > { %v2986_v39 = vld [vmem:[#allocation2 + $0x3e] sm:$0xff]  ;;  %2825 = vst.msk [vmem:[#allocation2 + $0x48] sm:$0xff] %vm1579_vm0, %v2812_v31  ;;  %v2862_v3 = vpack.c.bf16 %v2853_v56, %v2852_v6  ;;  %v2504_v6 = vadd.f32 %v12709_v33, %v2374_v32 }
 0x338   : > { %v3116_v44 = vld [vmem:[#allocation2 + $0x3f] sm:$0xff]  ;;  %v2995_v36 = vpack.c.bf16 %v2986_v39, %v2985_v38  ;;  %v2774_v16 = vmul.f32 0.01, %v2761_v53  ;;  %v12710_v39 = vld [vmem:[#allocation32_spill] sm:$0xff] }
 0x339   : > { %v3125_v46 = vpack.c.bf16 %v3116_v44, %v3244_v25  ;;  %8769 = vmatmul.msk.bf16.gmra.mxu2 %vm1579_vm0, %v2862_v3  ;;  %v9680_v42 = vld [vmem:[#allocation4 + $0x1b0] sm:$0xff]  ;;  %v12711_v3 = vld [vmem:[#allocation18_spill] sm:$0xff] }
 0x33a   : > { %8792 = vmatmul.msk.bf16.gmra.mxu3 %vm1579_vm0, %v2995_v36  ;;  %v2787_v48 = vmax.f32 %v2761_v53, %v2774_v16  ;;  %v9684_v53 = vld [vmem:[#allocation4 + $0x1d0] sm:$0xff]  ;;  %3435 = vmatpush.bf16.msrb.mxu2 %v9680_v42 }
 0x33b   : > { %8815 = vmatmul.msk.bf16.gmra.mxu0 %vm1579_vm0, %v3125_v46  ;;  %v9688_v56 = vld [vmem:[#allocation4 + $0x1f0] sm:$0xff]  ;;  %3565 = vmatpush.bf16.msrb.mxu3 %v9684_v53 }
 0x33c   : > { %v2800_v60 = vadd.f32 %v2787_v48, %v12702_v19  ;;  %3695 = vmatpush.bf16.msrb.mxu0 %v9688_v56  ;;  %v9693_v19 = vld [vmem:[#allocation4 + $0x218] sm:$0xff]  ;;  %v11039_v53 = vld [vmem:[#allocation2 + $0x18] sm:$0xff] }
 0x33d   : > { %v2741_v2 = vpop.f32.mrf.mxu1  ;;  %3824 = vmatpush.bf16.msrb.mxu1 %v9693_v19  ;;  %v3487_v56 = vld [vmem:[#allocation2 + $0x19] sm:$0xff] }
 0x33e   : > { %v2813_v58 = vsel %vm1561_vm8, %v2800_v60, 0.0  ;;  %v2762_v27 = vadd.f32 %v2741_v2, %v2632_v34  ;;  %v3246_v55 = vld [vmem:[#allocation2 + $0x47] sm:$0xff]  ;;  %3436 = vmatpush.bf16.msrb.mxu2 %v9679_v10 }
 0x33f   : > { %2826 = vst.msk [vmem:[#allocation2 + $0x50] sm:$0xff] %vm1579_vm0, %v2813_v58  ;;  %v3255_v9 = vpack.c.bf16 %v3246_v55, %v3116_v44  ;;  %v2854_v25 = vld [vmem:[#allocation2 + $0x45] sm:$0xff]  ;;  %v2634_v44 = vadd.f32 %v12710_v39, %v2504_v6  ;;  %3566 = vmatpush.bf16.msrb.mxu3 %v9683_v12  ;;  %v12713_v58 = vld [vmem:[#allocation17_spill] sm:$0xff]  ;;  %v3619_v12 = vld [vmem:[#allocation2 + $0x31] sm:$0xff] }
 0x340   : > { %v2775_v13 = vmul.f32 0.01, %v2762_v27  ;;  %v2987_v8 = vld [vmem:[#allocation2 + $0x46] sm:$0xff]  ;;  %3696 = vmatpush.bf16.msrb.mxu0 %v9687_v51 }
 0x341   : > { %8838 = vmatmul.msk.bf16.gmra.mxu1 %vm1579_vm0, %v3255_v9  ;;  %v9678_v60 = vld [vmem:[#allocation4 + $0x1a0] sm:$0xff]  ;;  %v9692_v9 = vld [vmem:[#allocation4 + $0x210] sm:$0xff]  ;;  %v3617_v39 = vld [vmem:[#allocation2 + $0x21] sm:$0xff] }
 0x342   : > { %v2788_v26 = vmax.f32 %v2762_v27, %v2775_v13  ;;  %v9682_v2 = vld [vmem:[#allocation4 + $0x1c0] sm:$0xff]  ;;  %3437 = vmatpush.bf16.msrb.mxu2 %v9678_v60  ;;  %3825 = vmatpush.bf16.msrb.mxu1 %v9692_v9  ;;  %v11051_v51 = vld [vmem:[#allocation2 + $0x20] sm:$0xff]  ;;  %v3749_v9 = vld [vmem:[#allocation2 + $0x32] sm:$0xff] }
 0x343   : > { %3567 = vmatpush.bf16.msrb.mxu3 %v9682_v2  ;;  %v3489_v10 = vld [vmem:[#allocation2 + $0x29] sm:$0xff] }
 0x344   : > { %v2801_v62 = vadd.f32 %v2788_v26, %v12706_v0  ;;  %v3500_v60 = vpack.c.bf16 %v3489_v10, %v3617_v39  ;;  %v3630_v2 = vpack.c.bf16 %v3619_v12, %v3489_v10 }
 0x345   : > { %v2744_v5 = vpop.f32.mrf.mxu1 }
 0x346   : > { %v2814_v47 = vsel %vm1562_vm9, %v2801_v62, 0.0  ;;  %v2763_v40 = vadd.f32 %v2744_v5, %v12708_v41  ;;  %v2855_v52 = vld [vmem:[#allocation2 + $0x4d] sm:$0xff] }
 0x347   : > { %v2988_v1 = vld [vmem:[#allocation2 + $0x4e] sm:$0xff]  ;;  %2827 = vst.msk [vmem:[#allocation2 + $0x58] sm:$0xff] %vm1579_vm0, %v2814_v47  ;;  %v2863_v63 = vpack.c.bf16 %v2855_v52, %v2854_v25 }
 0x348   : > { %v3118_v7 = vld [vmem:[#allocation2 + $0x4f] sm:$0xff]  ;;  %v2996_v23 = vpack.c.bf16 %v2988_v1, %v2987_v8  ;;  %v2776_v38 = vmul.f32 0.01, %v2763_v40 }
 0x349   : > { %v3126_v30 = vpack.c.bf16 %v3118_v7, %v3246_v55  ;;  %8770 = vmatmul.msk.bf16.gmra.mxu2 %vm1579_vm0, %v2863_v63  ;;  %v9686_v55 = vld [vmem:[#allocation4 + $0x1e0] sm:$0xff]  ;;  %v9691_v47 = vld [vmem:[#allocation4 + $0x208] sm:$0xff] }
 0x34a   : > { %8793 = vmatmul.msk.bf16.gmra.mxu3 %vm1579_vm0, %v2996_v23  ;;  %v2789_v31 = vmax.f32 %v2763_v40, %v2776_v38  ;;  %3697 = vmatpush.bf16.msrb.mxu0 %v9686_v55  ;;  %v9690_v52 = vld [vmem:[#allocation4 + $0x200] sm:$0xff] }
 0x34b   : > { %8816 = vmatmul.msk.bf16.gmra.mxu0 %vm1579_vm0, %v3126_v30  ;;  %3826 = vmatpush.bf16.msrb.mxu1 %v9691_v47  ;;  %v3493_v10 = vld [vmem:[#allocation2 + $0x49] sm:$0xff] }
 0x34c   : > { %v2802_v36 = vadd.f32 %v2789_v31, %v12711_v3  ;;  %v3486_v3 = vld [vmem:[#allocation2 + $0x11] sm:$0xff] }
 0x34d   : > { %v2746_v46 = vpop.f32.mrf.mxu1 }
 0x34e   : > { %v2815_v57 = vsel %vm1563_vm10, %v2802_v36, 0.0  ;;  %v2764_v18 = vadd.f32 %v2746_v46, %v2634_v44  ;;  %v3248_v43 = vld [vmem:[#allocation2 + $0x57] sm:$0xff]  ;;  %v3499_v46 = vpack.c.bf16 %v3487_v56, %v3486_v3 }
 0x34f   : > { %2828 = vst.msk [vmem:[#allocation2 + $0x60] sm:$0xff] %vm1579_vm0, %v2815_v57  ;;  %v3256_v16 = vpack.c.bf16 %v3248_v43, %v3118_v7  ;;  %v2856_v21 = vld [vmem:[#allocation2 + $0x55] sm:$0xff]  ;;  %3827 = vmatpush.bf16.msrb.mxu1 %v9690_v52  ;;  %v3629_v57 = vpack.c.bf16 %v3617_v39, %v3487_v56 }
 0x350   : > { %v2777_v48 = vmul.f32 0.01, %v2764_v18  ;;  %v2989_v20 = vld [vmem:[#allocation2 + $0x56] sm:$0xff] }
 0x351   : > { %8839 = vmatmul.msk.bf16.gmra.mxu1 %vm1579_vm0, %v3256_v16  ;;  %v11041_v44 = vld [vmem:[#allocation2 + $0x10] sm:$0xff]  ;;  %v3750_v56 = vld [vmem:[#allocation2 + $0x3a] sm:$0xff] }
 0x352   : > { %v2790_v34 = vmax.f32 %v2764_v18, %v2777_v48  ;;  %v3369_v36 = vpack.c.bf16 %v11039_v53, %v11041_v44  ;;  %v3747_v18 = vld [vmem:[#allocation2 + $0x22] sm:$0xff] }
 0x353   : > { %v11049_v48 = vld [vmem:[#allocation2 + $0x28] sm:$0xff] }
 0x354   : > { %v2803_v27 = vadd.f32 %v2790_v34, %v12713_v58  ;;  %v3370_v19 = vpack.c.bf16 %v11049_v48, %v11051_v51  ;;  %v11060_v58 = vld [vmem:[%s12614_s5 + $0x1] ss:$0 sm:$0xff] }
 0x355   : > { %v2749_v50 = vpop.f32.mrf.mxu1 }
 0x356   : > { %v2816_v35 = vsel %vm1564_vm11, %v2803_v27, 0.0  ;;  %v2765_v26 = vadd.f32 %v2749_v50, %v10906_v61  ;;  %v2857_v37 = vld [vmem:[#allocation2 + $0x5d] sm:$0xff]  ;;  %v12715_v61 = vld [vmem:[#allocation19_spill] sm:$0xff] }
 0x357   : > { %v2990_v32 = vld [vmem:[#allocation2 + $0x5e] sm:$0xff]  ;;  %2829 = vst.msk [vmem:[#allocation2 + $0x68] sm:$0xff] %vm1579_vm0, %v2816_v35  ;;  %v2864_v62 = vpack.c.bf16 %v2857_v37, %v2856_v21 }
 0x358   : > { %v3120_v0 = vld [vmem:[#allocation2 + $0x5f] sm:$0xff]  ;;  %v2997_v5 = vpack.c.bf16 %v2990_v32, %v2989_v20  ;;  %v2778_v8 = vmul.f32 0.01, %v2765_v26  ;;  %v3748_v20 = vld [vmem:[#allocation2 + $0x2a] sm:$0xff] }
 0x359   : > { %v3127_v25 = vpack.c.bf16 %v3120_v0, %v3248_v43  ;;  %8771 = vmatmul.msk.bf16.gmra.mxu2 %vm1579_vm0, %v2864_v62  ;;  %v3746_v43 = vld [vmem:[#allocation2 + $0x1a] sm:$0xff]  ;;  %v3760_v37 = vpack.c.bf16 %v3749_v9, %v3748_v20 }
 0x35a   : > { %8794 = vmatmul.msk.bf16.gmra.mxu3 %vm1579_vm0, %v2997_v5  ;;  %v2791_v41 = vmax.f32 %v2765_v26, %v2778_v8  ;;  %v3759_v16 = vpack.c.bf16 %v3747_v18, %v3746_v43  ;;  %v3491_v8 = vld [vmem:[#allocation2 + $0x39] sm:$0xff] }
 0x35b   : > { %8817 = vmatmul.msk.bf16.gmra.mxu0 %vm1579_vm0, %v3127_v25  ;;  %v11067_v25 = vld [vmem:[#allocation2 + $0x38] sm:$0xff] }
 0x35c   : > { %v2804_v40 = vadd.f32 %v2791_v41, %v12715_v61  ;;  %v3621_v41 = vld [vmem:[#allocation2 + $0x41] sm:$0xff] }
 0x35d   : > { %v2751_v1 = vpop.f32.mrf.mxu1  ;;  %v3502_v9 = vpack.c.bf16 %v3493_v10, %v3621_v41 }
 0x35e   : > { %v2817_v63 = vsel %vm1565_vm12, %v2804_v40, 0.0  ;;  %v3250_v23 = vld [vmem:[#allocation2 + $0x67] sm:$0xff]  ;;  %v11070_v40 = vld [vmem:[#allocation2 + $0x30] sm:$0xff] }
 0x35f   : > { %2830 = vst.msk [vmem:[#allocation2 + $0x70] sm:$0xff] %vm1579_vm0, %v2817_v63  ;;  %v3257_v30 = vpack.c.bf16 %v3250_v23, %v3120_v0  ;;  %v2858_v33 = vld [vmem:[#allocation2 + $0x65] sm:$0xff]  ;;  %v3128_v49 = vpack.c.bf16 %v3250_v23, %v3250_v23  ;;  %v3371_v63 = vpack.c.bf16 %v11067_v25, %v11070_v40  ;;  %v3501_v23 = vpack.c.bf16 %v3491_v8, %v3619_v12 }
 0x360   : > { %v2991_v6 = vld [vmem:[#allocation2 + $0x66] sm:$0xff]  ;;  %v2865_v38 = vpack.c.bf16 %v2858_v33, %v2858_v33 }
 0x361   : > { %8840 = vmatmul.msk.bf16.gmra.mxu1 %vm1579_vm0, %v3257_v30  ;;  %v2998_v59 = vpack.c.bf16 %v2991_v6, %v2991_v6  ;;  %v3631_v30 = vpack.c.bf16 %v3621_v41, %v3491_v8  ;;  %v3885_v14 = vld [vmem:[#allocation2 + $0x63] sm:$0xff] }
 0x366   : > { %v3251_v31 = vld [vmem:[#allocation2 + $0x6f] sm:$0xff] }
 0x367   : > { %v3258_v42 = vpack.c.bf16 %v3251_v31, %v3251_v31  ;;  %v3886_v17 = vld [vmem:[#allocation2 + $0x6b] sm:$0xff] }
 0x369   : > { %8772 = vmatmul.msk.bf16.gmra.mxu2 %vm1579_vm0, %v2865_v38 }
 0x36a   : > { %8795 = vmatmul.msk.bf16.gmra.mxu3 %vm1579_vm0, %v2998_v59 }
 0x36b   : > { %8818 = vmatmul.msk.bf16.gmra.mxu0 %vm1579_vm0, %v3128_v49  ;;  %v3751_v49 = vld [vmem:[#allocation2 + $0x42] sm:$0xff] }
 0x371   : > { %8841 = vmatmul.msk.bf16.gmra.mxu1 %vm1579_vm0, %v3258_v42 }
 0x379   : > { %8858 = vmatmul.msk.bf16.vlgmr.msrb.gmra.mxu2 %vm1579_vm0, %v3369_v36  ;;  %v3761_v36 = vpack.c.bf16 %v3751_v49, %v3750_v56  ;;  %v11109_v49 = vld [vmem:[#allocation2 + $0x50] sm:$0xff] }
 0x37a   : > { %8881 = vmatmul.msk.bf16.vlgmr.msrb.gmra.mxu3 %vm1579_vm0, %v3499_v46  ;;  %12719 = vst [vmem:[#allocation14_spill] sm:$0xff] %v11109_v49 }
 0x37b   : > { %8904 = vmatmul.msk.bf16.vlgmr.msrb.gmra.mxu0 %vm1579_vm0, %v3629_v57 }
 0x381   : > { %8927 = vmatmul.msk.bf16.vlgmr.msrb.gmra.mxu1 %vm1579_vm0, %v3759_v16  ;;  %v11083_v16 = vld [vmem:[#allocation2 + $0x48] sm:$0xff] }
 0x382   : > { %12717 = vst [vmem:[#allocation20_spill] sm:$0xff] %v11083_v16 }
 0x388   : > { %v3192_v34 = vpop.f32.mrf.mxu0 }
 0x389   : > { %8859 = vmatmul.msk.bf16.gmra.mxu2 %vm1579_vm0, %v3370_v19 }
 0x38a   : > { %8882 = vmatmul.msk.bf16.gmra.mxu3 %vm1579_vm0, %v3500_v60  ;;  %v11086_v60 = vld [vmem:[#allocation2 + $0x40] sm:$0xff] }
 0x38b   : > { %8905 = vmatmul.msk.bf16.gmra.mxu0 %vm1579_vm0, %v3630_v2 }
 0x38c   : > { %v2929_v27 = vpop.f32.mrf.mxu2 }
 0x38d   : > { %v3062_v55 = vpop.f32.mrf.mxu3  ;;  %v2966_v50 = vadd.f32 %v11060_v58, %v2929_v27 }
 0x38e   : > { %v3322_v21 = vpop.f32.mrf.mxu1 }
 0x38f   : > { %v3096_v35 = vadd.f32 %v3062_v55, %v2966_v50  ;;  %v3372_v55 = vpack.c.bf16 %v11083_v16, %v11086_v60 }
 0x390   : > { %v3194_v26 = vpop.f32.mrf.mxu0 }
 0x391   : > { %v3226_v32 = vadd.f32 %v3192_v34, %v3096_v35  ;;  %8928 = vmatmul.msk.bf16.gmra.mxu1 %vm1579_vm0, %v3760_v37  ;;  %v3623_v34 = vld [vmem:[#allocation2 + $0x51] sm:$0xff] }
 0x392   : > { %v3632_v50 = vpack.c.bf16 %v3623_v34, %v3493_v10  ;;  %v3753_v37 = vld [vmem:[#allocation2 + $0x52] sm:$0xff]  ;;  %v3754_v10 = vld [vmem:[#allocation2 + $0x5a] sm:$0xff] }
 0x393   : > { %v11065_v0 = vadd.f32 %v3322_v21, %v3226_v32 }
 0x394   : > { %v2931_v62 = vpop.f32.mrf.mxu2 }
 0x395   : > { %v3064_v5 = vpop.f32.mrf.mxu3  ;;  %v2967_v47 = vadd.f32 %v11060_v58, %v2931_v62 }
 0x396   : > { %v3324_v61 = vpop.f32.mrf.mxu1 }
 0x397   : > { %v3097_v52 = vadd.f32 %v3064_v5, %v2967_v47  ;;  %v3752_v5 = vld [vmem:[#allocation2 + $0x4a] sm:$0xff] }
 0x398   : > { %v3197_v1 = vpop.f32.mrf.mxu0  ;;  %v3762_v41 = vpack.c.bf16 %v3753_v37, %v3752_v5  ;;  %v3627_v37 = vld [vmem:[#allocation2 + $0x71] sm:$0xff]  ;;  %v9694_v5 = vld [vmem:[#allocation4 + $0x220] sm:$0xff] }
 0x399   : > { %v3227_v33 = vadd.f32 %v3194_v26, %v3097_v52  ;;  %8860 = vmatmul.msk.bf16.gmra.mxu2 %vm1579_vm0, %v3371_v63 }
 0x39a   : > { %8883 = vmatmul.msk.bf16.gmra.mxu3 %vm1579_vm0, %v3501_v23 }
 0x39b   : > { %8906 = vmatmul.msk.bf16.gmra.mxu0 %vm1579_vm0, %v3631_v30  ;;  %v11077_v6 = vadd.f32 %v3324_v61, %v3227_v33  ;;  %v11105_v30 = vld [vmem:[#allocation2 + $0x58] sm:$0xff] }
 0x39c   : > { %v2934_v38 = vpop.f32.mrf.mxu2  ;;  %12718 = vst [vmem:[#allocation26_spill] sm:$0xff] %v11105_v30  ;;  %v3495_v33 = vld [vmem:[#allocation2 + $0x59] sm:$0xff] }
 0x39d   : > { %v3067_v59 = vpop.f32.mrf.mxu3  ;;  %v2968_v31 = vadd.f32 %v11060_v58, %v2934_v38  ;;  %v3625_v38 = vld [vmem:[#allocation2 + $0x61] sm:$0xff]  ;;  %v3503_v56 = vpack.c.bf16 %v3495_v33, %v3623_v34 }
 0x39e   : > { %v3327_v42 = vpop.f32.mrf.mxu1 }
 0x39f   : > { %v3098_v39 = vadd.f32 %v3067_v59, %v2968_v31 }
 0x3a0   : > { %v3199_v3 = vpop.f32.mrf.mxu0 }
 0x3a1   : > { %v3228_v46 = vadd.f32 %v3197_v1, %v3098_v39  ;;  %8929 = vmatmul.msk.bf16.gmra.mxu1 %vm1579_vm0, %v3761_v36  ;;  %v9697_v1 = vld [vmem:[#allocation4 + $0x238] sm:$0xff]  ;;  %v3633_v39 = vpack.c.bf16 %v3625_v38, %v3495_v33 }
 0x3a2   : > { %3954 = vmatpush.bf16.msra.mxu2 %v9697_v1 }
 0x3a3   : > { %v11081_v57 = vadd.f32 %v3327_v42, %v3228_v46  ;;  %v3373_v42 = vpack.c.bf16 %v11105_v30, %v11109_v49  ;;  %v3755_v46 = vld [vmem:[#allocation2 + $0x62] sm:$0xff] }
 0x3a4   : > { %v2936_v18 = vpop.f32.mrf.mxu2 }
 0x3a5   : > { %v3069_v43 = vpop.f32.mrf.mxu3  ;;  %v2969_v12 = vadd.f32 %v11060_v58, %v2936_v18 }
 0x3a6   : > { %v3329_v19 = vpop.f32.mrf.mxu1 }
 0x3a7   : > { %v3099_v2 = vadd.f32 %v3069_v43, %v2969_v12  ;;  %v9696_v12 = vld [vmem:[#allocation4 + $0x230] sm:$0xff] }
 0x3a8   : > { %v3202_v27 = vpop.f32.mrf.mxu0  ;;  %3955 = vmatpush.bf16.msra.mxu2 %v9696_v12 }
 0x3a9   : > { %v3229_v21 = vadd.f32 %v3199_v3, %v3099_v2  ;;  %8861 = vmatmul.msk.bf16.gmra.mxu2 %vm1579_vm0, %v3372_v55  ;;  %v9695_v55 = vld [vmem:[#allocation4 + $0x228] sm:$0xff] }
 0x3aa   : > { %8884 = vmatmul.msk.bf16.gmra.mxu3 %vm1579_vm0, %v3502_v9 }
 0x3ab   : > { %8907 = vmatmul.msk.bf16.gmra.mxu0 %vm1579_vm0, %v3632_v50  ;;  %v11093_v20 = vadd.f32 %v3329_v19, %v3229_v21 }
 0x3ac   : > { %v2939_v35 = vpop.f32.mrf.mxu2  ;;  %3956 = vmatpush.bf16.msra.mxu2 %v9695_v55 }
 0x3ad   : > { %v3072_v26 = vpop.f32.mrf.mxu3  ;;  %v2970_v32 = vadd.f32 %v11060_v58, %v2939_v35  ;;  %v11126_v35 = vld [vmem:[#allocation2 + $0x68] sm:$0xff] }
 0x3ae   : > { %v3332_v62 = vpop.f32.mrf.mxu1  ;;  %12720 = vst [vmem:[#allocation21_spill] sm:$0xff] %v11126_v35 }
 0x3af   : > { %v3100_v8 = vadd.f32 %v3072_v26, %v2970_v32  ;;  %v3497_v26 = vld [vmem:[#allocation2 + $0x69] sm:$0xff] }
 0x3b0   : > { %v11096_v47 = vpop.f32.mrf.mxu0  ;;  %v3634_v1 = vpack.c.bf16 %v3627_v37, %v3497_v26  ;;  %3957 = vmatpush.bf16.msra.mxu2 %v9694_v5 }
 0x3b1   : > { %v3230_v61 = vadd.f32 %v3202_v27, %v3100_v8  ;;  %8930 = vmatmul.msk.bf16.gmra.mxu1 %vm1579_vm0, %v3762_v41  ;;  %v3763_v27 = vpack.c.bf16 %v3755_v46, %v3754_v10  ;;  %v3628_v10 = vld [vmem:[#allocation2 + $0x79] sm:$0xff] }
 0x3b2   : > { %v3635_v55 = vpack.c.bf16 %v3628_v10, %v3628_v10 }
 0x3b3   : > { %v11099_v52 = vadd.f32 %v3332_v62, %v3230_v61  ;;  %v11130_v62 = vld [vmem:[#allocation2 + $0x60] sm:$0xff]  ;;  %v3504_v61 = vpack.c.bf16 %v3497_v26, %v3625_v38 }
 0x3b4   : > { %v11101_v63 = vpop.f32.mrf.mxu2  ;;  %12721 = vst [vmem:[#allocation25_spill] sm:$0xff] %v11130_v62  ;;  %v3374_v41 = vpack.c.bf16 %v11126_v35, %v11130_v62  ;;  %v3878_v35 = vld [vmem:[#allocation2 + $0x2b] sm:$0xff] }
 0x3b5   : > { %v11103_v23 = vpop.f32.mrf.mxu3 }
 0x3b6   : > { %v11107_v59 = vpop.f32.mrf.mxu1 }
 0x3b8   : > { %v3207_v31 = vpop.f32.mrf.mxu0 }
 0x3b9   : > { %8862 = vmatmul.msk.bf16.gmra.mxu2 %vm1579_vm0, %v3373_v42  ;;  %v3756_v42 = vld [vmem:[#allocation2 + $0x6a] sm:$0xff] }
 0x3ba   : > { %8885 = vmatmul.msk.bf16.gmra.mxu3 %vm1579_vm0, %v3503_v56  ;;  %v3757_v56 = vld [vmem:[#allocation2 + $0x72] sm:$0xff] }
 0x3bb   : > { %8908 = vmatmul.msk.bf16.gmra.mxu0 %vm1579_vm0, %v3633_v39 }
 0x3bc   : > { %v2944_v3 = vpop.f32.mrf.mxu2 }
 0x3bd   : > { %v3077_v36 = vpop.f32.mrf.mxu3  ;;  %v2972_v18 = vadd.f32 %v11060_v58, %v2944_v3 }
 0x3be   : > { %v3337_v43 = vpop.f32.mrf.mxu1 }
 0x3bf   : > { %v3102_v19 = vadd.f32 %v3077_v36, %v2972_v18  ;;  %v3764_v18 = vpack.c.bf16 %v3757_v56, %v3756_v42 }
 0x3c0   : > { %v11117_v2 = vpop.f32.mrf.mxu0 }
 0x3c1   : > { %v3232_v34 = vadd.f32 %v3207_v31, %v3102_v19  ;;  %8931 = vmatmul.msk.bf16.gmra.mxu1 %vm1579_vm0, %v3763_v27  ;;  %v11147_v27 = vld [vmem:[#allocation2 + $0x70] sm:$0xff] }
 0x3c2   : > { %12722 = vst [vmem:[#allocation22_spill] sm:$0xff] %v11147_v27  ;;  %v3375_v5 = vpack.c.bf16 %v11147_v27, %v11147_v27  ;;  %v3879_v27 = vld [vmem:[#allocation2 + $0x33] sm:$0xff] }
 0x3c3   : > { %v11120_v9 = vadd.f32 %v3337_v43, %v3232_v34  ;;  %v3890_v62 = vpack.c.bf16 %v3879_v27, %v3878_v35 }
 0x3c4   : > { %v11122_v50 = vpop.f32.mrf.mxu2 }
 0x3c5   : > { %v11124_v21 = vpop.f32.mrf.mxu3 }
 0x3c6   : > { %v11128_v32 = vpop.f32.mrf.mxu1 }
 0x3c8   : > { %v3212_v8 = vpop.f32.mrf.mxu0 }
 0x3c9   : > { %8863 = vmatmul.msk.bf16.gmra.mxu2 %vm1579_vm0, %v3374_v41  ;;  %v3505_v41 = vpack.c.bf16 %v3627_v37, %v3627_v37 }
 0x3ca   : > { %8886 = vmatmul.msk.bf16.gmra.mxu3 %vm1579_vm0, %v3504_v61 }
 0x3cb   : > { %8909 = vmatmul.msk.bf16.gmra.mxu0 %vm1579_vm0, %v3634_v1 }
 0x3cc   : > { %v2949_v33 = vpop.f32.mrf.mxu2 }
 0x3cd   : > { %v3082_v31 = vpop.f32.mrf.mxu3  ;;  %v2974_v39 = vadd.f32 %v11060_v58, %v2949_v33 }
 0x3ce   : > { %v3342_v3 = vpop.f32.mrf.mxu1 }
 0x3cf   : > { %v3104_v36 = vadd.f32 %v3082_v31, %v2974_v39 }
 0x3d0   : > { %v11138_v46 = vpop.f32.mrf.mxu0 }
 0x3d1   : > { %v3234_v38 = vadd.f32 %v3212_v8, %v3104_v36  ;;  %8932 = vmatmul.msk.bf16.gmra.mxu1 %vm1579_vm0, %v3764_v18  ;;  %v3758_v8 = vld [vmem:[#allocation2 + $0x7a] sm:$0xff] }
 0x3d2   : > { %v3765_v31 = vpack.c.bf16 %v3758_v8, %v3758_v8 }
 0x3d3   : > { %v11141_v43 = vadd.f32 %v3342_v3, %v3234_v38  ;;  %v3877_v38 = vld [vmem:[#allocation2 + $0x23] sm:$0xff] }
 0x3d4   : > { %v11143_v12 = vpop.f32.mrf.mxu2 }
 0x3d5   : > { %v11145_v19 = vpop.f32.mrf.mxu3 }
 0x3d6   : > { %v11149_v34 = vpop.f32.mrf.mxu1 }
 0x3d7   : > { %12723 = vst [vmem:[#allocation27_spill] sm:$0xff] %v11149_v34  ;;  %v9701_v34 = vld [vmem:[#allocation4 + $0x258] sm:$0xff] }
 0x3d8   : > { %v3217_v26 = vpop.f32.mrf.mxu0  ;;  %4164 = vmatpush.bf16.msra.mxu3 %v9701_v34 }
 0x3d9   : > { %8864 = vmatmul.msk.bf16.gmra.mxu2 %vm1579_vm0, %v3375_v5 }
 0x3da   : > { %8887 = vmatmul.msk.bf16.gmra.mxu3 %vm1579_vm0, %v3505_v41 }
 0x3db   : > { %8910 = vmatmul.msk.bf16.gmra.mxu0 %vm1579_vm0, %v3635_v55  ;;  %v3876_v55 = vld [vmem:[#allocation2 + $0x1b] sm:$0xff] }
 0x3dc   : > { %v2954_v61 = vpop.f32.mrf.mxu2  ;;  %v3889_v41 = vpack.c.bf16 %v3877_v38, %v3876_v55 }
 0x3dd   : > { %v3087_v1 = vpop.f32.mrf.mxu3  ;;  %v2976_v33 = vadd.f32 %v11060_v58, %v2954_v61 }
 0x3de   : > { %v3347_v42 = vpop.f32.mrf.mxu1 }
 0x3df   : > { %v3106_v56 = vadd.f32 %v3087_v1, %v2976_v33 }
 0x3e0   : > { %v11157_v39 = vpop.f32.mrf.mxu0 }
 0x3e1   : > { %12724 = vst [vmem:[#allocation23_spill] sm:$0xff] %v11157_v39  ;;  %v3236_v3 = vadd.f32 %v3217_v26, %v3106_v56  ;;  %8933 = vmatmul.msk.bf16.gmra.mxu1 %vm1579_vm0, %v3765_v31 }
 0x3e3   : > { %v11160_v37 = vadd.f32 %v3347_v42, %v3236_v3 }
 0x3e4   : > { %v11162_v36 = vpop.f32.mrf.mxu2 }
 0x3e5   : > { %12725 = vst [vmem:[#allocation28_spill] sm:$0xff] %v11162_v36  ;;  %v11164_v18 = vpop.f32.mrf.mxu3 }
 0x3e6   : > { %12726 = vst [vmem:[#allocation16_spill] sm:$0xff] %v11164_v18  ;;  %v11166_v10 = vpop.f32.mrf.mxu1  ;;  %v3887_v18 = vld [vmem:[#allocation2 + $0x73] sm:$0xff] }
 0x3e7   : > { %12727 = vst [vmem:[#allocation24_spill] sm:$0xff] %v11166_v10 }
 0x3e8   : > { %v3222_v5 = vpop.f32.mrf.mxu0 }
 0x3e9   : > { %8950 = vmatmul.msk.bf16.vlgmr.msra.gmra.mxu2 %vm1579_vm0, %v3889_v41 }
 0x3ec   : > { %v2959_v8 = vpop.f32.mrf.mxu2 }
 0x3ed   : > { %v3092_v61 = vpop.f32.mrf.mxu3  ;;  %v2978_v26 = vadd.f32 %v11060_v58, %v2959_v8 }
 0x3ee   : > { %v3352_v1 = vpop.f32.mrf.mxu1 }
 0x3ef   : > { %v3108_v33 = vadd.f32 %v3092_v61, %v2978_v26 }
 0x3f0   : > { %v3224_v31 = vpop.f32.mrf.mxu0 }
 0x3f1   : > { %v3238_v42 = vadd.f32 %v3222_v5, %v3108_v33 }
 0x3f3   : > { %v11170_v56 = vadd.f32 %v3352_v1, %v3238_v42 }
 0x3f4   : > { %v2961_v3 = vpop.f32.mrf.mxu2 }
 0x3f5   : > { %v3094_v7 = vpop.f32.mrf.mxu3 }
 0x3f6   : > { %v3354_v13 = vpop.f32.mrf.mxu1 }
 0x3f7   : > { %v3881_v13 = vld [vmem:[#allocation2 + $0x43] sm:$0xff] }
 0x3f8   : > { %v3699_v54 = vpop.f32.mrf.mxu0 }
 0x3f9   : > { %8951 = vmatmul.msk.bf16.gmra.mxu2 %vm1579_vm0, %v3890_v62  ;;  %v3880_v62 = vld [vmem:[#allocation2 + $0x3b] sm:$0xff] }
 0x3fa   : > { %v3891_v31 = vpack.c.bf16 %v3881_v13, %v3880_v62  ;;  %v3882_v62 = vld [vmem:[#allocation2 + $0x4b] sm:$0xff] }
 0x3fc   : > { %v3439_v38 = vpop.f32.mrf.mxu2 }
 0x3fd   : > { %v3569_v55 = vpop.f32.mrf.mxu3  ;;  %v3473_v41 = vadd.f32 %v3439_v38, %v11065_v0 }
 0x3fe   : > { %v3829_v8 = vpop.f32.mrf.mxu1 }
 0x3ff   : > { %v3603_v22 = vadd.f32 %v3569_v55, %v3473_v41 }
 0x400   : > { %v11174_v61 = vpop.f32.mrf.mxu0 }
 0x401   : > { %v3733_v5 = vadd.f32 %v3699_v54, %v3603_v22 }
 0x403   : > { %v11176_v26 = vadd.f32 %v3829_v8, %v3733_v5  ;;  %v3883_v5 = vld [vmem:[#allocation2 + $0x53] sm:$0xff] }
 0x404   : > { %v3441_v1 = vpop.f32.mrf.mxu2  ;;  %v3892_v30 = vpack.c.bf16 %v3883_v5, %v3882_v62  ;;  %v3884_v5 = vld [vmem:[#allocation2 + $0x5b] sm:$0xff] }
 0x405   : > { %v11178_v7 = vpop.f32.mrf.mxu3  ;;  %v11181_v33 = vadd.f32 %v3441_v1, %v11077_v6  ;;  %v3893_v62 = vpack.c.bf16 %v3885_v14, %v3884_v5 }
 0x406   : > { %v11183_v35 = vpop.f32.mrf.mxu1 }
 0x408   : > { %v3704_v27 = vpop.f32.mrf.mxu0 }
 0x409   : > { %8952 = vmatmul.msk.bf16.gmra.mxu2 %vm1579_vm0, %v3891_v31 }
 0x40c   : > { %v3444_v0 = vpop.f32.mrf.mxu2 }
 0x40d   : > { %v3574_v42 = vpop.f32.mrf.mxu3  ;;  %v3475_v22 = vadd.f32 %v3444_v0, %v11081_v57 }
 0x40e   : > { %v3834_v54 = vpop.f32.mrf.mxu1 }
 0x40f   : > { %v3605_v3 = vadd.f32 %v3574_v42, %v3475_v22 }
 0x410   : > { %v11187_v38 = vpop.f32.mrf.mxu0 }
 0x411   : > { %v3735_v55 = vadd.f32 %v3704_v27, %v3605_v3 }
 0x413   : > { %v11189_v41 = vadd.f32 %v3834_v54, %v3735_v55 }
 0x414   : > { %v3446_v6 = vpop.f32.mrf.mxu2 }
 0x415   : > { %v11191_v8 = vpop.f32.mrf.mxu3  ;;  %v11194_v1 = vadd.f32 %v3446_v6, %v11093_v20 }
 0x416   : > { %v11196_v13 = vpop.f32.mrf.mxu1 }
 0x418   : > { %v3709_v31 = vpop.f32.mrf.mxu0 }
 0x419   : > { %8953 = vmatmul.msk.bf16.gmra.mxu2 %vm1579_vm0, %v3892_v30 }
 0x41c   : > { %v3449_v57 = vpop.f32.mrf.mxu2 }
 0x41d   : > { %v3579_v0 = vpop.f32.mrf.mxu3  ;;  %v3477_v27 = vadd.f32 %v3449_v57, %v11099_v52 }
 0x41e   : > { %v3839_v42 = vpop.f32.mrf.mxu1 }
 0x41f   : > { %v3607_v22 = vadd.f32 %v3579_v0, %v3477_v27 }
 0x420   : > { %v11200_v54 = vpop.f32.mrf.mxu0 }
 0x421   : > { %v3737_v3 = vadd.f32 %v3709_v31, %v3607_v22 }
 0x423   : > { %v11202_v55 = vadd.f32 %v3839_v42, %v3737_v3 }
 0x424   : > { %v11204_v20 = vpop.f32.mrf.mxu2 }
 0x425   : > { %v11206_v6 = vpop.f32.mrf.mxu3 }
 0x426   : > { %v11208_v10 = vpop.f32.mrf.mxu1 }
 0x428   : > { %v3714_v30 = vpop.f32.mrf.mxu0 }
 0x429   : > { %8954 = vmatmul.msk.bf16.gmra.mxu2 %vm1579_vm0, %v3893_v62  ;;  %v3894_v62 = vpack.c.bf16 %v3887_v18, %v3886_v17 }
 0x42c   : > { %v3454_v52 = vpop.f32.mrf.mxu2 }
 0x42d   : > { %v3584_v57 = vpop.f32.mrf.mxu3  ;;  %v3479_v0 = vadd.f32 %v3454_v52, %v11120_v9 }
 0x42e   : > { %v3844_v27 = vpop.f32.mrf.mxu1 }
 0x42f   : > { %v3609_v31 = vadd.f32 %v3584_v57, %v3479_v0 }
 0x430   : > { %v11212_v42 = vpop.f32.mrf.mxu0 }
 0x431   : > { %v3739_v22 = vadd.f32 %v3714_v30, %v3609_v31 }
 0x433   : > { %v11214_v3 = vadd.f32 %v3844_v27, %v3739_v22  ;;  %v3888_v22 = vld [vmem:[#allocation2 + $0x7b] sm:$0xff] }
 0x434   : > { %v11216_v49 = vpop.f32.mrf.mxu2  ;;  %v3895_v17 = vpack.c.bf16 %v3888_v22, %v3888_v22 }
 0x435   : > { %v11218_v39 = vpop.f32.mrf.mxu3 }
 0x436   : > { %v11220_v14 = vpop.f32.mrf.mxu1 }
 0x438   : > { %v3719_v5 = vpop.f32.mrf.mxu0 }
 0x439   : > { %8955 = vmatmul.msk.bf16.gmra.mxu2 %vm1579_vm0, %v3894_v62 }
 0x43c   : > { %v3459_v9 = vpop.f32.mrf.mxu2 }
 0x43d   : > { %v3589_v52 = vpop.f32.mrf.mxu3  ;;  %v3481_v57 = vadd.f32 %v3459_v9, %v11141_v43 }
 0x43e   : > { %v3849_v0 = vpop.f32.mrf.mxu1 }
 0x43f   : > { %v3611_v30 = vadd.f32 %v3589_v52, %v3481_v57 }
 0x440   : > { %v11224_v27 = vpop.f32.mrf.mxu0 }
 0x441   : > { %12728 = vst [vmem:[#allocation30_spill] sm:$0xff] %v11224_v27  ;;  %v3741_v31 = vadd.f32 %v3719_v5, %v3611_v30  ;;  %v9709_v27 = vld [vmem:[#allocation4 + $0x298] sm:$0xff] }
 0x442   : > { %4427 = vmatpush.bf16.msra.mxu1 %v9709_v27 }
 0x443   : > { %v11226_v16 = vadd.f32 %v3849_v0, %v3741_v31  ;;  %v9705_v31 = vld [vmem:[#allocation4 + $0x278] sm:$0xff] }
 0x444   : > { %v11228_v36 = vpop.f32.mrf.mxu2  ;;  %4297 = vmatpush.bf16.msra.mxu0 %v9705_v31  ;;  %v9702_v31 = vld [vmem:[#allocation4 + $0x260] sm:$0xff] }
 0x445   : > { %12729 = vst [vmem:[#allocation15_spill] sm:$0xff] %v11226_v16  ;;  %v11230_v15 = vpop.f32.mrf.mxu3 }
 0x446   : > { %12730 = vst [vmem:[#allocation29_spill] sm:$0xff] %v11228_v36  ;;  %v11232_v18 = vpop.f32.mrf.mxu1 }
 0x447   : > { %12731 = vst [vmem:[#allocation31_spill] sm:$0xff] %v11230_v15  ;;  %v9708_v15 = vld [vmem:[#allocation4 + $0x290] sm:$0xff] }
 0x448   : > { %12732 = vst [vmem:[#allocation32_spill] sm:$0xff] %v11232_v18  ;;  %v3724_v62 = vpop.f32.mrf.mxu0  ;;  %v9704_v18 = vld [vmem:[#allocation4 + $0x270] sm:$0xff]  ;;  %4428 = vmatpush.bf16.msra.mxu1 %v9708_v15 }
 0x449   : > { %8956 = vmatmul.msk.bf16.gmra.mxu2 %vm1579_vm0, %v3895_v17  ;;  %v9700_v17 = vld [vmem:[#allocation4 + $0x250] sm:$0xff]  ;;  %4298 = vmatpush.bf16.msra.mxu0 %v9704_v18 }
 0x44a   : > { %4165 = vmatpush.bf16.msra.mxu3 %v9700_v17 }
 0x44c   : > { %v3464_v43 = vpop.f32.mrf.mxu2 }
 0x44d   : > { %v3594_v9 = vpop.f32.mrf.mxu3  ;;  %v3483_v52 = vadd.f32 %v3464_v43, %v11160_v37  ;;  %v9703_v43 = vld [vmem:[#allocation4 + $0x268] sm:$0xff] }
 0x44e   : > { %v3854_v5 = vpop.f32.mrf.mxu1  ;;  %4299 = vmatpush.bf16.msra.mxu0 %v9703_v43 }
 0x44f   : > { %v3613_v57 = vadd.f32 %v3594_v9, %v3483_v52  ;;  %v9707_v9 = vld [vmem:[#allocation4 + $0x288] sm:$0xff]  ;;  %v9713_v52 = vld [vmem:[#allocation4 + $0x2b8] sm:$0xff] }
 0x450   : > { %v11236_v0 = vpop.f32.mrf.mxu0  ;;  %4429 = vmatpush.bf16.msra.mxu1 %v9707_v9  ;;  %4557 = vmatpush.bf16.msrb.mxu2 %v9713_v52  ;;  %v9710_v52 = vld [vmem:[#allocation4 + $0x2a0] sm:$0xff] }
 0x451   : > { %12733 = vst [vmem:[#allocation18_spill] sm:$0xff] %v11236_v0  ;;  %v3743_v30 = vadd.f32 %v3724_v62, %v3613_v57  ;;  %v9699_v62 = vld [vmem:[#allocation4 + $0x248] sm:$0xff]  ;;  %v9706_v0 = vld [vmem:[#allocation4 + $0x280] sm:$0xff] }
 0x452   : > { %4166 = vmatpush.bf16.msra.mxu3 %v9699_v62  ;;  %4300 = vmatpush.bf16.msra.mxu0 %v9702_v31  ;;  %v9711_v62 = vld [vmem:[#allocation4 + $0x2a8] sm:$0xff] }
 0x453   : > { %v11238_v16 = vadd.f32 %v3854_v5, %v3743_v30  ;;  %v9698_v30 = vld [vmem:[#allocation4 + $0x240] sm:$0xff] }
 0x454   : > { %v11240_v22 = vpop.f32.mrf.mxu2  ;;  %4430 = vmatpush.bf16.msra.mxu1 %v9706_v0 }
 0x455   : > { %12734 = vst [vmem:[#allocation17_spill] sm:$0xff] %v11238_v16  ;;  %v11242_v34 = vpop.f32.mrf.mxu3  ;;  %v9712_v16 = vld [vmem:[#allocation4 + $0x2b0] sm:$0xff] }
 0x456   : > { %12735 = vst [vmem:[#allocation19_spill] sm:$0xff] %v11240_v22  ;;  %v11244_v36 = vpop.f32.mrf.mxu1  ;;  %4167 = vmatpush.bf16.msra.mxu3 %v9698_v30  ;;  %4558 = vmatpush.bf16.msrb.mxu2 %v9712_v16 }
 0x457   : > { %12736 = vst [vmem:[#allocation33_spill] sm:$0xff] %v11242_v34 }
 0x458   : > { %12737 = vst [vmem:[#allocation34_spill] sm:$0xff] %v11244_v36  ;;  %v3729_v37 = vpop.f32.mrf.mxu0 }
 0x45a   : > { %4559 = vmatpush.bf16.msrb.mxu2 %v9711_v62 }
 0x45c   : > { %v3469_v27 = vpop.f32.mrf.mxu2 }
 0x45d   : > { %v3599_v5 = vpop.f32.mrf.mxu3  ;;  %v3485_v57 = vadd.f32 %v3469_v27, %v11170_v56  ;;  %v3604_v27 = vadd.f32 %v11178_v7, %v11181_v33  ;;  %v2971_v7 = vadd.f32 %v11060_v58, %v11101_v63 }
 0x45e   : > { %v3859_v36 = vpop.f32.mrf.mxu1  ;;  %4560 = vmatpush.bf16.msrb.mxu2 %v9710_v52 }
 0x45f   : > { %v3615_v17 = vadd.f32 %v3599_v5, %v3485_v57  ;;  %v3734_v57 = vadd.f32 %v11174_v61, %v3604_v27  ;;  %v3606_v61 = vadd.f32 %v11191_v8, %v11194_v1 }
 0x460   : > { %v3731_v15 = vpop.f32.mrf.mxu0 }
 0x461   : > { %v3745_v18 = vadd.f32 %v3729_v37, %v3615_v17  ;;  %v3864_v37 = vadd.f32 %v11183_v35, %v3734_v57  ;;  %v4086_v35 = vld [vmem:[#allocation2 + $0x5] sm:$0xff] }
 0x463   : > { %v11247_v43 = vadd.f32 %v3859_v36, %v3745_v18  ;;  %v3101_v18 = vadd.f32 %v11103_v23, %v2971_v7 }
 0x464   : > { %v3471_v34 = vpop.f32.mrf.mxu2 }
 0x465   : > { %v3601_v9 = vpop.f32.mrf.mxu3  ;;  %v3231_v23 = vadd.f32 %v11096_v47, %v3101_v18 }
 0x466   : > { %v3861_v56 = vpop.f32.mrf.mxu1 }
 0x46c   : > { %v3959_v22 = vpop.f32.mrf.mxu2 }
 0x46d   : > { %v3993_v5 = vadd.f32 %v3959_v22, %v11176_v26  ;;  %v4219_v22 = vld [vmem:[#allocation2 + $0x6] sm:$0xff] }
 0x46f   : > { %v4006_v0 = vmul.f32 0.01, %v3993_v5 }
 0x471   : > { %v4019_v16 = vmax.f32 %v3993_v5, %v4006_v0 }
 0x473   : > { %v4032_v36 = vadd.f32 %v4019_v16, %v11041_v44  ;;  %v4349_v44 = vld [vmem:[#allocation2 + $0x7] sm:$0xff] }
 0x474   : > { %v3961_v34 = vpop.f32.mrf.mxu2 }
 0x475   : > { %v4045_v30 = vsel %vm1553_vm15, %v4032_v36, 0.0  ;;  %v3994_v31 = vadd.f32 %v3961_v34, %v3864_v37  ;;  %v3361_v37 = vadd.f32 %v11107_v59, %v3231_v23 }
 0x476   : > { %4058 = vst.msk [vmem:[#allocation2 + $0x10] sm:$0xff] %vm1579_vm0, %v4045_v30 }
 0x477   : > { %v4007_v17 = vmul.f32 0.01, %v3994_v31  ;;  %v3478_v47 = vadd.f32 %v11204_v20, %v3361_v37 }
 0x479   : > { %v4020_v26 = vmax.f32 %v3994_v31, %v4007_v17  ;;  %v3608_v17 = vadd.f32 %v11206_v6, %v3478_v47 }
 0x47b   : > { %v4033_v33 = vadd.f32 %v4020_v26, %v11039_v53  ;;  %v3736_v53 = vadd.f32 %v11187_v38, %v3606_v61 }
 0x47c   : > { %v3964_v15 = vpop.f32.mrf.mxu2 }
 0x47d   : > { %v4046_v62 = vsel %vm1554_vm1, %v4033_v33, 0.0  ;;  %v3995_v9 = vadd.f32 %v3964_v15, %v11189_v41  ;;  %v4087_v52 = vld [vmem:[#allocation2 + $0xd] sm:$0xff]  ;;  %v3866_v41 = vadd.f32 %v11196_v13, %v3736_v53  ;;  %v2973_v13 = vadd.f32 %v11060_v58, %v11122_v50 }
 0x47e   : > { %v4220_v56 = vld [vmem:[#allocation2 + $0xe] sm:$0xff]  ;;  %4059 = vst.msk [vmem:[#allocation2 + $0x18] sm:$0xff] %vm1579_vm0, %v4046_v62  ;;  %v4099_v27 = vpack.c.bf16 %v4087_v52, %v4086_v35 }
 0x47f   : > { %v4350_v63 = vld [vmem:[#allocation2 + $0xf] sm:$0xff]  ;;  %v4232_v8 = vpack.c.bf16 %v4220_v56, %v4219_v22  ;;  %v4008_v5 = vmul.f32 0.01, %v3995_v9  ;;  %v3103_v33 = vadd.f32 %v11124_v21, %v2973_v13 }
 0x480   : > { %v4362_v1 = vpack.c.bf16 %v4350_v63, %v4349_v44  ;;  %8974 = vmatmul.msk.bf16.vlgmr.msra.gmra.mxu3 %vm1579_vm0, %v4099_v27 }
 0x481   : > { %8997 = vmatmul.msk.bf16.vlgmr.msra.gmra.mxu0 %vm1579_vm0, %v4232_v8  ;;  %v4021_v57 = vmax.f32 %v3995_v9, %v4008_v5  ;;  %v3233_v21 = vadd.f32 %v11117_v2, %v3103_v33  ;;  %v12740_v33 = vld [vmem:[#allocation29_spill] sm:$0xff] }
 0x482   : > { %9020 = vmatmul.msk.bf16.vlgmr.msra.gmra.mxu1 %vm1579_vm0, %v4362_v1 }
 0x483   : > { %v4034_v0 = vadd.f32 %v4021_v57, %v11051_v51 }
 0x484   : > { %v3966_v16 = vpop.f32.mrf.mxu2 }
 0x485   : > { %v4047_v38 = vsel %vm1555_vm2, %v4034_v0, 0.0  ;;  %v3996_v36 = vadd.f32 %v3966_v16, %v3866_v41  ;;  %v4480_v34 = vld [vmem:[#allocation2 + $0x17] sm:$0xff] }
 0x486   : > { %4060 = vst.msk [vmem:[#allocation2 + $0x20] sm:$0xff] %vm1579_vm0, %v4047_v38  ;;  %v4492_v30 = vpack.c.bf16 %v4480_v34, %v4350_v63  ;;  %v4088_v26 = vld [vmem:[#allocation2 + $0x15] sm:$0xff]  ;;  %v3363_v63 = vadd.f32 %v11128_v32, %v3233_v21 }
 0x487   : > { %v4009_v31 = vmul.f32 0.01, %v3996_v36  ;;  %v4221_v61 = vld [vmem:[#allocation2 + $0x16] sm:$0xff] }
 0x488   : > { %9043 = vmatmul.msk.bf16.vlgmr.msrb.gmra.mxu2 %vm1579_vm0, %v4492_v30  ;;  %v3480_v2 = vadd.f32 %v11216_v49, %v3363_v63 }
 0x489   : > { %v4022_v51 = vmax.f32 %v3996_v36, %v4009_v31 }
 0x48a   : > { %v3610_v5 = vadd.f32 %v11218_v39, %v3480_v2  ;;  %v12747_v2 = vld [vmem:[#allocation30_spill] sm:$0xff] }
 0x48b   : > { %v4035_v59 = vadd.f32 %v4022_v51, %v11049_v48  ;;  %v3738_v48 = vadd.f32 %v11200_v54, %v3608_v17  ;;  %v12738_v51 = vld [vmem:[#allocation27_spill] sm:$0xff] }
 0x48c   : > { %v3969_v7 = vpop.f32.mrf.mxu2 }
 0x48d   : > { %v4048_v35 = vsel %vm1556_vm3, %v4035_v59, 0.0  ;;  %v3997_v20 = vadd.f32 %v3969_v7, %v11202_v55  ;;  %v4089_v22 = vld [vmem:[#allocation2 + $0x1d] sm:$0xff]  ;;  %v3868_v55 = vadd.f32 %v11208_v10, %v3738_v48  ;;  %v2975_v10 = vadd.f32 %v11060_v58, %v11143_v12 }
 0x48e   : > { %v4222_v44 = vld [vmem:[#allocation2 + $0x1e] sm:$0xff]  ;;  %4061 = vst.msk [vmem:[#allocation2 + $0x28] sm:$0xff] %vm1579_vm0, %v4048_v35  ;;  %v4100_v50 = vpack.c.bf16 %v4089_v22, %v4088_v26  ;;  %v12742_v22 = vld [vmem:[#allocation31_spill] sm:$0xff] }
 0x48f   : > { %v4352_v15 = vld [vmem:[#allocation2 + $0x1f] sm:$0xff]  ;;  %v4233_v18 = vpack.c.bf16 %v4222_v44, %v4221_v61  ;;  %v4010_v62 = vmul.f32 0.01, %v3997_v20  ;;  %v3105_v0 = vadd.f32 %v11145_v19, %v2975_v10 }
 0x490   : > { %v4363_v6 = vpack.c.bf16 %v4352_v15, %v4480_v34  ;;  %8975 = vmatmul.msk.bf16.gmra.mxu3 %vm1579_vm0, %v4100_v50 }
 0x491   : > { %8998 = vmatmul.msk.bf16.gmra.mxu0 %vm1579_vm0, %v4233_v18  ;;  %v4023_v9 = vmax.f32 %v3997_v20, %v4010_v62  ;;  %v3235_v19 = vadd.f32 %v11138_v46, %v3105_v0  ;;  %v12741_v20 = vld [vmem:[#allocation28_spill] sm:$0xff] }
 0x492   : > { %9021 = vmatmul.msk.bf16.gmra.mxu1 %vm1579_vm0, %v4363_v6  ;;  %v12744_v62 = vld [vmem:[#allocation16_spill] sm:$0xff] }
 0x493   : > { %v4036_v52 = vadd.f32 %v4023_v9, %v11070_v40  ;;  %v3365_v17 = vadd.f32 %v12738_v51, %v3235_v19  ;;  %v12755_v51 = vld [vmem:[#allocation26_spill] sm:$0xff] }
 0x494   : > { %v3971_v56 = vpop.f32.mrf.mxu2 }
 0x495   : > { %v4049_v54 = vsel %vm1557_vm4, %v4036_v52, 0.0  ;;  %v3998_v27 = vadd.f32 %v3971_v56, %v3868_v55  ;;  %v4482_v8 = vld [vmem:[#allocation2 + $0x27] sm:$0xff]  ;;  %v3482_v46 = vadd.f32 %v12740_v33, %v3365_v17 }
 0x496   : > { %4062 = vst.msk [vmem:[#allocation2 + $0x30] sm:$0xff] %vm1579_vm0, %v4049_v54  ;;  %v4493_v1 = vpack.c.bf16 %v4482_v8, %v4352_v15  ;;  %v4090_v57 = vld [vmem:[#allocation2 + $0x25] sm:$0xff]  ;;  %v12743_v15 = vld [vmem:[#allocation20_spill] sm:$0xff] }
 0x497   : > { %v4011_v53 = vmul.f32 0.01, %v3998_v27  ;;  %v4223_v41 = vld [vmem:[#allocation2 + $0x26] sm:$0xff]  ;;  %v3612_v44 = vadd.f32 %v12742_v22, %v3482_v46  ;;  %v12757_v46 = vld [vmem:[#allocation17_spill] sm:$0xff] }
 0x498   : > { %9044 = vmatmul.msk.bf16.gmra.mxu2 %vm1579_vm0, %v4493_v1  ;;  %v12746_v52 = vld [vmem:[#allocation15_spill] sm:$0xff] }
 0x499   : > { %v4024_v40 = vmax.f32 %v3998_v27, %v4011_v53  ;;  %v3742_v53 = vadd.f32 %v12747_v2, %v3612_v44 }
 0x49b   : > { %v4037_v32 = vadd.f32 %v4024_v40, %v11067_v25  ;;  %v3740_v25 = vadd.f32 %v11212_v42, %v3610_v5  ;;  %v12748_v40 = vld [vmem:[#allocation23_spill] sm:$0xff] }
 0x49c   : > { %v3974_v23 = vpop.f32.mrf.mxu2 }
 0x49d   : > { %v4050_v16 = vsel %vm1558_vm5, %v4037_v32, 0.0  ;;  %v3999_v49 = vadd.f32 %v3974_v23, %v11214_v3  ;;  %v4091_v37 = vld [vmem:[#allocation2 + $0x2d] sm:$0xff]  ;;  %v3870_v3 = vadd.f32 %v11220_v14, %v3740_v25  ;;  %v2977_v14 = vadd.f32 %v11060_v58, %v12741_v20  ;;  %v9717_v25 = vld [vmem:[#allocation4 + $0x2d8] sm:$0xff] }
 0x49e   : > { %v4224_v38 = vld [vmem:[#allocation2 + $0x2e] sm:$0xff]  ;;  %4063 = vst.msk [vmem:[#allocation2 + $0x38] sm:$0xff] %vm1579_vm0, %v4050_v16  ;;  %v4101_v12 = vpack.c.bf16 %v4091_v37, %v4090_v57  ;;  %4674 = vmatpush.bf16.msrb.mxu3 %v9717_v25 }
 0x49f   : > { %v4354_v36 = vld [vmem:[#allocation2 + $0x2f] sm:$0xff]  ;;  %v4234_v34 = vpack.c.bf16 %v4224_v38, %v4223_v41  ;;  %v4012_v30 = vmul.f32 0.01, %v3999_v49  ;;  %v3107_v21 = vadd.f32 %v12744_v62, %v2977_v14  ;;  %v12750_v41 = vld [vmem:[#allocation14_spill] sm:$0xff] }
 0x4a0   : > { %v4364_v39 = vpack.c.bf16 %v4354_v36, %v4482_v8  ;;  %8976 = vmatmul.msk.bf16.gmra.mxu3 %vm1579_vm0, %v4101_v12  ;;  %v12749_v23 = vld [vmem:[#allocation32_spill] sm:$0xff]  ;;  %v9721_v62 = vld [vmem:[#allocation4 + $0x2f8] sm:$0xff] }
 0x4a1   : > { %8999 = vmatmul.msk.bf16.gmra.mxu0 %vm1579_vm0, %v4234_v34  ;;  %v4025_v47 = vmax.f32 %v3999_v49, %v4012_v30  ;;  %v3237_v5 = vadd.f32 %v12748_v40, %v3107_v21  ;;  %v3872_v57 = vadd.f32 %v12749_v23, %v3742_v53  ;;  %v12751_v49 = vld [vmem:[#allocation24_spill] sm:$0xff]  ;;  %v12753_v30 = vld [vmem:[#allocation19_spill] sm:$0xff]  ;;  %v9725_v21 = vld [vmem:[#allocation4 + $0x318] sm:$0xff] }
 0x4a2   : > { %9022 = vmatmul.msk.bf16.gmra.mxu1 %vm1579_vm0, %v4364_v39  ;;  %4804 = vmatpush.bf16.msrb.mxu0 %v9721_v62  ;;  %v9719_v23 = vld [vmem:[#allocation4 + $0x2e8] sm:$0xff] }
 0x4a3   : > { %v4038_v31 = vadd.f32 %v4025_v47, %v11086_v60  ;;  %v3367_v37 = vadd.f32 %v12751_v49, %v3237_v5  ;;  %4934 = vmatpush.bf16.msrb.mxu1 %v9725_v21  ;;  %v12762_v49 = vld [vmem:[#allocation21_spill] sm:$0xff] }
 0x4a4   : > { %v3976_v13 = vpop.f32.mrf.mxu2 }
 0x4a5   : > { %v4051_v42 = vsel %vm1559_vm6, %v4038_v31, 0.0  ;;  %v4000_v7 = vadd.f32 %v3976_v13, %v3870_v3  ;;  %v4484_v26 = vld [vmem:[#allocation2 + $0x37] sm:$0xff]  ;;  %v3484_v19 = vadd.f32 %v12753_v30, %v3367_v37 }
 0x4a6   : > { %4064 = vst.msk [vmem:[#allocation2 + $0x40] sm:$0xff] %vm1579_vm0, %v4051_v42  ;;  %v4494_v61 = vpack.c.bf16 %v4484_v26, %v4354_v36  ;;  %v4092_v6 = vld [vmem:[#allocation2 + $0x35] sm:$0xff] }
 0x4a7   : > { %v4013_v35 = vmul.f32 0.01, %v4000_v7  ;;  %v4225_v48 = vld [vmem:[#allocation2 + $0x36] sm:$0xff] }
 0x4a8   : > { %9045 = vmatmul.msk.bf16.gmra.mxu2 %vm1579_vm0, %v4494_v61  ;;  %v12754_v31 = vld [vmem:[#allocation33_spill] sm:$0xff] }
 0x4a9   : > { %v4026_v60 = vmax.f32 %v4000_v7, %v4013_v35  ;;  %v3614_v13 = vadd.f32 %v12754_v31, %v3484_v19  ;;  %v9728_v30 = vld [vmem:[#allocation4 + $0x330] sm:$0xff] }
 0x4aa   : > { %v5119_v19 = vld [vmem:[#allocation2 + $0x33] sm:$0xff] }
 0x4ab   : > { %v4039_v50 = vadd.f32 %v4026_v60, %v12743_v15 }
 0x4ac   : > { %v3979_v18 = vpop.f32.mrf.mxu2 }
 0x4ad   : > { %v4052_v55 = vsel %vm1560_vm7, %v4039_v50, 0.0  ;;  %v4001_v56 = vadd.f32 %v3979_v18, %v12746_v52  ;;  %v4093_v63 = vld [vmem:[#allocation2 + $0x3d] sm:$0xff] }
 0x4ae   : > { %v4226_v54 = vld [vmem:[#allocation2 + $0x3e] sm:$0xff]  ;;  %4065 = vst.msk [vmem:[#allocation2 + $0x48] sm:$0xff] %vm1579_vm0, %v4052_v55  ;;  %v4102_v58 = vpack.c.bf16 %v4093_v63, %v4092_v6 }
 0x4af   : > { %v4356_v27 = vld [vmem:[#allocation2 + $0x3f] sm:$0xff]  ;;  %v4235_v8 = vpack.c.bf16 %v4226_v54, %v4225_v48  ;;  %v4014_v10 = vmul.f32 0.01, %v4001_v56 }
 0x4b0   : > { %v4365_v1 = vpack.c.bf16 %v4356_v27, %v4484_v26  ;;  %8977 = vmatmul.msk.bf16.gmra.mxu3 %vm1579_vm0, %v4102_v58  ;;  %v12758_v50 = vld [vmem:[#allocation18_spill] sm:$0xff]  ;;  %v9716_v55 = vld [vmem:[#allocation4 + $0x2d0] sm:$0xff] }
 0x4b1   : > { %9000 = vmatmul.msk.bf16.gmra.mxu0 %vm1579_vm0, %v4235_v8  ;;  %v4027_v32 = vmax.f32 %v4001_v56, %v4014_v10  ;;  %v3744_v18 = vadd.f32 %v12758_v50, %v3614_v13  ;;  %v12759_v52 = vld [vmem:[#allocation34_spill] sm:$0xff]  ;;  %v12760_v63 = vld [vmem:[#allocation25_spill] sm:$0xff]  ;;  %4675 = vmatpush.bf16.msrb.mxu3 %v9716_v55 }
 0x4b2   : > { %9023 = vmatmul.msk.bf16.gmra.mxu1 %vm1579_vm0, %v4365_v1  ;;  %v9724_v58 = vld [vmem:[#allocation4 + $0x310] sm:$0xff] }
 0x4b3   : > { %v4040_v0 = vadd.f32 %v4027_v32, %v12750_v41  ;;  %v3874_v56 = vadd.f32 %v12759_v52, %v3744_v18  ;;  %4935 = vmatpush.bf16.msrb.mxu1 %v9724_v58  ;;  %v9715_v32 = vld [vmem:[#allocation4 + $0x2c8] sm:$0xff] }
 0x4b4   : > { %v3981_v16 = vpop.f32.mrf.mxu2  ;;  %v11380_v52 = vld [vmem:[#allocation2 + $0x18] sm:$0xff] }
 0x4b5   : > { %v4053_v36 = vsel %vm1561_vm8, %v4040_v0, 0.0  ;;  %v4002_v12 = vadd.f32 %v3981_v16, %v3872_v57  ;;  %v4486_v34 = vld [vmem:[#allocation2 + $0x47] sm:$0xff]  ;;  %v9723_v57 = vld [vmem:[#allocation4 + $0x308] sm:$0xff]  ;;  %4676 = vmatpush.bf16.msrb.mxu3 %v9715_v32 }
 0x4b6   : > { %4066 = vst.msk [vmem:[#allocation2 + $0x50] sm:$0xff] %vm1579_vm0, %v4053_v36  ;;  %v4495_v39 = vpack.c.bf16 %v4486_v34, %v4356_v27  ;;  %v4094_v7 = vld [vmem:[#allocation2 + $0x45] sm:$0xff]  ;;  %v9720_v27 = vld [vmem:[#allocation4 + $0x2f0] sm:$0xff] }
 0x4b7   : > { %v4015_v47 = vmul.f32 0.01, %v4002_v12  ;;  %v4227_v26 = vld [vmem:[#allocation2 + $0x46] sm:$0xff]  ;;  %4805 = vmatpush.bf16.msrb.mxu0 %v9720_v27  ;;  %4936 = vmatpush.bf16.msrb.mxu1 %v9723_v57  ;;  %v4726_v27 = vld [vmem:[#allocation2 + $0x11] sm:$0xff] }
 0x4b8   : > { %9046 = vmatmul.msk.bf16.gmra.mxu2 %vm1579_vm0, %v4495_v39  ;;  %v9729_v0 = vld [vmem:[#allocation4 + $0x338] sm:$0xff]  ;;  %v9714_v16 = vld [vmem:[#allocation4 + $0x2c0] sm:$0xff] }
 0x4b9   : > { %v4028_v3 = vmax.f32 %v4002_v12, %v4015_v47  ;;  %v9718_v36 = vld [vmem:[#allocation4 + $0x2e0] sm:$0xff]  ;;  %5064 = vmatpush.bf16.msra.mxu2 %v9729_v0  ;;  %4677 = vmatpush.bf16.msrb.mxu3 %v9714_v16 }
 0x4ba   : > { %v9722_v12 = vld [vmem:[#allocation4 + $0x300] sm:$0xff] }
 0x4bb   : > { %v4041_v17 = vadd.f32 %v4028_v3, %v12755_v51  ;;  %4806 = vmatpush.bf16.msrb.mxu0 %v9719_v23  ;;  %4937 = vmatpush.bf16.msrb.mxu1 %v9722_v12  ;;  %v4729_v32 = vld [vmem:[#allocation2 + $0x29] sm:$0xff]  ;;  %v4859_v23 = vld [vmem:[#allocation2 + $0x31] sm:$0xff] }
 0x4bc   : > { %v3984_v42 = vpop.f32.mrf.mxu2 }
 0x4bd   : > { %v4054_v33 = vsel %vm1562_vm9, %v4041_v17, 0.0  ;;  %v4003_v35 = vadd.f32 %v3984_v42, %v12757_v46  ;;  %v4095_v20 = vld [vmem:[#allocation2 + $0x4d] sm:$0xff]  ;;  %5065 = vmatpush.bf16.msra.mxu2 %v9728_v30  ;;  %v12764_v46 = vld [vmem:[#allocation22_spill] sm:$0xff] }
 0x4be   : > { %v4228_v14 = vld [vmem:[#allocation2 + $0x4e] sm:$0xff]  ;;  %4067 = vst.msk [vmem:[#allocation2 + $0x58] sm:$0xff] %vm1579_vm0, %v4054_v33  ;;  %v4103_v22 = vpack.c.bf16 %v4095_v20, %v4094_v7 }
 0x4bf   : > { %v4358_v60 = vld [vmem:[#allocation2 + $0x4f] sm:$0xff]  ;;  %v4236_v44 = vpack.c.bf16 %v4228_v14, %v4227_v26  ;;  %v4016_v6 = vmul.f32 0.01, %v4003_v35  ;;  %4807 = vmatpush.bf16.msrb.mxu0 %v9718_v36  ;;  %v11401_v36 = vld [vmem:[%s12614_s5 + $0x2] ss:$0 sm:$0xff] }
 0x4c0   : > { %v4366_v15 = vpack.c.bf16 %v4358_v60, %v4486_v34  ;;  %8978 = vmatmul.msk.bf16.gmra.mxu3 %vm1579_vm0, %v4103_v22  ;;  %v4988_v30 = vld [vmem:[#allocation2 + $0x2a] sm:$0xff] }
 0x4c1   : > { %9001 = vmatmul.msk.bf16.gmra.mxu0 %vm1579_vm0, %v4236_v44  ;;  %v4029_v48 = vmax.f32 %v4003_v35, %v4016_v6  ;;  %v9726_v44 = vld [vmem:[#allocation4 + $0x320] sm:$0xff] }
 0x4c2   : > { %9024 = vmatmul.msk.bf16.gmra.mxu1 %vm1579_vm0, %v4366_v15 }
 0x4c3   : > { %v4042_v54 = vadd.f32 %v4029_v48, %v12760_v63  ;;  %v4857_v63 = vld [vmem:[#allocation2 + $0x21] sm:$0xff] }
 0x4c4   : > { %v3986_v8 = vpop.f32.mrf.mxu2 }
 0x4c5   : > { %v4055_v2 = vsel %vm1563_vm10, %v4042_v54, 0.0  ;;  %v4004_v53 = vadd.f32 %v3986_v8, %v3874_v56  ;;  %v4488_v10 = vld [vmem:[#allocation2 + $0x57] sm:$0xff] }
 0x4c6   : > { %4068 = vst.msk [vmem:[#allocation2 + $0x60] sm:$0xff] %vm1579_vm0, %v4055_v2  ;;  %v4496_v40 = vpack.c.bf16 %v4488_v10, %v4358_v60  ;;  %v4096_v39 = vld [vmem:[#allocation2 + $0x55] sm:$0xff] }
 0x4c7   : > { %v4017_v5 = vmul.f32 0.01, %v4004_v53  ;;  %v4229_v25 = vld [vmem:[#allocation2 + $0x56] sm:$0xff] }
 0x4c8   : > { %9047 = vmatmul.msk.bf16.gmra.mxu2 %vm1579_vm0, %v4496_v40  ;;  %v4727_v56 = vld [vmem:[#allocation2 + $0x19] sm:$0xff]  ;;  %v11382_v54 = vld [vmem:[#allocation2 + $0x10] sm:$0xff] }
 0x4c9   : > { %v4030_v41 = vmax.f32 %v4004_v53, %v4017_v5  ;;  %v4609_v58 = vpack.c.bf16 %v11380_v52, %v11382_v54  ;;  %v4739_v8 = vpack.c.bf16 %v4727_v56, %v4726_v27  ;;  %v4869_v2 = vpack.c.bf16 %v4857_v63, %v4727_v56  ;;  %v4987_v53 = vld [vmem:[#allocation2 + $0x22] sm:$0xff]  ;;  %v4990_v56 = vld [vmem:[#allocation2 + $0x3a] sm:$0xff] }
 0x4ca   : > { %v11390_v5 = vld [vmem:[#allocation2 + $0x28] sm:$0xff] }
 0x4cb   : > { %v4043_v37 = vadd.f32 %v4030_v41, %v12762_v49  ;;  %v11392_v41 = vld [vmem:[#allocation2 + $0x20] sm:$0xff]  ;;  %v4740_v49 = vpack.c.bf16 %v4729_v32, %v4857_v63 }
 0x4cc   : > { %v3989_v34 = vpop.f32.mrf.mxu2  ;;  %v4610_v16 = vpack.c.bf16 %v11390_v5, %v11392_v41 }
 0x4cd   : > { %v4056_v47 = vsel %vm1564_vm11, %v4043_v37, 0.0  ;;  %v4005_v3 = vadd.f32 %v3989_v34, %v11247_v43  ;;  %v4097_v31 = vld [vmem:[#allocation2 + $0x5d] sm:$0xff]  ;;  %v9727_v43 = vld [vmem:[#allocation4 + $0x328] sm:$0xff]  ;;  %v4870_v37 = vpack.c.bf16 %v4859_v23, %v4729_v32 }
 0x4ce   : > { %v4230_v13 = vld [vmem:[#allocation2 + $0x5e] sm:$0xff]  ;;  %4069 = vst.msk [vmem:[#allocation2 + $0x68] sm:$0xff] %vm1579_vm0, %v4056_v47  ;;  %v4104_v17 = vpack.c.bf16 %v4097_v31, %v4096_v39  ;;  %5066 = vmatpush.bf16.msra.mxu2 %v9727_v43  ;;  %v4989_v34 = vld [vmem:[#allocation2 + $0x32] sm:$0xff] }
 0x4cf   : > { %v4360_v51 = vld [vmem:[#allocation2 + $0x5f] sm:$0xff]  ;;  %v4237_v42 = vpack.c.bf16 %v4230_v13, %v4229_v25  ;;  %v4018_v26 = vmul.f32 0.01, %v4005_v3  ;;  %v5000_v31 = vpack.c.bf16 %v4989_v34, %v4988_v30 }
 0x4d0   : > { %v4367_v7 = vpack.c.bf16 %v4360_v51, %v4488_v10  ;;  %8979 = vmatmul.msk.bf16.gmra.mxu3 %vm1579_vm0, %v4104_v17  ;;  %v4986_v10 = vld [vmem:[#allocation2 + $0x1a] sm:$0xff] }
 0x4d1   : > { %9002 = vmatmul.msk.bf16.gmra.mxu0 %vm1579_vm0, %v4237_v42  ;;  %v4031_v33 = vmax.f32 %v4005_v3, %v4018_v26  ;;  %v4999_v40 = vpack.c.bf16 %v4987_v53, %v4986_v10  ;;  %v11406_v42 = vld [vmem:[#allocation2 + $0x38] sm:$0xff]  ;;  %v4861_v43 = vld [vmem:[#allocation2 + $0x41] sm:$0xff] }
 0x4d2   : > { %9025 = vmatmul.msk.bf16.gmra.mxu1 %vm1579_vm0, %v4367_v7  ;;  %5067 = vmatpush.bf16.msra.mxu2 %v9726_v44  ;;  %v4731_v7 = vld [vmem:[#allocation2 + $0x39] sm:$0xff]  ;;  %v11422_v10 = vld [vmem:[#allocation2 + $0x48] sm:$0xff] }
 0x4d3   : > { %v4044_v35 = vadd.f32 %v4031_v33, %v12764_v46  ;;  %v4741_v44 = vpack.c.bf16 %v4731_v7, %v4859_v23  ;;  %12766 = vst [vmem:[#allocation27_spill] sm:$0xff] %v11422_v10 }
 0x4d4   : > { %v3991_v20 = vpop.f32.mrf.mxu2 }
 0x4d5   : > { %v4057_v60 = vsel %vm1565_vm12, %v4044_v35, 0.0  ;;  %v4490_v22 = vld [vmem:[#allocation2 + $0x67] sm:$0xff]  ;;  %v11411_v35 = vld [vmem:[#allocation2 + $0x30] sm:$0xff] }
 0x4d6   : > { %4070 = vst.msk [vmem:[#allocation2 + $0x70] sm:$0xff] %vm1579_vm0, %v4057_v60  ;;  %v4497_v15 = vpack.c.bf16 %v4490_v22, %v4360_v51  ;;  %v4098_v50 = vld [vmem:[#allocation2 + $0x65] sm:$0xff]  ;;  %v4368_v62 = vpack.c.bf16 %v4490_v22, %v4490_v22  ;;  %v4611_v22 = vpack.c.bf16 %v11406_v42, %v11411_v35 }
 0x4d7   : > { %v4231_v18 = vld [vmem:[#allocation2 + $0x66] sm:$0xff]  ;;  %v4105_v6 = vpack.c.bf16 %v4098_v50, %v4098_v50 }
 0x4d8   : > { %9048 = vmatmul.msk.bf16.gmra.mxu2 %vm1579_vm0, %v4497_v15  ;;  %v4238_v48 = vpack.c.bf16 %v4231_v18, %v4231_v18  ;;  %v4871_v15 = vpack.c.bf16 %v4861_v43, %v4731_v7 }
 0x4dd   : > { %v4491_v21 = vld [vmem:[#allocation2 + $0x6f] sm:$0xff] }
 0x4de   : > { %v4498_v55 = vpack.c.bf16 %v4491_v21, %v4491_v21 }
 0x4e0   : > { %8980 = vmatmul.msk.bf16.gmra.mxu3 %vm1579_vm0, %v4105_v6 }
 0x4e1   : > { %9003 = vmatmul.msk.bf16.gmra.mxu0 %vm1579_vm0, %v4238_v48  ;;  %v4991_v48 = vld [vmem:[#allocation2 + $0x42] sm:$0xff] }
 0x4e2   : > { %9026 = vmatmul.msk.bf16.gmra.mxu1 %vm1579_vm0, %v4368_v62 }
 0x4e8   : > { %9049 = vmatmul.msk.bf16.gmra.mxu2 %vm1579_vm0, %v4498_v55 }
 0x4f0   : > { %9066 = vmatmul.msk.bf16.vlgmr.msrb.gmra.mxu3 %vm1579_vm0, %v4609_v58  ;;  %v5001_v58 = vpack.c.bf16 %v4991_v48, %v4990_v56  ;;  %v11448_v48 = vld [vmem:[#allocation2 + $0x50] sm:$0xff] }
 0x4f1   : > { %9089 = vmatmul.msk.bf16.vlgmr.msrb.gmra.mxu0 %vm1579_vm0, %v4739_v8  ;;  %12768 = vst [vmem:[#allocation28_spill] sm:$0xff] %v11448_v48 }
 0x4f2   : > { %9112 = vmatmul.msk.bf16.vlgmr.msrb.gmra.mxu1 %vm1579_vm0, %v4869_v2 }
 0x4f8   : > { %9135 = vmatmul.msk.bf16.vlgmr.msra.gmra.mxu2 %vm1579_vm0, %v4999_v40  ;;  %v4733_v40 = vld [vmem:[#allocation2 + $0x49] sm:$0xff] }
 0x4f9   : > { %v4742_v34 = vpack.c.bf16 %v4733_v40, %v4861_v43 }
 0x4fe   : > { %v4302_v57 = vpop.f32.mrf.mxu0 }
 0x4ff   : > { %v4432_v0 = vpop.f32.mrf.mxu1 }
 0x500   : > { %9067 = vmatmul.msk.bf16.gmra.mxu3 %vm1579_vm0, %v4610_v16  ;;  %v11427_v16 = vld [vmem:[#allocation2 + $0x40] sm:$0xff] }
 0x501   : > { %9090 = vmatmul.msk.bf16.gmra.mxu0 %vm1579_vm0, %v4740_v49 }
 0x502   : > { %9113 = vmatmul.msk.bf16.gmra.mxu1 %vm1579_vm0, %v4870_v37 }
 0x503   : > { %v4169_v12 = vpop.f32.mrf.mxu3 }
 0x504   : > { %v4206_v39 = vadd.f32 %v11401_v36, %v4169_v12  ;;  %v4612_v12 = vpack.c.bf16 %v11422_v10, %v11427_v16  ;;  %v5128_v10 = vld [vmem:[#allocation2 + $0x7b] sm:$0xff] }
 0x506   : > { %v4304_v25 = vpop.f32.mrf.mxu0  ;;  %v4336_v47 = vadd.f32 %v4302_v57, %v4206_v39  ;;  %v4863_v57 = vld [vmem:[#allocation2 + $0x51] sm:$0xff] }
 0x507   : > { %v4434_v3 = vpop.f32.mrf.mxu1  ;;  %v4872_v39 = vpack.c.bf16 %v4863_v57, %v4733_v40  ;;  %v4994_v40 = vld [vmem:[#allocation2 + $0x5a] sm:$0xff] }
 0x508   : > { %9136 = vmatmul.msk.bf16.gmra.mxu2 %vm1579_vm0, %v5000_v31  ;;  %v4466_v13 = vadd.f32 %v4432_v0, %v4336_v47 }
 0x50b   : > { %v4171_v51 = vpop.f32.mrf.mxu3  ;;  %v4562_v17 = vpop.f32.mrf.mxu2 }
 0x50c   : > { %v4207_v26 = vadd.f32 %v11401_v36, %v4171_v51  ;;  %v11409_v33 = vadd.f32 %v4562_v17, %v4466_v13  ;;  %v4992_v17 = vld [vmem:[#allocation2 + $0x4a] sm:$0xff] }
 0x50e   : > { %v4307_v46 = vpop.f32.mrf.mxu0  ;;  %v4337_v20 = vadd.f32 %v4304_v25, %v4207_v26 }
 0x50f   : > { %v4437_v60 = vpop.f32.mrf.mxu1 }
 0x510   : > { %9068 = vmatmul.msk.bf16.gmra.mxu3 %vm1579_vm0, %v4611_v22  ;;  %v4467_v50 = vadd.f32 %v4434_v3, %v4337_v20  ;;  %v4993_v3 = vld [vmem:[#allocation2 + $0x52] sm:$0xff] }
 0x511   : > { %9091 = vmatmul.msk.bf16.gmra.mxu0 %vm1579_vm0, %v4741_v44  ;;  %v5002_v43 = vpack.c.bf16 %v4993_v3, %v4992_v17  ;;  %v11444_v44 = vld [vmem:[#allocation2 + $0x58] sm:$0xff]  ;;  %v11469_v17 = vld [vmem:[#allocation2 + $0x60] sm:$0xff] }
 0x512   : > { %9114 = vmatmul.msk.bf16.gmra.mxu1 %vm1579_vm0, %v4871_v15  ;;  %12767 = vst [vmem:[#allocation29_spill] sm:$0xff] %v11444_v44  ;;  %v4735_v15 = vld [vmem:[#allocation2 + $0x59] sm:$0xff]  ;;  %v4867_v3 = vld [vmem:[#allocation2 + $0x71] sm:$0xff] }
 0x513   : > { %v4174_v18 = vpop.f32.mrf.mxu3  ;;  %v4564_v6 = vpop.f32.mrf.mxu2  ;;  %v4743_v56 = vpack.c.bf16 %v4735_v15, %v4863_v57  ;;  %12770 = vst [vmem:[#allocation20_spill] sm:$0xff] %v11469_v17 }
 0x514   : > { %v4208_v62 = vadd.f32 %v11401_v36, %v4174_v18  ;;  %v11419_v21 = vadd.f32 %v4564_v6, %v4467_v50  ;;  %v4865_v18 = vld [vmem:[#allocation2 + $0x61] sm:$0xff] }
 0x516   : > { %v4309_v55 = vpop.f32.mrf.mxu0  ;;  %v4338_v63 = vadd.f32 %v4307_v46, %v4208_v62  ;;  %v9733_v46 = vld [vmem:[#allocation4 + $0x358] sm:$0xff] }
 0x517   : > { %v4439_v27 = vpop.f32.mrf.mxu1  ;;  %5194 = vmatpush.bf16.msra.mxu3 %v9733_v46 }
 0x518   : > { %9137 = vmatmul.msk.bf16.gmra.mxu2 %vm1579_vm0, %v5001_v58  ;;  %v4468_v8 = vadd.f32 %v4437_v60, %v4338_v63  ;;  %v4873_v63 = vpack.c.bf16 %v4865_v18, %v4735_v15 }
 0x51b   : > { %v4176_v2 = vpop.f32.mrf.mxu3  ;;  %v4567_v53 = vpop.f32.mrf.mxu2 }
 0x51c   : > { %v4209_v32 = vadd.f32 %v11401_v36, %v4176_v2  ;;  %v11425_v23 = vadd.f32 %v4567_v53, %v4468_v8  ;;  %v4995_v8 = vld [vmem:[#allocation2 + $0x62] sm:$0xff] }
 0x51d   : > { %v5003_v57 = vpack.c.bf16 %v4995_v8, %v4994_v40  ;;  %v4868_v40 = vld [vmem:[#allocation2 + $0x79] sm:$0xff] }
 0x51e   : > { %v4312_v0 = vpop.f32.mrf.mxu0  ;;  %v4339_v49 = vadd.f32 %v4309_v55, %v4209_v32  ;;  %v4613_v55 = vpack.c.bf16 %v11444_v44, %v11448_v48  ;;  %v9732_v32 = vld [vmem:[#allocation4 + $0x350] sm:$0xff] }
 0x51f   : > { %v4442_v37 = vpop.f32.mrf.mxu1  ;;  %5195 = vmatpush.bf16.msra.mxu3 %v9732_v32 }
 0x520   : > { %9069 = vmatmul.msk.bf16.gmra.mxu3 %vm1579_vm0, %v4612_v12  ;;  %v4469_v25 = vadd.f32 %v4439_v27, %v4339_v49  ;;  %v9731_v12 = vld [vmem:[#allocation4 + $0x348] sm:$0xff] }
 0x521   : > { %9092 = vmatmul.msk.bf16.gmra.mxu0 %vm1579_vm0, %v4742_v34 }
 0x522   : > { %9115 = vmatmul.msk.bf16.gmra.mxu1 %vm1579_vm0, %v4872_v39 }
 0x523   : > { %v4179_v30 = vpop.f32.mrf.mxu3  ;;  %v4569_v47 = vpop.f32.mrf.mxu2  ;;  %5196 = vmatpush.bf16.msra.mxu3 %v9731_v12 }
 0x524   : > { %v4210_v31 = vadd.f32 %v11401_v36, %v4179_v30  ;;  %v11435_v13 = vadd.f32 %v4569_v47, %v4469_v25  ;;  %v11465_v25 = vld [vmem:[#allocation2 + $0x68] sm:$0xff] }
 0x525   : > { %12769 = vst [vmem:[#allocation31_spill] sm:$0xff] %v11465_v25  ;;  %v4737_v30 = vld [vmem:[#allocation2 + $0x69] sm:$0xff]  ;;  %v4614_v46 = vpack.c.bf16 %v11465_v25, %v11469_v17 }
 0x526   : > { %v11437_v51 = vpop.f32.mrf.mxu0  ;;  %v4340_v7 = vadd.f32 %v4312_v0, %v4210_v31  ;;  %v5118_v25 = vld [vmem:[#allocation2 + $0x2b] sm:$0xff] }
 0x527   : > { %v11439_v26 = vpop.f32.mrf.mxu1 }
 0x528   : > { %9138 = vmatmul.msk.bf16.gmra.mxu2 %vm1579_vm0, %v5002_v43  ;;  %v4470_v20 = vadd.f32 %v4442_v37, %v4340_v7  ;;  %v9730_v7 = vld [vmem:[#allocation4 + $0x340] sm:$0xff] }
 0x529   : > { %5197 = vmatpush.bf16.msra.mxu3 %v9730_v7  ;;  %v4745_v7 = vpack.c.bf16 %v4867_v3, %v4867_v3 }
 0x52b   : > { %v11442_v60 = vpop.f32.mrf.mxu3  ;;  %v4572_v22 = vpop.f32.mrf.mxu2 }
 0x52c   : > { %v11446_v50 = vadd.f32 %v4572_v22, %v4470_v20  ;;  %v4744_v20 = vpack.c.bf16 %v4737_v30, %v4865_v18  ;;  %v4874_v22 = vpack.c.bf16 %v4867_v3, %v4737_v30 }
 0x52e   : > { %v4317_v6 = vpop.f32.mrf.mxu0 }
 0x52f   : > { %v4447_v62 = vpop.f32.mrf.mxu1 }
 0x530   : > { %9070 = vmatmul.msk.bf16.gmra.mxu3 %vm1579_vm0, %v4613_v55  ;;  %v4997_v55 = vld [vmem:[#allocation2 + $0x72] sm:$0xff] }
 0x531   : > { %9093 = vmatmul.msk.bf16.gmra.mxu0 %vm1579_vm0, %v4743_v56 }
 0x532   : > { %9116 = vmatmul.msk.bf16.gmra.mxu1 %vm1579_vm0, %v4873_v63 }
 0x533   : > { %v4184_v27 = vpop.f32.mrf.mxu3  ;;  %v11455_v58 = vpop.f32.mrf.mxu2 }
 0x534   : > { %v4212_v2 = vadd.f32 %v11401_v36, %v4184_v27 }
 0x536   : > { %v11458_v53 = vpop.f32.mrf.mxu0  ;;  %v4342_v0 = vadd.f32 %v4317_v6, %v4212_v2 }
 0x537   : > { %v11460_v49 = vpop.f32.mrf.mxu1 }
 0x538   : > { %9139 = vmatmul.msk.bf16.gmra.mxu2 %vm1579_vm0, %v5003_v57  ;;  %v4472_v37 = vadd.f32 %v4447_v62, %v4342_v0  ;;  %v4996_v62 = vld [vmem:[#allocation2 + $0x6a] sm:$0xff] }
 0x539   : > { %v5004_v18 = vpack.c.bf16 %v4997_v55, %v4996_v62  ;;  %v11486_v57 = vld [vmem:[#allocation2 + $0x70] sm:$0xff] }
 0x53a   : > { %12771 = vst [vmem:[#allocation16_spill] sm:$0xff] %v11486_v57 }
 0x53b   : > { %v11463_v34 = vpop.f32.mrf.mxu3  ;;  %v4577_v39 = vpop.f32.mrf.mxu2 }
 0x53c   : > { %v11467_v47 = vadd.f32 %v4577_v39, %v4472_v37  ;;  %v4875_v39 = vpack.c.bf16 %v4868_v40, %v4868_v40 }
 0x53e   : > { %v4322_v31 = vpop.f32.mrf.mxu0 }
 0x53f   : > { %v4452_v43 = vpop.f32.mrf.mxu1 }
 0x540   : > { %9071 = vmatmul.msk.bf16.gmra.mxu3 %vm1579_vm0, %v4614_v46 }
 0x541   : > { %9094 = vmatmul.msk.bf16.gmra.mxu0 %vm1579_vm0, %v4744_v20 }
 0x542   : > { %9117 = vmatmul.msk.bf16.gmra.mxu1 %vm1579_vm0, %v4874_v22 }
 0x543   : > { %v4189_v15 = vpop.f32.mrf.mxu3  ;;  %v11476_v6 = vpop.f32.mrf.mxu2 }
 0x544   : > { %v4214_v56 = vadd.f32 %v11401_v36, %v4189_v15 }
 0x546   : > { %v11479_v63 = vpop.f32.mrf.mxu0  ;;  %v4344_v27 = vadd.f32 %v4322_v31, %v4214_v56  ;;  %v4615_v31 = vpack.c.bf16 %v11486_v57, %v11486_v57 }
 0x547   : > { %v11481_v8 = vpop.f32.mrf.mxu1 }
 0x548   : > { %9140 = vmatmul.msk.bf16.gmra.mxu2 %vm1579_vm0, %v5004_v18  ;;  %v4474_v2 = vadd.f32 %v4452_v43, %v4344_v27  ;;  %v4998_v43 = vld [vmem:[#allocation2 + $0x7a] sm:$0xff] }
 0x549   : > { %v5005_v15 = vpack.c.bf16 %v4998_v43, %v4998_v43 }
 0x54b   : > { %v11484_v32 = vpop.f32.mrf.mxu3  ;;  %v4582_v0 = vpop.f32.mrf.mxu2 }
 0x54c   : > { %v11488_v37 = vadd.f32 %v4582_v0, %v4474_v2  ;;  %v5117_v2 = vld [vmem:[#allocation2 + $0x23] sm:$0xff] }
 0x54e   : > { %v4327_v12 = vpop.f32.mrf.mxu0 }
 0x54f   : > { %v4457_v30 = vpop.f32.mrf.mxu1 }
 0x550   : > { %9072 = vmatmul.msk.bf16.gmra.mxu3 %vm1579_vm0, %v4615_v31 }
 0x551   : > { %9095 = vmatmul.msk.bf16.gmra.mxu0 %vm1579_vm0, %v4745_v7 }
 0x552   : > { %9118 = vmatmul.msk.bf16.gmra.mxu1 %vm1579_vm0, %v4875_v39  ;;  %v5116_v39 = vld [vmem:[#allocation2 + $0x1b] sm:$0xff] }
 0x553   : > { %v4194_v46 = vpop.f32.mrf.mxu3  ;;  %v11495_v20 = vpop.f32.mrf.mxu2  ;;  %v5129_v7 = vpack.c.bf16 %v5117_v2, %v5116_v39  ;;  %v5130_v2 = vpack.c.bf16 %v5119_v19, %v5118_v25  ;;  %v5120_v25 = vld [vmem:[#allocation2 + $0x3b] sm:$0xff] }
 0x554   : > { %12772 = vst [vmem:[#allocation15_spill] sm:$0xff] %v11495_v20  ;;  %v4216_v22 = vadd.f32 %v11401_v36, %v4194_v46 }
 0x556   : > { %v11498_v62 = vpop.f32.mrf.mxu0  ;;  %v4346_v55 = vadd.f32 %v4327_v12, %v4216_v22 }
 0x557   : > { %12773 = vst [vmem:[#allocation30_spill] sm:$0xff] %v11498_v62  ;;  %v11500_v56 = vpop.f32.mrf.mxu1  ;;  %v5127_v62 = vld [vmem:[#allocation2 + $0x73] sm:$0xff] }
 0x558   : > { %12774 = vst [vmem:[#allocation23_spill] sm:$0xff] %v11500_v56  ;;  %9141 = vmatmul.msk.bf16.gmra.mxu2 %vm1579_vm0, %v5005_v15  ;;  %v4476_v3 = vadd.f32 %v4457_v30, %v4346_v55 }
 0x55b   : > { %v11503_v27 = vpop.f32.mrf.mxu3  ;;  %v4587_v18 = vpop.f32.mrf.mxu2 }
 0x55c   : > { %12775 = vst [vmem:[#allocation32_spill] sm:$0xff] %v11503_v27  ;;  %v11505_v40 = vadd.f32 %v4587_v18, %v4476_v3 }
 0x55e   : > { %v4332_v0 = vpop.f32.mrf.mxu0 }
 0x55f   : > { %v4462_v31 = vpop.f32.mrf.mxu1 }
 0x560   : > { %9158 = vmatmul.msk.bf16.vlgmr.msra.gmra.mxu3 %vm1579_vm0, %v5129_v7 }
 0x563   : > { %v4199_v43 = vpop.f32.mrf.mxu3  ;;  %v11508_v46 = vpop.f32.mrf.mxu2 }
 0x564   : > { %12776 = vst [vmem:[#allocation14_spill] sm:$0xff] %v11508_v46  ;;  %v4218_v12 = vadd.f32 %v11401_v36, %v4199_v43 }
 0x566   : > { %v4334_v22 = vpop.f32.mrf.mxu0  ;;  %v4348_v15 = vadd.f32 %v4332_v0, %v4218_v12 }
 0x567   : > { %v4464_v30 = vpop.f32.mrf.mxu1 }
 0x568   : > { %v4478_v55 = vadd.f32 %v4462_v31, %v4348_v15 }
 0x56b   : > { %v4201_v14 = vpop.f32.mrf.mxu3  ;;  %v4592_v57 = vpop.f32.mrf.mxu2 }
 0x56c   : > { %v11511_v3 = vadd.f32 %v4592_v57, %v4478_v55  ;;  %v5121_v57 = vld [vmem:[#allocation2 + $0x43] sm:$0xff] }
 0x56e   : > { %v4809_v18 = vpop.f32.mrf.mxu0 }
 0x56f   : > { %v4939_v1 = vpop.f32.mrf.mxu1 }
 0x570   : > { %9159 = vmatmul.msk.bf16.gmra.mxu3 %vm1579_vm0, %v5130_v2  ;;  %v5131_v2 = vpack.c.bf16 %v5121_v57, %v5120_v25 }
 0x573   : > { %v4594_v39 = vpop.f32.mrf.mxu2  ;;  %v4679_v7 = vpop.f32.mrf.mxu3 }
 0x574   : > { %v4713_v17 = vadd.f32 %v4679_v7, %v11409_v33 }
 0x576   : > { %v11515_v43 = vpop.f32.mrf.mxu0  ;;  %v4843_v0 = vadd.f32 %v4809_v18, %v4713_v17 }
 0x577   : > { %v11517_v12 = vpop.f32.mrf.mxu1 }
 0x578   : > { %v4973_v14 = vadd.f32 %v4939_v1, %v4843_v0 }
 0x57b   : > { %v4681_v31 = vpop.f32.mrf.mxu3  ;;  %v5069_v22 = vpop.f32.mrf.mxu2 }
 0x57c   : > { %v11520_v15 = vadd.f32 %v4681_v31, %v11419_v21  ;;  %v11522_v30 = vadd.f32 %v5069_v22, %v4973_v14  ;;  %v5123_v31 = vld [vmem:[#allocation2 + $0x53] sm:$0xff] }
 0x57e   : > { %v4814_v19 = vpop.f32.mrf.mxu0 }
 0x57f   : > { %v4944_v55 = vpop.f32.mrf.mxu1 }
 0x580   : > { %9160 = vmatmul.msk.bf16.gmra.mxu3 %vm1579_vm0, %v5131_v2  ;;  %v5122_v2 = vld [vmem:[#allocation2 + $0x4b] sm:$0xff] }
 0x581   : > { %v5132_v44 = vpack.c.bf16 %v5123_v31, %v5122_v2  ;;  %v5124_v2 = vld [vmem:[#allocation2 + $0x5b] sm:$0xff] }
 0x583   : > { %v4684_v33 = vpop.f32.mrf.mxu3  ;;  %v11525_v39 = vpop.f32.mrf.mxu2 }
 0x584   : > { %v4715_v17 = vadd.f32 %v4684_v33, %v11425_v23 }
 0x586   : > { %v11528_v1 = vpop.f32.mrf.mxu0  ;;  %v4845_v18 = vadd.f32 %v4814_v19, %v4715_v17 }
 0x587   : > { %v11530_v7 = vpop.f32.mrf.mxu1 }
 0x588   : > { %v4975_v21 = vadd.f32 %v4944_v55, %v4845_v18 }
 0x58b   : > { %v4686_v0 = vpop.f32.mrf.mxu3  ;;  %v5074_v14 = vpop.f32.mrf.mxu2 }
 0x58c   : > { %v11533_v22 = vadd.f32 %v4686_v0, %v11435_v13  ;;  %v11535_v57 = vadd.f32 %v5074_v14, %v4975_v21  ;;  %v5125_v14 = vld [vmem:[#allocation2 + $0x63] sm:$0xff] }
 0x58d   : > { %v5133_v38 = vpack.c.bf16 %v5125_v14, %v5124_v2 }
 0x58e   : > { %v4819_v25 = vpop.f32.mrf.mxu0 }
 0x58f   : > { %v4949_v61 = vpop.f32.mrf.mxu1 }
 0x590   : > { %9161 = vmatmul.msk.bf16.gmra.mxu3 %vm1579_vm0, %v5132_v44 }
 0x593   : > { %v4689_v23 = vpop.f32.mrf.mxu3  ;;  %v11538_v33 = vpop.f32.mrf.mxu2 }
 0x594   : > { %v4717_v19 = vadd.f32 %v4689_v23, %v11446_v50 }
 0x596   : > { %v11541_v55 = vpop.f32.mrf.mxu0  ;;  %v4847_v17 = vadd.f32 %v4819_v25, %v4717_v19 }
 0x597   : > { %v11543_v18 = vpop.f32.mrf.mxu1 }
 0x598   : > { %v4977_v13 = vadd.f32 %v4949_v61, %v4847_v17 }
 0x59b   : > { %v11545_v0 = vpop.f32.mrf.mxu3  ;;  %v5079_v21 = vpop.f32.mrf.mxu2 }
 0x59c   : > { %v11547_v46 = vadd.f32 %v5079_v21, %v4977_v13  ;;  %v5126_v21 = vld [vmem:[#allocation2 + $0x6b] sm:$0xff] }
 0x59d   : > { %v5134_v2 = vpack.c.bf16 %v5127_v62, %v5126_v21  ;;  %v5135_v62 = vpack.c.bf16 %v5128_v10, %v5128_v10  ;;  %v9737_v21 = vld [vmem:[#allocation4 + $0x378] sm:$0xff] }
 0x59e   : > { %v4824_v31 = vpop.f32.mrf.mxu0  ;;  %5404 = vmatpush.bf16.msra.mxu0 %v9737_v21 }
 0x59f   : > { %v4954_v44 = vpop.f32.mrf.mxu1 }
 0x5a0   : > { %9162 = vmatmul.msk.bf16.gmra.mxu3 %vm1579_vm0, %v5133_v38 }
 0x5a3   : > { %v4694_v56 = vpop.f32.mrf.mxu3  ;;  %v11550_v50 = vpop.f32.mrf.mxu2 }
 0x5a4   : > { %v4719_v25 = vadd.f32 %v4694_v56, %v11467_v47 }
 0x5a6   : > { %v11553_v23 = vpop.f32.mrf.mxu0  ;;  %v4849_v61 = vadd.f32 %v4824_v31, %v4719_v25 }
 0x5a7   : > { %v11555_v19 = vpop.f32.mrf.mxu1 }
 0x5a8   : > { %v4979_v17 = vadd.f32 %v4954_v44, %v4849_v61 }
 0x5ab   : > { %v11557_v48 = vpop.f32.mrf.mxu3  ;;  %v5084_v13 = vpop.f32.mrf.mxu2 }
 0x5ac   : > { %v11559_v9 = vadd.f32 %v5084_v13, %v4979_v17 }
 0x5ae   : > { %v4829_v14 = vpop.f32.mrf.mxu0 }
 0x5af   : > { %v4959_v38 = vpop.f32.mrf.mxu1 }
 0x5b0   : > { %9163 = vmatmul.msk.bf16.gmra.mxu3 %vm1579_vm0, %v5134_v2 }
 0x5b3   : > { %v4699_v27 = vpop.f32.mrf.mxu3  ;;  %v11562_v47 = vpop.f32.mrf.mxu2 }
 0x5b4   : > { %v4721_v56 = vadd.f32 %v4699_v27, %v11488_v37 }
 0x5b6   : > { %v11565_v31 = vpop.f32.mrf.mxu0  ;;  %v4851_v44 = vadd.f32 %v4829_v14, %v4721_v56 }
 0x5b7   : > { %12777 = vst [vmem:[#allocation24_spill] sm:$0xff] %v11565_v31  ;;  %v11567_v25 = vpop.f32.mrf.mxu1  ;;  %v9740_v31 = vld [vmem:[#allocation4 + $0x390] sm:$0xff] }
 0x5b8   : > { %12778 = vst [vmem:[#allocation19_spill] sm:$0xff] %v11567_v25  ;;  %v4981_v61 = vadd.f32 %v4959_v38, %v4851_v44 }
 0x5bb   : > { %v11569_v20 = vpop.f32.mrf.mxu3  ;;  %v5089_v17 = vpop.f32.mrf.mxu2 }
 0x5bc   : > { %12779 = vst [vmem:[#allocation33_spill] sm:$0xff] %v11569_v20  ;;  %v11571_v13 = vadd.f32 %v5089_v17, %v4981_v61  ;;  %v9741_v61 = vld [vmem:[#allocation4 + $0x398] sm:$0xff] }
 0x5bd   : > { %v9745_v17 = vld [vmem:[#allocation4 + $0x3b8] sm:$0xff]  ;;  %5537 = vmatpush.bf16.msra.mxu1 %v9741_v61 }
 0x5be   : > { %12780 = vst [vmem:[#allocation26_spill] sm:$0xff] %v11571_v13  ;;  %v4834_v2 = vpop.f32.mrf.mxu0  ;;  %5667 = vmatpush.bf16.msrb.mxu2 %v9745_v17  ;;  %v9734_v17 = vld [vmem:[#allocation4 + $0x360] sm:$0xff] }
 0x5bf   : > { %v4964_v59 = vpop.f32.mrf.mxu1 }
 0x5c0   : > { %9164 = vmatmul.msk.bf16.gmra.mxu3 %vm1579_vm0, %v5135_v62  ;;  %v9736_v62 = vld [vmem:[#allocation4 + $0x370] sm:$0xff] }
 0x5c1   : > { %5405 = vmatpush.bf16.msra.mxu0 %v9736_v62  ;;  %5538 = vmatpush.bf16.msra.mxu1 %v9740_v31  ;;  %v9748_v62 = vld [vmem:[#allocation4 + $0x3d0] sm:$0xff] }
 0x5c3   : > { %v4704_v37 = vpop.f32.mrf.mxu3  ;;  %v11574_v27 = vpop.f32.mrf.mxu2 }
 0x5c4   : > { %12781 = vst [vmem:[#allocation17_spill] sm:$0xff] %v11574_v27  ;;  %v4723_v14 = vadd.f32 %v4704_v37, %v11505_v40  ;;  %v9744_v27 = vld [vmem:[#allocation4 + $0x3b0] sm:$0xff]  ;;  %v9739_v37 = vld [vmem:[#allocation4 + $0x388] sm:$0xff] }
 0x5c5   : > { %5668 = vmatpush.bf16.msrb.mxu2 %v9744_v27  ;;  %5539 = vmatpush.bf16.msra.mxu1 %v9739_v37  ;;  %v9747_v37 = vld [vmem:[#allocation4 + $0x3c8] sm:$0xff] }
 0x5c6   : > { %v11577_v56 = vpop.f32.mrf.mxu0  ;;  %v4853_v38 = vadd.f32 %v4834_v2, %v4723_v14  ;;  %v9735_v2 = vld [vmem:[#allocation4 + $0x368] sm:$0xff]  ;;  %v9749_v14 = vld [vmem:[#allocation4 + $0x3d8] sm:$0xff] }
 0x5c7   : > { %12782 = vst [vmem:[#allocation18_spill] sm:$0xff] %v11577_v56  ;;  %v11579_v44 = vpop.f32.mrf.mxu1  ;;  %5406 = vmatpush.bf16.msra.mxu0 %v9735_v2  ;;  %5797 = vmatpush.bf16.msrb.mxu3 %v9749_v14  ;;  %v9746_v14 = vld [vmem:[#allocation4 + $0x3c0] sm:$0xff] }
 0x5c8   : > { %12783 = vst [vmem:[#allocation34_spill] sm:$0xff] %v11579_v44  ;;  %v4983_v25 = vadd.f32 %v4964_v59, %v4853_v38  ;;  %v9743_v59 = vld [vmem:[#allocation4 + $0x3a8] sm:$0xff]  ;;  %v9742_v44 = vld [vmem:[#allocation4 + $0x3a0] sm:$0xff] }
 0x5c9   : > { %5669 = vmatpush.bf16.msrb.mxu2 %v9743_v59 }
 0x5cb   : > { %v11581_v10 = vpop.f32.mrf.mxu3  ;;  %v5094_v21 = vpop.f32.mrf.mxu2  ;;  %5407 = vmatpush.bf16.msra.mxu0 %v9734_v17  ;;  %5798 = vmatpush.bf16.msrb.mxu3 %v9748_v62 }
 0x5cc   : > { %12784 = vst [vmem:[#allocation25_spill] sm:$0xff] %v11581_v10  ;;  %v11583_v13 = vadd.f32 %v5094_v21, %v4983_v25  ;;  %v9738_v21 = vld [vmem:[#allocation4 + $0x380] sm:$0xff] }
 0x5cd   : > { %5540 = vmatpush.bf16.msra.mxu1 %v9738_v21  ;;  %5670 = vmatpush.bf16.msrb.mxu2 %v9742_v44 }
 0x5ce   : > { %12785 = vst [vmem:[#allocation21_spill] sm:$0xff] %v11583_v13  ;;  %v4839_v20 = vpop.f32.mrf.mxu0 }
 0x5cf   : > { %v4969_v40 = vpop.f32.mrf.mxu1  ;;  %5799 = vmatpush.bf16.msrb.mxu3 %v9747_v37 }
 0x5d3   : > { %v4709_v38 = vpop.f32.mrf.mxu3  ;;  %v11585_v61 = vpop.f32.mrf.mxu2  ;;  %5800 = vmatpush.bf16.msrb.mxu3 %v9746_v14 }
 0x5d4   : > { %v4725_v25 = vadd.f32 %v4709_v38, %v11511_v3 }
 0x5d6   : > { %v4841_v13 = vpop.f32.mrf.mxu0  ;;  %v4855_v31 = vadd.f32 %v4839_v20, %v4725_v25 }
 0x5d7   : > { %v4971_v27 = vpop.f32.mrf.mxu1  ;;  %v4844_v13 = vadd.f32 %v11515_v43, %v11520_v15  ;;  %v5326_v15 = vld [vmem:[#allocation2 + $0x5] sm:$0xff] }
 0x5d8   : > { %v4985_v2 = vadd.f32 %v4969_v40, %v4855_v31 }
 0x5d9   : > { %v4974_v44 = vadd.f32 %v11517_v12, %v4844_v13 }
 0x5db   : > { %v4711_v56 = vpop.f32.mrf.mxu3  ;;  %v5099_v10 = vpop.f32.mrf.mxu2  ;;  %v5104_v40 = vadd.f32 %v11525_v39, %v4974_v44  ;;  %v4211_v39 = vadd.f32 %v11401_v36, %v11442_v60 }
 0x5dc   : > { %v11588_v59 = vadd.f32 %v5099_v10, %v4985_v2  ;;  %v5589_v2 = vld [vmem:[#allocation2 + $0x7] sm:$0xff] }
 0x5dd   : > { %v4341_v60 = vadd.f32 %v11437_v51, %v4211_v39 }
 0x5e3   : > { %v5199_v3 = vpop.f32.mrf.mxu3  ;;  %v5101_v38 = vpop.f32.mrf.mxu2 }
 0x5e4   : > { %v5233_v20 = vadd.f32 %v5199_v3, %v11522_v30  ;;  %v5459_v30 = vld [vmem:[#allocation2 + $0x6] sm:$0xff] }
 0x5e6   : > { %v5246_v25 = vmul.f32 0.01, %v5233_v20 }
 0x5e8   : > { %v5259_v17 = vmax.f32 %v5233_v20, %v5246_v25 }
 0x5ea   : > { %v5272_v56 = vadd.f32 %v5259_v17, %v11382_v54  ;;  %v4846_v54 = vadd.f32 %v11528_v1, %v11533_v22 }
 0x5eb   : > { %v5201_v21 = vpop.f32.mrf.mxu3 }
 0x5ec   : > { %v5285_v10 = vsel %vm1553_vm15, %v5272_v56, 0.0  ;;  %v5234_v62 = vadd.f32 %v5201_v21, %v5104_v40  ;;  %v4976_v1 = vadd.f32 %v11530_v7, %v4846_v54  ;;  %v4471_v56 = vadd.f32 %v11439_v26, %v4341_v60 }
 0x5ed   : > { %5298 = vst.msk [vmem:[#allocation2 + $0x10] sm:$0xff] %vm1579_vm0, %v5285_v10 }
 0x5ee   : > { %v5247_v31 = vmul.f32 0.01, %v5234_v62  ;;  %v4601_v7 = vadd.f32 %v11455_v58, %v4471_v56 }
 0x5f0   : > { %v5260_v27 = vmax.f32 %v5234_v62, %v5247_v31 }
 0x5f2   : > { %v5273_v43 = vadd.f32 %v5260_v27, %v11380_v52 }
 0x5f3   : > { %v5204_v12 = vpop.f32.mrf.mxu3 }
 0x5f4   : > { %v5286_v37 = vsel %vm1554_vm1, %v5273_v43, 0.0  ;;  %v5235_v14 = vadd.f32 %v5204_v12, %v11535_v57  ;;  %v5327_v3 = vld [vmem:[#allocation2 + $0xd] sm:$0xff]  ;;  %v5106_v57 = vadd.f32 %v11538_v33, %v4976_v1  ;;  %v4718_v33 = vadd.f32 %v11545_v0, %v4601_v7 }
 0x5f5   : > { %v5460_v38 = vld [vmem:[#allocation2 + $0xe] sm:$0xff]  ;;  %5299 = vst.msk [vmem:[#allocation2 + $0x18] sm:$0xff] %vm1579_vm0, %v5286_v37  ;;  %v5339_v52 = vpack.c.bf16 %v5327_v3, %v5326_v15 }
 0x5f6   : > { %v5590_v13 = vld [vmem:[#allocation2 + $0xf] sm:$0xff]  ;;  %v5472_v20 = vpack.c.bf16 %v5460_v38, %v5459_v30  ;;  %v5248_v44 = vmul.f32 0.01, %v5235_v14  ;;  %v4213_v30 = vadd.f32 %v11401_v36, %v11463_v34 }
 0x5f7   : > { %v5602_v25 = vpack.c.bf16 %v5590_v13, %v5589_v2  ;;  %9182 = vmatmul.msk.bf16.vlgmr.msra.gmra.mxu0 %vm1579_vm0, %v5339_v52  ;;  %v4848_v2 = vadd.f32 %v11541_v55, %v4718_v33 }
 0x5f8   : > { %9205 = vmatmul.msk.bf16.vlgmr.msra.gmra.mxu1 %vm1579_vm0, %v5472_v20  ;;  %v5261_v22 = vmax.f32 %v5235_v14, %v5248_v44  ;;  %v4343_v34 = vadd.f32 %v11458_v53, %v4213_v30 }
 0x5f9   : > { %9228 = vmatmul.msk.bf16.vlgmr.msrb.gmra.mxu2 %vm1579_vm0, %v5602_v25  ;;  %v4978_v55 = vadd.f32 %v11543_v18, %v4848_v2 }
 0x5fa   : > { %v5274_v17 = vadd.f32 %v5261_v22, %v11392_v41  ;;  %v4473_v20 = vadd.f32 %v11460_v49, %v4343_v34  ;;  %v12791_v34 = vld [vmem:[#allocation24_spill] sm:$0xff] }
 0x5fb   : > { %v5206_v40 = vpop.f32.mrf.mxu3 }
 0x5fc   : > { %v5287_v21 = vsel %vm1555_vm2, %v5274_v17, 0.0  ;;  %v5236_v10 = vadd.f32 %v5206_v40, %v5106_v57  ;;  %v5720_v62 = vld [vmem:[#allocation2 + $0x17] sm:$0xff]  ;;  %v4603_v18 = vadd.f32 %v11476_v6, %v4473_v20  ;;  %v4215_v40 = vadd.f32 %v11401_v36, %v11484_v32 }
 0x5fd   : > { %5300 = vst.msk [vmem:[#allocation2 + $0x20] sm:$0xff] %vm1579_vm0, %v5287_v21  ;;  %v5732_v51 = vpack.c.bf16 %v5720_v62, %v5590_v13  ;;  %v5328_v26 = vld [vmem:[#allocation2 + $0x15] sm:$0xff] }
 0x5fe   : > { %v5249_v31 = vmul.f32 0.01, %v5236_v10  ;;  %v5461_v15 = vld [vmem:[#allocation2 + $0x16] sm:$0xff]  ;;  %v4345_v32 = vadd.f32 %v11479_v63, %v4215_v40 }
 0x5ff   : > { %9251 = vmatmul.msk.bf16.vlgmr.msrb.gmra.mxu3 %vm1579_vm0, %v5732_v51  ;;  %v12797_v40 = vld [vmem:[#allocation28_spill] sm:$0xff] }
 0x600   : > { %v5262_v27 = vmax.f32 %v5236_v10, %v5249_v31 }
 0x602   : > { %v5275_v41 = vadd.f32 %v5262_v27, %v11390_v5 }
 0x603   : > { %v5209_v43 = vpop.f32.mrf.mxu3 }
 0x604   : > { %v5288_v12 = vsel %vm1556_vm3, %v5275_v41, 0.0  ;;  %v5237_v58 = vadd.f32 %v5209_v43, %v11547_v46  ;;  %v5329_v39 = vld [vmem:[#allocation2 + $0x1d] sm:$0xff]  ;;  %v5108_v46 = vadd.f32 %v11550_v50, %v4978_v55  ;;  %v4720_v50 = vadd.f32 %v11557_v48, %v4603_v18 }
 0x605   : > { %v5462_v54 = vld [vmem:[#allocation2 + $0x1e] sm:$0xff]  ;;  %5301 = vst.msk [vmem:[#allocation2 + $0x28] sm:$0xff] %vm1579_vm0, %v5288_v12  ;;  %v5340_v0 = vpack.c.bf16 %v5329_v39, %v5328_v26  ;;  %v4475_v43 = vadd.f32 %v11481_v8, %v4345_v32  ;;  %v12787_v12 = vld [vmem:[#allocation15_spill] sm:$0xff] }
 0x606   : > { %v5592_v37 = vld [vmem:[#allocation2 + $0x1f] sm:$0xff]  ;;  %v5473_v5 = vpack.c.bf16 %v5462_v54, %v5461_v15  ;;  %v5250_v3 = vmul.f32 0.01, %v5237_v58  ;;  %v4850_v56 = vadd.f32 %v11553_v23, %v4720_v50 }
 0x607   : > { %v5603_v14 = vpack.c.bf16 %v5592_v37, %v5720_v62  ;;  %9183 = vmatmul.msk.bf16.gmra.mxu0 %vm1579_vm0, %v5340_v0  ;;  %v12788_v39 = vld [vmem:[#allocation33_spill] sm:$0xff]  ;;  %v12800_v32 = vld [vmem:[#allocation14_spill] sm:$0xff] }
 0x608   : > { %9206 = vmatmul.msk.bf16.gmra.mxu1 %vm1579_vm0, %v5473_v5  ;;  %v5263_v38 = vmax.f32 %v5237_v58, %v5250_v3  ;;  %v4980_v23 = vadd.f32 %v11555_v19, %v4850_v56  ;;  %v4605_v19 = vadd.f32 %v12787_v12, %v4475_v43  ;;  %v12802_v43 = vld [vmem:[#allocation29_spill] sm:$0xff]  ;;  %v12803_v12 = vld [vmem:[#allocation18_spill] sm:$0xff] }
 0x609   : > { %9229 = vmatmul.msk.bf16.gmra.mxu2 %vm1579_vm0, %v5603_v14  ;;  %v12790_v14 = vld [vmem:[#allocation32_spill] sm:$0xff] }
 0x60a   : > { %v5276_v13 = vadd.f32 %v5263_v38, %v11411_v35  ;;  %v4217_v3 = vadd.f32 %v11401_v36, %v12790_v14  ;;  %v12794_v36 = vld [vmem:[#allocation30_spill] sm:$0xff] }
 0x60b   : > { %v5211_v52 = vpop.f32.mrf.mxu3 }
 0x60c   : > { %v5289_v25 = vsel %vm1557_vm4, %v5276_v13, 0.0  ;;  %v5238_v44 = vadd.f32 %v5211_v52, %v5108_v46  ;;  %v5722_v60 = vld [vmem:[#allocation2 + $0x27] sm:$0xff]  ;;  %v4347_v50 = vadd.f32 %v12794_v36, %v4217_v3 }
 0x60d   : > { %5302 = vst.msk [vmem:[#allocation2 + $0x30] sm:$0xff] %vm1579_vm0, %v5289_v25  ;;  %v5733_v53 = vpack.c.bf16 %v5722_v60, %v5592_v37  ;;  %v5330_v49 = vld [vmem:[#allocation2 + $0x25] sm:$0xff] }
 0x60e   : > { %v5251_v1 = vmul.f32 0.01, %v5238_v44  ;;  %v5463_v17 = vld [vmem:[#allocation2 + $0x26] sm:$0xff] }
 0x60f   : > { %9252 = vmatmul.msk.bf16.gmra.mxu3 %vm1579_vm0, %v5733_v53  ;;  %v12793_v13 = vld [vmem:[#allocation26_spill] sm:$0xff] }
 0x610   : > { %v5264_v22 = vmax.f32 %v5238_v44, %v5251_v1 }
 0x612   : > { %v5277_v35 = vadd.f32 %v5264_v22, %v11406_v42  ;;  %v12795_v22 = vld [vmem:[#allocation19_spill] sm:$0xff] }
 0x613   : > { %v5214_v57 = vpop.f32.mrf.mxu3 }
 0x614   : > { %v5290_v21 = vsel %vm1558_vm5, %v5277_v35, 0.0  ;;  %v5239_v6 = vadd.f32 %v5214_v57, %v11559_v9  ;;  %v5331_v10 = vld [vmem:[#allocation2 + $0x2d] sm:$0xff]  ;;  %v5110_v9 = vadd.f32 %v11562_v47, %v4980_v23  ;;  %v4722_v47 = vadd.f32 %v12788_v39, %v4605_v19 }
 0x615   : > { %v5464_v62 = vld [vmem:[#allocation2 + $0x2e] sm:$0xff]  ;;  %5303 = vst.msk [vmem:[#allocation2 + $0x38] sm:$0xff] %vm1579_vm0, %v5290_v21  ;;  %v5341_v48 = vpack.c.bf16 %v5331_v10, %v5330_v49  ;;  %v12796_v49 = vld [vmem:[#allocation17_spill] sm:$0xff] }
 0x616   : > { %v5594_v51 = vld [vmem:[#allocation2 + $0x2f] sm:$0xff]  ;;  %v5474_v42 = vpack.c.bf16 %v5464_v62, %v5463_v17  ;;  %v5252_v31 = vmul.f32 0.01, %v5239_v6  ;;  %v4852_v55 = vadd.f32 %v12791_v34, %v4722_v47  ;;  %v12805_v47 = vld [vmem:[#allocation21_spill] sm:$0xff]  ;;  %v12806_v34 = vld [vmem:[#allocation34_spill] sm:$0xff] }
 0x617   : > { %v5604_v7 = vpack.c.bf16 %v5594_v51, %v5722_v60  ;;  %9184 = vmatmul.msk.bf16.gmra.mxu0 %vm1579_vm0, %v5341_v48  ;;  %v6358_v36 = vld [vmem:[#allocation2 + $0x2b] sm:$0xff] }
 0x618   : > { %9207 = vmatmul.msk.bf16.gmra.mxu1 %vm1579_vm0, %v5474_v42  ;;  %v5265_v33 = vmax.f32 %v5239_v6, %v5252_v31  ;;  %v4982_v35 = vadd.f32 %v12795_v22, %v4852_v55  ;;  %v12798_v6 = vld [vmem:[#allocation23_spill] sm:$0xff]  ;;  %v9753_v31 = vld [vmem:[#allocation4 + $0x3f8] sm:$0xff] }
 0x619   : > { %9230 = vmatmul.msk.bf16.gmra.mxu2 %vm1579_vm0, %v5604_v7  ;;  %v4477_v10 = vadd.f32 %v12798_v6, %v4347_v50  ;;  %5914 = vmatpush.bf16.msrb.mxu0 %v9753_v31  ;;  %v9750_v6 = vld [vmem:[#allocation4 + $0x3e0] sm:$0xff] }
 0x61a   : > { %v5278_v27 = vadd.f32 %v5265_v33, %v11427_v16  ;;  %v12789_v16 = vld [vmem:[#allocation27_spill] sm:$0xff]  ;;  %v5112_v17 = vadd.f32 %v12796_v49, %v4982_v35 }
 0x61b   : > { %v5216_v41 = vpop.f32.mrf.mxu3  ;;  %v4607_v23 = vadd.f32 %v12800_v32, %v4477_v10  ;;  %v12809_v10 = vld [vmem:[#allocation31_spill] sm:$0xff] }
 0x61c   : > { %v5291_v15 = vsel %vm1559_vm6, %v5278_v27, 0.0  ;;  %v5240_v30 = vadd.f32 %v5216_v41, %v5110_v9  ;;  %v5724_v2 = vld [vmem:[#allocation2 + $0x37] sm:$0xff] }
 0x61d   : > { %5304 = vst.msk [vmem:[#allocation2 + $0x40] sm:$0xff] %vm1579_vm0, %v5291_v15  ;;  %v5734_v63 = vpack.c.bf16 %v5724_v2, %v5594_v51  ;;  %v5332_v8 = vld [vmem:[#allocation2 + $0x35] sm:$0xff] }
 0x61e   : > { %v5253_v58 = vmul.f32 0.01, %v5240_v30  ;;  %v5465_v5 = vld [vmem:[#allocation2 + $0x36] sm:$0xff] }
 0x61f   : > { %9253 = vmatmul.msk.bf16.gmra.mxu3 %vm1579_vm0, %v5734_v63  ;;  %v12801_v9 = vld [vmem:[#allocation25_spill] sm:$0xff] }
 0x620   : > { %v5266_v54 = vmax.f32 %v5240_v30, %v5253_v58  ;;  %v4724_v27 = vadd.f32 %v12801_v9, %v4607_v23  ;;  %v9764_v23 = vld [vmem:[#allocation4 + $0x450] sm:$0xff] }
 0x622   : > { %v5279_v37 = vadd.f32 %v5266_v54, %v12789_v16  ;;  %v4854_v19 = vadd.f32 %v12803_v12, %v4724_v27 }
 0x623   : > { %v5219_v0 = vpop.f32.mrf.mxu3 }
 0x624   : > { %v5292_v46 = vsel %vm1560_vm7, %v5279_v37, 0.0  ;;  %v5241_v52 = vadd.f32 %v5219_v0, %v12793_v13  ;;  %v5333_v20 = vld [vmem:[#allocation2 + $0x3d] sm:$0xff]  ;;  %v4984_v55 = vadd.f32 %v12806_v34, %v4854_v19 }
 0x625   : > { %v5466_v25 = vld [vmem:[#allocation2 + $0x3e] sm:$0xff]  ;;  %5305 = vst.msk [vmem:[#allocation2 + $0x48] sm:$0xff] %vm1579_vm0, %v5292_v46  ;;  %v5342_v60 = vpack.c.bf16 %v5333_v20, %v5332_v8 }
 0x626   : > { %v5596_v44 = vld [vmem:[#allocation2 + $0x3f] sm:$0xff]  ;;  %v5475_v53 = vpack.c.bf16 %v5466_v25, %v5465_v5  ;;  %v5254_v1 = vmul.f32 0.01, %v5241_v52  ;;  %v5114_v25 = vadd.f32 %v11585_v61, %v4984_v55  ;;  %v9751_v61 = vld [vmem:[#allocation4 + $0x3e8] sm:$0xff] }
 0x627   : > { %v5605_v18 = vpack.c.bf16 %v5596_v44, %v5724_v2  ;;  %9185 = vmatmul.msk.bf16.gmra.mxu0 %vm1579_vm0, %v5342_v60  ;;  %v9757_v13 = vld [vmem:[#allocation4 + $0x418] sm:$0xff]  ;;  %v9752_v20 = vld [vmem:[#allocation4 + $0x3f0] sm:$0xff] }
 0x628   : > { %9208 = vmatmul.msk.bf16.gmra.mxu1 %vm1579_vm0, %v5475_v53  ;;  %v5267_v57 = vmax.f32 %v5241_v52, %v5254_v1  ;;  %v9761_v52 = vld [vmem:[#allocation4 + $0x438] sm:$0xff]  ;;  %v9756_v53 = vld [vmem:[#allocation4 + $0x410] sm:$0xff]  ;;  %5915 = vmatpush.bf16.msrb.mxu0 %v9752_v20 }
 0x629   : > { %9231 = vmatmul.msk.bf16.gmra.mxu2 %vm1579_vm0, %v5605_v18  ;;  %6044 = vmatpush.bf16.msrb.mxu1 %v9757_v13  ;;  %v9760_v18 = vld [vmem:[#allocation4 + $0x430] sm:$0xff] }
 0x62a   : > { %v5280_v56 = vadd.f32 %v5267_v57, %v12797_v40  ;;  %6174 = vmatpush.bf16.msra.mxu2 %v9761_v52  ;;  %v9759_v40 = vld [vmem:[#allocation4 + $0x428] sm:$0xff] }
 0x62b   : > { %v5221_v21 = vpop.f32.mrf.mxu3  ;;  %v11721_v20 = vld [vmem:[#allocation2 + $0x18] sm:$0xff] }
 0x62c   : > { %v5293_v51 = vsel %vm1561_vm8, %v5280_v56, 0.0  ;;  %v5242_v48 = vadd.f32 %v5221_v21, %v5112_v17  ;;  %v5726_v42 = vld [vmem:[#allocation2 + $0x47] sm:$0xff]  ;;  %v9755_v17 = vld [vmem:[#allocation4 + $0x408] sm:$0xff]  ;;  %5916 = vmatpush.bf16.msrb.mxu0 %v9751_v61 }
 0x62d   : > { %5306 = vst.msk [vmem:[#allocation2 + $0x50] sm:$0xff] %vm1579_vm0, %v5293_v51  ;;  %v5735_v7 = vpack.c.bf16 %v5726_v42, %v5596_v44  ;;  %v5334_v2 = vld [vmem:[#allocation2 + $0x45] sm:$0xff]  ;;  %v12807_v44 = vld [vmem:[#allocation20_spill] sm:$0xff]  ;;  %6045 = vmatpush.bf16.msrb.mxu1 %v9756_v53 }
 0x62e   : > { %v5255_v33 = vmul.f32 0.01, %v5242_v48  ;;  %v5467_v63 = vld [vmem:[#allocation2 + $0x46] sm:$0xff]  ;;  %6175 = vmatpush.bf16.msra.mxu2 %v9760_v18  ;;  %v5966_v53 = vld [vmem:[#allocation2 + $0x11] sm:$0xff] }
 0x62f   : > { %9254 = vmatmul.msk.bf16.gmra.mxu3 %vm1579_vm0, %v5735_v7  ;;  %v9765_v21 = vld [vmem:[#allocation4 + $0x458] sm:$0xff] }
 0x630   : > { %v5268_v41 = vmax.f32 %v5242_v48, %v5255_v33  ;;  %v9754_v48 = vld [vmem:[#allocation4 + $0x400] sm:$0xff]  ;;  %6304 = vmatpush.bf16.msra.mxu3 %v9765_v21  ;;  %5917 = vmatpush.bf16.msrb.mxu0 %v9750_v6  ;;  %v11738_v6 = vld [vmem:[#allocation2 + $0x20] sm:$0xff] }
 0x631   : > { %6046 = vmatpush.bf16.msrb.mxu1 %v9755_v17  ;;  %v11736_v61 = vld [vmem:[#allocation2 + $0x28] sm:$0xff] }
 0x632   : > { %v5281_v15 = vadd.f32 %v5268_v41, %v12802_v43  ;;  %6176 = vmatpush.bf16.msra.mxu2 %v9759_v40  ;;  %v5969_v17 = vld [vmem:[#allocation2 + $0x29] sm:$0xff]  ;;  %v6099_v40 = vld [vmem:[#allocation2 + $0x31] sm:$0xff] }
 0x633   : > { %v5224_v30 = vpop.f32.mrf.mxu3 }
 0x634   : > { %v5294_v39 = vsel %vm1562_vm9, %v5281_v15, 0.0  ;;  %v5243_v54 = vadd.f32 %v5224_v30, %v12805_v47  ;;  %v5335_v16 = vld [vmem:[#allocation2 + $0x4d] sm:$0xff]  ;;  %6305 = vmatpush.bf16.msra.mxu3 %v9764_v23 }
 0x635   : > { %v5468_v37 = vld [vmem:[#allocation2 + $0x4e] sm:$0xff]  ;;  %5307 = vst.msk [vmem:[#allocation2 + $0x58] sm:$0xff] %vm1579_vm0, %v5294_v39  ;;  %v5343_v8 = vpack.c.bf16 %v5335_v16, %v5334_v2  ;;  %6047 = vmatpush.bf16.msrb.mxu1 %v9754_v48 }
 0x636   : > { %v5598_v0 = vld [vmem:[#allocation2 + $0x4f] sm:$0xff]  ;;  %v5476_v5 = vpack.c.bf16 %v5468_v37, %v5467_v63  ;;  %v5256_v3 = vmul.f32 0.01, %v5243_v54 }
 0x637   : > { %v5606_v14 = vpack.c.bf16 %v5598_v0, %v5726_v42  ;;  %9186 = vmatmul.msk.bf16.gmra.mxu0 %vm1579_vm0, %v5343_v8  ;;  %v9758_v42 = vld [vmem:[#allocation4 + $0x420] sm:$0xff]  ;;  %v12811_v39 = vld [vmem:[#allocation16_spill] sm:$0xff] }
 0x638   : > { %9209 = vmatmul.msk.bf16.gmra.mxu1 %vm1579_vm0, %v5476_v5  ;;  %v5269_v46 = vmax.f32 %v5243_v54, %v5256_v3  ;;  %6177 = vmatpush.bf16.msra.mxu2 %v9758_v42  ;;  %v9762_v8 = vld [vmem:[#allocation4 + $0x440] sm:$0xff]  ;;  %v6110_v42 = vpack.c.bf16 %v6099_v40, %v5969_v17 }
 0x639   : > { %9232 = vmatmul.msk.bf16.gmra.mxu2 %vm1579_vm0, %v5606_v14 }
 0x63a   : > { %v5282_v60 = vadd.f32 %v5269_v46, %v12807_v44  ;;  %v6097_v44 = vld [vmem:[#allocation2 + $0x21] sm:$0xff] }
 0x63b   : > { %v5226_v1 = vpop.f32.mrf.mxu3  ;;  %v5980_v48 = vpack.c.bf16 %v5969_v17, %v6097_v44  ;;  %v5973_v17 = vld [vmem:[#allocation2 + $0x49] sm:$0xff] }
 0x63c   : > { %v5295_v50 = vsel %vm1563_vm10, %v5282_v60, 0.0  ;;  %v5244_v22 = vadd.f32 %v5226_v1, %v5114_v25  ;;  %v5728_v35 = vld [vmem:[#allocation2 + $0x57] sm:$0xff] }
 0x63d   : > { %5308 = vst.msk [vmem:[#allocation2 + $0x60] sm:$0xff] %vm1579_vm0, %v5295_v50  ;;  %v5736_v57 = vpack.c.bf16 %v5728_v35, %v5598_v0  ;;  %v5336_v31 = vld [vmem:[#allocation2 + $0x55] sm:$0xff] }
 0x63e   : > { %v5257_v49 = vmul.f32 0.01, %v5244_v22  ;;  %v5469_v32 = vld [vmem:[#allocation2 + $0x56] sm:$0xff] }
 0x63f   : > { %9255 = vmatmul.msk.bf16.gmra.mxu3 %vm1579_vm0, %v5736_v57  ;;  %v5967_v25 = vld [vmem:[#allocation2 + $0x19] sm:$0xff]  ;;  %v11723_v60 = vld [vmem:[#allocation2 + $0x10] sm:$0xff] }
 0x640   : > { %v5270_v56 = vmax.f32 %v5244_v22, %v5257_v49  ;;  %v5849_v18 = vpack.c.bf16 %v11721_v20, %v11723_v60  ;;  %v5979_v1 = vpack.c.bf16 %v5967_v25, %v5966_v53  ;;  %v6109_v50 = vpack.c.bf16 %v6097_v44, %v5967_v25  ;;  %v6227_v22 = vld [vmem:[#allocation2 + $0x22] sm:$0xff] }
 0x641   : > { %v11734_v49 = vld [vmem:[%s12614_s5 + $0x3] ss:$0 sm:$0xff] }
 0x642   : > { %v5283_v51 = vadd.f32 %v5270_v56, %v12809_v10 }
 0x643   : > { %v5229_v7 = vpop.f32.mrf.mxu3 }
 0x644   : > { %v5296_v9 = vsel %vm1564_vm11, %v5283_v51, 0.0  ;;  %v5245_v27 = vadd.f32 %v5229_v7, %v11588_v59  ;;  %v5337_v41 = vld [vmem:[#allocation2 + $0x5d] sm:$0xff]  ;;  %v9763_v59 = vld [vmem:[#allocation4 + $0x448] sm:$0xff]  ;;  %v5850_v51 = vpack.c.bf16 %v11736_v61, %v11738_v6 }
 0x645   : > { %v5470_v43 = vld [vmem:[#allocation2 + $0x5e] sm:$0xff]  ;;  %5309 = vst.msk [vmem:[#allocation2 + $0x68] sm:$0xff] %vm1579_vm0, %v5296_v9  ;;  %v5344_v30 = vpack.c.bf16 %v5337_v41, %v5336_v31  ;;  %6306 = vmatpush.bf16.msra.mxu3 %v9763_v59  ;;  %v6229_v31 = vld [vmem:[#allocation2 + $0x32] sm:$0xff]  ;;  %v6228_v41 = vld [vmem:[#allocation2 + $0x2a] sm:$0xff] }
 0x646   : > { %v5600_v15 = vld [vmem:[#allocation2 + $0x5f] sm:$0xff]  ;;  %v5477_v2 = vpack.c.bf16 %v5470_v43, %v5469_v32  ;;  %v5258_v12 = vmul.f32 0.01, %v5245_v27 }
 0x647   : > { %v5607_v63 = vpack.c.bf16 %v5600_v15, %v5728_v35  ;;  %9187 = vmatmul.msk.bf16.gmra.mxu0 %vm1579_vm0, %v5344_v30  ;;  %v6226_v35 = vld [vmem:[#allocation2 + $0x1a] sm:$0xff] }
 0x648   : > { %9210 = vmatmul.msk.bf16.gmra.mxu1 %vm1579_vm0, %v5477_v2  ;;  %v5271_v19 = vmax.f32 %v5245_v27, %v5258_v12  ;;  %v6239_v57 = vpack.c.bf16 %v6227_v22, %v6226_v35  ;;  %v5971_v12 = vld [vmem:[#allocation2 + $0x39] sm:$0xff] }
 0x649   : > { %9233 = vmatmul.msk.bf16.gmra.mxu2 %vm1579_vm0, %v5607_v63  ;;  %6307 = vmatpush.bf16.msra.mxu3 %v9762_v8  ;;  %v11748_v63 = vld [vmem:[#allocation2 + $0x38] sm:$0xff] }
 0x64a   : > { %v5284_v47 = vadd.f32 %v5271_v19, %v12811_v39  ;;  %v6101_v39 = vld [vmem:[#allocation2 + $0x41] sm:$0xff] }
 0x64b   : > { %v5231_v54 = vpop.f32.mrf.mxu3 }
 0x64c   : > { %v5297_v37 = vsel %vm1565_vm12, %v5284_v47, 0.0  ;;  %v5730_v0 = vld [vmem:[#allocation2 + $0x67] sm:$0xff] }
 0x64d   : > { %5310 = vst.msk [vmem:[#allocation2 + $0x70] sm:$0xff] %vm1579_vm0, %v5297_v37  ;;  %v5737_v5 = vpack.c.bf16 %v5730_v0, %v5600_v15  ;;  %v5338_v14 = vld [vmem:[#allocation2 + $0x65] sm:$0xff]  ;;  %v5608_v46 = vpack.c.bf16 %v5730_v0, %v5730_v0  ;;  %v6240_v15 = vpack.c.bf16 %v6229_v31, %v6228_v41  ;;  %v11752_v0 = vld [vmem:[#allocation2 + $0x30] sm:$0xff] }
 0x64e   : > { %v5471_v3 = vld [vmem:[#allocation2 + $0x66] sm:$0xff]  ;;  %v5345_v34 = vpack.c.bf16 %v5338_v14, %v5338_v14  ;;  %v5981_v14 = vpack.c.bf16 %v5971_v12, %v6099_v40  ;;  %v6233_v41 = vld [vmem:[#allocation2 + $0x52] sm:$0xff] }
 0x64f   : > { %9256 = vmatmul.msk.bf16.gmra.mxu3 %vm1579_vm0, %v5737_v5  ;;  %v5478_v55 = vpack.c.bf16 %v5471_v3, %v5471_v3  ;;  %v5851_v5 = vpack.c.bf16 %v11748_v63, %v11752_v0  ;;  %v6111_v3 = vpack.c.bf16 %v6101_v39, %v5971_v12 }
 0x654   : > { %v5731_v13 = vld [vmem:[#allocation2 + $0x6f] sm:$0xff] }
 0x655   : > { %v5738_v52 = vpack.c.bf16 %v5731_v13, %v5731_v13 }
 0x657   : > { %9188 = vmatmul.msk.bf16.gmra.mxu0 %vm1579_vm0, %v5345_v34 }
 0x658   : > { %9211 = vmatmul.msk.bf16.gmra.mxu1 %vm1579_vm0, %v5478_v55 }
 0x659   : > { %9234 = vmatmul.msk.bf16.gmra.mxu2 %vm1579_vm0, %v5608_v46  ;;  %v6231_v46 = vld [vmem:[#allocation2 + $0x42] sm:$0xff] }
 0x65f   : > { %9257 = vmatmul.msk.bf16.gmra.mxu3 %vm1579_vm0, %v5738_v52 }
 0x667   : > { %9274 = vmatmul.msk.bf16.vlgmr.msrb.gmra.mxu0 %vm1579_vm0, %v5849_v18  ;;  %v6230_v18 = vld [vmem:[#allocation2 + $0x3a] sm:$0xff] }
 0x668   : > { %9297 = vmatmul.msk.bf16.vlgmr.msrb.gmra.mxu1 %vm1579_vm0, %v5979_v1 }
 0x669   : > { %9320 = vmatmul.msk.bf16.vlgmr.msra.gmra.mxu2 %vm1579_vm0, %v6109_v50  ;;  %v6241_v50 = vpack.c.bf16 %v6231_v46, %v6230_v18  ;;  %v11789_v46 = vld [vmem:[#allocation2 + $0x50] sm:$0xff] }
 0x66a   : > { %12815 = vst [vmem:[#allocation15_spill] sm:$0xff] %v11789_v46 }
 0x66f   : > { %9343 = vmatmul.msk.bf16.vlgmr.msra.gmra.mxu3 %vm1579_vm0, %v6239_v57  ;;  %v11764_v57 = vld [vmem:[#allocation2 + $0x48] sm:$0xff] }
 0x670   : > { %12813 = vst [vmem:[#allocation22_spill] sm:$0xff] %v11764_v57 }
 0x674   : > { %v5409_v56 = vpop.f32.mrf.mxu0 }
 0x675   : > { %v5542_v21 = vpop.f32.mrf.mxu1  ;;  %v5446_v10 = vadd.f32 %v11734_v49, %v5409_v56 }
 0x677   : > { %v5576_v7 = vadd.f32 %v5542_v21, %v5446_v10  ;;  %9275 = vmatmul.msk.bf16.gmra.mxu0 %vm1579_vm0, %v5850_v51  ;;  %v6103_v21 = vld [vmem:[#allocation2 + $0x51] sm:$0xff] }
 0x678   : > { %9298 = vmatmul.msk.bf16.gmra.mxu1 %vm1579_vm0, %v5980_v48 }
 0x679   : > { %9321 = vmatmul.msk.bf16.gmra.mxu2 %vm1579_vm0, %v6110_v42  ;;  %v11768_v42 = vld [vmem:[#allocation2 + $0x40] sm:$0xff] }
 0x67a   : > { %v5852_v31 = vpack.c.bf16 %v11764_v57, %v11768_v42  ;;  %v9773_v57 = vld [vmem:[#allocation4 + $0x498] sm:$0xff] }
 0x67b   : > { %6644 = vmatpush.bf16.msra.mxu1 %v9773_v57 }
 0x67c   : > { %v5672_v32 = vpop.f32.mrf.mxu2  ;;  %v5411_v9 = vpop.f32.mrf.mxu0 }
 0x67d   : > { %v5706_v23 = vadd.f32 %v5672_v32, %v5576_v7  ;;  %v5544_v27 = vpop.f32.mrf.mxu1  ;;  %v5447_v43 = vadd.f32 %v11734_v49, %v5411_v9  ;;  %v5982_v32 = vpack.c.bf16 %v5973_v17, %v6101_v39 }
 0x67f   : > { %v5577_v30 = vadd.f32 %v5544_v27, %v5447_v43  ;;  %9344 = vmatmul.msk.bf16.gmra.mxu3 %vm1579_vm0, %v6240_v15 }
 0x682   : > { %v5802_v2 = vpop.f32.mrf.mxu3 }
 0x683   : > { %v11750_v59 = vadd.f32 %v5802_v2, %v5706_v23  ;;  %v6112_v23 = vpack.c.bf16 %v6103_v21, %v5973_v17 }
 0x684   : > { %v5674_v19 = vpop.f32.mrf.mxu2  ;;  %v5414_v54 = vpop.f32.mrf.mxu0 }
 0x685   : > { %v5707_v47 = vadd.f32 %v5674_v19, %v5577_v30  ;;  %v5547_v37 = vpop.f32.mrf.mxu1  ;;  %v5448_v8 = vadd.f32 %v11734_v49, %v5414_v54  ;;  %v6232_v19 = vld [vmem:[#allocation2 + $0x4a] sm:$0xff] }
 0x686   : > { %v6242_v39 = vpack.c.bf16 %v6233_v41, %v6232_v19  ;;  %v9766_v19 = vld [vmem:[#allocation4 + $0x460] sm:$0xff] }
 0x687   : > { %v5578_v34 = vadd.f32 %v5547_v37, %v5448_v8  ;;  %9276 = vmatmul.msk.bf16.gmra.mxu0 %vm1579_vm0, %v5851_v5  ;;  %v11783_v37 = vld [vmem:[#allocation2 + $0x58] sm:$0xff] }
 0x688   : > { %9299 = vmatmul.msk.bf16.gmra.mxu1 %vm1579_vm0, %v5981_v14  ;;  %12814 = vst [vmem:[#allocation8_spill] sm:$0xff] %v11783_v37  ;;  %v5975_v8 = vld [vmem:[#allocation2 + $0x59] sm:$0xff] }
 0x689   : > { %9322 = vmatmul.msk.bf16.gmra.mxu2 %vm1579_vm0, %v6111_v3  ;;  %v6105_v3 = vld [vmem:[#allocation2 + $0x61] sm:$0xff] }
 0x68a   : > { %v5804_v55 = vpop.f32.mrf.mxu3 }
 0x68b   : > { %v11760_v52 = vadd.f32 %v5804_v55, %v5707_v47  ;;  %v9769_v47 = vld [vmem:[#allocation4 + $0x478] sm:$0xff] }
 0x68c   : > { %v5677_v13 = vpop.f32.mrf.mxu2  ;;  %v5416_v44 = vpop.f32.mrf.mxu0  ;;  %6434 = vmatpush.bf16.msra.mxu0 %v9769_v47 }
 0x68d   : > { %v5708_v25 = vadd.f32 %v5677_v13, %v5578_v34  ;;  %v5549_v53 = vpop.f32.mrf.mxu1  ;;  %v5449_v1 = vadd.f32 %v11734_v49, %v5416_v44  ;;  %v5983_v44 = vpack.c.bf16 %v5975_v8, %v6103_v21 }
 0x68f   : > { %v5579_v22 = vadd.f32 %v5549_v53, %v5449_v1  ;;  %9345 = vmatmul.msk.bf16.gmra.mxu3 %vm1579_vm0, %v6241_v50  ;;  %v6113_v53 = vpack.c.bf16 %v6105_v3, %v5975_v8  ;;  %v6235_v50 = vld [vmem:[#allocation2 + $0x62] sm:$0xff] }
 0x692   : > { %v5807_v35 = vpop.f32.mrf.mxu3 }
 0x693   : > { %v11766_v56 = vadd.f32 %v5807_v35, %v5708_v25  ;;  %v5853_v25 = vpack.c.bf16 %v11783_v37, %v11789_v46 }
 0x694   : > { %v5679_v40 = vpop.f32.mrf.mxu2  ;;  %v5419_v51 = vpop.f32.mrf.mxu0 }
 0x695   : > { %v5709_v10 = vadd.f32 %v5679_v40, %v5579_v22  ;;  %v5552_v48 = vpop.f32.mrf.mxu1  ;;  %v5450_v7 = vadd.f32 %v11734_v49, %v5419_v51  ;;  %v9768_v51 = vld [vmem:[#allocation4 + $0x470] sm:$0xff] }
 0x696   : > { %6435 = vmatpush.bf16.msra.mxu0 %v9768_v51 }
 0x697   : > { %v5580_v9 = vadd.f32 %v5552_v48, %v5450_v7  ;;  %9277 = vmatmul.msk.bf16.gmra.mxu0 %vm1579_vm0, %v5852_v31  ;;  %v9767_v48 = vld [vmem:[#allocation4 + $0x468] sm:$0xff]  ;;  %v11804_v31 = vld [vmem:[#allocation2 + $0x68] sm:$0xff] }
 0x698   : > { %9300 = vmatmul.msk.bf16.gmra.mxu1 %vm1579_vm0, %v5982_v32  ;;  %12816 = vst [vmem:[#allocation33_spill] sm:$0xff] %v11804_v31  ;;  %v5977_v32 = vld [vmem:[#allocation2 + $0x69] sm:$0xff] }
 0x699   : > { %9323 = vmatmul.msk.bf16.gmra.mxu2 %vm1579_vm0, %v6112_v23 }
 0x69a   : > { %v5809_v27 = vpop.f32.mrf.mxu3  ;;  %6436 = vmatpush.bf16.msra.mxu0 %v9767_v48 }
 0x69b   : > { %v11776_v15 = vadd.f32 %v5809_v27, %v5709_v10  ;;  %v6234_v10 = vld [vmem:[#allocation2 + $0x5a] sm:$0xff]  ;;  %v6107_v27 = vld [vmem:[#allocation2 + $0x71] sm:$0xff] }
 0x69c   : > { %v5682_v43 = vpop.f32.mrf.mxu2  ;;  %v11778_v2 = vpop.f32.mrf.mxu0  ;;  %v6243_v21 = vpack.c.bf16 %v6235_v50, %v6234_v10  ;;  %v6114_v8 = vpack.c.bf16 %v6107_v27, %v5977_v32  ;;  %v11825_v10 = vld [vmem:[#allocation2 + $0x70] sm:$0xff] }
 0x69d   : > { %v5710_v30 = vadd.f32 %v5682_v43, %v5580_v9  ;;  %v11780_v12 = vpop.f32.mrf.mxu1  ;;  %12818 = vst [vmem:[#allocation32_spill] sm:$0xff] %v11825_v10 }
 0x69e   : > { %6437 = vmatpush.bf16.msra.mxu0 %v9766_v19  ;;  %v5985_v19 = vpack.c.bf16 %v6107_v27, %v6107_v27 }
 0x69f   : > { %9346 = vmatmul.msk.bf16.gmra.mxu3 %vm1579_vm0, %v6242_v39 }
 0x6a2   : > { %v5812_v54 = vpop.f32.mrf.mxu3 }
 0x6a3   : > { %v11787_v14 = vadd.f32 %v5812_v54, %v5710_v30  ;;  %v11810_v30 = vld [vmem:[#allocation2 + $0x60] sm:$0xff]  ;;  %v5984_v54 = vpack.c.bf16 %v5977_v32, %v6105_v3 }
 0x6a4   : > { %v11785_v5 = vpop.f32.mrf.mxu2  ;;  %v5424_v34 = vpop.f32.mrf.mxu0  ;;  %12817 = vst [vmem:[#allocation27_spill] sm:$0xff] %v11810_v30  ;;  %v5854_v47 = vpack.c.bf16 %v11804_v31, %v11810_v30 }
 0x6a5   : > { %v5557_v55 = vpop.f32.mrf.mxu1  ;;  %v5452_v13 = vadd.f32 %v11734_v49, %v5424_v34 }
 0x6a7   : > { %v5582_v18 = vadd.f32 %v5557_v55, %v5452_v13  ;;  %9278 = vmatmul.msk.bf16.gmra.mxu0 %vm1579_vm0, %v5853_v25  ;;  %v6236_v13 = vld [vmem:[#allocation2 + $0x6a] sm:$0xff]  ;;  %v6237_v25 = vld [vmem:[#allocation2 + $0x72] sm:$0xff] }
 0x6a8   : > { %9301 = vmatmul.msk.bf16.gmra.mxu1 %vm1579_vm0, %v5983_v44  ;;  %v6244_v3 = vpack.c.bf16 %v6237_v25, %v6236_v13 }
 0x6a9   : > { %9324 = vmatmul.msk.bf16.gmra.mxu2 %vm1579_vm0, %v6113_v53 }
 0x6aa   : > { %v11797_v1 = vpop.f32.mrf.mxu3 }
 0x6ac   : > { %v5687_v22 = vpop.f32.mrf.mxu2  ;;  %v11799_v17 = vpop.f32.mrf.mxu0 }
 0x6ad   : > { %v5712_v35 = vadd.f32 %v5687_v22, %v5582_v18  ;;  %v11801_v40 = vpop.f32.mrf.mxu1  ;;  %v6108_v22 = vld [vmem:[#allocation2 + $0x79] sm:$0xff] }
 0x6ae   : > { %v6115_v32 = vpack.c.bf16 %v6108_v22, %v6108_v22 }
 0x6af   : > { %9347 = vmatmul.msk.bf16.gmra.mxu3 %vm1579_vm0, %v6243_v21 }
 0x6b2   : > { %v5817_v7 = vpop.f32.mrf.mxu3 }
 0x6b3   : > { %v11808_v9 = vadd.f32 %v5817_v7, %v5712_v35 }
 0x6b4   : > { %v11806_v23 = vpop.f32.mrf.mxu2  ;;  %v5429_v41 = vpop.f32.mrf.mxu0 }
 0x6b5   : > { %v5562_v43 = vpop.f32.mrf.mxu1  ;;  %v5454_v39 = vadd.f32 %v11734_v49, %v5429_v41 }
 0x6b7   : > { %v5584_v34 = vadd.f32 %v5562_v43, %v5454_v39  ;;  %9279 = vmatmul.msk.bf16.gmra.mxu0 %vm1579_vm0, %v5854_v47  ;;  %v5855_v43 = vpack.c.bf16 %v11825_v10, %v11825_v10  ;;  %v6238_v47 = vld [vmem:[#allocation2 + $0x7a] sm:$0xff] }
 0x6b8   : > { %9302 = vmatmul.msk.bf16.gmra.mxu1 %vm1579_vm0, %v5984_v54  ;;  %v6359_v10 = vld [vmem:[#allocation2 + $0x33] sm:$0xff] }
 0x6b9   : > { %9325 = vmatmul.msk.bf16.gmra.mxu2 %vm1579_vm0, %v6114_v8 }
 0x6ba   : > { %v11818_v55 = vpop.f32.mrf.mxu3 }
 0x6bc   : > { %v5692_v44 = vpop.f32.mrf.mxu2  ;;  %v11820_v18 = vpop.f32.mrf.mxu0 }
 0x6bd   : > { %v5714_v53 = vadd.f32 %v5692_v44, %v5584_v34  ;;  %v11822_v50 = vpop.f32.mrf.mxu1  ;;  %v6245_v34 = vpack.c.bf16 %v6238_v47, %v6238_v47 }
 0x6bf   : > { %9348 = vmatmul.msk.bf16.gmra.mxu3 %vm1579_vm0, %v6244_v3 }
 0x6c2   : > { %v5822_v35 = vpop.f32.mrf.mxu3 }
 0x6c3   : > { %v11829_v21 = vadd.f32 %v5822_v35, %v5714_v53  ;;  %v6357_v53 = vld [vmem:[#allocation2 + $0x23] sm:$0xff] }
 0x6c4   : > { %v11827_v51 = vpop.f32.mrf.mxu2  ;;  %v5434_v48 = vpop.f32.mrf.mxu0 }
 0x6c5   : > { %12819 = vst [vmem:[#allocation24_spill] sm:$0xff] %v11827_v51  ;;  %v5567_v7 = vpop.f32.mrf.mxu1  ;;  %v5456_v41 = vadd.f32 %v11734_v49, %v5434_v48 }
 0x6c7   : > { %v5586_v39 = vadd.f32 %v5567_v7, %v5456_v41  ;;  %9280 = vmatmul.msk.bf16.gmra.mxu0 %vm1579_vm0, %v5855_v43  ;;  %v6356_v7 = vld [vmem:[#allocation2 + $0x1b] sm:$0xff] }
 0x6c8   : > { %9303 = vmatmul.msk.bf16.gmra.mxu1 %vm1579_vm0, %v5985_v19  ;;  %v6369_v41 = vpack.c.bf16 %v6357_v53, %v6356_v7  ;;  %v6370_v53 = vpack.c.bf16 %v6359_v10, %v6358_v36 }
 0x6c9   : > { %9326 = vmatmul.msk.bf16.gmra.mxu2 %vm1579_vm0, %v6115_v32 }
 0x6ca   : > { %v11837_v54 = vpop.f32.mrf.mxu3 }
 0x6cb   : > { %12820 = vst [vmem:[#allocation26_spill] sm:$0xff] %v11837_v54 }
 0x6cc   : > { %v5697_v8 = vpop.f32.mrf.mxu2  ;;  %v11839_v25 = vpop.f32.mrf.mxu0 }
 0x6cd   : > { %v5716_v13 = vadd.f32 %v5697_v8, %v5586_v39  ;;  %12821 = vst [vmem:[#allocation30_spill] sm:$0xff] %v11839_v25  ;;  %v11841_v44 = vpop.f32.mrf.mxu1 }
 0x6ce   : > { %12822 = vst [vmem:[#allocation19_spill] sm:$0xff] %v11841_v44 }
 0x6cf   : > { %9349 = vmatmul.msk.bf16.gmra.mxu3 %vm1579_vm0, %v6245_v34 }
 0x6d2   : > { %v5827_v27 = vpop.f32.mrf.mxu3 }
 0x6d3   : > { %v11846_v22 = vadd.f32 %v5827_v27, %v5716_v13 }
 0x6d4   : > { %v11844_v3 = vpop.f32.mrf.mxu2  ;;  %v5439_v35 = vpop.f32.mrf.mxu0 }
 0x6d5   : > { %12823 = vst [vmem:[#allocation17_spill] sm:$0xff] %v11844_v3  ;;  %v5572_v48 = vpop.f32.mrf.mxu1  ;;  %v5458_v32 = vadd.f32 %v11734_v49, %v5439_v35 }
 0x6d7   : > { %v5588_v43 = vadd.f32 %v5572_v48, %v5458_v32  ;;  %9366 = vmatmul.msk.bf16.vlgmr.msra.gmra.mxu0 %vm1579_vm0, %v6369_v41 }
 0x6da   : > { %v11850_v19 = vpop.f32.mrf.mxu3 }
 0x6db   : > { %12824 = vst [vmem:[#allocation28_spill] sm:$0xff] %v11850_v19 }
 0x6dc   : > { %v5702_v39 = vpop.f32.mrf.mxu2  ;;  %v5441_v8 = vpop.f32.mrf.mxu0 }
 0x6dd   : > { %v5718_v47 = vadd.f32 %v5702_v39, %v5588_v43  ;;  %v5574_v34 = vpop.f32.mrf.mxu1 }
 0x6e2   : > { %v5832_v16 = vpop.f32.mrf.mxu3 }
 0x6e3   : > { %v11852_v13 = vadd.f32 %v5832_v16, %v5718_v47  ;;  %v6361_v16 = vld [vmem:[#allocation2 + $0x43] sm:$0xff] }
 0x6e4   : > { %v5704_v33 = vpop.f32.mrf.mxu2  ;;  %v5919_v27 = vpop.f32.mrf.mxu0 }
 0x6e5   : > { %v6049_v31 = vpop.f32.mrf.mxu1  ;;  %v5953_v35 = vadd.f32 %v5919_v27, %v11750_v59 }
 0x6e7   : > { %v6083_v48 = vadd.f32 %v6049_v31, %v5953_v35  ;;  %9367 = vmatmul.msk.bf16.gmra.mxu0 %vm1579_vm0, %v6370_v53  ;;  %v6360_v31 = vld [vmem:[#allocation2 + $0x3b] sm:$0xff] }
 0x6e8   : > { %v6371_v27 = vpack.c.bf16 %v6361_v16, %v6360_v31 }
 0x6ea   : > { %v5834_v7 = vpop.f32.mrf.mxu3 }
 0x6ec   : > { %v6179_v32 = vpop.f32.mrf.mxu2  ;;  %v5921_v43 = vpop.f32.mrf.mxu0 }
 0x6ed   : > { %v6213_v41 = vadd.f32 %v6179_v32, %v6083_v48  ;;  %v11856_v39 = vpop.f32.mrf.mxu1  ;;  %v11859_v8 = vadd.f32 %v5921_v43, %v11760_v52 }
 0x6f2   : > { %v6309_v33 = vpop.f32.mrf.mxu3 }
 0x6f3   : > { %v11863_v34 = vadd.f32 %v6309_v33, %v6213_v41  ;;  %v6363_v33 = vld [vmem:[#allocation2 + $0x53] sm:$0xff] }
 0x6f4   : > { %v11861_v47 = vpop.f32.mrf.mxu2  ;;  %v5924_v59 = vpop.f32.mrf.mxu0 }
 0x6f5   : > { %v6054_v36 = vpop.f32.mrf.mxu1  ;;  %v5955_v10 = vadd.f32 %v5924_v59, %v11766_v56  ;;  %v6362_v59 = vld [vmem:[#allocation2 + $0x4b] sm:$0xff] }
 0x6f6   : > { %v6372_v31 = vpack.c.bf16 %v6363_v33, %v6362_v59  ;;  %v6364_v33 = vld [vmem:[#allocation2 + $0x5b] sm:$0xff] }
 0x6f7   : > { %v6085_v35 = vadd.f32 %v6054_v36, %v5955_v10  ;;  %9368 = vmatmul.msk.bf16.gmra.mxu0 %vm1579_vm0, %v6371_v27 }
 0x6fa   : > { %v11867_v53 = vpop.f32.mrf.mxu3 }
 0x6fc   : > { %v6184_v48 = vpop.f32.mrf.mxu2  ;;  %v5926_v7 = vpop.f32.mrf.mxu0 }
 0x6fd   : > { %v6215_v52 = vadd.f32 %v6184_v48, %v6085_v35  ;;  %v11869_v32 = vpop.f32.mrf.mxu1  ;;  %v11872_v43 = vadd.f32 %v5926_v7, %v11776_v15 }
 0x702   : > { %v6314_v41 = vpop.f32.mrf.mxu3 }
 0x703   : > { %v11876_v58 = vadd.f32 %v6314_v41, %v6215_v52  ;;  %v6365_v52 = vld [vmem:[#allocation2 + $0x63] sm:$0xff] }
 0x704   : > { %v11874_v30 = vpop.f32.mrf.mxu2  ;;  %v5929_v56 = vpop.f32.mrf.mxu0 }
 0x705   : > { %v6059_v16 = vpop.f32.mrf.mxu1  ;;  %v5957_v36 = vadd.f32 %v5929_v56, %v11787_v14 }
 0x707   : > { %v6087_v10 = vadd.f32 %v6059_v16, %v5957_v36  ;;  %9369 = vmatmul.msk.bf16.gmra.mxu0 %vm1579_vm0, %v6372_v31  ;;  %v6373_v16 = vpack.c.bf16 %v6365_v52, %v6364_v33 }
 0x70a   : > { %v11880_v27 = vpop.f32.mrf.mxu3 }
 0x70c   : > { %v6189_v35 = vpop.f32.mrf.mxu2  ;;  %v11882_v48 = vpop.f32.mrf.mxu0 }
 0x70d   : > { %v6217_v15 = vadd.f32 %v6189_v35, %v6087_v10  ;;  %v11884_v7 = vpop.f32.mrf.mxu1 }
 0x712   : > { %v6319_v37 = vpop.f32.mrf.mxu3 }
 0x713   : > { %v11888_v19 = vadd.f32 %v6319_v37, %v6217_v15  ;;  %v6366_v37 = vld [vmem:[#allocation2 + $0x6b] sm:$0xff]  ;;  %v6367_v15 = vld [vmem:[#allocation2 + $0x73] sm:$0xff] }
 0x714   : > { %v11886_v41 = vpop.f32.mrf.mxu2  ;;  %v5934_v3 = vpop.f32.mrf.mxu0 }
 0x715   : > { %v6064_v14 = vpop.f32.mrf.mxu1  ;;  %v5959_v56 = vadd.f32 %v5934_v3, %v11808_v9 }
 0x717   : > { %v6089_v59 = vadd.f32 %v6064_v14, %v5959_v56  ;;  %9370 = vmatmul.msk.bf16.gmra.mxu0 %vm1579_vm0, %v6373_v16  ;;  %v6374_v14 = vpack.c.bf16 %v6367_v15, %v6366_v37 }
 0x71a   : > { %v11892_v36 = vpop.f32.mrf.mxu3 }
 0x71c   : > { %v6194_v31 = vpop.f32.mrf.mxu2  ;;  %v11894_v35 = vpop.f32.mrf.mxu0 }
 0x71d   : > { %v6219_v10 = vadd.f32 %v6194_v31, %v6089_v59  ;;  %v11896_v62 = vpop.f32.mrf.mxu1 }
 0x722   : > { %v6324_v44 = vpop.f32.mrf.mxu3 }
 0x723   : > { %v11900_v25 = vadd.f32 %v6324_v44, %v6219_v10  ;;  %v6368_v44 = vld [vmem:[#allocation2 + $0x7b] sm:$0xff] }
 0x724   : > { %v11898_v46 = vpop.f32.mrf.mxu2  ;;  %v5939_v9 = vpop.f32.mrf.mxu0 }
 0x725   : > { %v6069_v3 = vpop.f32.mrf.mxu1  ;;  %v5961_v52 = vadd.f32 %v5939_v9, %v11829_v21  ;;  %v6375_v21 = vpack.c.bf16 %v6368_v44, %v6368_v44  ;;  %v9772_v44 = vld [vmem:[#allocation4 + $0x490] sm:$0xff] }
 0x726   : > { %6645 = vmatpush.bf16.msra.mxu1 %v9772_v44  ;;  %v9770_v44 = vld [vmem:[#allocation4 + $0x480] sm:$0xff] }
 0x727   : > { %v6091_v33 = vadd.f32 %v6069_v3, %v5961_v52  ;;  %9371 = vmatmul.msk.bf16.gmra.mxu0 %vm1579_vm0, %v6374_v14  ;;  %v9777_v52 = vld [vmem:[#allocation4 + $0x4b8] sm:$0xff] }
 0x728   : > { %v9781_v14 = vld [vmem:[#allocation4 + $0x4d8] sm:$0xff]  ;;  %6777 = vmatpush.bf16.msrb.mxu2 %v9777_v52 }
 0x729   : > { %6907 = vmatpush.bf16.msrb.mxu3 %v9781_v14 }
 0x72a   : > { %v11904_v56 = vpop.f32.mrf.mxu3 }
 0x72c   : > { %v6199_v16 = vpop.f32.mrf.mxu2  ;;  %v11906_v31 = vpop.f32.mrf.mxu0 }
 0x72d   : > { %v6221_v59 = vadd.f32 %v6199_v16, %v6091_v33  ;;  %v11908_v38 = vpop.f32.mrf.mxu1 }
 0x72e   : > { %12825 = vst [vmem:[#allocation23_spill] sm:$0xff] %v11908_v38 }
 0x732   : > { %v6329_v10 = vpop.f32.mrf.mxu3 }
 0x733   : > { %v11912_v51 = vadd.f32 %v6329_v10, %v6221_v59  ;;  %v9776_v10 = vld [vmem:[#allocation4 + $0x4b0] sm:$0xff] }
 0x734   : > { %v11910_v54 = vpop.f32.mrf.mxu2  ;;  %v5944_v37 = vpop.f32.mrf.mxu0  ;;  %6778 = vmatpush.bf16.msrb.mxu2 %v9776_v10  ;;  %v9774_v10 = vld [vmem:[#allocation4 + $0x4a0] sm:$0xff] }
 0x735   : > { %12826 = vst [vmem:[#allocation14_spill] sm:$0xff] %v11910_v54  ;;  %v6074_v15 = vpop.f32.mrf.mxu1  ;;  %v5963_v9 = vadd.f32 %v5944_v37, %v11846_v22  ;;  %v9780_v54 = vld [vmem:[#allocation4 + $0x4d0] sm:$0xff]  ;;  %v9771_v22 = vld [vmem:[#allocation4 + $0x488] sm:$0xff] }
 0x736   : > { %12827 = vst [vmem:[#allocation25_spill] sm:$0xff] %v11912_v51  ;;  %6908 = vmatpush.bf16.msrb.mxu3 %v9780_v54  ;;  %v9779_v37 = vld [vmem:[#allocation4 + $0x4c8] sm:$0xff]  ;;  %6646 = vmatpush.bf16.msra.mxu1 %v9771_v22  ;;  %v9778_v54 = vld [vmem:[#allocation4 + $0x4c0] sm:$0xff] }
 0x737   : > { %v6093_v3 = vadd.f32 %v6074_v15, %v5963_v9  ;;  %9372 = vmatmul.msk.bf16.gmra.mxu0 %vm1579_vm0, %v6375_v21  ;;  %v9775_v21 = vld [vmem:[#allocation4 + $0x4a8] sm:$0xff]  ;;  %v9785_v9 = vld [vmem:[#allocation4 + $0x4f8] sm:$0xff] }
 0x738   : > { %6779 = vmatpush.bf16.msrb.mxu2 %v9775_v21  ;;  %7037 = vmatpush.bf16.msrb.mxu0 %v9785_v9 }
 0x73a   : > { %v11916_v33 = vpop.f32.mrf.mxu3  ;;  %6909 = vmatpush.bf16.msrb.mxu3 %v9779_v37  ;;  %6647 = vmatpush.bf16.msra.mxu1 %v9770_v44  ;;  %v9782_v37 = vld [vmem:[#allocation4 + $0x4e0] sm:$0xff] }
 0x73b   : > { %12828 = vst [vmem:[#allocation29_spill] sm:$0xff] %v11916_v33 }
 0x73c   : > { %v6204_v16 = vpop.f32.mrf.mxu2  ;;  %v11918_v38 = vpop.f32.mrf.mxu0  ;;  %6780 = vmatpush.bf16.msrb.mxu2 %v9774_v10 }
 0x73d   : > { %v6223_v57 = vadd.f32 %v6204_v16, %v6093_v3  ;;  %12829 = vst [vmem:[#allocation18_spill] sm:$0xff] %v11918_v38  ;;  %v11920_v59 = vpop.f32.mrf.mxu1 }
 0x73e   : > { %12830 = vst [vmem:[#allocation21_spill] sm:$0xff] %v11920_v59  ;;  %v9784_v59 = vld [vmem:[#allocation4 + $0x4f0] sm:$0xff]  ;;  %6910 = vmatpush.bf16.msrb.mxu3 %v9778_v54 }
 0x73f   : > { %7038 = vmatpush.bf16.msrb.mxu0 %v9784_v59  ;;  %v6084_v59 = vadd.f32 %v11856_v39, %v11859_v8  ;;  %v6566_v8 = vld [vmem:[#allocation2 + $0x5] sm:$0xff] }
 0x741   : > { %v6214_v44 = vadd.f32 %v11861_v47, %v6084_v59  ;;  %v6829_v47 = vld [vmem:[#allocation2 + $0x7] sm:$0xff] }
 0x742   : > { %v6334_v15 = vpop.f32.mrf.mxu3 }
 0x743   : > { %v11924_v52 = vadd.f32 %v6334_v15, %v6223_v57 }
 0x744   : > { %v11922_v33 = vpop.f32.mrf.mxu2  ;;  %v5949_v3 = vpop.f32.mrf.mxu0 }
 0x745   : > { %12831 = vst [vmem:[#allocation34_spill] sm:$0xff] %v11922_v33  ;;  %v6079_v14 = vpop.f32.mrf.mxu1  ;;  %v5965_v16 = vadd.f32 %v5949_v3, %v11852_v13  ;;  %v9783_v33 = vld [vmem:[#allocation4 + $0x4e8] sm:$0xff] }
 0x746   : > { %12832 = vst [vmem:[#allocation20_spill] sm:$0xff] %v11924_v52  ;;  %7039 = vmatpush.bf16.msrb.mxu0 %v9783_v33 }
 0x747   : > { %v6095_v38 = vadd.f32 %v6079_v14, %v5965_v16 }
 0x74a   : > { %v11927_v57 = vpop.f32.mrf.mxu3  ;;  %7040 = vmatpush.bf16.msrb.mxu0 %v9782_v37 }
 0x74c   : > { %v6209_v22 = vpop.f32.mrf.mxu2  ;;  %v5951_v15 = vpop.f32.mrf.mxu0 }
 0x74d   : > { %v6225_v21 = vadd.f32 %v6209_v22, %v6095_v38  ;;  %v6081_v52 = vpop.f32.mrf.mxu1  ;;  %v6699_v15 = vld [vmem:[#allocation2 + $0x6] sm:$0xff] }
 0x74e   : > { %v6344_v52 = vadd.f32 %v11867_v53, %v6214_v44 }
 0x752   : > { %v6339_v13 = vpop.f32.mrf.mxu3 }
 0x753   : > { %v11929_v9 = vadd.f32 %v6339_v13, %v6225_v21 }
 0x754   : > { %v6211_v3 = vpop.f32.mrf.mxu2  ;;  %v6439_v51 = vpop.f32.mrf.mxu0 }
 0x755   : > { %v6473_v14 = vadd.f32 %v6439_v51, %v11863_v34 }
 0x757   : > { %v6486_v16 = vmul.f32 0.01, %v6473_v14 }
 0x759   : > { %v6499_v10 = vmax.f32 %v6473_v14, %v6486_v16 }
 0x75a   : > { %v6341_v38 = vpop.f32.mrf.mxu3 }
 0x75b   : > { %v6512_v33 = vadd.f32 %v6499_v10, %v11723_v60  ;;  %v5451_v38 = vadd.f32 %v11734_v49, %v11778_v2 }
 0x75c   : > { %v6441_v54 = vpop.f32.mrf.mxu0 }
 0x75d   : > { %v6525_v22 = vsel %vm1553_vm15, %v6512_v33, 0.0  ;;  %v6474_v21 = vadd.f32 %v6441_v54, %v6344_v52 }
 0x75e   : > { %6538 = vst.msk [vmem:[#allocation2 + $0x10] sm:$0xff] %vm1579_vm0, %v6525_v22 }
 0x75f   : > { %v6487_v51 = vmul.f32 0.01, %v6474_v21 }
 0x761   : > { %v6500_v34 = vmax.f32 %v6474_v21, %v6487_v51 }
 0x763   : > { %v6513_v39 = vadd.f32 %v6500_v34, %v11721_v20  ;;  %v6086_v20 = vadd.f32 %v11869_v32, %v11872_v43  ;;  %v5581_v32 = vadd.f32 %v11780_v12, %v5451_v38 }
 0x764   : > { %v6444_v37 = vpop.f32.mrf.mxu0 }
 0x765   : > { %v6526_v53 = vsel %vm1554_vm1, %v6513_v39, 0.0  ;;  %v6475_v60 = vadd.f32 %v6444_v37, %v11876_v58  ;;  %v6567_v13 = vld [vmem:[#allocation2 + $0xd] sm:$0xff]  ;;  %v6216_v58 = vadd.f32 %v11874_v30, %v6086_v20  ;;  %v5711_v30 = vadd.f32 %v11785_v5, %v5581_v32 }
 0x766   : > { %v6700_v3 = vld [vmem:[#allocation2 + $0xe] sm:$0xff]  ;;  %6539 = vst.msk [vmem:[#allocation2 + $0x18] sm:$0xff] %vm1579_vm0, %v6526_v53  ;;  %v6579_v59 = vpack.c.bf16 %v6567_v13, %v6566_v8 }
 0x767   : > { %v6830_v14 = vld [vmem:[#allocation2 + $0xf] sm:$0xff]  ;;  %v6712_v16 = vpack.c.bf16 %v6700_v3, %v6699_v15  ;;  %v6488_v10 = vmul.f32 0.01, %v6475_v60  ;;  %v6346_v33 = vadd.f32 %v11880_v27, %v6216_v58  ;;  %v5841_v27 = vadd.f32 %v11797_v1, %v5711_v30 }
 0x768   : > { %v6842_v44 = vpack.c.bf16 %v6830_v14, %v6829_v47  ;;  %9390 = vmatmul.msk.bf16.vlgmr.msra.gmra.mxu1 %vm1579_vm0, %v6579_v59 }
 0x769   : > { %9413 = vmatmul.msk.bf16.vlgmr.msrb.gmra.mxu2 %vm1579_vm0, %v6712_v16  ;;  %v6501_v52 = vmax.f32 %v6475_v60, %v6488_v10 }
 0x76a   : > { %9436 = vmatmul.msk.bf16.vlgmr.msrb.gmra.mxu3 %vm1579_vm0, %v6842_v44 }
 0x76b   : > { %v6514_v54 = vadd.f32 %v6501_v52, %v11738_v6  ;;  %v5958_v6 = vadd.f32 %v11882_v48, %v5841_v27 }
 0x76c   : > { %v6446_v22 = vpop.f32.mrf.mxu0 }
 0x76d   : > { %v6527_v43 = vsel %vm1555_vm2, %v6514_v54, 0.0  ;;  %v6476_v21 = vadd.f32 %v6446_v22, %v6346_v33  ;;  %v6960_v51 = vld [vmem:[#allocation2 + $0x17] sm:$0xff]  ;;  %v6088_v48 = vadd.f32 %v11884_v7, %v5958_v6 }
 0x76e   : > { %6540 = vst.msk [vmem:[#allocation2 + $0x20] sm:$0xff] %vm1579_vm0, %v6527_v43  ;;  %v6972_v2 = vpack.c.bf16 %v6960_v51, %v6830_v14  ;;  %v6568_v15 = vld [vmem:[#allocation2 + $0x15] sm:$0xff] }
 0x76f   : > { %v6489_v34 = vmul.f32 0.01, %v6476_v21  ;;  %v6701_v47 = vld [vmem:[#allocation2 + $0x16] sm:$0xff] }
 0x770   : > { %9459 = vmatmul.msk.bf16.vlgmr.msrb.gmra.mxu0 %vm1579_vm0, %v6972_v2 }
 0x771   : > { %v6502_v39 = vmax.f32 %v6476_v21, %v6489_v34 }
 0x773   : > { %v6515_v12 = vadd.f32 %v6502_v39, %v11736_v61  ;;  %v5453_v61 = vadd.f32 %v11734_v49, %v11799_v17 }
 0x774   : > { %v6449_v8 = vpop.f32.mrf.mxu0 }
 0x775   : > { %v6528_v37 = vsel %vm1556_vm3, %v6515_v12, 0.0  ;;  %v6477_v53 = vadd.f32 %v6449_v8, %v11888_v19  ;;  %v6569_v60 = vld [vmem:[#allocation2 + $0x1d] sm:$0xff]  ;;  %v6218_v19 = vadd.f32 %v11886_v41, %v6088_v48  ;;  %v5583_v7 = vadd.f32 %v11801_v40, %v5453_v61 }
 0x776   : > { %v6702_v5 = vld [vmem:[#allocation2 + $0x1e] sm:$0xff]  ;;  %6541 = vst.msk [vmem:[#allocation2 + $0x28] sm:$0xff] %vm1579_vm0, %v6528_v37  ;;  %v6580_v3 = vpack.c.bf16 %v6569_v60, %v6568_v15  ;;  %v12833_v60 = vld [vmem:[#allocation24_spill] sm:$0xff] }
 0x777   : > { %v6832_v13 = vld [vmem:[#allocation2 + $0x1f] sm:$0xff]  ;;  %v6713_v1 = vpack.c.bf16 %v6702_v5, %v6701_v47  ;;  %v6490_v59 = vmul.f32 0.01, %v6477_v53  ;;  %v6348_v44 = vadd.f32 %v11892_v36, %v6218_v19  ;;  %v5713_v41 = vadd.f32 %v11806_v23, %v5583_v7 }
 0x778   : > { %v6843_v14 = vpack.c.bf16 %v6832_v13, %v6960_v51  ;;  %9391 = vmatmul.msk.bf16.gmra.mxu1 %vm1579_vm0, %v6580_v3 }
 0x779   : > { %9414 = vmatmul.msk.bf16.gmra.mxu2 %vm1579_vm0, %v6713_v1  ;;  %v6503_v16 = vmax.f32 %v6477_v53, %v6490_v59  ;;  %v5843_v36 = vadd.f32 %v11818_v55, %v5713_v41  ;;  %v12835_v1 = vld [vmem:[#allocation22_spill] sm:$0xff] }
 0x77a   : > { %9437 = vmatmul.msk.bf16.gmra.mxu3 %vm1579_vm0, %v6843_v14 }
 0x77b   : > { %v6516_v20 = vadd.f32 %v6503_v16, %v11752_v0  ;;  %v5960_v0 = vadd.f32 %v11894_v35, %v5843_v36  ;;  %v12837_v16 = vld [vmem:[#allocation25_spill] sm:$0xff] }
 0x77c   : > { %v6451_v10 = vpop.f32.mrf.mxu0 }
 0x77d   : > { %v6529_v38 = vsel %vm1557_vm4, %v6516_v20, 0.0  ;;  %v6478_v58 = vadd.f32 %v6451_v10, %v6348_v44  ;;  %v6962_v52 = vld [vmem:[#allocation2 + $0x27] sm:$0xff]  ;;  %v6090_v35 = vadd.f32 %v11896_v62, %v5960_v0 }
 0x77e   : > { %6542 = vst.msk [vmem:[#allocation2 + $0x30] sm:$0xff] %vm1579_vm0, %v6529_v38  ;;  %v6973_v17 = vpack.c.bf16 %v6962_v52, %v6832_v13  ;;  %v6570_v32 = vld [vmem:[#allocation2 + $0x25] sm:$0xff] }
 0x77f   : > { %v6491_v33 = vmul.f32 0.01, %v6478_v58  ;;  %v6703_v43 = vld [vmem:[#allocation2 + $0x26] sm:$0xff] }
 0x780   : > { %9460 = vmatmul.msk.bf16.gmra.mxu0 %vm1579_vm0, %v6973_v17  ;;  %v12834_v13 = vld [vmem:[#allocation26_spill] sm:$0xff]  ;;  %v12838_v17 = vld [vmem:[#allocation23_spill] sm:$0xff] }
 0x781   : > { %v6504_v54 = vmax.f32 %v6478_v58, %v6491_v33  ;;  %v12839_v33 = vld [vmem:[#allocation30_spill] sm:$0xff] }
 0x782   : > { %v5457_v36 = vadd.f32 %v11734_v49, %v12839_v33  ;;  %v9796_v33 = vld [vmem:[#allocation4 + $0x550] sm:$0xff] }
 0x783   : > { %v6517_v40 = vadd.f32 %v6504_v54, %v11748_v63  ;;  %v5455_v63 = vadd.f32 %v11734_v49, %v11820_v18  ;;  %v12840_v54 = vld [vmem:[#allocation14_spill] sm:$0xff] }
 0x784   : > { %v6454_v22 = vpop.f32.mrf.mxu0 }
 0x785   : > { %v6530_v21 = vsel %vm1558_vm5, %v6517_v40, 0.0  ;;  %v6479_v51 = vadd.f32 %v6454_v22, %v11900_v25  ;;  %v6571_v2 = vld [vmem:[#allocation2 + $0x2d] sm:$0xff]  ;;  %v6220_v25 = vadd.f32 %v11898_v46, %v6090_v35  ;;  %v5585_v62 = vadd.f32 %v11822_v50, %v5455_v63  ;;  %v12841_v22 = vld [vmem:[#allocation29_spill] sm:$0xff]  ;;  %v9789_v35 = vld [vmem:[#allocation4 + $0x518] sm:$0xff] }
 0x786   : > { %v6704_v23 = vld [vmem:[#allocation2 + $0x2e] sm:$0xff]  ;;  %6543 = vst.msk [vmem:[#allocation2 + $0x38] sm:$0xff] %vm1579_vm0, %v6530_v21  ;;  %v6581_v34 = vpack.c.bf16 %v6571_v2, %v6570_v32  ;;  %7154 = vmatpush.bf16.msrb.mxu1 %v9789_v35 }
 0x787   : > { %v6834_v30 = vld [vmem:[#allocation2 + $0x2f] sm:$0xff]  ;;  %v6714_v55 = vpack.c.bf16 %v6704_v23, %v6703_v43  ;;  %v6492_v39 = vmul.f32 0.01, %v6479_v51  ;;  %v6350_v12 = vadd.f32 %v11904_v56, %v6220_v25  ;;  %v5715_v46 = vadd.f32 %v12833_v60, %v5585_v62 }
 0x788   : > { %v6844_v27 = vpack.c.bf16 %v6834_v30, %v6962_v52  ;;  %9392 = vmatmul.msk.bf16.gmra.mxu1 %vm1579_vm0, %v6581_v34  ;;  %v12842_v43 = vld [vmem:[#allocation15_spill] sm:$0xff] }
 0x789   : > { %9415 = vmatmul.msk.bf16.gmra.mxu2 %vm1579_vm0, %v6714_v55  ;;  %v6505_v6 = vmax.f32 %v6479_v51, %v6492_v39  ;;  %v5845_v56 = vadd.f32 %v12834_v13, %v5715_v46  ;;  %v12843_v2 = vld [vmem:[#allocation19_spill] sm:$0xff]  ;;  %v12845_v39 = vld [vmem:[#allocation17_spill] sm:$0xff]  ;;  %v12850_v13 = vld [vmem:[#allocation20_spill] sm:$0xff] }
 0x78a   : > { %9438 = vmatmul.msk.bf16.gmra.mxu3 %vm1579_vm0, %v6844_v27  ;;  %v5587_v23 = vadd.f32 %v12843_v2, %v5457_v36  ;;  %v9794_v35 = vld [vmem:[#allocation4 + $0x540] sm:$0xff] }
 0x78b   : > { %v6518_v8 = vadd.f32 %v6505_v6, %v11768_v42  ;;  %v5962_v42 = vadd.f32 %v11906_v31, %v5845_v56  ;;  %v12846_v6 = vld [vmem:[#allocation28_spill] sm:$0xff] }
 0x78c   : > { %v6456_v15 = vpop.f32.mrf.mxu0  ;;  %v5717_v63 = vadd.f32 %v12845_v39, %v5587_v23  ;;  %v9801_v23 = vld [vmem:[#allocation4 + $0x578] sm:$0xff] }
 0x78d   : > { %v6531_v47 = vsel %vm1559_vm6, %v6518_v8, 0.0  ;;  %v6480_v37 = vadd.f32 %v6456_v15, %v6350_v12  ;;  %v6964_v53 = vld [vmem:[#allocation2 + $0x37] sm:$0xff]  ;;  %v6092_v31 = vadd.f32 %v12838_v17, %v5962_v42  ;;  %v12847_v15 = vld [vmem:[#allocation18_spill] sm:$0xff]  ;;  %v12853_v17 = vld [vmem:[#allocation27_spill] sm:$0xff]  ;;  %7544 = vmatpush.bf16.msra.mxu0 %v9801_v23 }
 0x78e   : > { %6544 = vst.msk [vmem:[#allocation2 + $0x40] sm:$0xff] %vm1579_vm0, %v6531_v47  ;;  %v6974_v18 = vpack.c.bf16 %v6964_v53, %v6834_v30  ;;  %v6572_v48 = vld [vmem:[#allocation2 + $0x35] sm:$0xff]  ;;  %v5847_v12 = vadd.f32 %v12846_v6, %v5717_v63  ;;  %v12079_v23 = vld [vmem:[%s12614_s5 + $0x4] ss:$0 sm:$0xff] }
 0x78f   : > { %v6493_v5 = vmul.f32 0.01, %v6480_v37  ;;  %v6705_v59 = vld [vmem:[#allocation2 + $0x36] sm:$0xff]  ;;  %v6222_v0 = vadd.f32 %v12840_v54, %v6092_v31 }
 0x790   : > { %9461 = vmatmul.msk.bf16.gmra.mxu0 %vm1579_vm0, %v6974_v18  ;;  %v5964_v62 = vadd.f32 %v12847_v15, %v5847_v12  ;;  %v12848_v47 = vld [vmem:[#allocation8_spill] sm:$0xff]  ;;  %v9800_v6 = vld [vmem:[#allocation4 + $0x570] sm:$0xff] }
 0x791   : > { %v6506_v3 = vmax.f32 %v6480_v37, %v6493_v5  ;;  %v6352_v32 = vadd.f32 %v12841_v22, %v6222_v0  ;;  %7545 = vmatpush.bf16.msra.mxu0 %v9800_v6 }
 0x793   : > { %v6519_v50 = vadd.f32 %v6506_v3, %v12835_v1 }
 0x794   : > { %v6459_v14 = vpop.f32.mrf.mxu0 }
 0x795   : > { %v6532_v19 = vsel %vm1560_vm7, %v6519_v50, 0.0  ;;  %v6481_v44 = vadd.f32 %v6459_v14, %v12837_v16  ;;  %v6573_v20 = vld [vmem:[#allocation2 + $0x3d] sm:$0xff] }
 0x796   : > { %v6706_v10 = vld [vmem:[#allocation2 + $0x3e] sm:$0xff]  ;;  %6545 = vst.msk [vmem:[#allocation2 + $0x48] sm:$0xff] %vm1579_vm0, %v6532_v19  ;;  %v6582_v38 = vpack.c.bf16 %v6573_v20, %v6572_v48 }
 0x797   : > { %v6836_v7 = vld [vmem:[#allocation2 + $0x3f] sm:$0xff]  ;;  %v6715_v58 = vpack.c.bf16 %v6706_v10, %v6705_v59  ;;  %v6494_v41 = vmul.f32 0.01, %v6481_v44 }
 0x798   : > { %v6845_v52 = vpack.c.bf16 %v6836_v7, %v6964_v53  ;;  %9393 = vmatmul.msk.bf16.gmra.mxu1 %vm1579_vm0, %v6582_v38  ;;  %v12851_v59 = vld [vmem:[#allocation21_spill] sm:$0xff]  ;;  %v9797_v38 = vld [vmem:[#allocation4 + $0x558] sm:$0xff] }
 0x799   : > { %9416 = vmatmul.msk.bf16.gmra.mxu2 %vm1579_vm0, %v6715_v58  ;;  %v6507_v40 = vmax.f32 %v6481_v44, %v6494_v41  ;;  %v6094_v19 = vadd.f32 %v12851_v59, %v5964_v62  ;;  %v12852_v44 = vld [vmem:[#allocation34_spill] sm:$0xff]  ;;  %v9788_v58 = vld [vmem:[#allocation4 + $0x510] sm:$0xff]  ;;  %7414 = vmatpush.bf16.msra.mxu3 %v9797_v38 }
 0x79a   : > { %9439 = vmatmul.msk.bf16.gmra.mxu3 %vm1579_vm0, %v6845_v52  ;;  %v9792_v41 = vld [vmem:[#allocation4 + $0x530] sm:$0xff]  ;;  %7155 = vmatpush.bf16.msrb.mxu1 %v9788_v58 }
 0x79b   : > { %v6520_v21 = vadd.f32 %v6507_v40, %v12842_v43  ;;  %v6224_v20 = vadd.f32 %v12852_v44, %v6094_v19  ;;  %v12062_v58 = vld [vmem:[#allocation2 + $0x18] sm:$0xff] }
 0x79c   : > { %v6461_v51 = vpop.f32.mrf.mxu0 }
 0x79d   : > { %v6533_v34 = vsel %vm1561_vm8, %v6520_v21, 0.0  ;;  %v6482_v55 = vadd.f32 %v6461_v51, %v6352_v32  ;;  %v6966_v27 = vld [vmem:[#allocation2 + $0x47] sm:$0xff]  ;;  %v6354_v52 = vadd.f32 %v11927_v57, %v6224_v20  ;;  %7415 = vmatpush.bf16.msra.mxu3 %v9796_v33  ;;  %v9787_v57 = vld [vmem:[#allocation4 + $0x508] sm:$0xff] }
 0x79e   : > { %6546 = vst.msk [vmem:[#allocation2 + $0x50] sm:$0xff] %vm1579_vm0, %v6533_v34  ;;  %v6975_v49 = vpack.c.bf16 %v6966_v27, %v6836_v7  ;;  %v6574_v18 = vld [vmem:[#allocation2 + $0x45] sm:$0xff]  ;;  %v9791_v21 = vld [vmem:[#allocation4 + $0x528] sm:$0xff]  ;;  %7156 = vmatpush.bf16.msrb.mxu1 %v9787_v57 }
 0x79f   : > { %v6495_v25 = vmul.f32 0.01, %v6482_v55  ;;  %v6707_v60 = vld [vmem:[#allocation2 + $0x46] sm:$0xff]  ;;  %v9795_v51 = vld [vmem:[#allocation4 + $0x548] sm:$0xff] }
 0x7a0   : > { %9462 = vmatmul.msk.bf16.gmra.mxu0 %vm1579_vm0, %v6975_v49  ;;  %v9793_v7 = vld [vmem:[#allocation4 + $0x538] sm:$0xff]  ;;  %v9786_v34 = vld [vmem:[#allocation4 + $0x500] sm:$0xff] }
 0x7a1   : > { %v6508_v8 = vmax.f32 %v6482_v55, %v6495_v25  ;;  %7284 = vmatpush.bf16.msra.mxu2 %v9793_v7  ;;  %v12855_v55 = vld [vmem:[#allocation33_spill] sm:$0xff]  ;;  %7416 = vmatpush.bf16.msra.mxu3 %v9795_v51  ;;  %v9790_v49 = vld [vmem:[#allocation4 + $0x520] sm:$0xff] }
 0x7a2   : > { %7157 = vmatpush.bf16.msrb.mxu1 %v9786_v34  ;;  %v7209_v57 = vld [vmem:[#allocation2 + $0x29] sm:$0xff] }
 0x7a3   : > { %v6521_v37 = vadd.f32 %v6508_v8, %v12848_v47 }
 0x7a4   : > { %v6464_v53 = vpop.f32.mrf.mxu0 }
 0x7a5   : > { %v6534_v5 = vsel %vm1562_vm9, %v6521_v37, 0.0  ;;  %v6483_v56 = vadd.f32 %v6464_v53, %v12850_v13  ;;  %v6575_v3 = vld [vmem:[#allocation2 + $0x4d] sm:$0xff]  ;;  %7285 = vmatpush.bf16.msra.mxu2 %v9792_v41  ;;  %7417 = vmatpush.bf16.msra.mxu3 %v9794_v35 }
 0x7a6   : > { %v6708_v42 = vld [vmem:[#allocation2 + $0x4e] sm:$0xff]  ;;  %6547 = vst.msk [vmem:[#allocation2 + $0x58] sm:$0xff] %vm1579_vm0, %v6534_v5  ;;  %v6583_v50 = vpack.c.bf16 %v6575_v3, %v6574_v18 }
 0x7a7   : > { %v6838_v1 = vld [vmem:[#allocation2 + $0x4f] sm:$0xff]  ;;  %v6716_v14 = vpack.c.bf16 %v6708_v42, %v6707_v60  ;;  %v6496_v16 = vmul.f32 0.01, %v6483_v56 }
 0x7a8   : > { %v6846_v48 = vpack.c.bf16 %v6838_v1, %v6966_v27  ;;  %9394 = vmatmul.msk.bf16.gmra.mxu1 %vm1579_vm0, %v6583_v50  ;;  %v7206_v41 = vld [vmem:[#allocation2 + $0x11] sm:$0xff] }
 0x7a9   : > { %9417 = vmatmul.msk.bf16.gmra.mxu2 %vm1579_vm0, %v6716_v14  ;;  %v6509_v10 = vmax.f32 %v6483_v56, %v6496_v16  ;;  %v12857_v56 = vld [vmem:[#allocation32_spill] sm:$0xff] }
 0x7aa   : > { %9440 = vmatmul.msk.bf16.gmra.mxu3 %vm1579_vm0, %v6846_v48  ;;  %7286 = vmatpush.bf16.msra.mxu2 %v9791_v21  ;;  %v9798_v48 = vld [vmem:[#allocation4 + $0x560] sm:$0xff]  ;;  %v7339_v21 = vld [vmem:[#allocation2 + $0x31] sm:$0xff] }
 0x7ab   : > { %v6522_v31 = vadd.f32 %v6509_v10, %v12853_v17  ;;  %v7337_v17 = vld [vmem:[#allocation2 + $0x21] sm:$0xff] }
 0x7ac   : > { %v6466_v36 = vpop.f32.mrf.mxu0 }
 0x7ad   : > { %v6535_v0 = vsel %vm1563_vm10, %v6522_v31, 0.0  ;;  %v6484_v40 = vadd.f32 %v6466_v36, %v6354_v52  ;;  %v6968_v22 = vld [vmem:[#allocation2 + $0x57] sm:$0xff] }
 0x7ae   : > { %6548 = vst.msk [vmem:[#allocation2 + $0x60] sm:$0xff] %vm1579_vm0, %v6535_v0  ;;  %v6976_v32 = vpack.c.bf16 %v6968_v22, %v6838_v1  ;;  %v6576_v63 = vld [vmem:[#allocation2 + $0x55] sm:$0xff]  ;;  %7287 = vmatpush.bf16.msra.mxu2 %v9790_v49 }
 0x7af   : > { %v6497_v43 = vmul.f32 0.01, %v6484_v40  ;;  %v6709_v25 = vld [vmem:[#allocation2 + $0x56] sm:$0xff] }
 0x7b0   : > { %9463 = vmatmul.msk.bf16.gmra.mxu0 %vm1579_vm0, %v6976_v32  ;;  %v7207_v52 = vld [vmem:[#allocation2 + $0x19] sm:$0xff]  ;;  %v12064_v31 = vld [vmem:[#allocation2 + $0x10] sm:$0xff] }
 0x7b1   : > { %v6510_v2 = vmax.f32 %v6484_v40, %v6497_v43  ;;  %v7089_v33 = vpack.c.bf16 %v12062_v58, %v12064_v31  ;;  %v7219_v36 = vpack.c.bf16 %v7207_v52, %v7206_v41  ;;  %v7349_v0 = vpack.c.bf16 %v7337_v17, %v7207_v52  ;;  %v7467_v40 = vld [vmem:[#allocation2 + $0x22] sm:$0xff]  ;;  %v7470_v41 = vld [vmem:[#allocation2 + $0x3a] sm:$0xff] }
 0x7b2   : > { %v12072_v43 = vld [vmem:[#allocation2 + $0x28] sm:$0xff] }
 0x7b3   : > { %v6523_v27 = vadd.f32 %v6510_v2, %v12855_v55  ;;  %v12074_v2 = vld [vmem:[#allocation2 + $0x20] sm:$0xff]  ;;  %v7220_v55 = vpack.c.bf16 %v7209_v57, %v7337_v17 }
 0x7b4   : > { %v6469_v39 = vpop.f32.mrf.mxu0  ;;  %v7090_v34 = vpack.c.bf16 %v12072_v43, %v12074_v2 }
 0x7b5   : > { %v6536_v8 = vsel %vm1564_vm11, %v6523_v27, 0.0  ;;  %v6485_v15 = vadd.f32 %v6469_v39, %v11929_v9  ;;  %v6577_v62 = vld [vmem:[#allocation2 + $0x5d] sm:$0xff]  ;;  %v9799_v9 = vld [vmem:[#allocation4 + $0x568] sm:$0xff]  ;;  %v7350_v27 = vpack.c.bf16 %v7339_v21, %v7209_v57  ;;  %v7213_v57 = vld [vmem:[#allocation2 + $0x49] sm:$0xff] }
 0x7b6   : > { %v6710_v47 = vld [vmem:[#allocation2 + $0x5e] sm:$0xff]  ;;  %6549 = vst.msk [vmem:[#allocation2 + $0x68] sm:$0xff] %vm1579_vm0, %v6536_v8  ;;  %v6584_v53 = vpack.c.bf16 %v6577_v62, %v6576_v63  ;;  %7546 = vmatpush.bf16.msra.mxu0 %v9799_v9  ;;  %v7469_v39 = vld [vmem:[#allocation2 + $0x32] sm:$0xff] }
 0x7b7   : > { %v6840_v37 = vld [vmem:[#allocation2 + $0x5f] sm:$0xff]  ;;  %v6717_v18 = vpack.c.bf16 %v6710_v47, %v6709_v25  ;;  %v6498_v5 = vmul.f32 0.01, %v6485_v15 }
 0x7b8   : > { %v6847_v60 = vpack.c.bf16 %v6840_v37, %v6968_v22  ;;  %9395 = vmatmul.msk.bf16.gmra.mxu1 %vm1579_vm0, %v6584_v53  ;;  %v7466_v22 = vld [vmem:[#allocation2 + $0x1a] sm:$0xff] }
 0x7b9   : > { %9418 = vmatmul.msk.bf16.gmra.mxu2 %vm1579_vm0, %v6717_v18  ;;  %v6511_v13 = vmax.f32 %v6485_v15, %v6498_v5  ;;  %v7479_v32 = vpack.c.bf16 %v7467_v40, %v7466_v22  ;;  %v7468_v15 = vld [vmem:[#allocation2 + $0x2a] sm:$0xff]  ;;  %v7211_v5 = vld [vmem:[#allocation2 + $0x39] sm:$0xff] }
 0x7ba   : > { %9441 = vmatmul.msk.bf16.gmra.mxu3 %vm1579_vm0, %v6847_v60  ;;  %7547 = vmatpush.bf16.msra.mxu0 %v9798_v48  ;;  %v7480_v47 = vpack.c.bf16 %v7469_v39, %v7468_v15  ;;  %v12091_v60 = vld [vmem:[#allocation2 + $0x38] sm:$0xff] }
 0x7bb   : > { %v6524_v3 = vadd.f32 %v6511_v13, %v12857_v56  ;;  %v7341_v56 = vld [vmem:[#allocation2 + $0x41] sm:$0xff] }
 0x7bc   : > { %v6471_v42 = vpop.f32.mrf.mxu0 }
 0x7bd   : > { %v6537_v50 = vsel %vm1565_vm12, %v6524_v3, 0.0  ;;  %v6970_v14 = vld [vmem:[#allocation2 + $0x67] sm:$0xff] }
 0x7be   : > { %6550 = vst.msk [vmem:[#allocation2 + $0x70] sm:$0xff] %vm1579_vm0, %v6537_v50  ;;  %v6977_v59 = vpack.c.bf16 %v6970_v14, %v6840_v37  ;;  %v6578_v19 = vld [vmem:[#allocation2 + $0x65] sm:$0xff]  ;;  %v6848_v10 = vpack.c.bf16 %v6970_v14, %v6970_v14  ;;  %v12093_v50 = vld [vmem:[#allocation2 + $0x30] sm:$0xff] }
 0x7bf   : > { %v6711_v16 = vld [vmem:[#allocation2 + $0x66] sm:$0xff]  ;;  %v6585_v44 = vpack.c.bf16 %v6578_v19, %v6578_v19  ;;  %v7091_v48 = vpack.c.bf16 %v12091_v60, %v12093_v50  ;;  %v7351_v19 = vpack.c.bf16 %v7341_v56, %v7211_v5 }
 0x7c0   : > { %9464 = vmatmul.msk.bf16.gmra.mxu0 %vm1579_vm0, %v6977_v59  ;;  %v6718_v20 = vpack.c.bf16 %v6711_v16, %v6711_v16  ;;  %v7221_v59 = vpack.c.bf16 %v7211_v5, %v7339_v21 }
 0x7c5   : > { %v6971_v7 = vld [vmem:[#allocation2 + $0x6f] sm:$0xff] }
 0x7c6   : > { %v6978_v38 = vpack.c.bf16 %v6971_v7, %v6971_v7 }
 0x7c8   : > { %9396 = vmatmul.msk.bf16.gmra.mxu1 %vm1579_vm0, %v6585_v44 }
 0x7c9   : > { %9419 = vmatmul.msk.bf16.gmra.mxu2 %vm1579_vm0, %v6718_v20 }
 0x7ca   : > { %9442 = vmatmul.msk.bf16.gmra.mxu3 %vm1579_vm0, %v6848_v10  ;;  %v7471_v10 = vld [vmem:[#allocation2 + $0x42] sm:$0xff] }
 0x7d0   : > { %9465 = vmatmul.msk.bf16.gmra.mxu0 %vm1579_vm0, %v6978_v38 }
 0x7d8   : > { %9482 = vmatmul.msk.bf16.vlgmr.msrb.gmra.mxu1 %vm1579_vm0, %v7089_v33 }
 0x7d9   : > { %9505 = vmatmul.msk.bf16.vlgmr.msra.gmra.mxu2 %vm1579_vm0, %v7219_v36  ;;  %v7481_v36 = vpack.c.bf16 %v7471_v10, %v7470_v41  ;;  %v7345_v10 = vld [vmem:[#allocation2 + $0x61] sm:$0xff] }
 0x7da   : > { %9528 = vmatmul.msk.bf16.vlgmr.msra.gmra.mxu3 %vm1579_vm0, %v7349_v0 }
 0x7e0   : > { %9551 = vmatmul.msk.bf16.vlgmr.msra.gmra.mxu0 %vm1579_vm0, %v7479_v32  ;;  %v12107_v32 = vld [vmem:[#allocation2 + $0x48] sm:$0xff] }
 0x7e5   : > { %v6649_v51 = vpop.f32.mrf.mxu1 }
 0x7e6   : > { %v6686_v49 = vadd.f32 %v12079_v23, %v6649_v51 }
 0x7e8   : > { %9483 = vmatmul.msk.bf16.gmra.mxu1 %vm1579_vm0, %v7090_v34  ;;  %v7343_v34 = vld [vmem:[#allocation2 + $0x51] sm:$0xff] }
 0x7e9   : > { %9506 = vmatmul.msk.bf16.gmra.mxu2 %vm1579_vm0, %v7220_v55 }
 0x7ea   : > { %9529 = vmatmul.msk.bf16.gmra.mxu3 %vm1579_vm0, %v7350_v27 }
 0x7ec   : > { %v6782_v35 = vpop.f32.mrf.mxu2 }
 0x7ed   : > { %v6816_v63 = vadd.f32 %v6782_v35, %v6686_v49  ;;  %v6912_v25 = vpop.f32.mrf.mxu3  ;;  %v6651_v6 = vpop.f32.mrf.mxu1  ;;  %v12109_v49 = vld [vmem:[#allocation2 + $0x40] sm:$0xff] }
 0x7ee   : > { %v7042_v8 = vpop.f32.mrf.mxu0  ;;  %v6687_v53 = vadd.f32 %v12079_v23, %v6651_v6  ;;  %v7092_v39 = vpack.c.bf16 %v12107_v32, %v12109_v49 }
 0x7ef   : > { %v6946_v62 = vadd.f32 %v6912_v25, %v6816_v63  ;;  %v7222_v63 = vpack.c.bf16 %v7213_v57, %v7341_v56  ;;  %v7352_v25 = vpack.c.bf16 %v7343_v34, %v7213_v57 }
 0x7f0   : > { %9552 = vmatmul.msk.bf16.gmra.mxu0 %vm1579_vm0, %v7480_v47 }
 0x7f1   : > { %v12087_v37 = vadd.f32 %v7042_v8, %v6946_v62  ;;  %v7473_v62 = vld [vmem:[#allocation2 + $0x52] sm:$0xff] }
 0x7f4   : > { %v6784_v18 = vpop.f32.mrf.mxu2 }
 0x7f5   : > { %v6817_v13 = vadd.f32 %v6784_v18, %v6687_v53  ;;  %v6914_v9 = vpop.f32.mrf.mxu3  ;;  %v6654_v3 = vpop.f32.mrf.mxu1 }
 0x7f6   : > { %v7044_v42 = vpop.f32.mrf.mxu0  ;;  %v6688_v44 = vadd.f32 %v12079_v23, %v6654_v3 }
 0x7f7   : > { %v6947_v14 = vadd.f32 %v6914_v9, %v6817_v13  ;;  %v7472_v13 = vld [vmem:[#allocation2 + $0x4a] sm:$0xff] }
 0x7f8   : > { %9484 = vmatmul.msk.bf16.gmra.mxu1 %vm1579_vm0, %v7091_v48  ;;  %v7482_v56 = vpack.c.bf16 %v7473_v62, %v7472_v13 }
 0x7f9   : > { %v12097_v16 = vadd.f32 %v7044_v42, %v6947_v14  ;;  %9507 = vmatmul.msk.bf16.gmra.mxu2 %vm1579_vm0, %v7221_v59  ;;  %v9805_v42 = vld [vmem:[#allocation4 + $0x598] sm:$0xff]  ;;  %v12123_v59 = vld [vmem:[#allocation2 + $0x58] sm:$0xff] }
 0x7fa   : > { %9530 = vmatmul.msk.bf16.gmra.mxu3 %vm1579_vm0, %v7351_v19  ;;  %7674 = vmatpush.bf16.msra.mxu1 %v9805_v42  ;;  %v7215_v19 = vld [vmem:[#allocation2 + $0x59] sm:$0xff] }
 0x7fc   : > { %v6787_v20 = vpop.f32.mrf.mxu2 }
 0x7fd   : > { %v6818_v7 = vadd.f32 %v6787_v20, %v6688_v44  ;;  %v6917_v38 = vpop.f32.mrf.mxu3  ;;  %v6656_v52 = vpop.f32.mrf.mxu1 }
 0x7fe   : > { %v7047_v17 = vpop.f32.mrf.mxu0  ;;  %v6689_v40 = vadd.f32 %v12079_v23, %v6656_v52  ;;  %v12125_v52 = vld [vmem:[#allocation2 + $0x50] sm:$0xff] }
 0x7ff   : > { %v6948_v33 = vadd.f32 %v6917_v38, %v6818_v7  ;;  %v7093_v41 = vpack.c.bf16 %v12123_v59, %v12125_v52 }
 0x800   : > { %9553 = vmatmul.msk.bf16.gmra.mxu0 %vm1579_vm0, %v7481_v36  ;;  %v7353_v36 = vpack.c.bf16 %v7345_v10, %v7215_v19 }
 0x801   : > { %v12103_v0 = vadd.f32 %v7047_v17, %v6948_v33  ;;  %v7223_v33 = vpack.c.bf16 %v7215_v19, %v7343_v34 }
 0x804   : > { %v6789_v22 = vpop.f32.mrf.mxu2 }
 0x805   : > { %v6819_v21 = vadd.f32 %v6789_v22, %v6689_v40  ;;  %v6919_v51 = vpop.f32.mrf.mxu3  ;;  %v6659_v55 = vpop.f32.mrf.mxu1 }
 0x806   : > { %v7049_v27 = vpop.f32.mrf.mxu0  ;;  %v6690_v8 = vadd.f32 %v12079_v23, %v6659_v55 }
 0x807   : > { %v6949_v35 = vadd.f32 %v6919_v51, %v6819_v21  ;;  %v7475_v21 = vld [vmem:[#allocation2 + $0x62] sm:$0xff] }
 0x808   : > { %9485 = vmatmul.msk.bf16.gmra.mxu1 %vm1579_vm0, %v7092_v39  ;;  %v7474_v39 = vld [vmem:[#allocation2 + $0x5a] sm:$0xff] }
 0x809   : > { %v12113_v6 = vadd.f32 %v7049_v27, %v6949_v35  ;;  %9508 = vmatmul.msk.bf16.gmra.mxu2 %vm1579_vm0, %v7222_v63  ;;  %v9804_v63 = vld [vmem:[#allocation4 + $0x590] sm:$0xff] }
 0x80a   : > { %9531 = vmatmul.msk.bf16.gmra.mxu3 %vm1579_vm0, %v7352_v25  ;;  %v7483_v25 = vpack.c.bf16 %v7475_v21, %v7474_v39  ;;  %7675 = vmatpush.bf16.msra.mxu1 %v9804_v63  ;;  %v7348_v39 = vld [vmem:[#allocation2 + $0x79] sm:$0xff] }
 0x80c   : > { %v6792_v15 = vpop.f32.mrf.mxu2 }
 0x80d   : > { %v6820_v47 = vadd.f32 %v6792_v15, %v6690_v8  ;;  %v6922_v53 = vpop.f32.mrf.mxu3  ;;  %v6661_v18 = vpop.f32.mrf.mxu1  ;;  %v9803_v15 = vld [vmem:[#allocation4 + $0x588] sm:$0xff] }
 0x80e   : > { %v7052_v5 = vpop.f32.mrf.mxu0  ;;  %v6691_v14 = vadd.f32 %v12079_v23, %v6661_v18  ;;  %v7217_v18 = vld [vmem:[#allocation2 + $0x69] sm:$0xff]  ;;  %7676 = vmatpush.bf16.msra.mxu1 %v9803_v15 }
 0x80f   : > { %v6950_v9 = vadd.f32 %v6922_v53, %v6820_v47  ;;  %v12139_v53 = vld [vmem:[#allocation2 + $0x68] sm:$0xff] }
 0x810   : > { %9554 = vmatmul.msk.bf16.gmra.mxu0 %vm1579_vm0, %v7482_v56 }
 0x811   : > { %v12119_v3 = vadd.f32 %v7052_v5, %v6950_v9  ;;  %v7347_v9 = vld [vmem:[#allocation2 + $0x71] sm:$0xff] }
 0x814   : > { %v6794_v48 = vpop.f32.mrf.mxu2 }
 0x815   : > { %v6821_v44 = vadd.f32 %v6794_v48, %v6691_v14  ;;  %v6924_v20 = vpop.f32.mrf.mxu3  ;;  %v6664_v7 = vpop.f32.mrf.mxu1  ;;  %v12141_v14 = vld [vmem:[#allocation2 + $0x60] sm:$0xff]  ;;  %v9802_v48 = vld [vmem:[#allocation4 + $0x580] sm:$0xff] }
 0x816   : > { %v7054_v38 = vpop.f32.mrf.mxu0  ;;  %v6692_v22 = vadd.f32 %v12079_v23, %v6664_v7  ;;  %v7354_v7 = vpack.c.bf16 %v7347_v9, %v7217_v18  ;;  %7677 = vmatpush.bf16.msra.mxu1 %v9802_v48  ;;  %v7478_v48 = vld [vmem:[#allocation2 + $0x7a] sm:$0xff] }
 0x817   : > { %v6951_v17 = vadd.f32 %v6924_v20, %v6821_v44  ;;  %v7094_v44 = vpack.c.bf16 %v12139_v53, %v12141_v14  ;;  %v7224_v20 = vpack.c.bf16 %v7217_v18, %v7345_v10  ;;  %v7355_v18 = vpack.c.bf16 %v7348_v39, %v7348_v39  ;;  %v7596_v39 = vld [vmem:[#allocation2 + $0x1b] sm:$0xff] }
 0x818   : > { %9486 = vmatmul.msk.bf16.gmra.mxu1 %vm1579_vm0, %v7093_v41 }
 0x819   : > { %v12129_v40 = vadd.f32 %v7054_v38, %v6951_v17  ;;  %9509 = vmatmul.msk.bf16.gmra.mxu2 %vm1579_vm0, %v7223_v33  ;;  %v7476_v33 = vld [vmem:[#allocation2 + $0x6a] sm:$0xff] }
 0x81a   : > { %9532 = vmatmul.msk.bf16.gmra.mxu3 %vm1579_vm0, %v7353_v36  ;;  %v7477_v36 = vld [vmem:[#allocation2 + $0x72] sm:$0xff] }
 0x81c   : > { %v6797_v57 = vpop.f32.mrf.mxu2 }
 0x81d   : > { %v6822_v51 = vadd.f32 %v6797_v57, %v6692_v22  ;;  %v6927_v55 = vpop.f32.mrf.mxu3  ;;  %v6666_v27 = vpop.f32.mrf.mxu1 }
 0x81e   : > { %v7057_v35 = vpop.f32.mrf.mxu0  ;;  %v6693_v62 = vadd.f32 %v12079_v23, %v6666_v27 }
 0x81f   : > { %v6952_v34 = vadd.f32 %v6927_v55, %v6822_v51  ;;  %v7484_v55 = vpack.c.bf16 %v7477_v36, %v7476_v33 }
 0x820   : > { %9555 = vmatmul.msk.bf16.gmra.mxu0 %vm1579_vm0, %v7483_v25 }
 0x821   : > { %v12135_v8 = vadd.f32 %v7057_v35, %v6952_v34  ;;  %v12155_v34 = vld [vmem:[#allocation2 + $0x70] sm:$0xff] }
 0x824   : > { %v6799_v47 = vpop.f32.mrf.mxu2 }
 0x825   : > { %v6823_v5 = vadd.f32 %v6799_v47, %v6693_v62  ;;  %v6929_v13 = vpop.f32.mrf.mxu3  ;;  %v6669_v56 = vpop.f32.mrf.mxu1 }
 0x826   : > { %v7059_v42 = vpop.f32.mrf.mxu0  ;;  %v6694_v17 = vadd.f32 %v12079_v23, %v6669_v56  ;;  %v7225_v56 = vpack.c.bf16 %v7347_v9, %v7347_v9 }
 0x827   : > { %v6953_v19 = vadd.f32 %v6929_v13, %v6823_v5  ;;  %v7095_v13 = vpack.c.bf16 %v12155_v34, %v12155_v34 }
 0x828   : > { %9487 = vmatmul.msk.bf16.gmra.mxu1 %vm1579_vm0, %v7094_v44 }
 0x829   : > { %v12145_v38 = vadd.f32 %v7059_v42, %v6953_v19  ;;  %9510 = vmatmul.msk.bf16.gmra.mxu2 %vm1579_vm0, %v7224_v20 }
 0x82a   : > { %9533 = vmatmul.msk.bf16.gmra.mxu3 %vm1579_vm0, %v7354_v7 }
 0x82c   : > { %v6802_v41 = vpop.f32.mrf.mxu2 }
 0x82d   : > { %v6824_v22 = vadd.f32 %v6802_v41, %v6694_v17  ;;  %v6932_v57 = vpop.f32.mrf.mxu3  ;;  %v6671_v21 = vpop.f32.mrf.mxu1  ;;  %v7485_v17 = vpack.c.bf16 %v7478_v48, %v7478_v48 }
 0x82e   : > { %v7062_v51 = vpop.f32.mrf.mxu0  ;;  %v6695_v35 = vadd.f32 %v12079_v23, %v6671_v21  ;;  %v7597_v21 = vld [vmem:[#allocation2 + $0x23] sm:$0xff] }
 0x82f   : > { %v6954_v10 = vadd.f32 %v6932_v57, %v6824_v22 }
 0x830   : > { %9556 = vmatmul.msk.bf16.gmra.mxu0 %vm1579_vm0, %v7484_v55 }
 0x831   : > { %v12151_v27 = vadd.f32 %v7062_v51, %v6954_v10 }
 0x834   : > { %v6804_v63 = vpop.f32.mrf.mxu2 }
 0x835   : > { %v6825_v25 = vadd.f32 %v6804_v63, %v6695_v35  ;;  %v6934_v15 = vpop.f32.mrf.mxu3  ;;  %v6674_v62 = vpop.f32.mrf.mxu1 }
 0x836   : > { %v7064_v47 = vpop.f32.mrf.mxu0  ;;  %v6696_v19 = vadd.f32 %v12079_v23, %v6674_v62 }
 0x837   : > { %v6955_v5 = vadd.f32 %v6934_v15, %v6825_v25  ;;  %v7609_v25 = vpack.c.bf16 %v7597_v21, %v7596_v39 }
 0x838   : > { %9488 = vmatmul.msk.bf16.gmra.mxu1 %vm1579_vm0, %v7095_v13 }
 0x839   : > { %v12159_v42 = vadd.f32 %v7064_v47, %v6955_v5  ;;  %9511 = vmatmul.msk.bf16.gmra.mxu2 %vm1579_vm0, %v7225_v56 }
 0x83a   : > { %9534 = vmatmul.msk.bf16.gmra.mxu3 %vm1579_vm0, %v7355_v18 }
 0x83c   : > { %v6807_v44 = vpop.f32.mrf.mxu2 }
 0x83d   : > { %v6826_v20 = vadd.f32 %v6807_v44, %v6696_v19  ;;  %v6937_v7 = vpop.f32.mrf.mxu3  ;;  %v6676_v41 = vpop.f32.mrf.mxu1 }
 0x83e   : > { %v7067_v33 = vpop.f32.mrf.mxu0  ;;  %v6697_v9 = vadd.f32 %v12079_v23, %v6676_v41 }
 0x83f   : > { %v6956_v36 = vadd.f32 %v6937_v7, %v6826_v20  ;;  %v7599_v20 = vld [vmem:[#allocation2 + $0x33] sm:$0xff] }
 0x840   : > { %9557 = vmatmul.msk.bf16.gmra.mxu0 %vm1579_vm0, %v7485_v17 }
 0x841   : > { %v12165_v22 = vadd.f32 %v7067_v33, %v6956_v36  ;;  %v7598_v33 = vld [vmem:[#allocation2 + $0x2b] sm:$0xff] }
 0x844   : > { %v6809_v57 = vpop.f32.mrf.mxu2 }
 0x845   : > { %v6827_v51 = vadd.f32 %v6809_v57, %v6697_v9  ;;  %v6939_v10 = vpop.f32.mrf.mxu3  ;;  %v6679_v55 = vpop.f32.mrf.mxu1  ;;  %v7610_v9 = vpack.c.bf16 %v7599_v20, %v7598_v33 }
 0x846   : > { %v7069_v35 = vpop.f32.mrf.mxu0  ;;  %v6698_v62 = vadd.f32 %v12079_v23, %v6679_v55 }
 0x847   : > { %v6957_v63 = vadd.f32 %v6939_v10, %v6827_v51 }
 0x848   : > { %9574 = vmatmul.msk.bf16.vlgmr.msra.gmra.mxu1 %vm1579_vm0, %v7609_v25  ;;  %v7601_v25 = vld [vmem:[#allocation2 + $0x43] sm:$0xff] }
 0x849   : > { %v12169_v15 = vadd.f32 %v7069_v35, %v6957_v63 }
 0x84c   : > { %v6812_v47 = vpop.f32.mrf.mxu2 }
 0x84d   : > { %v6828_v18 = vadd.f32 %v6812_v47, %v6698_v62  ;;  %v6942_v5 = vpop.f32.mrf.mxu3  ;;  %v6681_v13 = vpop.f32.mrf.mxu1 }
 0x84e   : > { %v7072_v56 = vpop.f32.mrf.mxu0 }
 0x84f   : > { %v6958_v48 = vadd.f32 %v6942_v5, %v6828_v18 }
 0x851   : > { %v12173_v19 = vadd.f32 %v7072_v56, %v6958_v48 }
 0x854   : > { %v6814_v44 = vpop.f32.mrf.mxu2 }
 0x855   : > { %v6944_v7 = vpop.f32.mrf.mxu3  ;;  %v7159_v41 = vpop.f32.mrf.mxu1 }
 0x856   : > { %v7074_v17 = vpop.f32.mrf.mxu0  ;;  %v7193_v36 = vadd.f32 %v7159_v41, %v12087_v37  ;;  %v7600_v37 = vld [vmem:[#allocation2 + $0x3b] sm:$0xff] }
 0x857   : > { %v7611_v48 = vpack.c.bf16 %v7601_v25, %v7600_v37 }
 0x858   : > { %9575 = vmatmul.msk.bf16.gmra.mxu1 %vm1579_vm0, %v7610_v9 }
 0x85c   : > { %v7289_v23 = vpop.f32.mrf.mxu2 }
 0x85d   : > { %v7323_v57 = vadd.f32 %v7289_v23, %v7193_v36  ;;  %v7419_v21 = vpop.f32.mrf.mxu3  ;;  %v7161_v51 = vpop.f32.mrf.mxu1 }
 0x85e   : > { %v7549_v10 = vpop.f32.mrf.mxu0  ;;  %v7194_v35 = vadd.f32 %v7161_v51, %v12097_v16 }
 0x85f   : > { %v7453_v55 = vadd.f32 %v7419_v21, %v7323_v57  ;;  %v7603_v57 = vld [vmem:[#allocation2 + $0x53] sm:$0xff] }
 0x861   : > { %v12178_v39 = vadd.f32 %v7549_v10, %v7453_v55  ;;  %v7602_v55 = vld [vmem:[#allocation2 + $0x4b] sm:$0xff] }
 0x862   : > { %v7612_v25 = vpack.c.bf16 %v7603_v57, %v7602_v55 }
 0x864   : > { %v7291_v63 = vpop.f32.mrf.mxu2 }
 0x865   : > { %v7324_v62 = vadd.f32 %v7291_v63, %v7194_v35  ;;  %v7421_v47 = vpop.f32.mrf.mxu3  ;;  %v7164_v18 = vpop.f32.mrf.mxu1 }
 0x866   : > { %v7551_v5 = vpop.f32.mrf.mxu0  ;;  %v7195_v56 = vadd.f32 %v7164_v18, %v12103_v0 }
 0x867   : > { %v7454_v13 = vadd.f32 %v7421_v47, %v7324_v62 }
 0x868   : > { %9576 = vmatmul.msk.bf16.gmra.mxu1 %vm1579_vm0, %v7611_v48 }
 0x869   : > { %v12181_v44 = vadd.f32 %v7551_v5, %v7454_v13 }
 0x86c   : > { %v7294_v20 = vpop.f32.mrf.mxu2 }
 0x86d   : > { %v7325_v7 = vadd.f32 %v7294_v20, %v7195_v56  ;;  %v7424_v16 = vpop.f32.mrf.mxu3  ;;  %v7166_v17 = vpop.f32.mrf.mxu1 }
 0x86e   : > { %v7554_v41 = vpop.f32.mrf.mxu0  ;;  %v7196_v36 = vadd.f32 %v7166_v17, %v12113_v6 }
 0x86f   : > { %v7455_v33 = vadd.f32 %v7424_v16, %v7325_v7  ;;  %v7605_v7 = vld [vmem:[#allocation2 + $0x63] sm:$0xff] }
 0x871   : > { %v12185_v9 = vadd.f32 %v7554_v41, %v7455_v33  ;;  %v7604_v33 = vld [vmem:[#allocation2 + $0x5b] sm:$0xff] }
 0x872   : > { %v7613_v57 = vpack.c.bf16 %v7605_v7, %v7604_v33 }
 0x874   : > { %v7296_v23 = vpop.f32.mrf.mxu2 }
 0x875   : > { %v7326_v21 = vadd.f32 %v7296_v23, %v7196_v36  ;;  %v7426_v51 = vpop.f32.mrf.mxu3  ;;  %v7169_v0 = vpop.f32.mrf.mxu1 }
 0x876   : > { %v7556_v10 = vpop.f32.mrf.mxu0  ;;  %v7197_v63 = vadd.f32 %v7169_v0, %v12119_v3 }
 0x877   : > { %v7456_v35 = vadd.f32 %v7426_v51, %v7326_v21 }
 0x878   : > { %9577 = vmatmul.msk.bf16.gmra.mxu1 %vm1579_vm0, %v7612_v25 }
 0x879   : > { %v12188_v62 = vadd.f32 %v7556_v10, %v7456_v35 }
 0x87c   : > { %v7299_v47 = vpop.f32.mrf.mxu2 }
 0x87d   : > { %v7327_v18 = vadd.f32 %v7299_v47, %v7197_v63  ;;  %v7429_v6 = vpop.f32.mrf.mxu3  ;;  %v7171_v5 = vpop.f32.mrf.mxu1 }
 0x87e   : > { %v7559_v37 = vpop.f32.mrf.mxu0  ;;  %v7198_v56 = vadd.f32 %v7171_v5, %v12129_v40 }
 0x87f   : > { %v7457_v13 = vadd.f32 %v7429_v6, %v7327_v18  ;;  %v7606_v18 = vld [vmem:[#allocation2 + $0x6b] sm:$0xff]  ;;  %v7607_v6 = vld [vmem:[#allocation2 + $0x73] sm:$0xff] }
 0x880   : > { %v7614_v7 = vpack.c.bf16 %v7607_v6, %v7606_v18 }
 0x881   : > { %v12192_v48 = vadd.f32 %v7559_v37, %v7457_v13 }
 0x884   : > { %v7301_v20 = vpop.f32.mrf.mxu2 }
 0x885   : > { %v7328_v16 = vadd.f32 %v7301_v20, %v7198_v56  ;;  %v7431_v17 = vpop.f32.mrf.mxu3  ;;  %v7174_v3 = vpop.f32.mrf.mxu1 }
 0x886   : > { %v7561_v41 = vpop.f32.mrf.mxu0  ;;  %v7199_v23 = vadd.f32 %v7174_v3, %v12135_v8 }
 0x887   : > { %v7458_v36 = vadd.f32 %v7431_v17, %v7328_v16 }
 0x888   : > { %9578 = vmatmul.msk.bf16.gmra.mxu1 %vm1579_vm0, %v7613_v57  ;;  %v7811_v57 = vld [vmem:[%s12615_s6 + $0x38] sm:$0xff] }
 0x889   : > { %v12195_v21 = vadd.f32 %v7561_v41, %v7458_v36  ;;  %7863 = vmatpush.msrb.mxu2 %v7811_v57 }
 0x88c   : > { %v7304_v51 = vpop.f32.mrf.mxu2 }
 0x88d   : > { %v7329_v0 = vadd.f32 %v7304_v51, %v7199_v23  ;;  %v7434_v40 = vpop.f32.mrf.mxu3  ;;  %v7176_v10 = vpop.f32.mrf.mxu1 }
 0x88e   : > { %v7564_v55 = vpop.f32.mrf.mxu0  ;;  %v7200_v63 = vadd.f32 %v7176_v10, %v12145_v38 }
 0x88f   : > { %v7459_v35 = vadd.f32 %v7434_v40, %v7329_v0 }
 0x891   : > { %v12199_v25 = vadd.f32 %v7564_v55, %v7459_v35 }
 0x894   : > { %v7306_v47 = vpop.f32.mrf.mxu2 }
 0x895   : > { %v7330_v5 = vadd.f32 %v7306_v47, %v7200_v63  ;;  %v7436_v8 = vpop.f32.mrf.mxu3  ;;  %v7179_v37 = vpop.f32.mrf.mxu1 }
 0x896   : > { %v7566_v13 = vpop.f32.mrf.mxu0  ;;  %v7201_v20 = vadd.f32 %v7179_v37, %v12151_v27  ;;  %v7608_v27 = vld [vmem:[#allocation2 + $0x7b] sm:$0xff] }
 0x897   : > { %v7460_v56 = vadd.f32 %v7436_v8, %v7330_v5  ;;  %v7615_v55 = vpack.c.bf16 %v7608_v27, %v7608_v27  ;;  %v7810_v5 = vld [vmem:[%s12615_s6 + $0x30] sm:$0xff]  ;;  %v7805_v27 = vld [vmem:[%s12615_s6 + $0x8] sm:$0xff] }
 0x898   : > { %9579 = vmatmul.msk.bf16.gmra.mxu1 %vm1579_vm0, %v7614_v7  ;;  %7864 = vmatpush.msrb.mxu2 %v7810_v5 }
 0x899   : > { %v12202_v16 = vadd.f32 %v7566_v13, %v7460_v56 }
 0x89c   : > { %v7309_v17 = vpop.f32.mrf.mxu2 }
 0x89d   : > { %v7331_v3 = vadd.f32 %v7309_v17, %v7201_v20  ;;  %v7439_v38 = vpop.f32.mrf.mxu3  ;;  %v7181_v41 = vpop.f32.mrf.mxu1  ;;  %v7809_v20 = vld [vmem:[%s12615_s6 + $0x28] sm:$0xff]  ;;  %v7808_v17 = vld [vmem:[%s12615_s6 + $0x20] sm:$0xff] }
 0x89e   : > { %v7569_v33 = vpop.f32.mrf.mxu0  ;;  %v7202_v23 = vadd.f32 %v7181_v41, %v12159_v42  ;;  %7865 = vmatpush.msrb.mxu2 %v7809_v20 }
 0x89f   : > { %v7461_v36 = vadd.f32 %v7439_v38, %v7331_v3  ;;  %v7807_v38 = vld [vmem:[%s12615_s6 + $0x18] sm:$0xff] }
 0x8a0   : > { %7866 = vmatpush.msrb.mxu2 %v7808_v17 }
 0x8a1   : > { %v12209_v51 = vadd.f32 %v7569_v33, %v7461_v36  ;;  %v7806_v33 = vld [vmem:[%s12615_s6 + $0x10] sm:$0xff] }
 0x8a2   : > { %7867 = vmatpush.msrb.mxu2 %v7807_v38 }
 0x8a4   : > { %v7311_v0 = vpop.f32.mrf.mxu2  ;;  %7868 = vmatpush.msrb.mxu2 %v7806_v33 }
 0x8a5   : > { %v7332_v40 = vadd.f32 %v7311_v0, %v7202_v23  ;;  %v7441_v10 = vpop.f32.mrf.mxu3  ;;  %v7184_v35 = vpop.f32.mrf.mxu1 }
 0x8a6   : > { %v7571_v63 = vpop.f32.mrf.mxu0  ;;  %v7203_v18 = vadd.f32 %v7184_v35, %v12165_v22  ;;  %7869 = vmatpush.msrb.mxu2 %v7805_v27 }
 0x8a7   : > { %v7462_v47 = vadd.f32 %v7441_v10, %v7332_v40  ;;  %v7804_v10 = vld [vmem:[%s12615_s6] sm:$0xff] }
 0x8a8   : > { %9580 = vmatmul.msk.bf16.gmra.mxu1 %vm1579_vm0, %v7615_v55  ;;  %7870 = vmatpush.msrb.mxu2 %v7804_v10 }
 0x8a9   : > { %v12212_v6 = vadd.f32 %v7571_v63, %v7462_v47 }
 0x8ac   : > { %v7314_v42 = vpop.f32.mrf.mxu2 }
 0x8ad   : > { %v7333_v8 = vadd.f32 %v7314_v42, %v7203_v18  ;;  %v7444_v37 = vpop.f32.mrf.mxu3  ;;  %v7186_v13 = vpop.f32.mrf.mxu1 }
 0x8ae   : > { %v7574_v56 = vpop.f32.mrf.mxu0  ;;  %v7204_v22 = vadd.f32 %v7186_v13, %v12169_v15 }
 0x8af   : > { %v7463_v7 = vadd.f32 %v7444_v37, %v7333_v8 }
 0x8b1   : > { %v12225_v3 = vadd.f32 %v7574_v56, %v7463_v7 }
 0x8b4   : > { %v7316_v41 = vpop.f32.mrf.mxu2 }
 0x8b5   : > { %v7334_v36 = vadd.f32 %v7316_v41, %v7204_v22  ;;  %v7446_v15 = vpop.f32.mrf.mxu3  ;;  %v7189_v23 = vpop.f32.mrf.mxu1 }
 0x8b6   : > { %v7576_v57 = vpop.f32.mrf.mxu0  ;;  %v7205_v40 = vadd.f32 %v7189_v23, %v12173_v19 }
 0x8b7   : > { %v7464_v0 = vadd.f32 %v7446_v15, %v7334_v36 }
 0x8b9   : > { %v12240_v55 = vadd.f32 %v7576_v57, %v7464_v0 }
 0x8bc   : > { %v7319_v35 = vpop.f32.mrf.mxu2 }
 0x8bd   : > { %v7335_v63 = vadd.f32 %v7319_v35, %v7205_v40  ;;  %v7449_v47 = vpop.f32.mrf.mxu3  ;;  %v7191_v18 = vpop.f32.mrf.mxu1 }
 0x8be   : > { %v7579_v42 = vpop.f32.mrf.mxu0 }
 0x8bf   : > { %v7465_v5 = vadd.f32 %v7449_v47, %v7335_v63 }
 0x8c1   : > { %v12242_v8 = vadd.f32 %v7579_v42, %v7465_v5 }
 0x8c4   : > { %v7321_v37 = vpop.f32.mrf.mxu2 }
 0x8c5   : > { %v7451_v13 = vpop.f32.mrf.mxu3  ;;  %v7679_v56 = vpop.f32.mrf.mxu1 }
 0x8c6   : > { %v7581_v19 = vpop.f32.mrf.mxu0  ;;  %v7713_v20 = vadd.f32 %v7679_v56, %v12178_v39 }
 0x8c8   : > { %v7726_v7 = vmul.f32 0.01, %v7713_v20 }
 0x8ca   : > { %v7739_v22 = vmax.f32 %v7713_v20, %v7726_v7 }
 0x8cc   : > { %v7752_v17 = vadd.f32 %v7739_v22, %v12064_v31 }
 0x8cd   : > { %v7681_v38 = vpop.f32.mrf.mxu1 }
 0x8ce   : > { %v7765_v41 = vsel %vm1553_vm15, %v7752_v17, 0.0  ;;  %v7714_v33 = vadd.f32 %v7681_v38, %v12181_v44  ;;  %vm7987_vm15 = vcmask 162816  }
 0x8cf   : > { %7778 = vst.msk [vmem:[#allocation2 + $0x10] sm:$0xff] %vm1579_vm0, %v7765_v41 }
 0x8d0   : > { %v7727_v36 = vmul.f32 0.01, %v7714_v33 }
 0x8d2   : > { %v7740_v15 = vmax.f32 %v7714_v33, %v7727_v36 }
 0x8d4   : > { %v7753_v23 = vadd.f32 %v7740_v15, %v12062_v58 }
 0x8d5   : > { %v7684_v57 = vpop.f32.mrf.mxu1 }
 0x8d6   : > { %v7766_v39 = vsel %vm1554_vm1, %v7753_v23, 0.0  ;;  %v7715_v27 = vadd.f32 %v7684_v57, %v12185_v9  ;;  %v7791_v0 = vld [vmem:[#allocation2 + $0x10] sm:$0xff]  ;;  %vm8272_vm1 = vcmask 7168  }
 0x8d7   : > { %7779 = vst.msk [vmem:[#allocation2 + $0x18] sm:$0xff] %vm1579_vm0, %v7766_v39  ;;  %9581 = vmatmul.msk.f32.vlgmr.msrb.gmra.mxu2 %vm1579_vm0, %v7791_v0 }
 0x8d8   : > { %v7728_v24 = vmul.f32 0.01, %v7715_v27 }
 0x8da   : > { %v7741_v31 = vmax.f32 %v7715_v27, %v7728_v24 }
 0x8dc   : > { %v7754_v44 = vadd.f32 %v7741_v31, %v12074_v2 }
 0x8dd   : > { %v7686_v40 = vpop.f32.mrf.mxu1 }
 0x8de   : > { %v7767_v10 = vsel %vm1555_vm2, %v7754_v44, 0.0  ;;  %v7716_v58 = vadd.f32 %v7686_v40, %v12188_v62  ;;  %v7792_v35 = vld [vmem:[#allocation2 + $0x18] sm:$0xff] }
 0x8df   : > { %7780 = vst.msk [vmem:[#allocation2 + $0x20] sm:$0xff] %vm1579_vm0, %v7767_v10  ;;  %9582 = vmatmul.msk.f32.gmra.mxu2 %vm1579_vm0, %v7792_v35 }
 0x8e0   : > { %v7729_v29 = vmul.f32 0.01, %v7716_v58 }
 0x8e2   : > { %v7742_v9 = vmax.f32 %v7716_v58, %v7729_v29 }
 0x8e4   : > { %v7755_v63 = vadd.f32 %v7742_v9, %v12072_v43 }
 0x8e5   : > { %v7689_v47 = vpop.f32.mrf.mxu1 }
 0x8e6   : > { %v7768_v18 = vsel %vm1556_vm3, %v7755_v63, 0.0  ;;  %v7717_v2 = vadd.f32 %v7689_v47, %v12192_v48  ;;  %v7793_v42 = vld [vmem:[#allocation2 + $0x20] sm:$0xff] }
 0x8e7   : > { %7781 = vst.msk [vmem:[#allocation2 + $0x28] sm:$0xff] %vm1579_vm0, %v7768_v18  ;;  %9583 = vmatmul.msk.f32.gmra.mxu2 %vm1579_vm0, %v7793_v42 }
 0x8e8   : > { %v7730_v11 = vmul.f32 0.01, %v7717_v2 }
 0x8ea   : > { %v7743_v62 = vmax.f32 %v7717_v2, %v7730_v11 }
 0x8ec   : > { %v7756_v5 = vadd.f32 %v7743_v62, %v12093_v50 }
 0x8ed   : > { %v7691_v37 = vpop.f32.mrf.mxu1 }
 0x8ee   : > { %v7769_v13 = vsel %vm1557_vm4, %v7756_v5, 0.0  ;;  %v7718_v43 = vadd.f32 %v7691_v37, %v12195_v21  ;;  %v7794_v56 = vld [vmem:[#allocation2 + $0x28] sm:$0xff]  ;;  %v9914_v37 = vld [vmem:[%s12616_s7] ss:$0 sm:$0xff] }
 0x8ef   : > { %7782 = vst.msk [vmem:[#allocation2 + $0x30] sm:$0xff] %vm1579_vm0, %v7769_v13  ;;  %9584 = vmatmul.msk.f32.gmra.mxu2 %vm1579_vm0, %v7794_v56 }
 0x8f0   : > { %v7731_v4 = vmul.f32 0.01, %v7718_v43 }
 0x8f2   : > { %v7744_v48 = vmax.f32 %v7718_v43, %v7731_v4 }
 0x8f4   : > { %v7757_v19 = vadd.f32 %v7744_v48, %v12091_v60 }
 0x8f5   : > { %v7694_v20 = vpop.f32.mrf.mxu1 }
 0x8f6   : > { %v7770_v7 = vsel %vm1558_vm5, %v7757_v19, 0.0  ;;  %v7719_v50 = vadd.f32 %v7694_v20, %v12199_v25  ;;  %v7795_v22 = vld [vmem:[#allocation2 + $0x30] sm:$0xff] }
 0x8f7   : > { %7783 = vst.msk [vmem:[#allocation2 + $0x38] sm:$0xff] %vm1579_vm0, %v7770_v7  ;;  %9585 = vmatmul.msk.f32.gmra.mxu2 %vm1579_vm0, %v7795_v22 }
 0x8f8   : > { %v7732_v45 = vmul.f32 0.01, %v7719_v50 }
 0x8fa   : > { %v7745_v21 = vmax.f32 %v7719_v50, %v7732_v45 }
 0x8fc   : > { %v7758_v17 = vadd.f32 %v7745_v21, %v12109_v49 }
 0x8fd   : > { %v7696_v38 = vpop.f32.mrf.mxu1 }
 0x8fe   : > { %v7771_v41 = vsel %vm1559_vm6, %v7758_v17, 0.0  ;;  %v7720_v60 = vadd.f32 %v7696_v38, %v12202_v16  ;;  %v7796_v33 = vld [vmem:[#allocation2 + $0x38] sm:$0xff] }
 0x8ff   : > { %7784 = vst.msk [vmem:[#allocation2 + $0x40] sm:$0xff] %vm1579_vm0, %v7771_v41  ;;  %9586 = vmatmul.msk.f32.gmra.mxu2 %vm1579_vm0, %v7796_v33 }
 0x900   : > { %v7733_v28 = vmul.f32 0.01, %v7720_v60 }
 0x902   : > { %v7746_v25 = vmax.f32 %v7720_v60, %v7733_v28 }
 0x904   : > { %v7759_v36 = vadd.f32 %v7746_v25, %v12107_v32 }
 0x905   : > { %v7699_v15 = vpop.f32.mrf.mxu1 }
 0x906   : > { %v7772_v23 = vsel %vm1560_vm7, %v7759_v36, 0.0  ;;  %v7721_v49 = vadd.f32 %v7699_v15, %v12209_v51  ;;  %v7797_v57 = vld [vmem:[#allocation2 + $0x40] sm:$0xff] }
 0x907   : > { %7785 = vst.msk [vmem:[#allocation2 + $0x48] sm:$0xff] %vm1579_vm0, %v7772_v23  ;;  %9587 = vmatmul.msk.f32.gmra.mxu2 %vm1579_vm0, %v7797_v57 }
 0x908   : > { %v7734_v26 = vmul.f32 0.01, %v7721_v49 }
 0x90a   : > { %v7747_v16 = vmax.f32 %v7721_v49, %v7734_v26 }
 0x90c   : > { %v7760_v39 = vadd.f32 %v7747_v16, %v12125_v52 }
 0x90d   : > { %v7701_v27 = vpop.f32.mrf.mxu1 }
 0x90e   : > { %v7773_v0 = vsel %vm1561_vm8, %v7760_v39, 0.0  ;;  %v7722_v32 = vadd.f32 %v7701_v27, %v12212_v6  ;;  %v7798_v24 = vld [vmem:[#allocation2 + $0x48] sm:$0xff] }
 0x90f   : > { %7786 = vst.msk [vmem:[#allocation2 + $0x50] sm:$0xff] %vm1579_vm0, %v7773_v0  ;;  %9588 = vmatmul.msk.f32.gmra.mxu2 %vm1579_vm0, %v7798_v24 }
 0x910   : > { %v7735_v61 = vmul.f32 0.01, %v7722_v32 }
 0x912   : > { %v7748_v51 = vmax.f32 %v7722_v32, %v7735_v61 }
 0x914   : > { %v7761_v31 = vadd.f32 %v7748_v51, %v12123_v59 }
 0x915   : > { %v7704_v44 = vpop.f32.mrf.mxu1 }
 0x916   : > { %v7774_v40 = vsel %vm1562_vm9, %v7761_v31, 0.0  ;;  %v7723_v52 = vadd.f32 %v7704_v44, %v12225_v3  ;;  %v7799_v10 = vld [vmem:[#allocation2 + $0x50] sm:$0xff] }
 0x917   : > { %7787 = vst.msk [vmem:[#allocation2 + $0x58] sm:$0xff] %vm1579_vm0, %v7774_v40  ;;  %9589 = vmatmul.msk.f32.gmra.mxu2 %vm1579_vm0, %v7799_v10 }
 0x918   : > { %v7736_v30 = vmul.f32 0.01, %v7723_v52 }
 0x91a   : > { %v7749_v6 = vmax.f32 %v7723_v52, %v7736_v30 }
 0x91c   : > { %v7762_v58 = vadd.f32 %v7749_v6, %v12141_v14 }
 0x91d   : > { %v7706_v35 = vpop.f32.mrf.mxu1 }
 0x91e   : > { %v7775_v29 = vsel %vm1563_vm10, %v7762_v58, 0.0  ;;  %v7724_v59 = vadd.f32 %v7706_v35, %v12240_v55  ;;  %v7800_v9 = vld [vmem:[#allocation2 + $0x58] sm:$0xff] }
 0x91f   : > { %7788 = vst.msk [vmem:[#allocation2 + $0x60] sm:$0xff] %vm1579_vm0, %v7775_v29  ;;  %9590 = vmatmul.msk.f32.gmra.mxu2 %vm1579_vm0, %v7800_v9 }
 0x920   : > { %v7737_v46 = vmul.f32 0.01, %v7724_v59 }
 0x922   : > { %v7750_v3 = vmax.f32 %v7724_v59, %v7737_v46 }
 0x924   : > { %v7763_v63 = vadd.f32 %v7750_v3, %v12139_v53 }
 0x925   : > { %v7709_v47 = vpop.f32.mrf.mxu1 }
 0x926   : > { %v7776_v18 = vsel %vm1564_vm11, %v7763_v63, 0.0  ;;  %v7725_v14 = vadd.f32 %v7709_v47, %v12242_v8  ;;  %v7801_v2 = vld [vmem:[#allocation2 + $0x60] sm:$0xff] }
 0x927   : > { %7789 = vst.msk [vmem:[#allocation2 + $0x68] sm:$0xff] %vm1579_vm0, %v7776_v18  ;;  %9591 = vmatmul.msk.f32.gmra.mxu2 %vm1579_vm0, %v7801_v2 }
 0x928   : > { %v7738_v54 = vmul.f32 0.01, %v7725_v14 }
 0x92a   : > { %v7751_v55 = vmax.f32 %v7725_v14, %v7738_v54 }
 0x92c   : > { %v7764_v42 = vadd.f32 %v7751_v55, %v12155_v34 }
 0x92d   : > { %v7711_v11 = vpop.f32.mrf.mxu1 }
 0x92e   : > { %v7777_v62 = vsel %vm1565_vm12, %v7764_v42, 0.0  ;;  %v7802_v53 = vld [vmem:[#allocation2 + $0x68] sm:$0xff]  ;;  %v7937_v42 = vld [vmem:[%s12617_s8] sm:$0xff] }
 0x92f   : > { %7790 = vst.msk [vmem:[#allocation2 + $0x70] sm:$0xff] %vm1579_vm0, %v7777_v62  ;;  %9592 = vmatmul.msk.f32.gmra.mxu2 %vm1579_vm0, %v7802_v53  ;;  %v7938_v11 = vld [vmem:[%s12617_s8 + $0x8] sm:$0xff]  ;;  %v7939_v62 = vld [vmem:[%s12617_s8 + $0x10] sm:$0xf] }
 0x936   : > { %v7803_v12 = vld [vmem:[#allocation2 + $0x70] sm:$0xff] }
 0x937   : > { %9593 = vmatmul.msk.f32.gmra.mxu2 %vm1579_vm0, %v7803_v12  ;;  %vm8016_vm0 = vcmask 0  }
 0x95a   : > { %v7872_v8 = vpop.f32.mrf.mxu2 }
 0x95b   : > { %v7873_v46 = vadd.f32 %v9914_v37, %v7872_v8 }
 0x95d   : > { %v7911_v18 = vmul.f32 0.01, %v7873_v46 }
 0x95f   : > { %v7924_v54 = vmax.f32 %v7873_v46, %v7911_v18 }
 0x962   : > { %v7875_v5 = vpop.f32.mrf.mxu2 }
 0x963   : > { %v7876_v13 = vadd.f32 %v9914_v37, %v7875_v5 }
 0x965   : > { %v7912_v43 = vmul.f32 0.01, %v7876_v13 }
 0x967   : > { %v12325_v4 = vmax.f32 %v7876_v13, %v7912_v43 }
 0x96a   : > { %v7878_v34 = vpop.f32.mrf.mxu2 }
 0x96b   : > { %v7879_v56 = vadd.f32 %v9914_v37, %v7878_v34 }
 0x96d   : > { %v7913_v1 = vmul.f32 0.01, %v7879_v56 }
 0x96f   : > { %v12327_v48 = vmax.f32 %v7879_v56, %v7913_v1 }
 0x971   : > { %v12331_v19 = vpack.i.bf16 %v12325_v4, %v12327_v48 }
 0x972   : > { %v7881_v20 = vpop.f32.mrf.mxu2 }
 0x973   : > { %v7882_v39 = vadd.f32 %v9914_v37, %v7881_v20 }
 0x975   : > { %v7914_v51 = vmul.f32 0.01, %v7882_v39 }
 0x977   : > { %v7927_v44 = vmax.f32 %v7882_v39, %v7914_v51  ;;  %v8018_v51 = vld [vmem:[%s12621_s12] sm:$0xff] }
 0x97a   : > { %v7884_v7 = vpop.f32.mrf.mxu2 }
 0x97b   : > { %v7885_v26 = vadd.f32 %v9914_v37, %v7884_v7 }
 0x97d   : > { %v7915_v32 = vmul.f32 0.01, %v7885_v26 }
 0x97f   : > { %v7928_v31 = vmax.f32 %v7885_v26, %v7915_v32 }
 0x981   : > { %v9868_v52 = vpack.i.bf16 %v7927_v44, %v7928_v31 }
 0x982   : > { %v7887_v50 = vpop.f32.mrf.mxu2 }
 0x983   : > { %v7888_v29 = vadd.f32 %v9914_v37, %v7887_v50 }
 0x985   : > { %v7916_v47 = vmul.f32 0.01, %v7888_v29 }
 0x987   : > { %v7929_v2 = vmax.f32 %v7888_v29, %v7916_v47  ;;  %v8021_v47 = vld [vmem:[%s12621_s12 + $0x18] sm:$0xff] }
 0x98a   : > { %v7890_v22 = vpop.f32.mrf.mxu2 }
 0x98b   : > { %v7891_v58 = vadd.f32 %v9914_v37, %v7890_v22 }
 0x98d   : > { %v7917_v3 = vmul.f32 0.01, %v7891_v58 }
 0x98f   : > { %v7930_v14 = vmax.f32 %v7891_v58, %v7917_v3 }
 0x991   : > { %v9893_v55 = vpack.i.bf16 %v7929_v2, %v7930_v14 }
 0x992   : > { %v7893_v45 = vpop.f32.mrf.mxu2 }
 0x993   : > { %v7894_v21 = vadd.f32 %v9914_v37, %v7893_v45 }
 0x995   : > { %v7918_v38 = vmul.f32 0.01, %v7894_v21 }
 0x997   : > { %v7931_v33 = vmax.f32 %v7894_v21, %v7918_v38 }
 0x99a   : > { %v7896_v17 = vpop.f32.mrf.mxu2 }
 0x99b   : > { %v7897_v41 = vadd.f32 %v9914_v37, %v7896_v17 }
 0x99d   : > { %v7919_v60 = vmul.f32 0.01, %v7897_v41 }
 0x99f   : > { %v7932_v28 = vmax.f32 %v7897_v41, %v7919_v60 }
 0x9a1   : > { %v12333_v25 = vpack.i.bf16 %v7931_v33, %v7932_v28 }
 0x9a2   : > { %v7899_v36 = vpop.f32.mrf.mxu2 }
 0x9a3   : > { %9849 = vrot.lane.b32.xlu0 %v12333_v25, %s9981_s19  ;;  %v7900_v15 = vadd.f32 %v9914_v37, %v7899_v36 }
 0x9a5   : > { %v7920_v49 = vmul.f32 0.01, %v7900_v15 }
 0x9a7   : > { %v7933_v27 = vmax.f32 %v7900_v15, %v7920_v49  ;;  %v7940_v49 = vld [vmem:[%s12618_s9] sm:$0xff] }
 0x9aa   : > { %v7902_v23 = vpop.f32.mrf.mxu2 }
 0x9ab   : > { %v7903_v57 = vadd.f32 %v9914_v37, %v7902_v23  ;;  %v7941_v23 = vld [vmem:[%s12618_s9 + $0x8] sm:$0xff] }
 0x9ad   : > { %v7921_v16 = vmul.f32 0.01, %v7903_v57 }
 0x9af   : > { %v7934_v0 = vmax.f32 %v7903_v57, %v7921_v16  ;;  %v7942_v57 = vld [vmem:[%s12618_s9 + $0x10] sm:$0xf] }
 0x9b1   : > { %v9853_v24 = vpack.i.bf16 %v7933_v27, %v7934_v0 }
 0x9b2   : > { %v7905_v61 = vpop.f32.mrf.mxu2 }
 0x9b3   : > { %9854 = vrot.lane.b32.xlu2 %v9853_v24, %s9981_s19  ;;  %v7906_v40 = vadd.f32 %v9914_v37, %v7905_v61 }
 0x9b5   : > { %v7922_v30 = vmul.f32 0.01, %v7906_v40 }
 0x9b7   : > { %v7935_v59 = vmax.f32 %v7906_v40, %v7922_v30  ;;  %v8019_v30 = vld [vmem:[%s12621_s12 + $0x8] sm:$0xff] }
 0x9ba   : > { %v7908_v10 = vpop.f32.mrf.mxu2 }
 0x9bb   : > { %v7909_v6 = vadd.f32 %v9914_v37, %v7908_v10  ;;  %9869 = vrot.lane.b32.xlu2 %v9868_v52, %s9981_s19 }
 0x9bd   : > { %v7923_v35 = vmul.f32 0.01, %v7909_v6 }
 0x9bf   : > { %v7936_v9 = vmax.f32 %v7909_v6, %v7923_v35 }
 0x9c1   : > { %7956 = vmatpush.msrb.mxu3 %v7936_v9  ;;  %v9883_v63 = vpack.i.bf16 %v7935_v59, %v7936_v9 }
 0x9c3   : > { %9879 = vrot.lane.b32.xlu2 %v9853_v24, %s9982_s26  ;;  %9884 = vrot.lane.b32.xlu0 %v9883_v63, %s9982_s26 }
 0x9c4   : > { %9859 = vrot.lane.b32.xlu1 %v9883_v63, %s9981_s19  ;;  %7957 = vmatpush.msrb.mxu3 %v7935_v59  ;;  %v8020_v59 = vld [vmem:[%s12621_s12 + $0x10] sm:$0xff] }
 0x9c6   : > { %7958 = vmatpush.msrb.mxu3 %v7934_v0 }
 0x9c8   : > { %7959 = vmatpush.msrb.mxu3 %v7933_v27 }
 0x9ca   : > { %7960 = vmatpush.msrb.mxu3 %v7932_v28 }
 0x9cb   : > { %9894 = vrot.lane.b32.xlu2 %v9893_v55, %s9982_s26  ;;  %8048 = vrot.lane.b32.xlu0 %v7924_v54, %s9981_s19 }
 0x9cc   : > { %9864 = vrot.lane.b32.xlu1 %v9893_v55, %s9981_s19  ;;  %7961 = vmatpush.msrb.mxu3 %v7931_v33  ;;  %v9600_v55 = vld [vmem:[%s12621_s12 + $0x48] sm:$0xff] }
 0x9ce   : > { %7962 = vmatpush.msrb.mxu3 %v7930_v14 }
 0x9d0   : > { %7963 = vmatpush.msrb.mxu3 %v7929_v2  ;;  %v9599_v2 = vld [vmem:[%s12621_s12 + $0x40] sm:$0xff] }
 0x9d2   : > { %7964 = vmatpush.msrb.mxu3 %v7928_v31 }
 0x9d3   : > { %8152 = vrot.lane.b32.xlu2 %v7924_v54, %s9982_s26  ;;  %9899 = vrot.lane.b32.xlu0 %v9868_v52, %s9982_s26  ;;  %v7985_v52 = vld [vmem:[%s12619_s10] sm:$0x1] }
 0x9d4   : > { %9874 = vrot.lane.b32.xlu1 %v12331_v19, %s9981_s19  ;;  %7965 = vmatpush.msrb.mxu3 %v7927_v44  ;;  %s521_s19 = scalar_lea.vmem %s12623_s14, %s9625_s23 }
 0x9d6   : > { %7966 = vmatpush.msrb.mxu3 %v12327_v48 }
 0x9d8   : > { %7967 = vmatpush.msrb.mxu3 %v12325_v4 }
 0x9da   : > { %7968 = vmatpush.msrb.mxu3 %v7924_v54  ;;  %v8022_v54 = vld [vmem:[%s12621_s12 + $0x20] sm:$0xff] }
 0x9db   : > { %9594 = vmatmul.msk.f32.vlgmr.msrb.gmra.mxu3 %vm7943_vm13, %v7937_v42  ;;  %v8023_v42 = vld [vmem:[%s12621_s12 + $0x28] sm:$0xff] }
 0x9dc   : > { %9889 = vrot.lane.b32.xlu1 %v12333_v25, %s9982_s26 }
 0x9e3   : > { %9595 = vmatmul.msk.f32.gmra.mxu3 %vm7943_vm13, %v7938_v11  ;;  %v9601_v11 = vld [vmem:[%s12621_s12 + $0x50] sm:$0xff] }
 0x9e4   : > { %9904 = vrot.lane.b32.xlu1 %v12331_v19, %s9982_s26 }
 0x9eb   : > { %9596 = vmatmul.msk.f32.gmra.mxu3 %vm7943_vm13, %v7939_v62  ;;  %v8024_v62 = vld [vmem:[%s12621_s12 + $0x30] sm:$0xff] }
 0xa0d   : > { %v12367_v53 = vpop.permute.xlu2 %9854 }
 0xa0e   : > { %v9856_v6 = vunpack.i.l.bf16 %v12367_v53  ;;  %v9857_v58 = vunpack.i.h.bf16 %v12367_v53  ;;  %v9602_v53 = vld [vmem:[%s12621_s12 + $0x58] sm:$0xff] }
 0xa15   : > { %v12369_v12 = vpop.permute.xlu0 %9849  ;;  %v12371_v8 = vpop.permute.xlu2 %9869 }
 0xa16   : > { %v9851_v35 = vunpack.i.l.bf16 %v12369_v12  ;;  %v9852_v29 = vunpack.i.h.bf16 %v12369_v12  ;;  %v9871_v3 = vunpack.i.l.bf16 %v12371_v8  ;;  %v9872_v63 = vunpack.i.h.bf16 %v12371_v8  ;;  %v9603_v12 = vld [vmem:[%s12621_s12 + $0x60] sm:$0xff]  ;;  %v9604_v8 = vld [vmem:[%s12621_s12 + $0x68] sm:$0xff] }
 0xa1d   : > { %v12378_v34 = vpop.permute.xlu2 %9879 }
 0xa1e   : > { %v9881_v56 = vunpack.i.l.bf16 %v12378_v34  ;;  %v9882_v1 = vunpack.i.h.bf16 %v12378_v34  ;;  %v7986_v34 = vld [vmem:[#allocation3] sm:$0x1] }
 0xa25   : > { %v12400_v50 = vpop.permute.xlu2 %9894 }
 0xa26   : > { %v9896_v45 = vunpack.i.l.bf16 %v12400_v50  ;;  %v9897_v17 = vunpack.i.h.bf16 %v12400_v50 }
 0xa2d   : > { %v12429_v36 = vpop.permute.xlu2 %8152 }
 0xa35   : > { %v12373_v5 = vpop.permute.xlu0 %9884 }
 0xa36   : > { %v9886_v37 = vunpack.i.l.bf16 %v12373_v5  ;;  %v12376_v13 = vpop.permute.xlu1 %9859  ;;  %v9887_v43 = vunpack.i.h.bf16 %v12373_v5  ;;  %v9605_v5 = vld [vmem:[%s12621_s12 + $0x70] sm:$0xff] }
 0xa37   : > { %v9861_v40 = vunpack.i.l.bf16 %v12376_v13  ;;  %v9862_v10 = vunpack.i.h.bf16 %v12376_v13  ;;  %v8025_v13 = vld [vmem:[%s12621_s12 + $0x38] sm:$0xff] }
 0xa38   : > { %8218 = vmatpush.msra.mxu2 %v9886_v37 }
 0xa3a   : > { %8219 = vmatpush.msra.mxu2 %v9887_v43 }
 0xa3c   : > { %8220 = vmatpush.msra.mxu2 %v9881_v56 }
 0xa3d   : > { %v12395_v19 = vpop.permute.xlu0 %8048 }
 0xa3e   : > { %v12389_v4 = vpop.permute.xlu1 %9864  ;;  %8221 = vmatpush.msra.mxu2 %v9882_v1 }
 0xa3f   : > { %v9866_v9 = vunpack.i.l.bf16 %v12389_v4  ;;  %v9867_v46 = vunpack.i.h.bf16 %v12389_v4 }
 0xa45   : > { %v12408_v21 = vpop.permute.xlu0 %9899 }
 0xa46   : > { %v12393_v48 = vpop.permute.xlu1 %9874  ;;  %v9901_v38 = vunpack.i.l.bf16 %v12408_v21  ;;  %v9902_v60 = vunpack.i.h.bf16 %v12408_v21 }
 0xa47   : > { %v9876_v18 = vunpack.i.l.bf16 %v12393_v48  ;;  %v9877_v14 = vunpack.i.h.bf16 %v12393_v48 }
 0xa4e   : > { %v12397_v20 = vpop.permute.xlu1 %9889 }
 0xa4f   : > { %v9891_v7 = vunpack.i.l.bf16 %v12397_v20  ;;  %v9892_v22 = vunpack.i.h.bf16 %v12397_v20 }
 0xa51   : > { %8222 = vmatpush.msra.mxu2 %v9891_v7 }
 0xa53   : > { %8223 = vmatpush.msra.mxu2 %v9892_v22 }
 0xa55   : > { %8224 = vmatpush.msra.mxu2 %v9896_v45 }
 0xa56   : > { %v12416_v41 = vpop.permute.xlu1 %9904 }
 0xa57   : > { %8225 = vmatpush.msra.mxu2 %v9897_v17  ;;  %v9906_v33 = vunpack.i.l.bf16 %v12416_v41  ;;  %v9907_v28 = vunpack.i.h.bf16 %v12416_v41 }
 0xa59   : > { %8226 = vmatpush.msra.mxu2 %v9901_v38 }
 0xa5b   : > { %8227 = vmatpush.msra.mxu2 %v9902_v60 }
 0xa5d   : > { %8228 = vmatpush.msra.mxu2 %v9906_v33 }
 0xa5e   : > { %v7970_v25 = vpop.f32.mrf.mxu3 }
 0xa5f   : > { %8229 = vmatpush.msra.mxu2 %v9907_v28  ;;  %v7971_v39 = vadd.f32 %v7970_v25, %v7940_v49 }
 0xa61   : > { %8230 = vmatpush.msra.mxu2 %v12429_v36  ;;  %v7979_v24 = vmul.f32 0.01, %v7971_v39 }
 0xa62   : > { %9615 = vmatmul.msk.f32.vlgmr.msra.gmra.mxu2 %vm7943_vm13, %v8018_v51  ;;  %v8259_v51 = vld [vmem:[%s12622_s13 + $0x18] sm:$0xff] }
 0xa63   : > { %v7982_v44 = vmax.f32 %v7971_v39, %v7979_v24  ;;  %v8262_v39 = vld [vmem:[%s12622_s13 + $0x30] sm:$0xff] }
 0xa66   : > { %v7973_v15 = vpop.f32.mrf.mxu3 }
 0xa67   : > { %v7974_v26 = vadd.f32 %v7973_v15, %v7941_v23 }
 0xa69   : > { %v7980_v0 = vmul.f32 0.01, %v7974_v26 }
 0xa6a   : > { %9616 = vmatmul.msk.f32.gmra.mxu2 %vm7943_vm13, %v8019_v30  ;;  %v8263_v30 = vld [vmem:[%s12622_s13 + $0x38] sm:$0xff] }
 0xa6b   : > { %v7983_v31 = vmax.f32 %v7974_v26, %v7980_v0  ;;  %v8257_v26 = vld [vmem:[%s12622_s13 + $0x8] sm:$0xff] }
 0xa6e   : > { %v7976_v16 = vpop.f32.mrf.mxu3 }
 0xa6f   : > { %v7977_v27 = vadd.f32 %v7976_v16, %v7942_v57  ;;  %v8260_v16 = vld [vmem:[%s12622_s13 + $0x20] sm:$0xff] }
 0xa71   : > { %v7981_v32 = vmul.f32 0.01, %v7977_v27 }
 0xa72   : > { %9617 = vmatmul.msk.f32.gmra.mxu2 %vm7943_vm13, %v8020_v59 }
 0xa73   : > { %v7984_v61 = vmax.f32 %v7977_v27, %v7981_v32  ;;  %v8256_v27 = vld [vmem:[%s12622_s13] sm:$0xff] }
 0xa75   : > { %9597 = vmatpush.msk.msra.mxu3 %vm7991_vm14, %v7984_v61  ;;  %v8258_v61 = vld [vmem:[%s12622_s13 + $0x10] sm:$0xff] }
 0xa77   : > { %8009 = vmatpush.msra.mxu3 %v7983_v31 }
 0xa79   : > { %8010 = vmatpush.msra.mxu3 %v7982_v44 }
 0xa7a   : > { %9598 = vmatmul.msk.f32.vlgmr.msra.gmra.mxu3 %vm7987_vm15, %v7985_v52  ;;  %9618 = vmatmul.msk.f32.gmra.mxu2 %vm7943_vm13, %v8021_v47 }
 0xa7b   : > { %8114 = vmatpush.msrb.mxu3 %v9861_v40 }
 0xa7d   : > { %8115 = vmatpush.msrb.mxu3 %v9862_v10 }
 0xa7f   : > { %8116 = vmatpush.msrb.mxu3 %v9856_v6 }
 0xa81   : > { %8117 = vmatpush.msrb.mxu3 %v9857_v58 }
 0xa82   : > { %9619 = vmatmul.msk.f32.gmra.mxu2 %vm7943_vm13, %v8022_v54 }
 0xa83   : > { %8118 = vmatpush.msrb.mxu3 %v9851_v35 }
 0xa85   : > { %8119 = vmatpush.msrb.mxu3 %v9852_v29 }
 0xa87   : > { %8120 = vmatpush.msrb.mxu3 %v9866_v9 }
 0xa89   : > { %8121 = vmatpush.msrb.mxu3 %v9867_v46 }
 0xa8a   : > { %9620 = vmatmul.msk.f32.gmra.mxu2 %vm7943_vm13, %v8023_v42 }
 0xa8b   : > { %8122 = vmatpush.msrb.mxu3 %v9871_v3 }
 0xa8d   : > { %8123 = vmatpush.msrb.mxu3 %v9872_v63 }
 0xa8f   : > { %8124 = vmatpush.msrb.mxu3 %v9876_v18 }
 0xa91   : > { %8125 = vmatpush.msrb.mxu3 %v9877_v14 }
 0xa92   : > { %9621 = vmatmul.msk.f32.gmra.mxu2 %vm7943_vm13, %v8024_v62 }
 0xa93   : > { %8126 = vmatpush.msrb.mxu3 %v12395_v19 }
 0xa94   : > { %9607 = vmatmul.msk.f32.vlgmr.msrb.gmra.mxu3 %vm7943_vm13, %v9599_v2 }
 0xa95   : > { %9808 = vmatpush.msra.mxu3 %v9886_v37  ;;  %v9606_v37 = vld [vmem:[%s12621_s12 + $0x78] sm:$0xff] }
 0xa97   : > { %9809 = vmatpush.msra.mxu3 %v9887_v43 }
 0xa99   : > { %9810 = vmatpush.msra.mxu3 %v9881_v56 }
 0xa9b   : > { %9811 = vmatpush.msra.mxu3 %v9882_v1 }
 0xa9c   : > { %9608 = vmatmul.msk.f32.gmra.mxu3 %vm7943_vm13, %v9600_v55 }
 0xa9d   : > { %9812 = vmatpush.msra.mxu3 %v9891_v7 }
 0xa9f   : > { %9813 = vmatpush.msra.mxu3 %v9892_v22 }
 0xaa1   : > { %9814 = vmatpush.msra.mxu3 %v9896_v45 }
 0xaa3   : > { %9815 = vmatpush.msra.mxu3 %v9897_v17 }
 0xaa4   : > { %9609 = vmatmul.msk.f32.gmra.mxu3 %vm7943_vm13, %v9601_v11 }
 0xaa5   : > { %9816 = vmatpush.msra.mxu3 %v9901_v38 }
 0xaa7   : > { %9817 = vmatpush.msra.mxu3 %v9902_v60 }
 0xaa9   : > { %9818 = vmatpush.msra.mxu3 %v9906_v33 }
 0xaab   : > { %9819 = vmatpush.msra.mxu3 %v9907_v28 }
 0xaac   : > { %9610 = vmatmul.msk.f32.gmra.mxu3 %vm7943_vm13, %v9602_v53 }
 0xaad   : > { %9820 = vmatpush.msra.mxu3 %v12429_v36  ;;  %v8261_v36 = vld [vmem:[%s12622_s13 + $0x28] sm:$0xff] }
 0xab4   : > { %9611 = vmatmul.msk.f32.gmra.mxu3 %vm7943_vm13, %v9603_v12 }
 0xabc   : > { %9612 = vmatmul.msk.f32.gmra.mxu3 %vm7943_vm13, %v9604_v8 }
 0xac4   : > { %9613 = vmatmul.msk.f32.gmra.mxu3 %vm7943_vm13, %v9605_v5 }
 0xacc   : > { %9614 = vmatmul.msk.f32.gmra.mxu3 %vm7943_vm13, %v9606_v37 }
 0xad4   : > { %9622 = vmatmul.msk.f32.vlgmr.msra.gmra.mxu3 %vm7943_vm13, %v8025_v13 }
 0xae5   : > { %v8232_v4 = vpop.f32.mrf.mxu2 }
 0xaed   : > { %v8235_v19 = vpop.f32.mrf.mxu2 }
 0xaf5   : > { %v8238_v50 = vpop.f32.mrf.mxu2 }
 0xafd   : > { %v8012_v43 = vpop.f32.mrf.mxu3  ;;  %v8241_v45 = vpop.f32.mrf.mxu2 }
 0xafe   : > { %v8013_v56 = vadd.f32 %v8012_v43, %v7986_v34 }
 0xb00   : > { %9915 = vtanh.f32 %v8013_v56 }
 0xb05   : > { %v8244_v17 = vpop.f32.mrf.mxu2 }
 0xb06   : > { %v9916_v1 = vpop.eup %9915 }
 0xb07   : > { %8017 = vst.msk [vmem:[%s524_s18] sm:$0x1] %vm8016_vm0, %v9916_v1 }
 0xb0d   : > { %v8247_v41 = vpop.f32.mrf.mxu2 }
 0xb15   : > { %v8250_v28 = vpop.f32.mrf.mxu2 }
 0xb17   : > { %v8128_v48 = vpop.f32.mrf.mxu3 }
 0xb18   : > { %v8233_v57 = vadd.f32 %v8232_v4, %v8128_v48 }
 0xb1a   : > { %v8264_v52 = vadd.f32 %v8256_v27, %v8233_v57 }
 0xb1c   : > { %v8273_v47 = vsel %vm8272_vm1, %v8264_v52, -inf }
 0xb1f   : > { %v8131_v20 = vpop.f32.mrf.mxu3 }
 0xb20   : > { %v8236_v15 = vadd.f32 %v8235_v19, %v8131_v20 }
 0xb22   : > { %v8265_v31 = vadd.f32 %v8257_v26, %v8236_v15 }
 0xb24   : > { %v8274_v59 = vsel %vm8272_vm1, %v8265_v31, -inf }
 0xb27   : > { %v8134_v7 = vpop.f32.mrf.mxu3 }
 0xb28   : > { %v8239_v0 = vadd.f32 %v8238_v50, %v8134_v7 }
 0xb2a   : > { %v8266_v6 = vadd.f32 %v8258_v61, %v8239_v0 }
 0xb2c   : > { %v8275_v18 = vsel %vm8272_vm1, %v8266_v6, -inf }
 0xb2f   : > { %v8137_v22 = vpop.f32.mrf.mxu3 }
 0xb30   : > { %v8242_v32 = vadd.f32 %v8241_v45, %v8137_v22 }
 0xb32   : > { %v8267_v58 = vadd.f32 %v8259_v51, %v8242_v32 }
 0xb34   : > { %v8276_v14 = vsel %vm8272_vm1, %v8267_v58, -inf }
 0xb37   : > { %v8140_v21 = vpop.f32.mrf.mxu3 }
 0xb38   : > { %v8245_v23 = vadd.f32 %v8244_v17, %v8140_v21 }
 0xb3a   : > { %v8268_v44 = vadd.f32 %v8260_v16, %v8245_v23 }
 0xb3c   : > { %v8277_v9 = vsel %vm8272_vm1, %v8268_v44, -inf }
 0xb3d   : > { %v8278_v54 = vmax.f32 %v8273_v47, %v8277_v9 }
 0xb3f   : > { %v8143_v38 = vpop.f32.mrf.mxu3 }
 0xb40   : > { %v8248_v25 = vadd.f32 %v8247_v41, %v8143_v38 }
 0xb42   : > { %v8269_v24 = vadd.f32 %v8261_v36, %v8248_v25 }
 0xb44   : > { %v8279_v35 = vsel %vm8272_vm1, %v8269_v24, -inf }
 0xb45   : > { %v8280_v63 = vmax.f32 %v8274_v59, %v8279_v35 }
 0xb47   : > { %v8146_v60 = vpop.f32.mrf.mxu3  ;;  %v8285_v11 = vmax.f32 %v8278_v54, %v8280_v63 }
 0xb48   : > { %v8251_v49 = vadd.f32 %v8250_v28, %v8146_v60 }
 0xb4a   : > { %v8270_v40 = vadd.f32 %v8262_v39, %v8251_v49 }
 0xb4c   : > { %v8281_v46 = vsel %vm8272_vm1, %v8270_v40, -inf }
 0xb4d   : > { %v8282_v55 = vmax.f32 %v8275_v18, %v8281_v46 }
 0xb4f   : > { %v8149_v33 = vpop.f32.mrf.mxu3 }
 0xb57   : > { %v8253_v10 = vpop.f32.mrf.mxu3 }
 0xb58   : > { %v8254_v29 = vadd.f32 %v8253_v10, %v8149_v33 }
 0xb5a   : > { %v8271_v3 = vadd.f32 %v8263_v30, %v8254_v29 }
 0xb5c   : > { %v8283_v2 = vsel %vm8272_vm1, %v8271_v3, -inf }
 0xb5d   : > { %v8284_v42 = vmax.f32 %v8276_v14, %v8283_v2 }
 0xb5f   : > { %v8286_v62 = vmax.f32 %v8282_v55, %v8284_v42 }
 0xb61   : > { %v8287_v53 = vmax.f32 %v8285_v11, %v8286_v62 }
 0xb63   : > { %v8288_v12 = vrot.slane %v8287_v53, 4 }
 0xb65   : > { %v8289_v8 = vmax.f32 %v8287_v53, %v8288_v12 }
 0xb67   : > { %v8290_v5 = vrot.slane %v8289_v8, 2 }
 0xb69   : > { %v8291_v37 = vmax.f32 %v8289_v8, %v8290_v5 }
 0xb6b   : > { %v8292_v13 = vrot.slane %v8291_v37, 1 }
 0xb6d   : > { %v8293_v34 = vmax.f32 %v8291_v37, %v8292_v13 }
 0xb6f   : > { %v8294_v43 = vsub.f32 %v8264_v52, %v8293_v34  ;;  %v8295_v56 = vsub.f32 %v8265_v31, %v8293_v34  ;;  %v8296_v1 = vsub.f32 %v8266_v6, %v8293_v34  ;;  %v8297_v4 = vsub.f32 %v8267_v58, %v8293_v34 }
 0xb70   : > { %v8298_v48 = vsub.f32 %v8268_v44, %v8293_v34  ;;  %v8299_v50 = vsub.f32 %v8269_v24, %v8293_v34  ;;  %v8300_v45 = vsub.f32 %v8270_v40, %v8293_v34  ;;  %v8301_v17 = vsub.f32 %v8271_v3, %v8293_v34 }
 0xb71   : > { %v8302_v19 = vmul.f32 1.442695, %v8294_v43  ;;  %v8304_v20 = vmul.f32 1.442695, %v8295_v56  ;;  %v8306_v7 = vmul.f32 1.442695, %v8296_v1 }
 0xb72   : > { %v8308_v22 = vmul.f32 1.442695, %v8297_v4  ;;  %v8310_v21 = vmul.f32 1.442695, %v8298_v48  ;;  %v8312_v38 = vmul.f32 1.442695, %v8299_v50 }
 0xb73   : > { %9917 = vpow2.f32 %v8302_v19  ;;  %v8314_v41 = vmul.f32 1.442695, %v8300_v45  ;;  %v8316_v28 = vmul.f32 1.442695, %v8301_v17 }
 0xb74   : > { %9919 = vpow2.f32 %v8304_v20 }
 0xb75   : > { %9921 = vpow2.f32 %v8306_v7 }
 0xb76   : > { %9923 = vpow2.f32 %v8308_v22 }
 0xb77   : > { %9925 = vpow2.f32 %v8310_v21 }
 0xb78   : > { %9927 = vpow2.f32 %v8312_v38 }
 0xb79   : > { %v9918_v60 = vpop.eup %9917  ;;  %9929 = vpow2.f32 %v8314_v41 }
 0xb7a   : > { %v9920_v33 = vpop.eup %9919  ;;  %v8318_v25 = vsel %vm8272_vm1, %v9918_v60, 0.0  ;;  %9931 = vpow2.f32 %v8316_v28 }
 0xb7b   : > { %v9922_v36 = vpop.eup %9921  ;;  %v8319_v15 = vsel %vm8272_vm1, %v9920_v33, 0.0 }
 0xb7c   : > { %v9924_v23 = vpop.eup %9923  ;;  %v8320_v49 = vadd.f32 %v8319_v15, %v8318_v25  ;;  %v8321_v57 = vsel %vm8272_vm1, %v9922_v36, 0.0 }
 0xb7d   : > { %v9926_v26 = vpop.eup %9925  ;;  %v8323_v39 = vsel %vm8272_vm1, %v9924_v23, 0.0 }
 0xb7e   : > { %v8322_v16 = vadd.f32 %v8321_v57, %v8320_v49  ;;  %v9928_v27 = vpop.eup %9927  ;;  %v8325_v32 = vsel %vm8272_vm1, %v9926_v26, 0.0 }
 0xb7f   : > { %v9930_v24 = vpop.eup %9929  ;;  %v8327_v51 = vsel %vm8272_vm1, %v9928_v27, 0.0 }
 0xb80   : > { %v8324_v0 = vadd.f32 %v8323_v39, %v8322_v16  ;;  %v9932_v31 = vpop.eup %9931  ;;  %v8329_v40 = vsel %vm8272_vm1, %v9930_v24, 0.0 }
 0xb81   : > { %v8331_v10 = vsel %vm8272_vm1, %v9932_v31, 0.0 }
 0xb82   : > { %v8326_v61 = vadd.f32 %v8325_v32, %v8324_v0 }
 0xb84   : > { %v8328_v44 = vadd.f32 %v8327_v51, %v8326_v61 }
 0xb86   : > { %v8330_v52 = vadd.f32 %v8329_v40, %v8328_v44 }
 0xb88   : > { %v8332_v30 = vadd.f32 %v8331_v10, %v8330_v52 }
 0xb8a   : > { %v8333_v6 = vrot.slane %v8332_v30, 4 }
 0xb8c   : > { %v8334_v58 = vadd.f32 %v8333_v6, %v8332_v30 }
 0xb8e   : > { %v8335_v35 = vrot.slane %v8334_v58, 2 }
 0xb90   : > { %v8336_v29 = vadd.f32 %v8335_v35, %v8334_v58 }
 0xb92   : > { %v8337_v59 = vrot.slane %v8336_v29, 1 }
 0xb94   : > { %v8338_v9 = vadd.f32 %v8337_v59, %v8336_v29 }
 0xb96   : > { %9933 = vrcp.f32 %v8338_v9  ;;  %v8350_v47 = vand.u32 2147483648, %v8338_v9  ;;  %v8348_v14 = vand.u32 2147483647, %v8338_v9  ;;  %vm8344_vm3 = vweird.f32 %v8338_v9 }
 0xb98   : > { %v8351_v54 = vor.u32 1.1754944e-38, %v8350_v47  ;;  %vm8349_vm5 = vcmp.eq.f32.partialorder %v8348_v14, 8.507059e+37 }
 0xb9c   : > { %v9934_v46 = vpop.eup %9933 }
 0xb9d   : > { %v8340_v3 = vmul.f32 %v9934_v46, %v8338_v9  ;;  %vm8345_vm2 = vweird.f32 %v9934_v46 }
 0xb9e   : > { %vm8346_vm4 = vmor %vm8344_vm3, %vm8345_vm2 }
 0xb9f   : > { %v8341_v63 = vsub.f32 1.0, %v8340_v3 }
 0xba1   : > { %v8342_v18 = vmul.f32 %v9934_v46, %v8341_v63 }
 0xba3   : > { %v8343_v2 = vadd.f32 %v9934_v46, %v8342_v18 }
 0xba5   : > { %v8347_v55 = vsel %vm8346_vm4, %v9934_v46, %v8343_v2 }
 0xba6   : > { %v8352_v42 = vsel %vm8349_vm5, %v8351_v54, %v8347_v55 }
 0xba7   : > { %v8353_v11 = vmul.f32 %v9918_v60, %v8352_v42  ;;  %v8354_v62 = vmul.f32 %v9920_v33, %v8352_v42  ;;  %v8355_v53 = vmul.f32 %v9922_v36, %v8352_v42  ;;  %v8356_v12 = vmul.f32 %v9924_v23, %v8352_v42 }
 0xba8   : > { %v8357_v8 = vmul.f32 %v9926_v26, %v8352_v42  ;;  %v8358_v5 = vmul.f32 %v9928_v27, %v8352_v42  ;;  %v8359_v37 = vmul.f32 %v9930_v24, %v8352_v42  ;;  %v8360_v13 = vmul.f32 %v9932_v31, %v8352_v42 }
 0xba9   : > { %8361 = vst.msk [vmem:[%s521_s19] sm:$0xff] %vm8272_vm1, %v8353_v11 }
 0xbaa   : > { %8362 = vst.msk [vmem:[%s521_s19 + $0x8] sm:$0xff] %vm8272_vm1, %v8354_v62 }
 0xbab   : > { %8363 = vst.msk [vmem:[%s521_s19 + $0x10] sm:$0xff] %vm8272_vm1, %v8355_v53 }
 0xbac   : > { %8364 = vst.msk [vmem:[%s521_s19 + $0x18] sm:$0xff] %vm8272_vm1, %v8356_v12 }
 0xbad   : > { %8365 = vst.msk [vmem:[%s521_s19 + $0x20] sm:$0xff] %vm8272_vm1, %v8357_v8 }
 0xbae   : > { %8366 = vst.msk [vmem:[%s521_s19 + $0x28] sm:$0xff] %vm8272_vm1, %v8358_v5 }
 0xbaf   : > { %8367 = vst.msk [vmem:[%s521_s19 + $0x30] sm:$0xff] %vm8272_vm1, %v8359_v37 }
 0xbb0   : > { %8368 = vst.msk [vmem:[%s521_s19 + $0x38] sm:$0xff] %vm8272_vm1, %v8360_v13 }
 0xbb1 PF: > { %s29_s20 = sadd.s32 1, %s9975_s20  }
 0xbb2   : > { %p26_p8 = scmp.ge.s32.totalorder %s29_s20, 4  }
 0xbb4   :  { %28 = sbr.rel (!%p26_p8) target bundleno = 4 (0x4), region = 180 }
 0xbb9   :  { %8402 = vsyncpa [#allocation5], 1 }
 0xbba   :  { %8404 = vsyncpa [#allocation5 + $0x1], 1 }

</bundles_post_ra>
